<compile_context>
chip_gen: v7x
topology: tpu7x:2x2x1
jax: 0.10.0
libtpu: 0.0.40
codegen_flags: <defaults>
</compile_context>

<pallas_src>
import functools

import jax
import jax.numpy as jnp
from jax.experimental import pallas as pl
from jax.experimental.pallas import tpu as pltpu


# ----------------------------------------------------------------------------
# Fused kernel: [per-channel affine] -> zero-pad -> 3x3 conv -> ReLU -> BN stats
# ----------------------------------------------------------------------------
def _conv3x3_relu_stats_kernel(*refs, apply_affine):
    if apply_affine:
        x_ref, w_ref, scale_ref, shift_ref, y_ref, s_ref, q_ref, xp_s = refs
    else:
        x_ref, w_ref, y_ref, s_ref, q_ref, xp_s = refs
        scale_ref = shift_ref = None

    H, W, Cin = x_ref.shape
    Cout = w_ref.shape[-1]

    # Fused input epilogue: previous BatchNorm's per-channel affine (f32 math).
    xin = x_ref[...].astype(jnp.float32)
    if apply_affine:
        xin = xin * scale_ref[...] + shift_ref[...]

    # Zero-pad (padding=1) into a VMEM scratch -- never touches HBM.
    xp_s[...] = jnp.zeros_like(xp_s)
    xp_s[1:H + 1, 1:W + 1, :] = xin.astype(xp_s.dtype)

    # 3x3 conv = 9 accumulated MXU matmuls over shifted windows (bf16 in, f32 acc).
    acc = jnp.zeros((H * W, Cout), jnp.float32)
    for kh in range(3):
        for kw in range(3):
            tap = xp_s[kh:kh + H, kw:kw + W, :].reshape(H * W, Cin)
            acc = acc + jnp.dot(tap, w_ref[kh * 3 + kw],
                                preferred_element_type=jnp.float32)

    # ReLU epilogue (f32), then BatchNorm partial statistics for this batch element.
    y = jnp.maximum(acc, 0.0)
    s_ref[...] = jnp.sum(y, axis=0, keepdims=True)
    q_ref[...] = jnp.sum(y * y, axis=0, keepdims=True)
    y_ref[...] = y.reshape(H, W, Cout).astype(y_ref.dtype)


def conv3x3_relu_stats(x, w9, scale=None, shift=None):
    """y = relu(conv3x3_pad1(affine(x))), plus per-image per-channel sum / sum-sq.

    x:  (N, H, W, Cin) activation (f32 or bf16)
    w9: (9, Cin, Cout) bf16 weights (tap-major)
    scale/shift: optional (Cin,) f32 per-channel affine fused on the input
    returns: y (N,H,W,Cout) bf16, sum (N,1,Cout) f32, sumsq (N,1,Cout) f32
    """
    N, H, W, Cin = x.shape
    Cout = w9.shape[-1]
    apply_affine = scale is not None

    in_specs = [
        pl.BlockSpec((None, H, W, Cin), lambda n: (n, 0, 0, 0)),   # per-image block
        pl.BlockSpec((9, Cin, Cout), lambda n: (0, 0, 0)),          # full weights
    ]
    args = [x, w9]
    if apply_affine:
        in_specs += [pl.BlockSpec((1, 1, Cin), lambda n: (0, 0, 0)),
                     pl.BlockSpec((1, 1, Cin), lambda n: (0, 0, 0))]
        args += [scale.reshape(1, 1, Cin).astype(jnp.float32),
                 shift.reshape(1, 1, Cin).astype(jnp.float32)]

    out_shape = (
        jax.ShapeDtypeStruct((N, H, W, Cout), jnp.bfloat16),
        jax.ShapeDtypeStruct((N, 1, Cout), jnp.float32),
        jax.ShapeDtypeStruct((N, 1, Cout), jnp.float32),
    )
    out_specs = (
        pl.BlockSpec((None, H, W, Cout), lambda n: (n, 0, 0, 0)),
        pl.BlockSpec((None, 1, Cout), lambda n: (n, 0, 0)),
        pl.BlockSpec((None, 1, Cout), lambda n: (n, 0, 0)),
    )
    return pl.pallas_call(
        functools.partial(_conv3x3_relu_stats_kernel, apply_affine=apply_affine),
        grid=(N,),
        in_specs=in_specs,
        out_specs=out_specs,
        out_shape=out_shape,
        scratch_shapes=[pltpu.VMEM((H + 2, W + 2, Cin), jnp.bfloat16)],
        compiler_params=pltpu.CompilerParams(dimension_semantics=("parallel",)),
    )(*args)


# ----------------------------------------------------------------------------
# Final BatchNorm affine (only needed for the last BN, which has no next matmul)
# ----------------------------------------------------------------------------
def _affine_kernel(x_ref, s_ref, t_ref, o_ref):
    o_ref[...] = x_ref[...].astype(jnp.float32) * s_ref[...] + t_ref[...]


def channel_affine(x, scale, shift):
    N, H, W, C = x.shape
    return pl.pallas_call(
        _affine_kernel,
        grid=(N,),
        in_specs=[pl.BlockSpec((None, H, W, C), lambda n: (n, 0, 0, 0)),
                  pl.BlockSpec((1, 1, C), lambda n: (0, 0, 0)),
                  pl.BlockSpec((1, 1, C), lambda n: (0, 0, 0))],
        out_specs=pl.BlockSpec((None, H, W, C), lambda n: (n, 0, 0, 0)),
        out_shape=jax.ShapeDtypeStruct((N, H, W, C), jnp.float32),
        compiler_params=pltpu.CompilerParams(dimension_semantics=("parallel",)),
    )(x, scale.reshape(1, 1, C).astype(jnp.float32),
      shift.reshape(1, 1, C).astype(jnp.float32))


# ----------------------------------------------------------------------------
# DoubleConv forward (wrapper glue: tiny per-channel math only, no HBM passes)
# ----------------------------------------------------------------------------
def _bn_scale_shift(ssum, ssq, count, gamma, beta, eps):
    total = jnp.sum(ssum, axis=0)[0]                        # (C,)
    totsq = jnp.sum(ssq, axis=0)[0]                         # (C,)
    mean = total / count
    var = jnp.maximum(totsq / count - mean * mean, 0.0)     # biased var (PyTorch norm)
    scale = gamma.astype(jnp.float32) / jnp.sqrt(var + eps)
    shift = beta.astype(jnp.float32) - mean * scale
    return scale, shift


def _prep_weight(w):  # (3,3,Cin,Cout) -> (9,Cin,Cout) bf16
    kh, kw, cin, cout = w.shape
    return w.reshape(kh * kw, cin, cout).astype(jnp.bfloat16)


def double_conv_forward(x_nchw, params, eps=1e-5):
    """Conv3x3 -> ReLU -> BatchNorm2d -> Conv3x3 -> ReLU -> BatchNorm2d (NCHW in/out)."""
    x = jnp.transpose(x_nchw, (0, 2, 3, 1)).astype(jnp.float32)   # NCHW -> NHWC
    N, H, W, _ = x.shape
    count = N * H * W
    w1 = _prep_weight(params["w1"])
    w2 = _prep_weight(params["w2"])

    # Conv1 + ReLU; BN1 statistics gathered in the same kernel pass.
    y1, s1, q1 = conv3x3_relu_stats(x, w1)
    scale1, shift1 = _bn_scale_shift(s1, q1, count, params["g1"], params["b1"], eps)

    # BN1 affine folded into Conv2's input epilogue; Conv2 + ReLU + BN2 stats.
    y2, s2, q2 = conv3x3_relu_stats(y1, w2, scale1, shift1)
    scale2, shift2 = _bn_scale_shift(s2, q2, count, params["g2"], params["b2"], eps)

    # Final BN2 affine.
    out = channel_affine(y2, scale2, shift2)
    # TODO(synk): BatchNorm running_mean/running_var buffer updates (training-mode
    # side effects) are not modeled; forward uses batch statistics.
    return jnp.transpose(out, (0, 3, 1, 2))                       # NHWC -> NCHW


# ----------------------------------------------------------------------------
# Pure-JAX f32 reference (for correctness check)
# ----------------------------------------------------------------------------
def double_conv_reference(x_nchw, params, eps=1e-5):
    x = jnp.transpose(x_nchw, (0, 2, 3, 1)).astype(jnp.float32)

    def block(x, w, g, b):
        y = jax.lax.conv_general_dilated(
            x, w, window_strides=(1, 1), padding="SAME",
            dimension_numbers=("NHWC", "HWIO", "NHWC"))
        y = jnp.maximum(y, 0.0)
        mean = jnp.mean(y, axis=(0, 1, 2))
        var = jnp.mean((y - mean) ** 2, axis=(0, 1, 2))
        return (y - mean) / jnp.sqrt(var + eps) * g + b

    y = block(x, params["w1"], params["g1"], params["b1"])
    y = block(y, params["w2"], params["g2"], params["b2"])
    return jnp.transpose(y, (0, 3, 1, 2))


# ----------------------------------------------------------------------------
if __name__ == "__main__":
    key = jax.random.PRNGKey(0)
    kx, kw1, kw2, kg1, kb1, kg2, kb2 = jax.random.split(key, 7)

    N, Cin, H, W = 2, 4, 16, 16
    Cout = 32

    x = jax.random.normal(kx, (N, Cin, H, W), jnp.float32)   # NCHW, like PyTorch
    params = {
        "w1": jax.random.normal(kw1, (3, 3, Cin, Cout), jnp.float32) * (2.0 / (9 * Cin)) ** 0.5,
        "g1": 1.0 + 0.1 * jax.random.normal(kg1, (Cout,), jnp.float32),
        "b1": 0.1 * jax.random.normal(kb1, (Cout,), jnp.float32),
        "w2": jax.random.normal(kw2, (3, 3, Cout, Cout), jnp.float32) * (2.0 / (9 * Cout)) ** 0.5,
        "g2": 1.0 + 0.1 * jax.random.normal(kg2, (Cout,), jnp.float32),
        "b2": 0.1 * jax.random.normal(kb2, (Cout,), jnp.float32),
    }

    fwd = jax.jit(double_conv_forward)
    y = fwd(x, params)
    jax.block_until_ready(y)
    assert y.shape == (N, Cout, H, W), y.shape

    y_ref = jax.jit(double_conv_reference)(x, params)
    jax.block_until_ready(y_ref)
    max_err = float(jnp.max(jnp.abs(y - y_ref)))
    assert max_err < 0.25, f"max abs error vs f32 reference too large: {max_err}"
    print("KERNEL_OK")
</pallas_src>

<mosaic_0001>
module attributes {stable_mosaic.version = 11 : i64} {
  func.func @_conv3x3_relu_stats_kernel(%arg0: i32, %arg1: memref<1x16x16x4xf32, #tpu.memory_space<vmem>>, %arg2: memref<9x4x32xbf16, #tpu.memory_space<vmem>>, %arg3: memref<1x16x16x32xbf16, #tpu.memory_space<vmem>>, %arg4: memref<1x1x32xf32, #tpu.memory_space<vmem>>, %arg5: memref<1x1x32xf32, #tpu.memory_space<vmem>>, %arg6: memref<18x18x4xbf16, #tpu.memory_space<vmem>>) attributes {dimension_semantics = [#tpu.dimension_semantics<parallel>], iteration_bounds = array<i64: 2>, scalar_prefetch = 0 : i64, scratch_operands = 1 : i64, tpu.core_type = #tpu.core_type<tc>, window_params = [{transform_indices = @transform_0, window_bounds = array<i64: 1, 16, 16, 4>}, {pipeline_mode = #tpu.pipeline_mode<synchronous>, transform_indices = @transform_1, window_bounds = array<i64: 9, 4, 32>}, {transform_indices = @transform_2, window_bounds = array<i64: 1, 16, 16, 32>}, {transform_indices = @transform_3, window_bounds = array<i64: 1, 1, 32>}, {transform_indices = @transform_4, window_bounds = array<i64: 1, 1, 32>}]} {
    %c0 = arith.constant 0 : index
    %c0_0 = arith.constant 0 : index
    %c0_1 = arith.constant 0 : index
    %c0_2 = arith.constant 0 : index
    %0 = vector.load %arg1[%c0, %c0_0, %c0_1, %c0_2] : memref<1x16x16x4xf32, #tpu.memory_space<vmem>>, vector<1x16x16x4xf32>
    %1 = vector.shape_cast %0 : vector<1x16x16x4xf32> to vector<16x16x4xf32>
    %cst = arith.constant 0.000000e+00 : bf16
    %2 = vector.broadcast %cst : bf16 to vector<18x18x4xbf16>
    %c0_3 = arith.constant 0 : index
    %c0_4 = arith.constant 0 : index
    %c0_5 = arith.constant 0 : index
    %3 = vector.load %arg6[%c0_3, %c0_4, %c0_5] : memref<18x18x4xbf16, #tpu.memory_space<vmem>>, vector<18x18x4xbf16>
    tpu.vector_store %arg6[%c0_3, %c0_4, %c0_5], %2 {strides = array<i32>} : memref<18x18x4xbf16, #tpu.memory_space<vmem>>, vector<18x18x4xbf16>,
    %4 = arith.truncf %1 : vector<16x16x4xf32> to vector<16x16x4xbf16>
    %c1 = arith.constant 1 : index
    %c1_6 = arith.constant 1 : index
    %c0_7 = arith.constant 0 : index
    %5 = vector.load %arg6[%c1, %c1_6, %c0_7] : memref<18x18x4xbf16, #tpu.memory_space<vmem>>, vector<16x16x4xbf16>
    tpu.vector_store %arg6[%c1, %c1_6, %c0_7], %4 {strides = array<i32>} : memref<18x18x4xbf16, #tpu.memory_space<vmem>>, vector<16x16x4xbf16>,
    %cst_8 = arith.constant 0.000000e+00 : f32
    %6 = vector.broadcast %cst_8 : f32 to vector<256x32xf32>
    %c0_9 = arith.constant 0 : index
    %c0_10 = arith.constant 0 : index
    %c0_11 = arith.constant 0 : index
    %7 = vector.load %arg6[%c0_9, %c0_10, %c0_11] : memref<18x18x4xbf16, #tpu.memory_space<vmem>>, vector<16x16x4xbf16>
    %8 = vector.shape_cast %7 : vector<16x16x4xbf16> to vector<256x4xbf16>
    %c0_12 = arith.constant 0 : index
    %c0_13 = arith.constant 0 : index
    %c0_14 = arith.constant 0 : index
    %9 = vector.load %arg2[%c0_12, %c0_13, %c0_14] : memref<9x4x32xbf16, #tpu.memory_space<vmem>>, vector<1x4x32xbf16>
    %10 = vector.shape_cast %9 : vector<1x4x32xbf16> to vector<4x32xbf16>
    %cst_15 = arith.constant dense<0.000000e+00> : vector<256x32xf32>
    %11 = tpu.matmul %8, %10, %cst_15 {dimension_numbers = #tpu.dot_dimension_numbers<[1], [0], [0], [1], [0, 0, 1, 1], [], []>} : vector<256x4xbf16>, vector<4x32xbf16>, vector<256x32xf32> -> vector<256x32xf32>
    %12 = arith.addf %6, %11 : vector<256x32xf32>
    %c0_16 = arith.constant 0 : index
    %c1_17 = arith.constant 1 : index
    %c0_18 = arith.constant 0 : index
    %13 = vector.load %arg6[%c0_16, %c1_17, %c0_18] : memref<18x18x4xbf16, #tpu.memory_space<vmem>>, vector<16x16x4xbf16>
    %14 = vector.shape_cast %13 : vector<16x16x4xbf16> to vector<256x4xbf16>
    %c1_19 = arith.constant 1 : index
    %c0_20 = arith.constant 0 : index
    %c0_21 = arith.constant 0 : index
    %15 = vector.load %arg2[%c1_19, %c0_20, %c0_21] : memref<9x4x32xbf16, #tpu.memory_space<vmem>>, vector<1x4x32xbf16>
    %16 = vector.shape_cast %15 : vector<1x4x32xbf16> to vector<4x32xbf16>
    %cst_22 = arith.constant dense<0.000000e+00> : vector<256x32xf32>
    %17 = tpu.matmul %14, %16, %cst_22 {dimension_numbers = #tpu.dot_dimension_numbers<[1], [0], [0], [1], [0, 0, 1, 1], [], []>} : vector<256x4xbf16>, vector<4x32xbf16>, vector<256x32xf32> -> vector<256x32xf32>
    %18 = arith.addf %12, %17 : vector<256x32xf32>
    %c0_23 = arith.constant 0 : index
    %c2 = arith.constant 2 : index
    %c0_24 = arith.constant 0 : index
    %19 = vector.load %arg6[%c0_23, %c2, %c0_24] : memref<18x18x4xbf16, #tpu.memory_space<vmem>>, vector<16x16x4xbf16>
    %20 = vector.shape_cast %19 : vector<16x16x4xbf16> to vector<256x4xbf16>
    %c2_25 = arith.constant 2 : index
    %c0_26 = arith.constant 0 : index
    %c0_27 = arith.constant 0 : index
    %21 = vector.load %arg2[%c2_25, %c0_26, %c0_27] : memref<9x4x32xbf16, #tpu.memory_space<vmem>>, vector<1x4x32xbf16>
    %22 = vector.shape_cast %21 : vector<1x4x32xbf16> to vector<4x32xbf16>
    %cst_28 = arith.constant dense<0.000000e+00> : vector<256x32xf32>
    %23 = tpu.matmul %20, %22, %cst_28 {dimension_numbers = #tpu.dot_dimension_numbers<[1], [0], [0], [1], [0, 0, 1, 1], [], []>} : vector<256x4xbf16>, vector<4x32xbf16>, vector<256x32xf32> -> vector<256x32xf32>
    %24 = arith.addf %18, %23 : vector<256x32xf32>
    %c1_29 = arith.constant 1 : index
    %c0_30 = arith.constant 0 : index
    %c0_31 = arith.constant 0 : index
    %25 = vector.load %arg6[%c1_29, %c0_30, %c0_31] : memref<18x18x4xbf16, #tpu.memory_space<vmem>>, vector<16x16x4xbf16>
    %26 = vector.shape_cast %25 : vector<16x16x4xbf16> to vector<256x4xbf16>
    %c3 = arith.constant 3 : index
    %c0_32 = arith.constant 0 : index
    %c0_33 = arith.constant 0 : index
    %27 = vector.load %arg2[%c3, %c0_32, %c0_33] : memref<9x4x32xbf16, #tpu.memory_space<vmem>>, vector<1x4x32xbf16>
    %28 = vector.shape_cast %27 : vector<1x4x32xbf16> to vector<4x32xbf16>
    %cst_34 = arith.constant dense<0.000000e+00> : vector<256x32xf32>
    %29 = tpu.matmul %26, %28, %cst_34 {dimension_numbers = #tpu.dot_dimension_numbers<[1], [0], [0], [1], [0, 0, 1, 1], [], []>} : vector<256x4xbf16>, vector<4x32xbf16>, vector<256x32xf32> -> vector<256x32xf32>
    %30 = arith.addf %24, %29 : vector<256x32xf32>
    %c1_35 = arith.constant 1 : index
    %c1_36 = arith.constant 1 : index
    %c0_37 = arith.constant 0 : index
    %31 = vector.load %arg6[%c1_35, %c1_36, %c0_37] : memref<18x18x4xbf16, #tpu.memory_space<vmem>>, vector<16x16x4xbf16>
    %32 = vector.shape_cast %31 : vector<16x16x4xbf16> to vector<256x4xbf16>
    %c4 = arith.constant 4 : index
    %c0_38 = arith.constant 0 : index
    %c0_39 = arith.constant 0 : index
    %33 = vector.load %arg2[%c4, %c0_38, %c0_39] : memref<9x4x32xbf16, #tpu.memory_space<vmem>>, vector<1x4x32xbf16>
    %34 = vector.shape_cast %33 : vector<1x4x32xbf16> to vector<4x32xbf16>
    %cst_40 = arith.constant dense<0.000000e+00> : vector<256x32xf32>
    %35 = tpu.matmul %32, %34, %cst_40 {dimension_numbers = #tpu.dot_dimension_numbers<[1], [0], [0], [1], [0, 0, 1, 1], [], []>} : vector<256x4xbf16>, vector<4x32xbf16>, vector<256x32xf32> -> vector<256x32xf32>
    %36 = arith.addf %30, %35 : vector<256x32xf32>
    %c1_41 = arith.constant 1 : index
    %c2_42 = arith.constant 2 : index
    %c0_43 = arith.constant 0 : index
    %37 = vector.load %arg6[%c1_41, %c2_42, %c0_43] : memref<18x18x4xbf16, #tpu.memory_space<vmem>>, vector<16x16x4xbf16>
    %38 = vector.shape_cast %37 : vector<16x16x4xbf16> to vector<256x4xbf16>
    %c5 = arith.constant 5 : index
    %c0_44 = arith.constant 0 : index
    %c0_45 = arith.constant 0 : index
    %39 = vector.load %arg2[%c5, %c0_44, %c0_45] : memref<9x4x32xbf16, #tpu.memory_space<vmem>>, vector<1x4x32xbf16>
    %40 = vector.shape_cast %39 : vector<1x4x32xbf16> to vector<4x32xbf16>
    %cst_46 = arith.constant dense<0.000000e+00> : vector<256x32xf32>
    %41 = tpu.matmul %38, %40, %cst_46 {dimension_numbers = #tpu.dot_dimension_numbers<[1], [0], [0], [1], [0, 0, 1, 1], [], []>} : vector<256x4xbf16>, vector<4x32xbf16>, vector<256x32xf32> -> vector<256x32xf32>
    %42 = arith.addf %36, %41 : vector<256x32xf32>
    %c2_47 = arith.constant 2 : index
    %c0_48 = arith.constant 0 : index
    %c0_49 = arith.constant 0 : index
    %43 = vector.load %arg6[%c2_47, %c0_48, %c0_49] : memref<18x18x4xbf16, #tpu.memory_space<vmem>>, vector<16x16x4xbf16>
    %44 = vector.shape_cast %43 : vector<16x16x4xbf16> to vector<256x4xbf16>
    %c6 = arith.constant 6 : index
    %c0_50 = arith.constant 0 : index
    %c0_51 = arith.constant 0 : index
    %45 = vector.load %arg2[%c6, %c0_50, %c0_51] : memref<9x4x32xbf16, #tpu.memory_space<vmem>>, vector<1x4x32xbf16>
    %46 = vector.shape_cast %45 : vector<1x4x32xbf16> to vector<4x32xbf16>
    %cst_52 = arith.constant dense<0.000000e+00> : vector<256x32xf32>
    %47 = tpu.matmul %44, %46, %cst_52 {dimension_numbers = #tpu.dot_dimension_numbers<[1], [0], [0], [1], [0, 0, 1, 1], [], []>} : vector<256x4xbf16>, vector<4x32xbf16>, vector<256x32xf32> -> vector<256x32xf32>
    %48 = arith.addf %42, %47 : vector<256x32xf32>
    %c2_53 = arith.constant 2 : index
    %c1_54 = arith.constant 1 : index
    %c0_55 = arith.constant 0 : index
    %49 = vector.load %arg6[%c2_53, %c1_54, %c0_55] : memref<18x18x4xbf16, #tpu.memory_space<vmem>>, vector<16x16x4xbf16>
    %50 = vector.shape_cast %49 : vector<16x16x4xbf16> to vector<256x4xbf16>
    %c7 = arith.constant 7 : index
    %c0_56 = arith.constant 0 : index
    %c0_57 = arith.constant 0 : index
    %51 = vector.load %arg2[%c7, %c0_56, %c0_57] : memref<9x4x32xbf16, #tpu.memory_space<vmem>>, vector<1x4x32xbf16>
    %52 = vector.shape_cast %51 : vector<1x4x32xbf16> to vector<4x32xbf16>
    %cst_58 = arith.constant dense<0.000000e+00> : vector<256x32xf32>
    %53 = tpu.matmul %50, %52, %cst_58 {dimension_numbers = #tpu.dot_dimension_numbers<[1], [0], [0], [1], [0, 0, 1, 1], [], []>} : vector<256x4xbf16>, vector<4x32xbf16>, vector<256x32xf32> -> vector<256x32xf32>
    %54 = arith.addf %48, %53 : vector<256x32xf32>
    %c2_59 = arith.constant 2 : index
    %c2_60 = arith.constant 2 : index
    %c0_61 = arith.constant 0 : index
    %55 = vector.load %arg6[%c2_59, %c2_60, %c0_61] : memref<18x18x4xbf16, #tpu.memory_space<vmem>>, vector<16x16x4xbf16>
    %56 = vector.shape_cast %55 : vector<16x16x4xbf16> to vector<256x4xbf16>
    %c8 = arith.constant 8 : index
    %c0_62 = arith.constant 0 : index
    %c0_63 = arith.constant 0 : index
    %57 = vector.load %arg2[%c8, %c0_62, %c0_63] : memref<9x4x32xbf16, #tpu.memory_space<vmem>>, vector<1x4x32xbf16>
    %58 = vector.shape_cast %57 : vector<1x4x32xbf16> to vector<4x32xbf16>
    %cst_64 = arith.constant dense<0.000000e+00> : vector<256x32xf32>
    %59 = tpu.matmul %56, %58, %cst_64 {dimension_numbers = #tpu.dot_dimension_numbers<[1], [0], [0], [1], [0, 0, 1, 1], [], []>} : vector<256x4xbf16>, vector<4x32xbf16>, vector<256x32xf32> -> vector<256x32xf32>
    %60 = arith.addf %54, %59 : vector<256x32xf32>
    %cst_65 = arith.constant 0.000000e+00 : f32
    %61 = vector.broadcast %cst_65 : f32 to vector<256x32xf32>
    %62 = arith.maximumf %60, %61 : vector<256x32xf32>
    %cst_66 = arith.constant dense<0.000000e+00> : vector<32xf32>
    %63 = vector.multi_reduction <add>, %62, %cst_66 [0] : vector<256x32xf32> to vector<32xf32>
    %64 = vector.shape_cast %63 : vector<32xf32> to vector<1x32xf32>
    %c0_67 = arith.constant 0 : index
    %c0_68 = arith.constant 0 : index
    %c0_69 = arith.constant 0 : index
    %65 = vector.load %arg4[%c0_67, %c0_68, %c0_69] : memref<1x1x32xf32, #tpu.memory_space<vmem>>, vector<1x1x32xf32>
    %66 = vector.shape_cast %65 : vector<1x1x32xf32> to vector<1x32xf32>
    %67 = vector.shape_cast %64 : vector<1x32xf32> to vector<1x1x32xf32>
    tpu.vector_store %arg4[%c0_67, %c0_68, %c0_69], %67 {strides = array<i32>} : memref<1x1x32xf32, #tpu.memory_space<vmem>>, vector<1x1x32xf32>,
    %68 = arith.mulf %62, %62 : vector<256x32xf32>
    %cst_70 = arith.constant dense<0.000000e+00> : vector<32xf32>
    %69 = vector.multi_reduction <add>, %68, %cst_70 [0] : vector<256x32xf32> to vector<32xf32>
    %70 = vector.shape_cast %69 : vector<32xf32> to vector<1x32xf32>
    %c0_71 = arith.constant 0 : index
    %c0_72 = arith.constant 0 : index
    %c0_73 = arith.constant 0 : index
    %71 = vector.load %arg5[%c0_71, %c0_72, %c0_73] : memref<1x1x32xf32, #tpu.memory_space<vmem>>, vector<1x1x32xf32>
    %72 = vector.shape_cast %71 : vector<1x1x32xf32> to vector<1x32xf32>
    %73 = vector.shape_cast %70 : vector<1x32xf32> to vector<1x1x32xf32>
    tpu.vector_store %arg5[%c0_71, %c0_72, %c0_73], %73 {strides = array<i32>} : memref<1x1x32xf32, #tpu.memory_space<vmem>>, vector<1x1x32xf32>,
    %74 = vector.shape_cast %62 : vector<256x32xf32> to vector<16x16x32xf32>
    %75 = arith.truncf %74 : vector<16x16x32xf32> to vector<16x16x32xbf16>
    %c0_74 = arith.constant 0 : index
    %c0_75 = arith.constant 0 : index
    %c0_76 = arith.constant 0 : index
    %c0_77 = arith.constant 0 : index
    %76 = vector.load %arg3[%c0_74, %c0_75, %c0_76, %c0_77] : memref<1x16x16x32xbf16, #tpu.memory_space<vmem>>, vector<1x16x16x32xbf16>
    %77 = vector.shape_cast %76 : vector<1x16x16x32xbf16> to vector<16x16x32xbf16>
    %78 = vector.shape_cast %75 : vector<16x16x32xbf16> to vector<1x16x16x32xbf16>
    tpu.vector_store %arg3[%c0_74, %c0_75, %c0_76, %c0_77], %78 {strides = array<i32>} : memref<1x16x16x32xbf16, #tpu.memory_space<vmem>>, vector<1x16x16x32xbf16>,
    return
  }
  func.func @transform_0(%arg0: i32) -> (i32, i32, i32, i32) {
    %c0_i32 = arith.constant 0 : i32
    %c0_i32_0 = arith.constant 0 : i32
    %c0_i32_1 = arith.constant 0 : i32
    %c0_i32_2 = arith.constant 0 : i32
    return %arg0, %c0_i32, %c0_i32_0, %c0_i32_1 : i32, i32, i32, i32
  }
  func.func @transform_1(%arg0: i32) -> (i32, i32, i32) {
    %c0_i32 = arith.constant 0 : i32
    %c0_i32_0 = arith.constant 0 : i32
    %c0_i32_1 = arith.constant 0 : i32
    %c0_i32_2 = arith.constant 0 : i32
    return %c0_i32, %c0_i32_0, %c0_i32_1 : i32, i32, i32
  }
  func.func @transform_2(%arg0: i32) -> (i32, i32, i32, i32) {
    %c0_i32 = arith.constant 0 : i32
    %c0_i32_0 = arith.constant 0 : i32
    %c0_i32_1 = arith.constant 0 : i32
    %c0_i32_2 = arith.constant 0 : i32
    return %arg0, %c0_i32, %c0_i32_0, %c0_i32_1 : i32, i32, i32, i32
  }
  func.func @transform_3(%arg0: i32) -> (i32, i32, i32) {
    %c0_i32 = arith.constant 0 : i32
    %c0_i32_0 = arith.constant 0 : i32
    %c0_i32_1 = arith.constant 0 : i32
    return %arg0, %c0_i32, %c0_i32_0 : i32, i32, i32
  }
  func.func @transform_4(%arg0: i32) -> (i32, i32, i32) {
    %c0_i32 = arith.constant 0 : i32
    %c0_i32_0 = arith.constant 0 : i32
    %c0_i32_1 = arith.constant 0 : i32
    return %arg0, %c0_i32, %c0_i32_0 : i32, i32, i32
  }
}

module attributes {stable_mosaic.version = 11 : i64} {
  func.func @_affine_kernel(%arg0: i32, %arg1: memref<1x16x16x32xbf16, #tpu.memory_space<vmem>>, %arg2: memref<1x1x32xf32, #tpu.memory_space<vmem>>, %arg3: memref<1x1x32xf32, #tpu.memory_space<vmem>>, %arg4: memref<1x16x16x32xf32, #tpu.memory_space<vmem>>) attributes {dimension_semantics = [#tpu.dimension_semantics<parallel>], iteration_bounds = array<i64: 2>, scalar_prefetch = 0 : i64, scratch_operands = 0 : i64, tpu.core_type = #tpu.core_type<tc>, window_params = [{transform_indices = @transform_0, window_bounds = array<i64: 1, 16, 16, 32>}, {pipeline_mode = #tpu.pipeline_mode<synchronous>, transform_indices = @transform_1, window_bounds = array<i64: 1, 1, 32>}, {pipeline_mode = #tpu.pipeline_mode<synchronous>, transform_indices = @transform_2, window_bounds = array<i64: 1, 1, 32>}, {transform_indices = @transform_3, window_bounds = array<i64: 1, 16, 16, 32>}]} {
    %c0 = arith.constant 0 : index
    %c0_0 = arith.constant 0 : index
    %c0_1 = arith.constant 0 : index
    %c0_2 = arith.constant 0 : index
    %0 = vector.load %arg1[%c0, %c0_0, %c0_1, %c0_2] : memref<1x16x16x32xbf16, #tpu.memory_space<vmem>>, vector<1x16x16x32xbf16>
    %1 = vector.shape_cast %0 : vector<1x16x16x32xbf16> to vector<16x16x32xbf16>
    %2 = arith.extf %1 : vector<16x16x32xbf16> to vector<16x16x32xf32>
    %c0_3 = arith.constant 0 : index
    %c0_4 = arith.constant 0 : index
    %c0_5 = arith.constant 0 : index
    %3 = vector.load %arg2[%c0_3, %c0_4, %c0_5] : memref<1x1x32xf32, #tpu.memory_space<vmem>>, vector<1x1x32xf32>
    %4 = vector.broadcast %3 : vector<1x1x32xf32> to vector<16x16x32xf32>
    %5 = arith.mulf %2, %4 : vector<16x16x32xf32>
    %c0_6 = arith.constant 0 : index
    %c0_7 = arith.constant 0 : index
    %c0_8 = arith.constant 0 : index
    %6 = vector.load %arg3[%c0_6, %c0_7, %c0_8] : memref<1x1x32xf32, #tpu.memory_space<vmem>>, vector<1x1x32xf32>
    %7 = vector.broadcast %6 : vector<1x1x32xf32> to vector<16x16x32xf32>
    %8 = arith.addf %5, %7 : vector<16x16x32xf32>
    %c0_9 = arith.constant 0 : index
    %c0_10 = arith.constant 0 : index
    %c0_11 = arith.constant 0 : index
    %c0_12 = arith.constant 0 : index
    %9 = vector.load %arg4[%c0_9, %c0_10, %c0_11, %c0_12] : memref<1x16x16x32xf32, #tpu.memory_space<vmem>>, vector<1x16x16x32xf32>
    %10 = vector.shape_cast %9 : vector<1x16x16x32xf32> to vector<16x16x32xf32>
    %11 = vector.shape_cast %8 : vector<16x16x32xf32> to vector<1x16x16x32xf32>
    tpu.vector_store %arg4[%c0_9, %c0_10, %c0_11, %c0_12], %11 {strides = array<i32>} : memref<1x16x16x32xf32, #tpu.memory_space<vmem>>, vector<1x16x16x32xf32>,
    return
  }
  func.func @transform_0(%arg0: i32) -> (i32, i32, i32, i32) {
    %c0_i32 = arith.constant 0 : i32
    %c0_i32_0 = arith.constant 0 : i32
    %c0_i32_1 = arith.constant 0 : i32
    %c0_i32_2 = arith.constant 0 : i32
    return %arg0, %c0_i32, %c0_i32_0, %c0_i32_1 : i32, i32, i32, i32
  }
  func.func @transform_1(%arg0: i32) -> (i32, i32, i32) {
    %c0_i32 = arith.constant 0 : i32
    %c0_i32_0 = arith.constant 0 : i32
    %c0_i32_1 = arith.constant 0 : i32
    %c0_i32_2 = arith.constant 0 : i32
    return %c0_i32, %c0_i32_0, %c0_i32_1 : i32, i32, i32
  }
  func.func @transform_2(%arg0: i32) -> (i32, i32, i32) {
    %c0_i32 = arith.constant 0 : i32
    %c0_i32_0 = arith.constant 0 : i32
    %c0_i32_1 = arith.constant 0 : i32
    %c0_i32_2 = arith.constant 0 : i32
    return %c0_i32, %c0_i32_0, %c0_i32_1 : i32, i32, i32
  }
  func.func @transform_3(%arg0: i32) -> (i32, i32, i32, i32) {
    %c0_i32 = arith.constant 0 : i32
    %c0_i32_0 = arith.constant 0 : i32
    %c0_i32_1 = arith.constant 0 : i32
    %c0_i32_2 = arith.constant 0 : i32
    return %arg0, %c0_i32, %c0_i32_0, %c0_i32_1 : i32, i32, i32, i32
  }
}

module attributes {stable_mosaic.version = 11 : i64} {
  func.func @_conv3x3_relu_stats_kernel(%arg0: i32, %arg1: memref<1x16x16x32xbf16, #tpu.memory_space<vmem>>, %arg2: memref<9x32x32xbf16, #tpu.memory_space<vmem>>, %arg3: memref<1x1x32xf32, #tpu.memory_space<vmem>>, %arg4: memref<1x1x32xf32, #tpu.memory_space<vmem>>, %arg5: memref<1x16x16x32xbf16, #tpu.memory_space<vmem>>, %arg6: memref<1x1x32xf32, #tpu.memory_space<vmem>>, %arg7: memref<1x1x32xf32, #tpu.memory_space<vmem>>, %arg8: memref<18x18x32xbf16, #tpu.memory_space<vmem>>) attributes {dimension_semantics = [#tpu.dimension_semantics<parallel>], iteration_bounds = array<i64: 2>, scalar_prefetch = 0 : i64, scratch_operands = 1 : i64, tpu.core_type = #tpu.core_type<tc>, window_params = [{transform_indices = @transform_0, window_bounds = array<i64: 1, 16, 16, 32>}, {pipeline_mode = #tpu.pipeline_mode<synchronous>, transform_indices = @transform_1, window_bounds = array<i64: 9, 32, 32>}, {pipeline_mode = #tpu.pipeline_mode<synchronous>, transform_indices = @transform_2, window_bounds = array<i64: 1, 1, 32>}, {pipeline_mode = #tpu.pipeline_mode<synchronous>, transform_indices = @transform_3, window_bounds = array<i64: 1, 1, 32>}, {transform_indices = @transform_4, window_bounds = array<i64: 1, 16, 16, 32>}, {transform_indices = @transform_5, window_bounds = array<i64: 1, 1, 32>}, {transform_indices = @transform_6, window_bounds = array<i64: 1, 1, 32>}]} {
    %c0 = arith.constant 0 : index
    %c0_0 = arith.constant 0 : index
    %c0_1 = arith.constant 0 : index
    %c0_2 = arith.constant 0 : index
    %0 = vector.load %arg1[%c0, %c0_0, %c0_1, %c0_2] : memref<1x16x16x32xbf16, #tpu.memory_space<vmem>>, vector<1x16x16x32xbf16>
    %1 = vector.shape_cast %0 : vector<1x16x16x32xbf16> to vector<16x16x32xbf16>
    %2 = arith.extf %1 : vector<16x16x32xbf16> to vector<16x16x32xf32>
    %c0_3 = arith.constant 0 : index
    %c0_4 = arith.constant 0 : index
    %c0_5 = arith.constant 0 : index
    %3 = vector.load %arg3[%c0_3, %c0_4, %c0_5] : memref<1x1x32xf32, #tpu.memory_space<vmem>>, vector<1x1x32xf32>
    %4 = vector.broadcast %3 : vector<1x1x32xf32> to vector<16x16x32xf32>
    %5 = arith.mulf %2, %4 : vector<16x16x32xf32>
    %c0_6 = arith.constant 0 : index
    %c0_7 = arith.constant 0 : index
    %c0_8 = arith.constant 0 : index
    %6 = vector.load %arg4[%c0_6, %c0_7, %c0_8] : memref<1x1x32xf32, #tpu.memory_space<vmem>>, vector<1x1x32xf32>
    %7 = vector.broadcast %6 : vector<1x1x32xf32> to vector<16x16x32xf32>
    %8 = arith.addf %5, %7 : vector<16x16x32xf32>
    %cst = arith.constant 0.000000e+00 : bf16
    %9 = vector.broadcast %cst : bf16 to vector<18x18x32xbf16>
    %c0_9 = arith.constant 0 : index
    %c0_10 = arith.constant 0 : index
    %c0_11 = arith.constant 0 : index
    %10 = vector.load %arg8[%c0_9, %c0_10, %c0_11] : memref<18x18x32xbf16, #tpu.memory_space<vmem>>, vector<18x18x32xbf16>
    tpu.vector_store %arg8[%c0_9, %c0_10, %c0_11], %9 {strides = array<i32>} : memref<18x18x32xbf16, #tpu.memory_space<vmem>>, vector<18x18x32xbf16>,
    %11 = arith.truncf %8 : vector<16x16x32xf32> to vector<16x16x32xbf16>
    %c1 = arith.constant 1 : index
    %c1_12 = arith.constant 1 : index
    %c0_13 = arith.constant 0 : index
    %12 = vector.load %arg8[%c1, %c1_12, %c0_13] : memref<18x18x32xbf16, #tpu.memory_space<vmem>>, vector<16x16x32xbf16>
    tpu.vector_store %arg8[%c1, %c1_12, %c0_13], %11 {strides = array<i32>} : memref<18x18x32xbf16, #tpu.memory_space<vmem>>, vector<16x16x32xbf16>,
    %cst_14 = arith.constant 0.000000e+00 : f32
    %13 = vector.broadcast %cst_14 : f32 to vector<256x32xf32>
    %c0_15 = arith.constant 0 : index
    %c0_16 = arith.constant 0 : index
    %c0_17 = arith.constant 0 : index
    %14 = vector.load %arg8[%c0_15, %c0_16, %c0_17] : memref<18x18x32xbf16, #tpu.memory_space<vmem>>, vector<16x16x32xbf16>
    %15 = vector.shape_cast %14 : vector<16x16x32xbf16> to vector<256x32xbf16>
    %c0_18 = arith.constant 0 : index
    %c0_19 = arith.constant 0 : index
    %c0_20 = arith.constant 0 : index
    %16 = vector.load %arg2[%c0_18, %c0_19, %c0_20] : memref<9x32x32xbf16, #tpu.memory_space<vmem>>, vector<1x32x32xbf16>
    %17 = vector.shape_cast %16 : vector<1x32x32xbf16> to vector<32x32xbf16>
    %cst_21 = arith.constant dense<0.000000e+00> : vector<256x32xf32>
    %18 = tpu.matmul %15, %17, %cst_21 {dimension_numbers = #tpu.dot_dimension_numbers<[1], [0], [0], [1], [0, 0, 1, 1], [], []>} : vector<256x32xbf16>, vector<32x32xbf16>, vector<256x32xf32> -> vector<256x32xf32>
    %19 = arith.addf %13, %18 : vector<256x32xf32>
    %c0_22 = arith.constant 0 : index
    %c1_23 = arith.constant 1 : index
    %c0_24 = arith.constant 0 : index
    %20 = vector.load %arg8[%c0_22, %c1_23, %c0_24] : memref<18x18x32xbf16, #tpu.memory_space<vmem>>, vector<16x16x32xbf16>
    %21 = vector.shape_cast %20 : vector<16x16x32xbf16> to vector<256x32xbf16>
    %c1_25 = arith.constant 1 : index
    %c0_26 = arith.constant 0 : index
    %c0_27 = arith.constant 0 : index
    %22 = vector.load %arg2[%c1_25, %c0_26, %c0_27] : memref<9x32x32xbf16, #tpu.memory_space<vmem>>, vector<1x32x32xbf16>
    %23 = vector.shape_cast %22 : vector<1x32x32xbf16> to vector<32x32xbf16>
    %cst_28 = arith.constant dense<0.000000e+00> : vector<256x32xf32>
    %24 = tpu.matmul %21, %23, %cst_28 {dimension_numbers = #tpu.dot_dimension_numbers<[1], [0], [0], [1], [0, 0, 1, 1], [], []>} : vector<256x32xbf16>, vector<32x32xbf16>, vector<256x32xf32> -> vector<256x32xf32>
    %25 = arith.addf %19, %24 : vector<256x32xf32>
    %c0_29 = arith.constant 0 : index
    %c2 = arith.constant 2 : index
    %c0_30 = arith.constant 0 : index
    %26 = vector.load %arg8[%c0_29, %c2, %c0_30] : memref<18x18x32xbf16, #tpu.memory_space<vmem>>, vector<16x16x32xbf16>
    %27 = vector.shape_cast %26 : vector<16x16x32xbf16> to vector<256x32xbf16>
    %c2_31 = arith.constant 2 : index
    %c0_32 = arith.constant 0 : index
    %c0_33 = arith.constant 0 : index
    %28 = vector.load %arg2[%c2_31, %c0_32, %c0_33] : memref<9x32x32xbf16, #tpu.memory_space<vmem>>, vector<1x32x32xbf16>
    %29 = vector.shape_cast %28 : vector<1x32x32xbf16> to vector<32x32xbf16>
    %cst_34 = arith.constant dense<0.000000e+00> : vector<256x32xf32>
    %30 = tpu.matmul %27, %29, %cst_34 {dimension_numbers = #tpu.dot_dimension_numbers<[1], [0], [0], [1], [0, 0, 1, 1], [], []>} : vector<256x32xbf16>, vector<32x32xbf16>, vector<256x32xf32> -> vector<256x32xf32>
    %31 = arith.addf %25, %30 : vector<256x32xf32>
    %c1_35 = arith.constant 1 : index
    %c0_36 = arith.constant 0 : index
    %c0_37 = arith.constant 0 : index
    %32 = vector.load %arg8[%c1_35, %c0_36, %c0_37] : memref<18x18x32xbf16, #tpu.memory_space<vmem>>, vector<16x16x32xbf16>
    %33 = vector.shape_cast %32 : vector<16x16x32xbf16> to vector<256x32xbf16>
    %c3 = arith.constant 3 : index
    %c0_38 = arith.constant 0 : index
    %c0_39 = arith.constant 0 : index
    %34 = vector.load %arg2[%c3, %c0_38, %c0_39] : memref<9x32x32xbf16, #tpu.memory_space<vmem>>, vector<1x32x32xbf16>
    %35 = vector.shape_cast %34 : vector<1x32x32xbf16> to vector<32x32xbf16>
    %cst_40 = arith.constant dense<0.000000e+00> : vector<256x32xf32>
    %36 = tpu.matmul %33, %35, %cst_40 {dimension_numbers = #tpu.dot_dimension_numbers<[1], [0], [0], [1], [0, 0, 1, 1], [], []>} : vector<256x32xbf16>, vector<32x32xbf16>, vector<256x32xf32> -> vector<256x32xf32>
    %37 = arith.addf %31, %36 : vector<256x32xf32>
    %c1_41 = arith.constant 1 : index
    %c1_42 = arith.constant 1 : index
    %c0_43 = arith.constant 0 : index
    %38 = vector.load %arg8[%c1_41, %c1_42, %c0_43] : memref<18x18x32xbf16, #tpu.memory_space<vmem>>, vector<16x16x32xbf16>
    %39 = vector.shape_cast %38 : vector<16x16x32xbf16> to vector<256x32xbf16>
    %c4 = arith.constant 4 : index
    %c0_44 = arith.constant 0 : index
    %c0_45 = arith.constant 0 : index
    %40 = vector.load %arg2[%c4, %c0_44, %c0_45] : memref<9x32x32xbf16, #tpu.memory_space<vmem>>, vector<1x32x32xbf16>
    %41 = vector.shape_cast %40 : vector<1x32x32xbf16> to vector<32x32xbf16>
    %cst_46 = arith.constant dense<0.000000e+00> : vector<256x32xf32>
    %42 = tpu.matmul %39, %41, %cst_46 {dimension_numbers = #tpu.dot_dimension_numbers<[1], [0], [0], [1], [0, 0, 1, 1], [], []>} : vector<256x32xbf16>, vector<32x32xbf16>, vector<256x32xf32> -> vector<256x32xf32>
    %43 = arith.addf %37, %42 : vector<256x32xf32>
    %c1_47 = arith.constant 1 : index
    %c2_48 = arith.constant 2 : index
    %c0_49 = arith.constant 0 : index
    %44 = vector.load %arg8[%c1_47, %c2_48, %c0_49] : memref<18x18x32xbf16, #tpu.memory_space<vmem>>, vector<16x16x32xbf16>
    %45 = vector.shape_cast %44 : vector<16x16x32xbf16> to vector<256x32xbf16>
    %c5 = arith.constant 5 : index
    %c0_50 = arith.constant 0 : index
    %c0_51 = arith.constant 0 : index
    %46 = vector.load %arg2[%c5, %c0_50, %c0_51] : memref<9x32x32xbf16, #tpu.memory_space<vmem>>, vector<1x32x32xbf16>
    %47 = vector.shape_cast %46 : vector<1x32x32xbf16> to vector<32x32xbf16>
    %cst_52 = arith.constant dense<0.000000e+00> : vector<256x32xf32>
    %48 = tpu.matmul %45, %47, %cst_52 {dimension_numbers = #tpu.dot_dimension_numbers<[1], [0], [0], [1], [0, 0, 1, 1], [], []>} : vector<256x32xbf16>, vector<32x32xbf16>, vector<256x32xf32> -> vector<256x32xf32>
    %49 = arith.addf %43, %48 : vector<256x32xf32>
    %c2_53 = arith.constant 2 : index
    %c0_54 = arith.constant 0 : index
    %c0_55 = arith.constant 0 : index
    %50 = vector.load %arg8[%c2_53, %c0_54, %c0_55] : memref<18x18x32xbf16, #tpu.memory_space<vmem>>, vector<16x16x32xbf16>
    %51 = vector.shape_cast %50 : vector<16x16x32xbf16> to vector<256x32xbf16>
    %c6 = arith.constant 6 : index
    %c0_56 = arith.constant 0 : index
    %c0_57 = arith.constant 0 : index
    %52 = vector.load %arg2[%c6, %c0_56, %c0_57] : memref<9x32x32xbf16, #tpu.memory_space<vmem>>, vector<1x32x32xbf16>
    %53 = vector.shape_cast %52 : vector<1x32x32xbf16> to vector<32x32xbf16>
    %cst_58 = arith.constant dense<0.000000e+00> : vector<256x32xf32>
    %54 = tpu.matmul %51, %53, %cst_58 {dimension_numbers = #tpu.dot_dimension_numbers<[1], [0], [0], [1], [0, 0, 1, 1], [], []>} : vector<256x32xbf16>, vector<32x32xbf16>, vector<256x32xf32> -> vector<256x32xf32>
    %55 = arith.addf %49, %54 : vector<256x32xf32>
    %c2_59 = arith.constant 2 : index
    %c1_60 = arith.constant 1 : index
    %c0_61 = arith.constant 0 : index
    %56 = vector.load %arg8[%c2_59, %c1_60, %c0_61] : memref<18x18x32xbf16, #tpu.memory_space<vmem>>, vector<16x16x32xbf16>
    %57 = vector.shape_cast %56 : vector<16x16x32xbf16> to vector<256x32xbf16>
    %c7 = arith.constant 7 : index
    %c0_62 = arith.constant 0 : index
    %c0_63 = arith.constant 0 : index
    %58 = vector.load %arg2[%c7, %c0_62, %c0_63] : memref<9x32x32xbf16, #tpu.memory_space<vmem>>, vector<1x32x32xbf16>
    %59 = vector.shape_cast %58 : vector<1x32x32xbf16> to vector<32x32xbf16>
    %cst_64 = arith.constant dense<0.000000e+00> : vector<256x32xf32>
    %60 = tpu.matmul %57, %59, %cst_64 {dimension_numbers = #tpu.dot_dimension_numbers<[1], [0], [0], [1], [0, 0, 1, 1], [], []>} : vector<256x32xbf16>, vector<32x32xbf16>, vector<256x32xf32> -> vector<256x32xf32>
    %61 = arith.addf %55, %60 : vector<256x32xf32>
    %c2_65 = arith.constant 2 : index
    %c2_66 = arith.constant 2 : index
    %c0_67 = arith.constant 0 : index
    %62 = vector.load %arg8[%c2_65, %c2_66, %c0_67] : memref<18x18x32xbf16, #tpu.memory_space<vmem>>, vector<16x16x32xbf16>
    %63 = vector.shape_cast %62 : vector<16x16x32xbf16> to vector<256x32xbf16>
    %c8 = arith.constant 8 : index
    %c0_68 = arith.constant 0 : index
    %c0_69 = arith.constant 0 : index
    %64 = vector.load %arg2[%c8, %c0_68, %c0_69] : memref<9x32x32xbf16, #tpu.memory_space<vmem>>, vector<1x32x32xbf16>
    %65 = vector.shape_cast %64 : vector<1x32x32xbf16> to vector<32x32xbf16>
    %cst_70 = arith.constant dense<0.000000e+00> : vector<256x32xf32>
    %66 = tpu.matmul %63, %65, %cst_70 {dimension_numbers = #tpu.dot_dimension_numbers<[1], [0], [0], [1], [0, 0, 1, 1], [], []>} : vector<256x32xbf16>, vector<32x32xbf16>, vector<256x32xf32> -> vector<256x32xf32>
    %67 = arith.addf %61, %66 : vector<256x32xf32>
    %cst_71 = arith.constant 0.000000e+00 : f32
    %68 = vector.broadcast %cst_71 : f32 to vector<256x32xf32>
    %69 = arith.maximumf %67, %68 : vector<256x32xf32>
    %cst_72 = arith.constant dense<0.000000e+00> : vector<32xf32>
    %70 = vector.multi_reduction <add>, %69, %cst_72 [0] : vector<256x32xf32> to vector<32xf32>
    %71 = vector.shape_cast %70 : vector<32xf32> to vector<1x32xf32>
    %c0_73 = arith.constant 0 : index
    %c0_74 = arith.constant 0 : index
    %c0_75 = arith.constant 0 : index
    %72 = vector.load %arg6[%c0_73, %c0_74, %c0_75] : memref<1x1x32xf32, #tpu.memory_space<vmem>>, vector<1x1x32xf32>
    %73 = vector.shape_cast %72 : vector<1x1x32xf32> to vector<1x32xf32>
    %74 = vector.shape_cast %71 : vector<1x32xf32> to vector<1x1x32xf32>
    tpu.vector_store %arg6[%c0_73, %c0_74, %c0_75], %74 {strides = array<i32>} : memref<1x1x32xf32, #tpu.memory_space<vmem>>, vector<1x1x32xf32>,
    %75 = arith.mulf %69, %69 : vector<256x32xf32>
    %cst_76 = arith.constant dense<0.000000e+00> : vector<32xf32>
    %76 = vector.multi_reduction <add>, %75, %cst_76 [0] : vector<256x32xf32> to vector<32xf32>
    %77 = vector.shape_cast %76 : vector<32xf32> to vector<1x32xf32>
    %c0_77 = arith.constant 0 : index
    %c0_78 = arith.constant 0 : index
    %c0_79 = arith.constant 0 : index
    %78 = vector.load %arg7[%c0_77, %c0_78, %c0_79] : memref<1x1x32xf32, #tpu.memory_space<vmem>>, vector<1x1x32xf32>
    %79 = vector.shape_cast %78 : vector<1x1x32xf32> to vector<1x32xf32>
    %80 = vector.shape_cast %77 : vector<1x32xf32> to vector<1x1x32xf32>
    tpu.vector_store %arg7[%c0_77, %c0_78, %c0_79], %80 {strides = array<i32>} : memref<1x1x32xf32, #tpu.memory_space<vmem>>, vector<1x1x32xf32>,
    %81 = vector.shape_cast %69 : vector<256x32xf32> to vector<16x16x32xf32>
    %82 = arith.truncf %81 : vector<16x16x32xf32> to vector<16x16x32xbf16>
    %c0_80 = arith.constant 0 : index
    %c0_81 = arith.constant 0 : index
    %c0_82 = arith.constant 0 : index
    %c0_83 = arith.constant 0 : index
    %83 = vector.load %arg5[%c0_80, %c0_81, %c0_82, %c0_83] : memref<1x16x16x32xbf16, #tpu.memory_space<vmem>>, vector<1x16x16x32xbf16>
    %84 = vector.shape_cast %83 : vector<1x16x16x32xbf16> to vector<16x16x32xbf16>
    %85 = vector.shape_cast %82 : vector<16x16x32xbf16> to vector<1x16x16x32xbf16>
    tpu.vector_store %arg5[%c0_80, %c0_81, %c0_82, %c0_83], %85 {strides = array<i32>} : memref<1x16x16x32xbf16, #tpu.memory_space<vmem>>, vector<1x16x16x32xbf16>,
    return
  }
  func.func @transform_0(%arg0: i32) -> (i32, i32, i32, i32) {
    %c0_i32 = arith.constant 0 : i32
    %c0_i32_0 = arith.constant 0 : i32
    %c0_i32_1 = arith.constant 0 : i32
    %c0_i32_2 = arith.constant 0 : i32
    return %arg0, %c0_i32, %c0_i32_0, %c0_i32_1 : i32, i32, i32, i32
  }
  func.func @transform_1(%arg0: i32) -> (i32, i32, i32) {
    %c0_i32 = arith.constant 0 : i32
    %c0_i32_0 = arith.constant 0 : i32
    %c0_i32_1 = arith.constant 0 : i32
    %c0_i32_2 = arith.constant 0 : i32
    return %c0_i32, %c0_i32_0, %c0_i32_1 : i32, i32, i32
  }
  func.func @transform_2(%arg0: i32) -> (i32, i32, i32) {
    %c0_i32 = arith.constant 0 : i32
    %c0_i32_0 = arith.constant 0 : i32
    %c0_i32_1 = arith.constant 0 : i32
    %c0_i32_2 = arith.constant 0 : i32
    return %c0_i32, %c0_i32_0, %c0_i32_1 : i32, i32, i32
  }
  func.func @transform_3(%arg0: i32) -> (i32, i32, i32) {
    %c0_i32 = arith.constant 0 : i32
    %c0_i32_0 = arith.constant 0 : i32
    %c0_i32_1 = arith.constant 0 : i32
    %c0_i32_2 = arith.constant 0 : i32
    return %c0_i32, %c0_i32_0, %c0_i32_1 : i32, i32, i32
  }
  func.func @transform_4(%arg0: i32) -> (i32, i32, i32, i32) {
    %c0_i32 = arith.constant 0 : i32
    %c0_i32_0 = arith.constant 0 : i32
    %c0_i32_1 = arith.constant 0 : i32
    %c0_i32_2 = arith.constant 0 : i32
    return %arg0, %c0_i32, %c0_i32_0, %c0_i32_1 : i32, i32, i32, i32
  }
  func.func @transform_5(%arg0: i32) -> (i32, i32, i32) {
    %c0_i32 = arith.constant 0 : i32
    %c0_i32_0 = arith.constant 0 : i32
    %c0_i32_1 = arith.constant 0 : i32
    return %arg0, %c0_i32, %c0_i32_0 : i32, i32, i32
  }
  func.func @transform_6(%arg0: i32) -> (i32, i32, i32) {
    %c0_i32 = arith.constant 0 : i32
    %c0_i32_0 = arith.constant 0 : i32
    %c0_i32_1 = arith.constant 0 : i32
    return %arg0, %c0_i32, %c0_i32_0 : i32, i32, i32
  }
}

</mosaic_0001>

<bundles_post_ra>
// kernel: double_conv_forward.5
= control target key start
LH: loop header
LB: loop body
LE: loop exit
PB: predicated region body
PF: predicated region fallthrough
CT: control target
= control target key end

     0   :  { %8 = vsyncpa [#allocation3], 0  ;;  %s912_s0 = inlined_call_operand.vmem [shape: bf16[2,16,16,32], index: 0, kind: input, shape index: {}]   ;;  %s913_s1 = inlined_call_operand.vmem [shape: f32[1,1,32], index: 1, kind: input, shape index: {}]   ;;  %s914_s2 = inlined_call_operand.vmem [shape: f32[1,1,32], index: 2, kind: input, shape index: {}]   ;;  %s915_s3 = inlined_call_operand.hbm [shape: f32[2,16,16,32], index: 3, kind: output, shape index: {}]  }
   0x1   :  { %10 = vsyncpa [#allocation3 + $0x1], 0  ;;  %s643_s12 = smov 0   ;;  %s645_s13 = smov 0  }
   0x2   :  { %s647_s14 = smov 0   ;;  %s649_s15 = smov 0  }
   0x3 LB: > { %s664_s16 = sadd.s32 4294967295, %s618_s15   ;;  %s420_s17 = sadd.s32 4294967294, %s618_s15   ;;  %s618_s15 = sphi %s649_s15, %s921_s15   ;;  %s614_s14 = sphi %s647_s14, %s920_s14   ;;  %s610_s13 = sphi %s645_s13, %s919_s13   ;;  %s606_s12 = sphi %s643_s12, %s918_s12  }
   0x4   : > { %s668_s18 = sadd.s32 1, %s618_s15   ;;  %s91_s19 = sadd.s32 1, %s614_s14 }
   0x5   : > { %s88_s20 = ssub.s32 %s618_s15, %s668_s18  ;;  %p101_p0 = scmp.ne.s32.totalorder %s614_s14, %s610_s13 }
   0x6   : > { %p89_p1 = scmp.eq.s32.totalorder %s88_s20, 0  ;;  %p102_p2 = scmp.eq.s32.totalorder %s664_s16, 1 }
   0x7   : > { %p107_p3 = scmp.ne.s32.totalorder %s610_s13, %s606_s12  ;;  %p108_p4 = scmp.eq.s32.totalorder %s420_s17, 1 }
   0x8   : > { %s679_s21 = scalar_select %p89_p1, %s614_s14, %s91_s19  }
   0x9   : > { %p681_p5 = por %p102_p2, %p101_p0  ;;  %p685_p6 = por %p108_p4, %p107_p3 }
   0xa   : > { %p423_p7 = scmp.ge.s32.totalorder %s618_s15, 1  ;;  %p140_p8 = scmp.lt.s32.totalorder %s618_s15, 3 }
   0xc   : > { %p141_p9 = pnand %p423_p7, %p140_p8 }
   0xd   : > { %p164_p10 = scmp.lt.s32.totalorder (!%p141_p9), %s664_s16, 1  ;;  %s161_s25 = sand.u32 (!%p141_p9), 1, %s610_s13   ;;  %v702_v0 = vld [vmem:[%s913_s1] ss:$0 sm:$0xff] (!%p141_p9)  ;;  %vm311_vm0 = vcmask (!%p141_p9), 261120  }
   0xe   : > { %144 = sbr.rel (%p141_p9) target bundleno = 68 (0x44), region = 32  ;;  %s709_s5 = sshll.u32 (!%p141_p9), %s161_s25, 8  ;;  %v715_v9 = vld [vmem:[%s914_s2] ss:$0 sm:$0xff] (!%p141_p9) }
   0xf   : > { %s738_s8 = scalar_lea.vmem (!%p141_p9), [#allocation2], %s709_s5  ;;  %s435_s9 = sshll.u32 (!%p141_p9), %s664_s16, 12 }
  0x10   : > { %s358_s10 = sshll.u32 (!%p141_p9), %s738_s8, 4  ;;  %s845_s17 = scalar_lea.hbm (!%p141_p9), %s915_s3, %s435_s9  ;;  %s847_s10 = int_to_ptr.vmem [resolvable:$true] %s358_s10 }
  0x11   : > { %s871_s19 = scalar_lea.sflag (!%p141_p9), [#allocation3], %s161_s25  ;;  %s556_s20 = scalar_lea.vmem (!%p141_p9), %s847_s10, 4096 }
  0x12   : > { %p557_p11 = scmp.ne.s32.totalorder (!%p141_p9), %s847_s10, %s556_s20 }
  0x14   : > { %p558_p12 = pnand (!%p141_p9), %p557_p11, %p681_p5 }
  0x15   : > { %s165_s24 = scalar_select %p164_p10, %s664_s16, 1 }
  0x16   : > { %p559_p13 = pneg %p558_p12 }
  0x17   : > { %s434_s26 = sshll.u32 %s165_s24, 7  ;;  %s620_s24 = smov [#allocation2]  }
  0x18   : > { %s697_s29 = scalar_lea.vmem %s912_s0, %s434_s26  ;;  %s560_s26 = sshll.u32 %s620_s24, 4  ;;  %s561_s26 = int_to_ptr.vmem [resolvable:$false] %s560_s26 }
  0x19   : > { %v437_v1 = vld [vmem:[%s697_s29] sm:$0xff]   ;;  %v500_v2 = vld [vmem:[%s697_s29 + $0x8] sm:$0xff]   ;;  %v501_v3 = vld [vmem:[%s697_s29 + $0x10] sm:$0xff]   ;;  %s562_s27 = scalar_lea.vmem %s561_s26, 8192  ;;  %p563_p0 = scmp.lt.s32.totalorder %s847_s10, %s561_s26 }
  0x1a   : > { %v438_v4 = vunpack.c.l.bf16 %v437_v1  ;;  %v439_v5 = vunpack.c.h.bf16 %v437_v1  ;;  %v442_v6 = vunpack.c.l.bf16 %v500_v2  ;;  %v443_v7 = vunpack.c.h.bf16 %v500_v2  ;;  %v502_v8 = vld [vmem:[%s697_s29 + $0x18] sm:$0xff]   ;;  %v503_v22 = vld [vmem:[%s697_s29 + $0x20] sm:$0xff]   ;;  %v504_v23 = vld [vmem:[%s697_s29 + $0x28] sm:$0xff]   ;;  %p564_p1 = scmp.lt.s32.totalorder %s562_s27, %s556_s20 }
  0x1b   : > { %v446_v10 = vunpack.c.l.bf16 %v501_v3  ;;  %v447_v11 = vunpack.c.h.bf16 %v501_v3  ;;  %v450_v12 = vunpack.c.l.bf16 %v502_v8  ;;  %v451_v13 = vunpack.c.h.bf16 %v502_v8  ;;  %v505_v28 = vld [vmem:[%s697_s29 + $0x30] sm:$0xff]   ;;  %v506_v29 = vld [vmem:[%s697_s29 + $0x38] sm:$0xff]   ;;  %v507_v50 = vld [vmem:[%s697_s29 + $0x40] sm:$0xff]  }
  0x1c   : > { %v240_v14 = vmul.f32 %v438_v4, %v702_v0  ;;  %v241_v15 = vmul.f32 %v439_v5, %v702_v0  ;;  %v242_v16 = vmul.f32 %v442_v6, %v702_v0  ;;  %v243_v17 = vmul.f32 %v443_v7, %v702_v0  ;;  %v508_v51 = vld [vmem:[%s697_s29 + $0x48] sm:$0xff]   ;;  %v509_v56 = vld [vmem:[%s697_s29 + $0x50] sm:$0xff]   ;;  %v510_v57 = vld [vmem:[%s697_s29 + $0x58] sm:$0xff]   ;;  %p565_p2 = por %p564_p1, %p563_p0 }
  0x1d   : > { %v244_v18 = vmul.f32 %v446_v10, %v702_v0  ;;  %v245_v19 = vmul.f32 %v447_v11, %v702_v0  ;;  %v246_v20 = vmul.f32 %v450_v12, %v702_v0  ;;  %v247_v21 = vmul.f32 %v451_v13, %v702_v0 }
  0x1e   : > { %v279_v24 = vadd.f32 %v715_v9, %v240_v14  ;;  %v280_v25 = vadd.f32 %v715_v9, %v241_v15  ;;  %v281_v26 = vadd.f32 %v715_v9, %v242_v16  ;;  %v282_v27 = vadd.f32 %v715_v9, %v243_v17  ;;  %v511_v16 = vld [vmem:[%s697_s29 + $0x60] sm:$0xff]   ;;  %v512_v17 = vld [vmem:[%s697_s29 + $0x68] sm:$0xff]   ;;  %p566_p3 = pnand %p565_p2, %p559_p13 }
  0x1f   : > { %v283_v30 = vadd.f32 %v715_v9, %v244_v18  ;;  %v284_v31 = vadd.f32 %v715_v9, %v245_v19  ;;  %v285_v32 = vadd.f32 %v715_v9, %v246_v20  ;;  %v286_v33 = vadd.f32 %v715_v9, %v247_v21 }
  0x20   : > { %312 = vst.msk [vmem:[%s738_s8] sm:$0xff] %vm311_vm0, %v279_v24  ;;  %313 = vst.msk [vmem:[%s738_s8 + $0x8] sm:$0xff] %vm311_vm0, %v280_v25  ;;  %v454_v34 = vunpack.c.l.bf16 %v503_v22  ;;  %v455_v35 = vunpack.c.h.bf16 %v503_v22  ;;  %v458_v36 = vunpack.c.l.bf16 %v504_v23  ;;  %v459_v37 = vunpack.c.h.bf16 %v504_v23  ;;  %v513_v22 = vld [vmem:[%s697_s29 + $0x70] sm:$0xff]   ;;  %v514_v23 = vld [vmem:[%s697_s29 + $0x78] sm:$0xff]  }
  0x21   : > { %314 = vst.msk [vmem:[%s738_s8 + $0x10] sm:$0xff] %vm311_vm0, %v281_v26  ;;  %315 = vst.msk [vmem:[%s738_s8 + $0x18] sm:$0xff] %vm311_vm0, %v282_v27  ;;  %v462_v38 = vunpack.c.l.bf16 %v505_v28  ;;  %v463_v39 = vunpack.c.h.bf16 %v505_v28  ;;  %v466_v40 = vunpack.c.l.bf16 %v506_v29  ;;  %v467_v41 = vunpack.c.h.bf16 %v506_v29 }
  0x22   : > { %316 = vst.msk [vmem:[%s738_s8 + $0x20] sm:$0xff] %vm311_vm0, %v283_v30  ;;  %317 = vst.msk [vmem:[%s738_s8 + $0x28] sm:$0xff] %vm311_vm0, %v284_v31  ;;  %v248_v42 = vmul.f32 %v454_v34, %v702_v0  ;;  %v249_v43 = vmul.f32 %v455_v35, %v702_v0  ;;  %v250_v44 = vmul.f32 %v458_v36, %v702_v0  ;;  %v470_v62 = vunpack.c.l.bf16 %v507_v50 }
  0x23   : > { %318 = vst.msk [vmem:[%s738_s8 + $0x30] sm:$0xff] %vm311_vm0, %v285_v32  ;;  %319 = vst.msk [vmem:[%s738_s8 + $0x38] sm:$0xff] %vm311_vm0, %v286_v33  ;;  %v251_v45 = vmul.f32 %v459_v37, %v702_v0  ;;  %v252_v46 = vmul.f32 %v462_v38, %v702_v0  ;;  %v253_v47 = vmul.f32 %v463_v39, %v702_v0  ;;  %v471_v63 = vunpack.c.h.bf16 %v507_v50 }
  0x24   : > { %v254_v48 = vmul.f32 %v466_v40, %v702_v0  ;;  %v255_v49 = vmul.f32 %v467_v41, %v702_v0  ;;  %v287_v52 = vadd.f32 %v715_v9, %v248_v42  ;;  %v288_v53 = vadd.f32 %v715_v9, %v249_v43 }
  0x25   : > { %v289_v54 = vadd.f32 %v715_v9, %v250_v44  ;;  %v290_v55 = vadd.f32 %v715_v9, %v251_v45  ;;  %v291_v58 = vadd.f32 %v715_v9, %v252_v46  ;;  %v292_v59 = vadd.f32 %v715_v9, %v253_v47 }
  0x26   : > { %v293_v60 = vadd.f32 %v715_v9, %v254_v48  ;;  %v294_v61 = vadd.f32 %v715_v9, %v255_v49  ;;  %320 = vst.msk [vmem:[%s738_s8 + $0x40] sm:$0xff] %vm311_vm0, %v287_v52  ;;  %321 = vst.msk [vmem:[%s738_s8 + $0x48] sm:$0xff] %vm311_vm0, %v288_v53  ;;  %v474_v1 = vunpack.c.l.bf16 %v508_v51  ;;  %v475_v2 = vunpack.c.h.bf16 %v508_v51 }
  0x27   : > { %322 = vst.msk [vmem:[%s738_s8 + $0x50] sm:$0xff] %vm311_vm0, %v289_v54  ;;  %323 = vst.msk [vmem:[%s738_s8 + $0x58] sm:$0xff] %vm311_vm0, %v290_v55  ;;  %v478_v3 = vunpack.c.l.bf16 %v509_v56  ;;  %v479_v4 = vunpack.c.h.bf16 %v509_v56  ;;  %v482_v5 = vunpack.c.l.bf16 %v510_v57  ;;  %v483_v6 = vunpack.c.h.bf16 %v510_v57 }
  0x28   : > { %324 = vst.msk [vmem:[%s738_s8 + $0x60] sm:$0xff] %vm311_vm0, %v291_v58  ;;  %325 = vst.msk [vmem:[%s738_s8 + $0x68] sm:$0xff] %vm311_vm0, %v292_v59  ;;  %v256_v7 = vmul.f32 %v470_v62, %v702_v0  ;;  %v257_v8 = vmul.f32 %v471_v63, %v702_v0  ;;  %v258_v10 = vmul.f32 %v474_v1, %v702_v0  ;;  %v486_v28 = vunpack.c.l.bf16 %v511_v16 }
  0x29   : > { %326 = vst.msk [vmem:[%s738_s8 + $0x70] sm:$0xff] %vm311_vm0, %v293_v60  ;;  %327 = vst.msk [vmem:[%s738_s8 + $0x78] sm:$0xff] %vm311_vm0, %v294_v61  ;;  %v259_v11 = vmul.f32 %v475_v2, %v702_v0  ;;  %v260_v12 = vmul.f32 %v478_v3, %v702_v0  ;;  %v261_v13 = vmul.f32 %v479_v4, %v702_v0  ;;  %v487_v29 = vunpack.c.h.bf16 %v511_v16 }
  0x2a   : > { %v262_v14 = vmul.f32 %v482_v5, %v702_v0  ;;  %v263_v15 = vmul.f32 %v483_v6, %v702_v0  ;;  %v295_v18 = vadd.f32 %v715_v9, %v256_v7  ;;  %v296_v19 = vadd.f32 %v715_v9, %v257_v8 }
  0x2b   : > { %v297_v20 = vadd.f32 %v715_v9, %v258_v10  ;;  %v298_v21 = vadd.f32 %v715_v9, %v259_v11  ;;  %v299_v24 = vadd.f32 %v715_v9, %v260_v12  ;;  %v300_v25 = vadd.f32 %v715_v9, %v261_v13 }
  0x2c   : > { %v301_v26 = vadd.f32 %v715_v9, %v262_v14  ;;  %v302_v27 = vadd.f32 %v715_v9, %v263_v15  ;;  %328 = vst.msk [vmem:[%s738_s8 + $0x80] sm:$0xff] %vm311_vm0, %v295_v18  ;;  %329 = vst.msk [vmem:[%s738_s8 + $0x88] sm:$0xff] %vm311_vm0, %v296_v19  ;;  %v490_v30 = vunpack.c.l.bf16 %v512_v17  ;;  %v491_v31 = vunpack.c.h.bf16 %v512_v17 }
  0x2d   : > { %330 = vst.msk [vmem:[%s738_s8 + $0x90] sm:$0xff] %vm311_vm0, %v297_v20  ;;  %331 = vst.msk [vmem:[%s738_s8 + $0x98] sm:$0xff] %vm311_vm0, %v298_v21  ;;  %v494_v32 = vunpack.c.l.bf16 %v513_v22  ;;  %v495_v33 = vunpack.c.h.bf16 %v513_v22  ;;  %v498_v34 = vunpack.c.l.bf16 %v514_v23  ;;  %v499_v35 = vunpack.c.h.bf16 %v514_v23 }
  0x2e   : > { %332 = vst.msk [vmem:[%s738_s8 + $0xa0] sm:$0xff] %vm311_vm0, %v299_v24  ;;  %333 = vst.msk [vmem:[%s738_s8 + $0xa8] sm:$0xff] %vm311_vm0, %v300_v25  ;;  %v264_v36 = vmul.f32 %v486_v28, %v702_v0  ;;  %v265_v37 = vmul.f32 %v487_v29, %v702_v0  ;;  %v266_v38 = vmul.f32 %v490_v30, %v702_v0 }
  0x2f   : > { %334 = vst.msk [vmem:[%s738_s8 + $0xb0] sm:$0xff] %vm311_vm0, %v301_v26  ;;  %335 = vst.msk [vmem:[%s738_s8 + $0xb8] sm:$0xff] %vm311_vm0, %v302_v27  ;;  %v267_v39 = vmul.f32 %v491_v31, %v702_v0  ;;  %v268_v40 = vmul.f32 %v494_v32, %v702_v0  ;;  %v269_v41 = vmul.f32 %v495_v33, %v702_v0 }
  0x30   : > { %v270_v42 = vmul.f32 %v498_v34, %v702_v0  ;;  %v271_v43 = vmul.f32 %v499_v35, %v702_v0  ;;  %v303_v44 = vadd.f32 %v715_v9, %v264_v36  ;;  %v304_v45 = vadd.f32 %v715_v9, %v265_v37 }
  0x31   : > { %v305_v46 = vadd.f32 %v715_v9, %v266_v38  ;;  %v306_v47 = vadd.f32 %v715_v9, %v267_v39  ;;  %v307_v0 = vadd.f32 %v715_v9, %v268_v40  ;;  %v308_v48 = vadd.f32 %v715_v9, %v269_v41 }
  0x32   : > { %v309_v49 = vadd.f32 %v715_v9, %v270_v42  ;;  %v310_v50 = vadd.f32 %v715_v9, %v271_v43  ;;  %336 = vst.msk [vmem:[%s738_s8 + $0xc0] sm:$0xff] %vm311_vm0, %v303_v44  ;;  %337 = vst.msk [vmem:[%s738_s8 + $0xc8] sm:$0xff] %vm311_vm0, %v304_v45 }
  0x33   : > { %338 = vst.msk [vmem:[%s738_s8 + $0xd0] sm:$0xff] %vm311_vm0, %v305_v46  ;;  %339 = vst.msk [vmem:[%s738_s8 + $0xd8] sm:$0xff] %vm311_vm0, %v306_v47 }
  0x34   : > { %340 = vst.msk [vmem:[%s738_s8 + $0xe0] sm:$0xff] %vm311_vm0, %v307_v0  ;;  %341 = vst.msk [vmem:[%s738_s8 + $0xe8] sm:$0xff] %vm311_vm0, %v308_v48 }
  0x35   : > { %342 = vst.msk [vmem:[%s738_s8 + $0xf0] sm:$0xff] %vm311_vm0, %v309_v49  ;;  %343 = vst.msk [vmem:[%s738_s8 + $0xf8] sm:$0xff] %vm311_vm0, %v310_v50 }
  0x36   : > { %569 = shalt.err (!%p566_p3)
}
  0x37   : > { %s570_s25 = scalar_lea.hbm %s845_s17, 4096  ;;  %s574_s30 = scalar_lea.hbm %s915_s3, 8192 }
  0x38   : > { %p571_p4 = scmp.ne.s32.totalorder %s845_s17, %s570_s25  ;;  %p575_p9 = scmp.lt.u32.totalorder %s845_s17, %s915_s3 }
  0x39   : > { %p576_p10 = scmp.lt.u32.totalorder %s574_s30, %s570_s25  ;;  %p578_p12 = scmp.lt.u32.totalorder %s570_s25, %s845_s17 }
  0x3a   : > { %p572_p7 = pnand %p571_p4, %p681_p5 }
  0x3b   : > { %p577_p11 = por %p576_p10, %p575_p9 }
  0x3c   : > { %p573_p8 = pneg %p572_p7 }
  0x3d   : > { %p579_p13 = por %p578_p12, %p577_p11 }
  0x3f   : > { %p580_p0 = pnand %p579_p13, %p573_p8 }
  0x41   : > { %583 = shalt.err (!%p580_p0)
}
  0x42   : > { %s621_s6 = smov 128   ;;  %s622_s7 = smov 8  }
  0x43   : > { %515 = dma.vmem_to_hbm [thread:$0]  (%p681_p5), %s847_s10, 4096, %s845_s17, %s871_s19, %s621_s6, %s621_s6, %s622_s7  }
  0x44 PF: > { %p521_p1 = scmp.ge.s32.totalorder %s618_s15, 2  ;;  %s373_s8 = sand.u32 1, %s606_s12  }
  0x45   : > { %s374_s9 = scalar_lea.sflag [#allocation3], %s373_s8 }
  0x46   : > { %p518_p2 = pnand %p521_p1, %p685_p6 }
  0x48   : > { %601 = dma.done.wait (!%p518_p2), %s374_s9, 4096  }
  0x49   : > { %603 = vsyncadd (!%p518_p2), %s374_s9, 4294963200  ;;  %p13_p3 = scmp.ge.s32.totalorder %s668_s18, 4   ;;  %s918_s12 = smov %s610_s13 }
  0x4a   : > { %s919_s13 = smov %s614_s14  ;;  %s920_s14 = smov %s679_s21 }
  0x4b   : > { %s921_s15 = smov %s668_s18  ;;  %15 = sbr.rel (!%p13_p3) target bundleno = 3 (0x3), region = 67 }
  0x52   :  { %379 = vsyncpa [#allocation3], 1 }
  0x53   :  { %381 = vsyncpa [#allocation3 + $0x1], 1 }

// kernel: double_conv_forward.4
= control target key start
LH: loop header
LB: loop body
LE: loop exit
PB: predicated region body
PF: predicated region fallthrough
CT: control target
= control target key end

     0   :  { %s7659_s21 = smov 0   ;;  %s9669_s0 = inlined_call_operand.vmem [shape: bf16[2,16,16,32], index: 0, kind: input, shape index: {}]   ;;  %s9670_s1 = inlined_call_operand.vmem [shape: bf16[9,32,32], index: 1, kind: input, shape index: {}]   ;;  %s9671_s2 = inlined_call_operand.vmem [shape: f32[1,1,32], index: 2, kind: input, shape index: {}]   ;;  %s9672_s3 = inlined_call_operand.vmem [shape: f32[1,1,32], index: 3, kind: input, shape index: {}]   ;;  %s9673_s4 = inlined_call_operand.vmem [shape: bf16[2,16,16,32], index: 4, kind: output, shape index: {0}]   ;;  %s9674_s5 = inlined_call_operand.vmem [shape: f32[2,1,32], index: 5, kind: output, shape index: {1}]   ;;  %s9675_s6 = inlined_call_operand.vmem [shape: f32[2,1,32], index: 6, kind: output, shape index: {2}]  }
   0x1 LB: > { %s6139_s22 = sadd.s32 4294967295, %s7621_s21   ;;  %p6143_p0 = scmp.ge.s32.totalorder %s7621_s21, 1  ;;  %s7621_s21 = sphi %s7659_s21, %s17_s21  }
   0x2   : > { %p217_p1 = scmp.lt.s32.totalorder %s7621_s21, 3 }
   0x4   : > { %p218_p2 = pnand %p6143_p0, %p217_p1 }
   0x6   : > { %221 = sbr.rel (%p218_p2) target bundleno = 705 (0x2c1), region = 36 }
   0xd   : > { %v7502_v0 = vld [vmem:[%s9670_s1 + $0x10] sm:$0xff]   ;;  %vm412_vm0 = vcmask 257024   ;;  %v7503_v1 = vld [vmem:[%s9670_s1 + $0x40] sm:$0xff]   ;;  %v7676_v2 = vld [vmem:[%s9670_s1 + $0x18] sm:$0xff]   ;;  %v7623_v3 = vmov 0   ;;  %vm415_vm1 = vcmask 253952  }
   0xe   : > { %6909 = vmatprep.subr.bf16.mxu1 %v7502_v0  ;;  %413 = vst.msk [vmem:[#allocation2] sm:$0xf] %vm412_vm0, %v7623_v3  ;;  %414 = vst.msk [vmem:[#allocation2 + $0x4] sm:$0xf] %vm412_vm0, %v7623_v3  ;;  %7053 = vmatprep.subr.bf16.mxu0 %v7503_v1  ;;  %v7505_v4 = vld [vmem:[%s9670_s1 + $0x48] sm:$0xff]   ;;  %p253_p3 = scmp.lt.s32.totalorder %s6139_s22, 1 }
   0xf   : > { %417 = vst.msk [vmem:[#allocation2 + $0xc] sm:$0xf] %vm412_vm0, %v7623_v3  ;;  %418 = vst.msk [vmem:[#allocation2 + $0x10] sm:$0xf] %vm412_vm0, %v7623_v3  ;;  %6910 = vmatpush3.bf16.msra.mxu1 %v7502_v0  ;;  %7054 = vmatpush3.bf16.msra.mxu0 %v7503_v1  ;;  %v7741_v5 = vld [vmem:[%s9670_s1] sm:$0xff]   ;;  %v7750_v6 = vld [vmem:[%s9670_s1 + $0x50] sm:$0xff]  }
  0x10   : > { %420 = vst.msk [vmem:[#allocation2 + $0x18] sm:$0xf] %vm412_vm0, %v7623_v3  ;;  %421 = vst.msk [vmem:[#allocation2 + $0x1c] sm:$0xf] %vm412_vm0, %v7623_v3  ;;  %6911 = vmatprep.subr.bf16.mxu1 %v7676_v2  ;;  %7055 = vmatprep.subr.bf16.mxu0 %v7505_v4  ;;  %s9761_s22 = smov (!%p253_p3, %s6139_s22), 1  ;;  %vm1509_vm4 = vcmask 261120  }
  0x11   : > { %423 = vst.msk [vmem:[#allocation2 + $0x24] sm:$0xf] %vm412_vm0, %v7623_v3  ;;  %424 = vst.msk [vmem:[#allocation2 + $0x28] sm:$0xf] %vm412_vm0, %v7623_v3  ;;  %s6602_s11 = sshll.u32 %s9761_s22, 7  ;;  %vm2068_vm12 = vcmask 1042432   ;;  %s265_s23 = scalar_lea.vmem %s9674_s5, %s9761_s22 }
  0x12   : > { %426 = vst.msk [vmem:[#allocation2 + $0x30] sm:$0xf] %vm412_vm0, %v7623_v3  ;;  %427 = vst.msk [vmem:[#allocation2 + $0x34] sm:$0xf] %vm412_vm0, %v7623_v3  ;;  %vm1057_vm2 = vsmask.f32 3328  ;;  %s7760_s14 = scalar_lea.vmem %s9669_s0, %s6602_s11  ;;  %s9518_s19 = scalar_lea.vmem %s9673_s4, %s6602_s11 }
  0x13   : > { %429 = vst.msk [vmem:[#allocation2 + $0x3c] sm:$0xf] %vm412_vm0, %v7623_v3  ;;  %430 = vst.msk [vmem:[#allocation2 + $0x40] sm:$0xf] %vm412_vm0, %v7623_v3  ;;  %6912 = vmatpush3.bf16.msra.mxu1 %v7676_v2  ;;  %7056 = vmatpush3.bf16.msra.mxu0 %v7505_v4  ;;  %vm1058_vm3 = vsmask.f32 7440  ;;  %s268_s26 = scalar_lea.vmem %s9675_s6, %s9761_s22 }
  0x14   : > { %432 = vst.msk [vmem:[#allocation2 + $0x48] sm:$0xf] %vm412_vm0, %v7623_v3  ;;  %433 = vst.msk [vmem:[#allocation2 + $0x4c] sm:$0xf] %vm412_vm0, %v7623_v3  ;;  %6945 = vmatprep.subr.bf16.mxu1 %v7741_v5  ;;  %7089 = vmatprep.subr.bf16.mxu0 %v7750_v6  ;;  %v6669_v15 = vld [vmem:[%s7760_s14] sm:$0xff]   ;;  %v6732_v16 = vld [vmem:[%s7760_s14 + $0x8] sm:$0xff]  }
  0x15   : > { %435 = vst.msk [vmem:[#allocation2 + $0x54] sm:$0xf] %vm412_vm0, %v7623_v3  ;;  %436 = vst.msk [vmem:[#allocation2 + $0x58] sm:$0xf] %vm412_vm0, %v7623_v3  ;;  %v1005_v7 = vld [vmem:[#allocation2] sm:$0xf]  ;;  %v6670_v23 = vunpack.c.l.bf16 %v6669_v15  ;;  %v6671_v24 = vunpack.c.h.bf16 %v6669_v15  ;;  %v6674_v25 = vunpack.c.l.bf16 %v6732_v16  ;;  %v6675_v30 = vunpack.c.h.bf16 %v6732_v16 }
  0x16   : > { %438 = vst.msk [vmem:[#allocation2 + $0x60] sm:$0xf] %vm412_vm0, %v7623_v3  ;;  %439 = vst.msk [vmem:[#allocation2 + $0x64] sm:$0xf] %vm412_vm0, %v7623_v3  ;;  %v1006_v8 = vld [vmem:[#allocation2 + $0x4] sm:$0xf] }
  0x17   : > { %441 = vst.msk [vmem:[#allocation2 + $0x6c] sm:$0xf] %vm412_vm0, %v7623_v3  ;;  %442 = vst.msk [vmem:[#allocation2 + $0x70] sm:$0xf] %vm412_vm0, %v7623_v3  ;;  %v1061_v10 = vshrl.u32 %v1005_v7, 16  ;;  %v1064_v11 = vshll.u32 %v1005_v7, 16 }
  0x18   : > { %444 = vst.msk [vmem:[#allocation2 + $0x78] sm:$0xf] %vm412_vm0, %v7623_v3  ;;  %445 = vst.msk [vmem:[#allocation2 + $0x7c] sm:$0xf] %vm412_vm0, %v7623_v3  ;;  %v1070_v12 = vshll.u32 %v1006_v8, 16  ;;  %v1074_v13 = vshrl.u32 %v1006_v8, 16 }
  0x19   : > { %447 = vst.msk [vmem:[#allocation2 + $0x84] sm:$0xf] %vm412_vm0, %v7623_v3  ;;  %448 = vst.msk [vmem:[#allocation2 + $0x88] sm:$0xf] %vm412_vm0, %v7623_v3  ;;  %v1063_v17 = vrot.slane %v1061_v10, 4  ;;  %v1066_v18 = vrot.slane %v1064_v11, 5 }
  0x1a   : > { %450 = vst.msk [vmem:[#allocation2 + $0x90] sm:$0xf] %vm412_vm0, %v7623_v3  ;;  %451 = vst.msk [vmem:[#allocation2 + $0x94] sm:$0xf] %vm412_vm0, %v7623_v3  ;;  %v1072_v19 = vrot.slane %v1070_v12, 5  ;;  %v1076_v20 = vrot.slane %v1074_v13, 4 }
  0x1b   : > { %453 = vst.msk [vmem:[#allocation2 + $0x9c] sm:$0xf] %vm412_vm0, %v7623_v3  ;;  %454 = vst.msk [vmem:[#allocation2 + $0xa0] sm:$0xf] %vm412_vm0, %v7623_v3  ;;  %v7768_v21 = vld [vmem:[%s9671_s2] ss:$0 sm:$0xff]  ;;  %v1067_v27 = vor.u32 %v1066_v18, %v1063_v17 }
  0x1c   : > { %456 = vst.msk [vmem:[#allocation2 + $0xa8] sm:$0xf] %vm412_vm0, %v7623_v3  ;;  %457 = vst.msk [vmem:[#allocation2 + $0xac] sm:$0xf] %vm412_vm0, %v7623_v3  ;;  %vm564_vm5 = vsmask.f32 256  ;;  %v1077_v28 = vor.u32 %v1076_v20, %v1072_v19  ;;  %v341_v33 = vmul.f32 %v6670_v23, %v7768_v21  ;;  %v342_v34 = vmul.f32 %v6671_v24, %v7768_v21 }
  0x1d   : > { %459 = vst.msk [vmem:[#allocation2 + $0xb4] sm:$0xf] %vm412_vm0, %v7623_v3  ;;  %460 = vst.msk [vmem:[#allocation2 + $0xb8] sm:$0xf] %vm412_vm0, %v7623_v3  ;;  %vm565_vm6 = vsmask.f32 4368  ;;  %v343_v35 = vmul.f32 %v6674_v25, %v7768_v21  ;;  %v344_v39 = vmul.f32 %v6675_v30, %v7768_v21 }
  0x1e   : > { %462 = vst.msk [vmem:[#allocation2 + $0xc0] sm:$0xf] %vm412_vm0, %v7623_v3  ;;  %463 = vst.msk [vmem:[#allocation2 + $0xc4] sm:$0xf] %vm412_vm0, %v7623_v3  ;;  %vm889_vm7 = vsmask.f32 7938 }
  0x1f   : > { %465 = vst.msk [vmem:[#allocation2 + $0xcc] sm:$0xf] %vm412_vm0, %v7623_v3  ;;  %466 = vst.msk [vmem:[#allocation2 + $0xd0] sm:$0xf] %vm412_vm0, %v7623_v3  ;;  %v6733_v26 = vld [vmem:[%s7760_s14 + $0x10] sm:$0xff]   ;;  %v1068_v37 = vrot.slane %v1067_v27, 4 }
  0x20   : > { %416 = vst.msk [vmem:[#allocation2 + $0x8] sm:$0x1] %vm415_vm1, %v7623_v3  ;;  %419 = vst.msk [vmem:[#allocation2 + $0x14] sm:$0x1] %vm415_vm1, %v7623_v3  ;;  %v7774_v29 = vld [vmem:[%s9672_s3] ss:$0 sm:$0xff]  ;;  %v6678_v31 = vunpack.c.l.bf16 %v6733_v26  ;;  %v6679_v36 = vunpack.c.h.bf16 %v6733_v26 }
  0x21   : > { %422 = vst.msk [vmem:[#allocation2 + $0x20] sm:$0x1] %vm415_vm1, %v7623_v3  ;;  %425 = vst.msk [vmem:[#allocation2 + $0x2c] sm:$0x1] %vm415_vm1, %v7623_v3  ;;  %v1078_v38 = vrot.slane %v1077_v28, 4  ;;  %v380_v41 = vadd.f32 %v7774_v29, %v341_v33  ;;  %v381_v42 = vadd.f32 %v7774_v29, %v342_v34  ;;  %v382_v43 = vadd.f32 %v7774_v29, %v343_v35  ;;  %v7792_v45 = vld [vmem:[%s7760_s14 + $0x18] sm:$0xff]  }
  0x22   : > { %428 = vst.msk [vmem:[#allocation2 + $0x38] sm:$0x1] %vm415_vm1, %v7623_v3  ;;  %431 = vst.msk [vmem:[#allocation2 + $0x44] sm:$0x1] %vm415_vm1, %v7623_v3  ;;  %v345_v40 = vmul.f32 %v6678_v31, %v7768_v21  ;;  %v346_v44 = vmul.f32 %v6679_v36, %v7768_v21  ;;  %v383_v48 = vadd.f32 %v7774_v29, %v344_v39  ;;  %v6682_v57 = vunpack.c.l.bf16 %v7792_v45  ;;  %v891_v62 = vld [vmem:[#allocation2 + $0xc] sm:$0xf] }
  0x23   : > { %434 = vst.msk [vmem:[#allocation2 + $0x50] sm:$0x1] %vm415_vm1, %v7623_v3  ;;  %437 = vst.msk [vmem:[#allocation2 + $0x5c] sm:$0x1] %vm415_vm1, %v7623_v3  ;;  %v6604_v51 = vpack.c.bf16 %v380_v41, %v380_v41  ;;  %v6605_v52 = vpack.c.bf16 %v381_v42, %v381_v42  ;;  %v6606_v53 = vpack.c.bf16 %v382_v43, %v382_v43  ;;  %v900_v10 = vld [vmem:[#allocation2 + $0x18] sm:$0xf]  ;;  %v6683_v18 = vunpack.c.h.bf16 %v7792_v45 }
  0x24   : > { %440 = vst.msk [vmem:[#allocation2 + $0x68] sm:$0x1] %vm415_vm1, %v7623_v3  ;;  %443 = vst.msk [vmem:[#allocation2 + $0x74] sm:$0x1] %vm415_vm1, %v7623_v3  ;;  %v384_v49 = vadd.f32 %v7774_v29, %v345_v40  ;;  %v6607_v54 = vpack.c.bf16 %v383_v48, %v383_v48  ;;  %v385_v55 = vadd.f32 %v7774_v29, %v346_v44  ;;  %v6735_v34 = vld [vmem:[%s7760_s14 + $0x20] sm:$0xff]   ;;  %v6736_v40 = vld [vmem:[%s7760_s14 + $0x28] sm:$0xff]  }
  0x25   : > { %446 = vst.msk [vmem:[#allocation2 + $0x80] sm:$0x1] %vm415_vm1, %v7623_v3  ;;  %449 = vst.msk [vmem:[#allocation2 + $0x8c] sm:$0x1] %vm415_vm1, %v7623_v3  ;;  %v568_v58 = vshrl.u32 %v6604_v51, 16  ;;  %v571_v59 = vshll.u32 %v6604_v51, 16  ;;  %v347_v45 = vmul.f32 %v6682_v57, %v7768_v21  ;;  %v6686_v48 = vunpack.c.l.bf16 %v6735_v34 }
  0x26   : > { %452 = vst.msk [vmem:[#allocation2 + $0x98] sm:$0x1] %vm415_vm1, %v7623_v3  ;;  %455 = vst.msk [vmem:[#allocation2 + $0xa4] sm:$0x1] %vm415_vm1, %v7623_v3  ;;  %v6608_v56 = vpack.c.bf16 %v384_v49, %v384_v49  ;;  %v576_v60 = vshrl.u32 %v6605_v52, 16  ;;  %v579_v61 = vshll.u32 %v6605_v52, 16  ;;  %v6609_v12 = vpack.c.bf16 %v385_v55, %v385_v55 }
  0x27   : > { %458 = vst.msk [vmem:[#allocation2 + $0xb0] sm:$0x1] %vm415_vm1, %v7623_v3  ;;  %461 = vst.msk [vmem:[#allocation2 + $0xbc] sm:$0x1] %vm415_vm1, %v7623_v3  ;;  %v1041_v9 = vld [vmem:[#allocation2 + $0x8] sm:$0x1]  ;;  %v6687_v49 = vunpack.c.h.bf16 %v6735_v34  ;;  %v386_v51 = vadd.f32 %v7774_v29, %v347_v45  ;;  %v6690_v52 = vunpack.c.l.bf16 %v6736_v40 }
  0x28   : > { %464 = vst.msk [vmem:[#allocation2 + $0xc8] sm:$0x1] %vm415_vm1, %v7623_v3  ;;  %467 = vst.msk [vmem:[#allocation2 + $0xd4] sm:$0x1] %vm415_vm1, %v7623_v3  ;;  %v1080_v14 = vshll.u32 %v1041_v9, 16  ;;  %v585_v1 = vshrl.u32 %v6606_v53, 16 }
  0x29   : > { %vm7778_vm8 = vmor %vm1057_vm2, %vm1058_vm3  ;;  %v897_v0 = vld [vmem:[#allocation2 + $0x14] sm:$0x1]  ;;  %v588_v2 = vshll.u32 %v6606_v53, 16  ;;  %v593_v3 = vshrl.u32 %v6607_v54, 16  ;;  %v596_v4 = vshll.u32 %v6607_v54, 16  ;;  %v570_v8 = vrot.slane %v568_v58, 7 }
  0x2a   : > { %v1082_v22 = vrot.slane %v1080_v14, 5  ;;  %v1073_v46 = vsel %vm7778_vm8, %v1068_v37, %v1072_v19  ;;  %vm7805_vm9 = vmand %vm415_vm1, %vm564_vm5  ;;  %v578_v9 = vrot.slane %v576_v60, 7  ;;  %v904_v11 = vld [vmem:[#allocation2 + $0x20] sm:$0x1]  ;;  %v602_v13 = vshrl.u32 %v6608_v56, 16  ;;  %v7846_v57 = vld [vmem:[%s7760_s14 + $0x30] sm:$0xff]  }
  0x2b   : > { %vm7811_vm10 = vmor %vm564_vm5, %vm565_vm6  ;;  %v587_v15 = vrot.slane %v585_v1, 7  ;;  %v595_v16 = vrot.slane %v593_v3, 7  ;;  %v605_v17 = vshll.u32 %v6608_v56, 16  ;;  %v573_v19 = vor.u32 %v571_v59, %v570_v8  ;;  %v907_v39 = vld [vmem:[#allocation2 + $0x24] sm:$0xf] }
  0x2c   : > { %v1083_v47 = vsel %vm7778_vm8, %v1078_v38, %v1082_v22  ;;  %vm7817_vm11 = vmand %vm412_vm0, %vm889_vm7  ;;  %v574_v20 = vrot.slane %v570_v8, 4  ;;  %v581_v22 = vor.u32 %v579_v61, %v578_v9  ;;  %v583_v23 = vrot.slane %v578_v9, 4  ;;  %v911_v44 = vld [vmem:[#allocation2 + $0x2c] sm:$0x1] }
  0x2d   : > { %v6186_v50 = vcombine.low %v1073_v46, %v1083_v47  ;;  %v590_v24 = vor.u32 %v588_v2, %v587_v15  ;;  %v591_v25 = vrot.slane %v587_v15, 4  ;;  %v598_v26 = vor.u32 %v596_v4, %v595_v16 }
  0x2e   : > { %v600_v27 = vrot.slane %v595_v16, 4  ;;  %v582_v28 = vsel %vm7811_vm10, %v574_v20, %v581_v22  ;;  %v892_v30 = vsel %vm7817_vm11, %v573_v19, %v891_v62  ;;  %v898_v31 = vsel %vm7805_vm9, %v583_v23, %v897_v0 }
  0x2f   : > { %6913 = vmatprep.mubr.msk.bf16.mxu1 %vm1509_vm4, %v6186_v50  ;;  %v604_v33 = vrot.slane %v602_v13, 7  ;;  %893 = vst [vmem:[#allocation2 + $0xc] sm:$0xf] %v892_v30  ;;  %894 = vst.msk [vmem:[#allocation2 + $0x10] sm:$0xf] %vm412_vm0, %v582_v28  ;;  %v599_v35 = vsel %vm7811_vm10, %v591_v25, %v598_v26  ;;  %v901_v36 = vsel %vm7817_vm11, %v590_v24, %v900_v10  ;;  %v610_v38 = vshrl.u32 %v6609_v12, 16 }
  0x30   : > { %899 = vst [vmem:[#allocation2 + $0x14] sm:$0x1] %v898_v31  ;;  %v905_v37 = vsel %vm7805_vm9, %v600_v27, %v904_v11  ;;  %902 = vst [vmem:[#allocation2 + $0x18] sm:$0xf] %v901_v36  ;;  %v613_v43 = vshll.u32 %v6609_v12, 16  ;;  %v348_v47 = vmul.f32 %v6683_v18, %v7768_v21  ;;  %v6691_v53 = vunpack.c.h.bf16 %v6736_v40 }
  0x31   : > { %903 = vst.msk [vmem:[#allocation2 + $0x1c] sm:$0xf] %vm412_vm0, %v599_v35  ;;  %906 = vst [vmem:[#allocation2 + $0x20] sm:$0x1] %v905_v37  ;;  %v607_v41 = vor.u32 %v605_v17, %v604_v33  ;;  %v608_v42 = vrot.slane %v604_v33, 4  ;;  %v612_v46 = vrot.slane %v610_v38, 7  ;;  %v349_v58 = vmul.f32 %v6686_v48, %v7768_v21 }
  0x32   : > { %v387_v56 = vadd.f32 %v7774_v29, %v348_v47  ;;  %v350_v59 = vmul.f32 %v6687_v49, %v7768_v21  ;;  %v351_v60 = vmul.f32 %v6690_v52, %v7768_v21  ;;  %v352_v61 = vmul.f32 %v6691_v53, %v7768_v21 }
  0x33   : > { %v908_v50 = vsel %vm7817_vm11, %v607_v41, %v907_v39  ;;  %v615_v54 = vor.u32 %v613_v43, %v612_v46  ;;  %v617_v55 = vrot.slane %v612_v46, 4  ;;  %v7855_v1 = vpack.c.bf16 %v386_v51, %v386_v51 }
  0x34   : > { %909 = vst [vmem:[#allocation2 + $0x24] sm:$0xf] %v908_v50  ;;  %v7858_v8 = vpack.c.bf16 %v387_v56, %v387_v56  ;;  %v7861_v9 = vadd.f32 %v7774_v29, %v349_v58  ;;  %v7864_v10 = vadd.f32 %v7774_v29, %v350_v59  ;;  %v7867_v11 = vadd.f32 %v7774_v29, %v351_v60 }
  0x35   : > { %v616_v62 = vsel %vm7811_vm10, %v608_v42, %v615_v54  ;;  %v912_v0 = vsel %vm7805_vm9, %v617_v55, %v911_v44  ;;  %v7872_v22 = vadd.f32 %v7774_v29, %v352_v61  ;;  %v6694_v23 = vunpack.c.l.bf16 %v7846_v57 }
  0x36   : > { %v1007_v2 = vld [vmem:[#allocation2 + $0xc] sm:$0xf]  ;;  %v1008_v3 = vld [vmem:[#allocation2 + $0x10] sm:$0xf]  ;;  %910 = vst.msk [vmem:[#allocation2 + $0x28] sm:$0xf] %vm412_vm0, %v616_v62 }
  0x37   : > { %v1042_v4 = vld [vmem:[#allocation2 + $0x14] sm:$0x1]  ;;  %913 = vst [vmem:[#allocation2 + $0x2c] sm:$0x1] %v912_v0  ;;  %v1085_v12 = vshrl.u32 %v1007_v2, 16  ;;  %v1088_v13 = vshll.u32 %v1007_v2, 16 }
  0x38   : > { %v1094_v15 = vshll.u32 %v1008_v3, 16  ;;  %v1098_v16 = vshrl.u32 %v1008_v3, 16  ;;  %v2859_v17 = vld [vmem:[#allocation2 + $0xc] sm:$0xf]  ;;  %v1104_v18 = vshll.u32 %v1042_v4, 16  ;;  %vm2069_vm13 = vcmask 1046532  }
  0x39   : > { %v7869_v19 = vld [vmem:[#allocation2 + $0x10] sm:$0xf]  ;;  %v2908_v20 = vshrl.u32 %v2859_v17, 16  ;;  %v1087_v24 = vrot.slane %v1085_v12, 4  ;;  %v1090_v25 = vrot.slane %v1088_v13, 5  ;;  %v2911_v33 = vshll.u32 %v2859_v17, 16  ;;  %vm8088_vm14 = vmor %vm2068_vm12, %vm2069_vm13 }
  0x3a   : > { %v1096_v26 = vrot.slane %v1094_v15, 5  ;;  %v1100_v27 = vrot.slane %v1098_v16, 4  ;;  %v7875_v28 = vld [vmem:[#allocation2 + $0x14] sm:$0x1]  ;;  %v1106_v30 = vrot.slane %v1104_v18, 5  ;;  %v2917_v34 = vshll.u32 %v7869_v19, 16 }
  0x3b   : > { %v2910_v31 = vrot.slane %v2908_v20, 4  ;;  %v1091_v35 = vor.u32 %v1090_v25, %v1087_v24  ;;  %v2921_v37 = vshrl.u32 %v7869_v19, 16  ;;  %v2927_v38 = vshll.u32 %v7875_v28, 16  ;;  %v2862_v39 = vld [vmem:[#allocation2 + $0x18] sm:$0xf]  ;;  %v7509_v2 = vld [vmem:[%s9670_s1 + $0x8] sm:$0xff]  }
  0x3c   : > { %v1101_v36 = vor.u32 %v1100_v27, %v1096_v26  ;;  %v7880_v40 = vld [vmem:[#allocation2 + $0x1c] sm:$0xf]  ;;  %v2913_v41 = vrot.slane %v2911_v33, 5  ;;  %v2919_v42 = vrot.slane %v2917_v34, 5  ;;  %v3663_v43 = vrot.slane %v7869_v19, 5 }
  0x3d   : > { %v3666_v44 = vrot.slane %v7875_v28, 5  ;;  %v1092_v45 = vrot.slane %v1091_v35, 4  ;;  %v2923_v47 = vrot.slane %v2921_v37, 4  ;;  %v2929_v48 = vrot.slane %v2927_v38, 5  ;;  %v7884_v50 = vld [vmem:[#allocation2 + $0x20] sm:$0x1] }
  0x3e   : > { %v1102_v46 = vrot.slane %v1101_v36, 4  ;;  %v2914_v49 = vor.u32 %v2913_v41, %v2910_v31  ;;  %v2932_v51 = vshrl.u32 %v2862_v39, 16  ;;  %v2935_v52 = vshll.u32 %v2862_v39, 16  ;;  %v1009_v0 = vld [vmem:[#allocation2 + $0x18] sm:$0xf] }
  0x3f   : > { %v2941_v53 = vshll.u32 %v7880_v40, 16  ;;  %v1097_v54 = vsel %vm7778_vm8, %v1092_v45, %v1096_v26  ;;  %v2924_v56 = vor.u32 %v2923_v47, %v2919_v42  ;;  %v2945_v58 = vshrl.u32 %v7880_v40, 16  ;;  %v1010_v20 = vld [vmem:[#allocation2 + $0x1c] sm:$0xf]  ;;  %v1043_v27 = vld [vmem:[#allocation2 + $0x20] sm:$0x1] }
  0x40   : > { %v1107_v55 = vsel %vm7778_vm8, %v1102_v46, %v1106_v30  ;;  %v2915_v60 = vrot.slane %v2914_v49, 4  ;;  %v2934_v61 = vrot.slane %v2932_v51, 4  ;;  %v2937_v62 = vrot.slane %v2935_v52, 5  ;;  %v1011_v31 = vld [vmem:[#allocation2 + $0x24] sm:$0xf] }
  0x41   : > { %v6187_v59 = vcombine.low %v1097_v54, %v1107_v55  ;;  %v2925_v3 = vrot.slane %v2924_v56, 4  ;;  %v2943_v4 = vrot.slane %v2941_v53, 5  ;;  %v2947_v12 = vrot.slane %v2945_v58, 4  ;;  %v1044_v47 = vld [vmem:[#allocation2 + $0x2c] sm:$0x1]  ;;  %v7508_v55 = vld [vmem:[%s9670_s1 + $0x58] sm:$0xff]  }
  0x42   : > { %v2951_v13 = vshll.u32 %v7884_v50, 16  ;;  %v2920_v15 = vsel %vm7778_vm8, %v2915_v60, %v2919_v42  ;;  %v2938_v16 = vor.u32 %v2937_v62, %v2934_v61  ;;  %v3670_v17 = vrot.slane %v7880_v40, 5  ;;  %v1012_v42 = vld [vmem:[#allocation2 + $0x28] sm:$0xf]  ;;  %v2865_v54 = vld [vmem:[#allocation2 + $0x24] sm:$0xf] }
  0x43   : > { %6914 = vmatmul.mubr.msk.bf16.vlgmr.msra.gmra.mrb[0].mxu1 %vm1509_vm4, %v6187_v59  ;;  %v3673_v18 = vrot.slane %v7884_v50, 5  ;;  %v2930_v24 = vsel %vm7778_vm8, %v2925_v3, %v2929_v48  ;;  %v2948_v25 = vor.u32 %v2947_v12, %v2943_v4  ;;  %v1109_v30 = vshrl.u32 %v1009_v0, 16  ;;  %v7916_v61 = vld [vmem:[#allocation2 + $0x28] sm:$0xf]  ;;  %v7918_v12 = vld [vmem:[#allocation2 + $0x2c] sm:$0x1] }
  0x44   : > { %6946 = vmatpush3.bf16.msra.mxu1 %v7741_v5  ;;  %v2953_v26 = vrot.slane %v2951_v13, 5  ;;  %v6350_v33 = vcombine.low %v2920_v15, %v2930_v24  ;;  %v2939_v34 = vrot.slane %v2938_v16, 4  ;;  %v7906_v35 = vrot.slane %v3670_v17, 4 }
  0x45   : > { %v1112_v36 = vshll.u32 %v1009_v0, 16  ;;  %6947 = vmatprep.subr.bf16.mxu1 %v7509_v2  ;;  %v2949_v37 = vrot.slane %v2948_v25, 4  ;;  %v1111_v38 = vrot.slane %v1109_v30, 4  ;;  %v1118_v39 = vshll.u32 %v1010_v20, 16 }
  0x46   : > { %v1122_v41 = vshrl.u32 %v1010_v20, 16  ;;  %7057 = vmatprep.mubr.msk.bf16.mxu0 %vm1509_vm4, %v6350_v33  ;;  %v2944_v5 = vsel %vm7778_vm8, %v2939_v34, %v2943_v4  ;;  %v1128_v46 = vshll.u32 %v1043_v27, 16  ;;  %v1133_v48 = vshrl.u32 %v1011_v31, 16  ;;  %v7927_v34 = vld [vmem:[%s9670_s1 + $0x60] sm:$0xff]  }
  0x47   : > { %v1114_v45 = vrot.slane %v1112_v36, 5  ;;  %v2954_v49 = vsel %vm7778_vm8, %v2949_v37, %v2953_v26  ;;  %v1120_v51 = vrot.slane %v1118_v39, 5  ;;  %v1136_v53 = vshll.u32 %v1011_v31, 16 }
  0x48   : > { %v1124_v52 = vrot.slane %v1122_v41, 4  ;;  %6948 = vmatpush3.bf16.msra.mxu1 %v7509_v2  ;;  %v6351_v56 = vcombine.low %v2944_v5, %v2954_v49  ;;  %v1130_v59 = vrot.slane %v1128_v46, 5  ;;  %v1135_v60 = vrot.slane %v1133_v48, 4 }
  0x49   : > { %v1115_v58 = vor.u32 %v1114_v45, %v1111_v38  ;;  %v1138_v0 = vrot.slane %v1136_v53, 5  ;;  %v1142_v3 = vshll.u32 %v1012_v42, 16  ;;  %v1146_v4 = vshrl.u32 %v1012_v42, 16 }
  0x4a   : > { %v1125_v62 = vor.u32 %v1124_v52, %v1120_v51  ;;  %7058 = vmatmul.mubr.msk.bf16.vlgmr.msra.gmra.mrb[0].mxu0 %vm1509_vm4, %v6351_v56  ;;  %v1152_v15 = vshll.u32 %v1044_v47, 16  ;;  %v2956_v16 = vshrl.u32 %v2865_v54, 16  ;;  %v2959_v20 = vshll.u32 %v2865_v54, 16 }
  0x4b   : > { %v1116_v13 = vrot.slane %v1115_v58, 4  ;;  %7090 = vmatpush3.bf16.msra.mxu0 %v7750_v6  ;;  %v1139_v24 = vor.u32 %v1138_v0, %v1135_v60  ;;  %v1144_v25 = vrot.slane %v1142_v3, 5  ;;  %v1148_v26 = vrot.slane %v1146_v4, 4  ;;  %v914_v0 = vld [vmem:[#allocation2 + $0x30] sm:$0xf] }
  0x4c   : > { %v1126_v2 = vrot.slane %v1125_v62, 4  ;;  %v1154_v30 = vrot.slane %v1152_v15, 5  ;;  %v2958_v31 = vrot.slane %v2956_v16, 4  ;;  %v2961_v33 = vrot.slane %v2959_v20, 5  ;;  %7091 = vmatprep.subr.bf16.mxu0 %v7508_v55  ;;  %v918_v20 = vld [vmem:[#allocation2 + $0x38] sm:$0x1] }
  0x4d   : > { %v1121_v27 = vsel %vm7778_vm8, %v1116_v13, %v1120_v51  ;;  %v1140_v6 = vrot.slane %v1139_v24, 4  ;;  %v1149_v37 = vor.u32 %v1148_v26, %v1144_v25  ;;  %v2965_v38 = vshll.u32 %v7916_v61, 16 }
  0x4e   : > { %v1131_v36 = vsel %vm7778_vm8, %v1126_v2, %v1130_v59  ;;  %v2962_v41 = vor.u32 %v2961_v33, %v2958_v31  ;;  %v2969_v42 = vshrl.u32 %v7916_v61, 16  ;;  %v2975_v5 = vshll.u32 %v7918_v12, 16 }
  0x4f   : > { %v6188_v39 = vcombine.low %v1121_v27, %v1131_v36  ;;  %v1145_v45 = vsel %vm7778_vm8, %v1140_v6, %v1144_v25  ;;  %v1150_v46 = vrot.slane %v1149_v37, 4  ;;  %v2967_v47 = vrot.slane %v2965_v38, 5  ;;  %7092 = vmatpush3.bf16.msra.mxu0 %v7508_v55  ;;  %v921_v38 = vld [vmem:[#allocation2 + $0x3c] sm:$0xf] }
  0x50   : > { %v619_v48 = vshrl.u32 %v7855_v1, 16  ;;  %v2963_v49 = vrot.slane %v2962_v41, 4  ;;  %v2971_v51 = vrot.slane %v2969_v42, 4  ;;  %v2977_v52 = vrot.slane %v2975_v5, 5  ;;  %7125 = vmatprep.subr.bf16.mxu0 %v7927_v34  ;;  %v925_v42 = vld [vmem:[#allocation2 + $0x44] sm:$0x1] }
  0x51   : > { %6917 = vmatprep.mubr.msk.bf16.mxu1 %vm1509_vm4, %v6188_v39  ;;  %v622_v53 = vshll.u32 %v7855_v1, 16  ;;  %v1155_v54 = vsel %vm7778_vm8, %v1150_v46, %v1154_v30  ;;  %v627_v58 = vshrl.u32 %v7858_v8, 16  ;;  %v630_v59 = vshll.u32 %v7858_v8, 16  ;;  %v7965_v46 = vld [vmem:[%s7760_s14 + $0x38] sm:$0xff]  }
  0x52   : > { %v621_v56 = vrot.slane %v619_v48, 7  ;;  %v6189_v60 = vcombine.low %v1145_v45, %v1155_v54  ;;  %v2968_v55 = vsel %vm7778_vm8, %v2963_v49, %v2967_v47  ;;  %v2972_v62 = vor.u32 %v2971_v51, %v2967_v47 }
  0x53   : > { %v6612_v3 = vpack.c.bf16 %v7861_v9, %v7861_v9  ;;  %v629_v13 = vrot.slane %v627_v58, 7  ;;  %v6613_v15 = vpack.c.bf16 %v7864_v10, %v7864_v10  ;;  %v6614_v24 = vpack.c.bf16 %v7867_v11, %v7867_v11 }
  0x54   : > { %v624_v1 = vor.u32 %v622_v53, %v621_v56  ;;  %v625_v4 = vrot.slane %v621_v56, 4  ;;  %6918 = vmatmul.mubr.msk.bf16.gmra.mrb[4].mxu1 %vm1509_vm4, %v6189_v60  ;;  %v2973_v16 = vrot.slane %v2972_v62, 4  ;;  %v6615_v33 = vpack.c.bf16 %v7872_v22, %v7872_v22 }
  0x55   : > { %v636_v8 = vshrl.u32 %v6612_v3, 16  ;;  %v639_v2 = vshll.u32 %v6612_v3, 16  ;;  %v632_v25 = vor.u32 %v630_v59, %v629_v13  ;;  %v634_v26 = vrot.slane %v629_v13, 4  ;;  %v932_v3 = vld [vmem:[#allocation2 + $0x50] sm:$0x1] }
  0x56   : > { %v915_v9 = vsel %vm7817_vm11, %v624_v1, %v914_v0  ;;  %v644_v27 = vshrl.u32 %v6613_v15, 16  ;;  %v2978_v30 = vsel %vm7778_vm8, %v2973_v16, %v2977_v52  ;;  %v647_v31 = vshll.u32 %v6613_v15, 16  ;;  %v928_v0 = vld [vmem:[#allocation2 + $0x48] sm:$0xf] }
  0x57   : > { %916 = vst [vmem:[#allocation2 + $0x30] sm:$0xf] %v915_v9  ;;  %v638_v10 = vrot.slane %v636_v8, 7  ;;  %v6352_v36 = vcombine.low %v2968_v55, %v2978_v30  ;;  %v633_v11 = vsel %vm7811_vm10, %v625_v4, %v632_v25  ;;  %v919_v6 = vsel %vm7805_vm9, %v634_v26, %v918_v20 }
  0x58   : > { %v646_v37 = vrot.slane %v644_v27, 7  ;;  %917 = vst.msk [vmem:[#allocation2 + $0x34] sm:$0xf] %vm412_vm0, %v633_v11  ;;  %920 = vst [vmem:[#allocation2 + $0x38] sm:$0x1] %v919_v6  ;;  %v653_v5 = vshrl.u32 %v6614_v24, 16  ;;  %v6695_v53 = vunpack.c.h.bf16 %v7846_v57  ;;  %v353_v54 = vmul.f32 %v6694_v23, %v7768_v21 }
  0x59   : > { %v641_v39 = vor.u32 %v639_v2, %v638_v10  ;;  %v642_v41 = vrot.slane %v638_v10, 4  ;;  %v656_v45 = vshll.u32 %v6614_v24, 16  ;;  %7061 = vmatprep.mubr.msk.bf16.mxu0 %vm1509_vm4, %v6352_v36  ;;  %v661_v48 = vshrl.u32 %v6615_v33, 16 }
  0x5a   : > { %v649_v22 = vor.u32 %v647_v31, %v646_v37  ;;  %v651_v47 = vrot.slane %v646_v37, 4  ;;  %v664_v49 = vshll.u32 %v6615_v33, 16  ;;  %v655_v52 = vrot.slane %v653_v5, 7 }
  0x5b   : > { %v922_v51 = vsel %vm7817_vm11, %v641_v39, %v921_v38  ;;  %v663_v59 = vrot.slane %v661_v48, 7  ;;  %v6698_v60 = vunpack.c.l.bf16 %v7965_v46  ;;  %v354_v57 = vmul.f32 %v6695_v53, %v7768_v21 }
  0x5c   : > { %v650_v56 = vsel %vm7811_vm10, %v642_v41, %v649_v22  ;;  %923 = vst [vmem:[#allocation2 + $0x3c] sm:$0xf] %v922_v51  ;;  %v926_v58 = vsel %vm7805_vm9, %v651_v47, %v925_v42  ;;  %v658_v55 = vor.u32 %v656_v45, %v655_v52  ;;  %v659_v62 = vrot.slane %v655_v52, 4 }
  0x5d   : > { %924 = vst.msk [vmem:[#allocation2 + $0x40] sm:$0xf] %vm412_vm0, %v650_v56  ;;  %927 = vst [vmem:[#allocation2 + $0x44] sm:$0x1] %v926_v58  ;;  %v7982_v23 = vadd.f32 %v7774_v29, %v353_v54  ;;  %v666_v13 = vor.u32 %v664_v49, %v663_v59  ;;  %v668_v15 = vrot.slane %v663_v59, 4  ;;  %v6699_v16 = vunpack.c.h.bf16 %v7965_v46 }
  0x5e   : > { %v2868_v1 = vld [vmem:[#allocation2 + $0x30] sm:$0xf]  ;;  %v7986_v20 = vmul.f32 %v6698_v60, %v7768_v21  ;;  %v929_v10 = vsel %vm7817_vm11, %v658_v55, %v928_v0  ;;  %v7999_v33 = vadd.f32 %v7774_v29, %v354_v57 }
  0x5f   : > { %v1013_v4 = vld [vmem:[#allocation2 + $0x30] sm:$0xf]  ;;  %v2980_v8 = vshrl.u32 %v2868_v1, 16  ;;  %v2983_v2 = vshll.u32 %v2868_v1, 16  ;;  %v7988_v26 = vld [vmem:[#allocation2 + $0x34] sm:$0xf]  ;;  %v667_v30 = vsel %vm7811_vm10, %v659_v62, %v666_v13  ;;  %v933_v31 = vsel %vm7805_vm9, %v668_v15, %v932_v3 }
  0x60   : > { %v1157_v24 = vshrl.u32 %v1013_v4, 16  ;;  %v1160_v25 = vshll.u32 %v1013_v4, 16  ;;  %v7990_v9 = vld [vmem:[#allocation2 + $0x38] sm:$0x1]  ;;  %v1014_v27 = vld [vmem:[#allocation2 + $0x34] sm:$0xf] }
  0x61   : > { %v2982_v36 = vrot.slane %v2980_v8, 4  ;;  %v2985_v11 = vrot.slane %v2983_v2, 5  ;;  %v2989_v6 = vshll.u32 %v7988_v26, 16  ;;  %v2993_v37 = vshrl.u32 %v7988_v26, 16  ;;  %v1045_v38 = vld [vmem:[#allocation2 + $0x38] sm:$0x1] }
  0x62   : > { %930 = vst [vmem:[#allocation2 + $0x48] sm:$0xf] %v929_v10  ;;  %931 = vst.msk [vmem:[#allocation2 + $0x4c] sm:$0xf] %vm412_vm0, %v667_v30  ;;  %v2999_v39 = vshll.u32 %v7990_v9, 16  ;;  %v1159_v41 = vrot.slane %v1157_v24, 4 }
  0x63   : > { %934 = vst [vmem:[#allocation2 + $0x50] sm:$0x1] %v933_v31  ;;  %v1162_v42 = vrot.slane %v1160_v25, 5  ;;  %v1166_v5 = vshll.u32 %v1014_v27, 16  ;;  %v2986_v45 = vor.u32 %v2985_v11, %v2982_v36  ;;  %v2991_v22 = vrot.slane %v2989_v6, 5 }
  0x64   : > { %v2995_v47 = vrot.slane %v2993_v37, 4  ;;  %v1170_v48 = vshrl.u32 %v1014_v27, 16  ;;  %v1015_v49 = vld [vmem:[#allocation2 + $0x3c] sm:$0xf]  ;;  %v3001_v51 = vrot.slane %v2999_v39, 5  ;;  %v1176_v54 = vshll.u32 %v1045_v38, 16 }
  0x65   : > { %v1163_v52 = vor.u32 %v1162_v42, %v1159_v41  ;;  %v1168_v53 = vrot.slane %v1166_v5, 5  ;;  %v1016_v56 = vld [vmem:[#allocation2 + $0x40] sm:$0xf]  ;;  %v2987_v58 = vrot.slane %v2986_v45, 4  ;;  %v1046_v55 = vld [vmem:[#allocation2 + $0x44] sm:$0x1] }
  0x66   : > { %v2996_v59 = vor.u32 %v2995_v47, %v2991_v22  ;;  %v1172_v60 = vrot.slane %v1170_v48, 4  ;;  %v1181_v62 = vshrl.u32 %v1015_v49, 16  ;;  %v1178_v3 = vrot.slane %v1176_v54, 5  ;;  %v2871_v4 = vld [vmem:[#allocation2 + $0x3c] sm:$0xf] }
  0x67   : > { %v1164_v0 = vrot.slane %v1163_v52, 4  ;;  %v1184_v57 = vshll.u32 %v1015_v49, 16  ;;  %v1190_v1 = vshll.u32 %v1016_v56, 16  ;;  %v2992_v13 = vsel %vm7778_vm8, %v2987_v58, %v2991_v22  ;;  %v8009_v10 = vld [vmem:[#allocation2 + $0x40] sm:$0xf] }
  0x68   : > { %v2997_v15 = vrot.slane %v2996_v59, 4  ;;  %v1173_v8 = vor.u32 %v1172_v60, %v1168_v53  ;;  %v1183_v2 = vrot.slane %v1181_v62, 4  ;;  %v1194_v30 = vshrl.u32 %v1016_v56, 16  ;;  %v8013_v41 = vld [vmem:[#allocation2 + $0x44] sm:$0x1] }
  0x69   : > { %v1169_v24 = vsel %vm7778_vm8, %v1164_v0, %v1168_v53  ;;  %v1186_v25 = vrot.slane %v1184_v57, 5  ;;  %v1192_v27 = vrot.slane %v1190_v1, 5  ;;  %v1200_v11 = vshll.u32 %v1046_v55, 16  ;;  %v2874_v5 = vld [vmem:[#allocation2 + $0x48] sm:$0xf] }
  0x6a   : > { %v3002_v31 = vsel %vm7778_vm8, %v2997_v15, %v3001_v51  ;;  %v1174_v36 = vrot.slane %v1173_v8, 4  ;;  %v3004_v6 = vshrl.u32 %v2871_v4, 16  ;;  %v1196_v39 = vrot.slane %v1194_v30, 4  ;;  %v8019_v54 = vld [vmem:[#allocation2 + $0x4c] sm:$0xf] }
  0x6b   : > { %v6353_v37 = vcombine.low %v2992_v13, %v3002_v31  ;;  %v1187_v38 = vor.u32 %v1186_v25, %v1183_v2  ;;  %v3007_v42 = vshll.u32 %v2871_v4, 16  ;;  %v1202_v22 = vrot.slane %v1200_v11, 5  ;;  %v8021_v56 = vld [vmem:[#allocation2 + $0x50] sm:$0x1]  ;;  %v1017_v62 = vld [vmem:[#allocation2 + $0x48] sm:$0xf] }
  0x6c   : > { %v1179_v45 = vsel %vm7778_vm8, %v1174_v36, %v1178_v3  ;;  %v3006_v47 = vrot.slane %v3004_v6, 4  ;;  %v3013_v48 = vshll.u32 %v8009_v10, 16  ;;  %v1197_v52 = vor.u32 %v1196_v39, %v1192_v27  ;;  %v1018_v4 = vld [vmem:[#allocation2 + $0x4c] sm:$0xf]  ;;  %v1047_v36 = vld [vmem:[#allocation2 + $0x50] sm:$0x1] }
  0x6d   : > { %7062 = vmatmul.mubr.msk.bf16.gmra.mrb[4].mxu0 %vm1509_vm4, %v6353_v37  ;;  %v6190_v49 = vcombine.low %v1169_v24, %v1179_v45  ;;  %v1188_v51 = vrot.slane %v1187_v38, 4  ;;  %v3009_v53 = vrot.slane %v3007_v42, 5  ;;  %v3017_v59 = vshrl.u32 %v8009_v10, 16 }
  0x6e   : > { %v3015_v58 = vrot.slane %v3013_v48, 5  ;;  %v3023_v60 = vshll.u32 %v8013_v41, 16  ;;  %v3028_v55 = vshrl.u32 %v2874_v5, 16  ;;  %v1198_v3 = vrot.slane %v1197_v52, 4 }
  0x6f   : > { %6921 = vmatprep.mubr.msk.bf16.mxu1 %vm1509_vm4, %v6190_v49  ;;  %v1193_v0 = vsel %vm7778_vm8, %v1188_v51, %v1192_v27  ;;  %v3010_v57 = vor.u32 %v3009_v53, %v3006_v47  ;;  %v3031_v1 = vshll.u32 %v2874_v5, 16  ;;  %v3019_v13 = vrot.slane %v3017_v59, 4 }
  0x70   : > { %v3025_v15 = vrot.slane %v3023_v60, 5  ;;  %v3030_v8 = vrot.slane %v3028_v55, 4  ;;  %v3037_v2 = vshll.u32 %v8019_v54, 16  ;;  %v1203_v24 = vsel %vm7778_vm8, %v1198_v3, %v1202_v22 }
  0x71   : > { %v3011_v25 = vrot.slane %v3010_v57, 4  ;;  %v3033_v30 = vrot.slane %v3031_v1, 5  ;;  %v3041_v31 = vshrl.u32 %v8019_v54, 16  ;;  %v6191_v11 = vcombine.low %v1193_v0, %v1203_v24 }
  0x72   : > { %v3020_v6 = vor.u32 %v3019_v13, %v3015_v58  ;;  %v3039_v27 = vrot.slane %v3037_v2, 5  ;;  %v3047_v37 = vshll.u32 %v8021_v56, 16  ;;  %v1205_v5 = vshrl.u32 %v1017_v62, 16 }
  0x73   : > { %v3016_v38 = vsel %vm7778_vm8, %v3011_v25, %v3015_v58  ;;  %v3034_v39 = vor.u32 %v3033_v30, %v3030_v8  ;;  %v3043_v42 = vrot.slane %v3041_v31, 4  ;;  %6922 = vmatmul.mubr.msk.bf16.gmra.mrb[8].mxu1 %vm1509_vm4, %v6191_v11  ;;  %v1208_v47 = vshll.u32 %v1017_v62, 16  ;;  %v7511_v62 = vld [vmem:[%s9670_s1 + $0x20] sm:$0xff]  }
  0x74   : > { %v3021_v45 = vrot.slane %v3020_v6, 4  ;;  %v3049_v22 = vrot.slane %v3047_v37, 5  ;;  %v1214_v48 = vshll.u32 %v1018_v4, 16  ;;  %v1207_v52 = vrot.slane %v1205_v5, 4  ;;  %v6739_v31 = vld [vmem:[%s7760_s14 + $0x40] sm:$0xff]   ;;  %6981 = vmatprep.subr.bf16.mxu1 %v7511_v62 }
  0x75   : > { %v3035_v49 = vrot.slane %v3034_v39, 4  ;;  %v3044_v51 = vor.u32 %v3043_v42, %v3039_v27  ;;  %v1218_v53 = vshrl.u32 %v1018_v4, 16  ;;  %v1210_v60 = vrot.slane %v1208_v47, 5  ;;  %v935_v5 = vld [vmem:[#allocation2 + $0x54] sm:$0xf] }
  0x76   : > { %v3026_v59 = vsel %vm7778_vm8, %v3021_v45, %v3025_v15  ;;  %v1216_v55 = vrot.slane %v1214_v48, 5  ;;  %v1224_v58 = vshll.u32 %v1047_v36, 16  ;;  %v6616_v4 = vpack.c.bf16 %v7982_v23, %v7982_v23 }
  0x77   : > { %v6354_v0 = vcombine.low %v3016_v38, %v3026_v59  ;;  %v3040_v3 = vsel %vm7778_vm8, %v3035_v49, %v3039_v27  ;;  %v3045_v57 = vrot.slane %v3044_v51, 4  ;;  %v1220_v1 = vrot.slane %v1218_v53, 4  ;;  %v939_v51 = vld [vmem:[#allocation2 + $0x5c] sm:$0x1] }
  0x78   : > { %v1211_v13 = vor.u32 %v1210_v60, %v1207_v52  ;;  %v1226_v8 = vrot.slane %v1224_v58, 5  ;;  %v6617_v15 = vpack.c.bf16 %v7999_v33, %v7999_v33  ;;  %v356_v25 = vmul.f32 %v6699_v16, %v7768_v21 }
  0x79   : > { %7065 = vmatprep.mubr.msk.bf16.mxu0 %vm1509_vm4, %v6354_v0  ;;  %v3050_v2 = vsel %vm7778_vm8, %v3045_v57, %v3049_v22  ;;  %v1221_v24 = vor.u32 %v1220_v1, %v1216_v55  ;;  %v394_v30 = vadd.f32 %v7774_v29, %v7986_v20  ;;  %v670_v23 = vshrl.u32 %v6616_v4, 16 }
  0x7a   : > { %v6355_v36 = vcombine.low %v3040_v3, %v3050_v2  ;;  %v1212_v11 = vrot.slane %v1211_v13, 4  ;;  %v673_v6 = vshll.u32 %v6616_v4, 16  ;;  %v678_v27 = vshrl.u32 %v6617_v15, 16  ;;  %v8068_v3 = vld [vmem:[%s9671_s2] ss:$0 sm:$0xff] }
  0x7b   : > { %v1222_v33 = vrot.slane %v1221_v24, 4  ;;  %v681_v37 = vshll.u32 %v6617_v15, 16  ;;  %v395_v38 = vadd.f32 %v7774_v29, %v356_v25  ;;  %v672_v21 = vrot.slane %v670_v23, 7  ;;  %v3597_v15 = vld [vmem:[#allocation2 + $0xc] sm:$0xe] }
  0x7c   : > { %7066 = vmatmul.mubr.msk.bf16.gmra.mrb[8].mxu0 %vm1509_vm4, %v6355_v36  ;;  %v1217_v46 = vsel %vm7778_vm8, %v1212_v11, %v1216_v55  ;;  %v6618_v16 = vpack.c.bf16 %v394_v30, %v394_v30  ;;  %v6702_v39 = vunpack.c.l.bf16 %v6739_v31  ;;  %v680_v42 = vrot.slane %v678_v27, 7  ;;  %v946_v25 = vld [vmem:[#allocation2 + $0x68] sm:$0x1]  ;;  %v8080_v30 = vld [vmem:[%s9672_s3] ss:$0 sm:$0xff] }
  0x7d   : > { %v1227_v20 = vsel %vm7778_vm8, %v1222_v33, %v1226_v8  ;;  %v6619_v45 = vpack.c.bf16 %v395_v38, %v395_v38  ;;  %v6703_v22 = vunpack.c.h.bf16 %v6739_v31  ;;  %v675_v48 = vor.u32 %v673_v6, %v672_v21  ;;  %v942_v8 = vld [vmem:[#allocation2 + $0x60] sm:$0xf]  ;;  %v3598_v36 = vld [vmem:[#allocation2 + $0x18] sm:$0xe] }
  0x7e   : > { %v6192_v47 = vcombine.low %v1217_v46, %v1227_v20  ;;  %v676_v49 = vrot.slane %v672_v21, 4  ;;  %v687_v29 = vshrl.u32 %v6618_v16, 16  ;;  %v683_v52 = vor.u32 %v681_v37, %v680_v42 }
  0x7f   : > { %v685_v53 = vrot.slane %v680_v42, 4  ;;  %v690_v59 = vshll.u32 %v6618_v16, 16  ;;  %v695_v60 = vshrl.u32 %v6619_v45, 16  ;;  %v936_v55 = vsel %vm7817_vm11, %v675_v48, %v935_v5  ;;  %v8101_v42 = vld [vmem:[%s7760_s14 + $0x48] sm:$0xff]   ;;  %v8119_v48 = vld [vmem:[%s7760_s14 + $0x50] sm:$0xff]  }
  0x80   : > { %6925 = vmatprep.mubr.msk.bf16.mxu1 %vm1509_vm4, %v6192_v47  ;;  %v689_v58 = vrot.slane %v687_v29, 7  ;;  %v698_v0 = vshll.u32 %v6619_v45, 16  ;;  %v357_v57 = vmul.f32 %v8068_v3, %v6702_v39  ;;  %v684_v1 = vsel %vm7811_vm10, %v676_v49, %v683_v52  ;;  %937 = vst [vmem:[#allocation2 + $0x54] sm:$0xf] %v936_v55 }
  0x81   : > { %v940_v62 = vsel %vm7805_vm9, %v685_v53, %v939_v51  ;;  %v697_v13 = vrot.slane %v695_v60, 7  ;;  %v358_v4 = vmul.f32 %v8068_v3, %v6703_v22  ;;  %938 = vst.msk [vmem:[#allocation2 + $0x58] sm:$0xf] %vm412_vm0, %v684_v1  ;;  %v6384_v38 = vrot.slane %v3597_v15, 9 }
  0x82   : > { %941 = vst [vmem:[#allocation2 + $0x5c] sm:$0x1] %v940_v62  ;;  %v692_v2 = vor.u32 %v690_v59, %v689_v58  ;;  %v693_v24 = vrot.slane %v689_v58, 4  ;;  %v396_v31 = vadd.f32 %v8080_v30, %v357_v57  ;;  %v3665_v46 = vrot.slane %v3663_v43, 4 }
  0x83   : > { %v700_v11 = vor.u32 %v698_v0, %v697_v13  ;;  %v702_v23 = vrot.slane %v697_v13, 4  ;;  %v397_v6 = vadd.f32 %v8080_v30, %v358_v4  ;;  %v6385_v20 = vrot.slane %v3598_v36, 9 }
  0x84   : > { %v943_v33 = vsel %vm7817_vm11, %v692_v2, %v942_v8  ;;  %v8086_v27 = vpack.c.bf16 %v396_v31, %v396_v31  ;;  %v8110_v22 = vsel %vm8088_vm14, %v6384_v38, %v3663_v43  ;;  %v8116_v47 = vsel %vm8088_vm14, %v3665_v46, %v3666_v44 }
  0x85   : > { %v701_v21 = vsel %vm7811_vm10, %v693_v24, %v700_v11  ;;  %944 = vst [vmem:[#allocation2 + $0x60] sm:$0xf] %v943_v33  ;;  %v947_v16 = vsel %vm7805_vm9, %v702_v23, %v946_v25  ;;  %v8098_v39 = vpack.c.bf16 %v397_v6, %v397_v6  ;;  %v6404_v29 = vcombine.low %v8110_v22, %v8116_v47 }
  0x86   : > { %945 = vst.msk [vmem:[#allocation2 + $0x64] sm:$0xf] %vm412_vm0, %v701_v21  ;;  %948 = vst [vmem:[#allocation2 + $0x68] sm:$0x1] %v947_v16  ;;  %v704_v5 = vshrl.u32 %v8086_v27, 16  ;;  %v707_v45 = vshll.u32 %v8086_v27, 16  ;;  %v8129_v19 = vsel %vm8088_vm14, %v6385_v20, %v3670_v17  ;;  %v8138_v44 = vsel %vm8088_vm14, %v7906_v35, %v3673_v18 }
  0x87   : > { %v712_v49 = vshrl.u32 %v8098_v39, 16  ;;  %v715_v51 = vshll.u32 %v8098_v39, 16  ;;  %v1019_v28 = vld [vmem:[#allocation2 + $0x54] sm:$0xf]  ;;  %v6706_v53 = vunpack.c.l.bf16 %v8101_v42  ;;  %v6707_v59 = vunpack.c.h.bf16 %v8101_v42 }
  0x88   : > { %v2877_v43 = vld [vmem:[#allocation2 + $0x54] sm:$0xf]  ;;  %v8131_v52 = vrot.slane %v704_v5, 7  ;;  %v1020_v40 = vld [vmem:[#allocation2 + $0x58] sm:$0xf]  ;;  %v1229_v55 = vshrl.u32 %v1019_v28, 16  ;;  %v6405_v58 = vcombine.low %v8129_v19, %v8138_v44  ;;  %v6710_v0 = vunpack.c.l.bf16 %v8119_v48 }
  0x89   : > { %v1048_v60 = vld [vmem:[#allocation2 + $0x5c] sm:$0x1]  ;;  %v1232_v17 = vshll.u32 %v1019_v28, 16  ;;  %v1238_v57 = vshll.u32 %v1020_v40, 16  ;;  %v1242_v50 = vshrl.u32 %v1020_v40, 16  ;;  %v3052_v18 = vshrl.u32 %v2877_v43, 16 }
  0x8a   : > { %v1248_v1 = vshll.u32 %v1048_v60, 16  ;;  %v8145_v62 = vld [vmem:[#allocation2 + $0x58] sm:$0xf]  ;;  %v1231_v35 = vrot.slane %v1229_v55, 4  ;;  %v8147_v8 = vld [vmem:[#allocation2 + $0x5c] sm:$0x1]  ;;  %v359_v27 = vmul.f32 %v8068_v3, %v6706_v53 }
  0x8b   : > { %v1234_v13 = vrot.slane %v1232_v17, 5  ;;  %v3055_v4 = vshll.u32 %v2877_v43, 16  ;;  %v3061_v15 = vshll.u32 %v8145_v62, 16  ;;  %v1240_v2 = vrot.slane %v1238_v57, 5 }
  0x8c   : > { %v1244_v24 = vrot.slane %v1242_v50, 4  ;;  %v1250_v25 = vrot.slane %v1248_v1, 5  ;;  %v3054_v31 = vrot.slane %v3052_v18, 4  ;;  %v2880_v36 = vld [vmem:[#allocation2 + $0x60] sm:$0xf]  ;;  %v3065_v33 = vshrl.u32 %v8145_v62, 16 }
  0x8d   : > { %v1235_v11 = vor.u32 %v1234_v13, %v1231_v35  ;;  %v3057_v23 = vrot.slane %v3055_v4, 5  ;;  %v3063_v6 = vrot.slane %v3061_v15, 5  ;;  %v8151_v38 = vld [vmem:[#allocation2 + $0x64] sm:$0xf]  ;;  %v3071_v21 = vshll.u32 %v8147_v8, 16 }
  0x8e   : > { %v1245_v46 = vor.u32 %v1244_v24, %v1240_v2  ;;  %v3076_v16 = vshrl.u32 %v2880_v36, 16  ;;  %v3079_v20 = vshll.u32 %v2880_v36, 16  ;;  %v3067_v43 = vrot.slane %v3065_v33, 4  ;;  %v8154_v40 = vld [vmem:[#allocation2 + $0x68] sm:$0x1] }
  0x8f   : > { %v1236_v5 = vrot.slane %v1235_v11, 4  ;;  %v3058_v28 = vor.u32 %v3057_v23, %v3054_v31  ;;  %v3085_v60 = vshll.u32 %v8151_v38, 16  ;;  %v3073_v17 = vrot.slane %v3071_v21, 5  ;;  %v1021_v1 = vld [vmem:[#allocation2 + $0x60] sm:$0xf] }
  0x90   : > { %v1246_v55 = vrot.slane %v1245_v46, 4  ;;  %v3078_v57 = vrot.slane %v3076_v16, 4  ;;  %v3081_v50 = vrot.slane %v3079_v20, 5  ;;  %v3068_v13 = vor.u32 %v3067_v43, %v3063_v6  ;;  %v1022_v15 = vld [vmem:[#allocation2 + $0x64] sm:$0xf] }
  0x91   : > { %v1241_v18 = vsel %vm7778_vm8, %v1236_v5, %v1240_v2  ;;  %v3059_v35 = vrot.slane %v3058_v28, 4  ;;  %v3087_v4 = vrot.slane %v3085_v60, 5  ;;  %v3089_v36 = vshrl.u32 %v8151_v38, 16  ;;  %v1049_v23 = vld [vmem:[#allocation2 + $0x68] sm:$0x1] }
  0x92   : > { %v1251_v24 = vsel %vm7778_vm8, %v1246_v55, %v1250_v25  ;;  %v3082_v31 = vor.u32 %v3081_v50, %v3078_v57  ;;  %v3095_v11 = vshll.u32 %v8154_v40, 16  ;;  %v3069_v21 = vrot.slane %v3068_v13, 4  ;;  %v949_v43 = vld [vmem:[#allocation2 + $0x6c] sm:$0xf] }
  0x93   : > { %v6193_v33 = vcombine.low %v1241_v18, %v1251_v24  ;;  %v3064_v46 = vsel %vm7778_vm8, %v3059_v35, %v3063_v6  ;;  %v1253_v16 = vshrl.u32 %v1021_v1, 16  ;;  %v3091_v20 = vrot.slane %v3089_v36, 4 }
  0x94   : > { %v3083_v2 = vrot.slane %v3082_v31, 4  ;;  %v3097_v5 = vrot.slane %v3095_v11, 5  ;;  %v1256_v28 = vshll.u32 %v1021_v1, 16  ;;  %v3074_v25 = vsel %vm7778_vm8, %v3069_v21, %v3073_v17  ;;  %v953_v21 = vld [vmem:[#allocation2 + $0x74] sm:$0x1] }
  0x95   : > { %6926 = vmatmul.mubr.msk.bf16.gmra.mrb[12].mxu1 %vm1509_vm4, %v6193_v33  ;;  %v1255_v60 = vrot.slane %v1253_v16, 4  ;;  %v1262_v55 = vshll.u32 %v1022_v15, 16  ;;  %v1266_v57 = vshrl.u32 %v1022_v15, 16  ;;  %v6356_v50 = vcombine.low %v3064_v46, %v3074_v25 }
  0x96   : > { %v3088_v18 = vsel %vm7778_vm8, %v3083_v2, %v3087_v4  ;;  %v3092_v6 = vor.u32 %v3091_v20, %v3087_v4  ;;  %v1258_v35 = vrot.slane %v1256_v28, 5  ;;  %v1272_v31 = vshll.u32 %v1049_v23, 16 }
  0x97   : > { %v1264_v13 = vrot.slane %v1262_v55, 5  ;;  %v1268_v24 = vrot.slane %v1266_v57, 4  ;;  %v709_v1 = vor.u32 %v707_v45, %v8131_v52  ;;  %7069 = vmatprep.mubr.msk.bf16.mxu0 %vm1509_vm4, %v6356_v50  ;;  %v710_v11 = vrot.slane %v8131_v52, 4 }
  0x98   : > { %v3093_v36 = vrot.slane %v3092_v6, 4  ;;  %v1259_v17 = vor.u32 %v1258_v35, %v1255_v60  ;;  %v714_v15 = vrot.slane %v712_v49, 7  ;;  %v1274_v46 = vrot.slane %v1272_v31, 5 }
  0x99   : > { %v1269_v33 = vor.u32 %v1268_v24, %v1264_v13  ;;  %v950_v4 = vsel %vm7817_vm11, %v709_v1, %v949_v43  ;;  %v360_v20 = vmul.f32 %v8068_v3, %v6707_v59  ;;  %v398_v28 = vadd.f32 %v8080_v30, %v359_v27  ;;  %v3599_v43 = vld [vmem:[#allocation2 + $0x24] sm:$0xe] }
  0x9a   : > { %v3098_v45 = vsel %vm7778_vm8, %v3093_v36, %v3097_v5  ;;  %v1260_v23 = vrot.slane %v1259_v17, 4  ;;  %v717_v52 = vor.u32 %v715_v51, %v714_v15  ;;  %v719_v16 = vrot.slane %v714_v15, 4  ;;  %951 = vst [vmem:[#allocation2 + $0x6c] sm:$0xf] %v950_v4  ;;  %v8218_v17 = vld [vmem:[%s7760_s14 + $0x58] sm:$0xff]  }
  0x9b   : > { %v6357_v49 = vcombine.low %v3088_v18, %v3098_v45  ;;  %v1270_v2 = vrot.slane %v1269_v33, 4  ;;  %v6711_v51 = vunpack.c.h.bf16 %v8119_v48  ;;  %v399_v59 = vadd.f32 %v8080_v30, %v360_v20  ;;  %v956_v33 = vld [vmem:[#allocation2 + $0x78] sm:$0xf] }
  0x9c   : > { %v1265_v53 = vsel %vm7778_vm8, %v1260_v23, %v1264_v13  ;;  %v718_v5 = vsel %vm7811_vm10, %v710_v11, %v717_v52  ;;  %v954_v39 = vsel %vm7805_vm9, %v719_v16, %v953_v21  ;;  %v6622_v25 = vpack.c.bf16 %v398_v28, %v398_v28 }
  0x9d   : > { %7070 = vmatmul.mubr.msk.bf16.gmra.mrb[12].mxu0 %vm1509_vm4, %v6357_v49  ;;  %v1275_v42 = vsel %vm7778_vm8, %v1270_v2, %v1274_v46  ;;  %952 = vst.msk [vmem:[#allocation2 + $0x70] sm:$0xf] %vm412_vm0, %v718_v5  ;;  %955 = vst [vmem:[#allocation2 + $0x74] sm:$0x1] %v954_v39  ;;  %v361_v60 = vmul.f32 %v8068_v3, %v6710_v0  ;;  %v362_v57 = vmul.f32 %v8068_v3, %v6711_v51  ;;  %v960_v51 = vld [vmem:[#allocation2 + $0x80] sm:$0x1] }
  0x9e   : > { %v6194_v55 = vcombine.low %v1265_v53, %v1275_v42  ;;  %7093 = vmatprep.mubr.msk.bf16.mxu0 %vm1509_vm4, %v6404_v29  ;;  %v6386_v50 = vrot.slane %v3599_v43, 9  ;;  %v3677_v18 = vrot.slane %v7916_v61, 5  ;;  %v6623_v6 = vpack.c.bf16 %v399_v59, %v399_v59 }
  0x9f   : > { %v721_v35 = vshrl.u32 %v6622_v25, 16  ;;  %v724_v13 = vshll.u32 %v6622_v25, 16  ;;  %v400_v24 = vadd.f32 %v8080_v30, %v361_v60  ;;  %v401_v48 = vadd.f32 %v8080_v30, %v362_v57 }
  0xa0   : > { %6929 = vmatprep.mubr.msk.bf16.mxu1 %vm1509_vm4, %v6194_v55  ;;  %v3678_v22 = vsel %vm8088_vm14, %v6386_v50, %v3677_v18  ;;  %v3679_v47 = vrot.slane %v3677_v18, 4  ;;  %v3680_v29 = vrot.slane %v7918_v12, 5  ;;  %v729_v1 = vshrl.u32 %v6623_v6, 16  ;;  %v7512_v12 = vld [vmem:[%s9670_s1 + $0x68] sm:$0xff]   ;;  %v3600_v55 = vld [vmem:[#allocation2 + $0x30] sm:$0xe] }
  0xa1   : > { %v1023_v0 = vld [vmem:[#allocation2 + $0x6c] sm:$0xf]  ;;  %v723_v31 = vrot.slane %v721_v35, 7  ;;  %v732_v36 = vshll.u32 %v6623_v6, 16  ;;  %v6624_v61 = vpack.c.bf16 %v400_v24, %v400_v24  ;;  %v6625_v46 = vpack.c.bf16 %v401_v48, %v401_v48 }
  0xa2   : > { %v1277_v11 = vshrl.u32 %v1023_v0, 16  ;;  %v1280_v15 = vshll.u32 %v1023_v0, 16  ;;  %v3681_v4 = vsel %vm8088_vm14, %v3679_v47, %v3680_v29  ;;  %v731_v45 = vrot.slane %v729_v1, 7  ;;  %v6743_v29 = vld [vmem:[%s7760_s14 + $0x60] sm:$0xff]  }
  0xa3   : > { %v726_v21 = vor.u32 %v724_v13, %v723_v31  ;;  %v727_v27 = vrot.slane %v723_v31, 4  ;;  %v738_v23 = vshrl.u32 %v6624_v61, 16  ;;  %v6406_v20 = vcombine.low %v3678_v22, %v3681_v4  ;;  %v963_v22 = vld [vmem:[#allocation2 + $0x84] sm:$0xf]  ;;  %v967_v4 = vld [vmem:[#allocation2 + $0x8c] sm:$0x1] }
  0xa4   : > { %v1024_v52 = vld [vmem:[#allocation2 + $0x70] sm:$0xf]  ;;  %v1050_v16 = vld [vmem:[#allocation2 + $0x74] sm:$0x1]  ;;  %v1279_v49 = vrot.slane %v1277_v11, 4  ;;  %v1282_v2 = vrot.slane %v1280_v15, 5  ;;  %v6714_v28 = vunpack.c.l.bf16 %v8218_v17  ;;  %v734_v39 = vor.u32 %v732_v36, %v731_v45 }
  0xa5   : > { %v1286_v43 = vshll.u32 %v1024_v52, 16  ;;  %v1290_v53 = vshrl.u32 %v1024_v52, 16  ;;  %v1296_v5 = vshll.u32 %v1050_v16, 16  ;;  %7094 = vmatmul.mubr.msk.bf16.vlgmr.msra.gmra.mrb[0].mxu0 %vm1509_vm4, %v6405_v58  ;;  %v736_v59 = vrot.slane %v731_v45, 4 }
  0xa6   : > { %v1283_v42 = vor.u32 %v1282_v2, %v1279_v49  ;;  %7126 = vmatpush3.bf16.msra.mxu0 %v7927_v34  ;;  %v957_v25 = vsel %vm7817_vm11, %v726_v21, %v956_v33  ;;  %v740_v60 = vrot.slane %v738_v23, 7  ;;  %7097 = vmatprep.mubr.msk.bf16.mxu0 %vm1509_vm4, %v6406_v20  ;;  %v735_v19 = vsel %vm7811_vm10, %v727_v27, %v734_v39  ;;  %v7515_v34 = vld [vmem:[%s9670_s1 + $0x70] sm:$0xff]  }
  0xa7   : > { %v1288_v57 = vrot.slane %v1286_v43, 5  ;;  %v1292_v50 = vrot.slane %v1290_v53, 4  ;;  %v1298_v18 = vrot.slane %v1296_v5, 5  ;;  %958 = vst [vmem:[#allocation2 + $0x78] sm:$0xf] %v957_v25  ;;  %7127 = vmatprep.subr.bf16.mxu0 %v7512_v12  ;;  %v961_v58 = vsel %vm7805_vm9, %v736_v59, %v960_v51 }
  0xa8   : > { %v1284_v44 = vrot.slane %v1283_v42, 4  ;;  %959 = vst.msk [vmem:[#allocation2 + $0x7c] sm:$0xf] %vm412_vm0, %v735_v19  ;;  %v741_v6 = vshll.u32 %v6624_v61, 16  ;;  %v744_v35 = vrot.slane %v740_v60, 4  ;;  %v746_v24 = vshrl.u32 %v6625_v46, 16 }
  0xa9   : > { %v1293_v13 = vor.u32 %v1292_v50, %v1288_v57  ;;  %962 = vst [vmem:[#allocation2 + $0x80] sm:$0x1] %v961_v58  ;;  %v749_v48 = vshll.u32 %v6625_v46, 16  ;;  %v6387_v47 = vrot.slane %v3600_v55, 9  ;;  %v3684_v1 = vrot.slane %v7988_v26, 5 }
  0xaa   : > { %v1289_v0 = vsel %vm7778_vm8, %v1284_v44, %v1288_v57  ;;  %v743_v31 = vor.u32 %v741_v6, %v740_v60  ;;  %v3687_v36 = vrot.slane %v7990_v9, 5  ;;  %7128 = vmatpush3.bf16.msra.mxu0 %v7512_v12  ;;  %v748_v15 = vrot.slane %v746_v24, 7 }
  0xab   : > { %v1294_v11 = vrot.slane %v1293_v13, 4  ;;  %v6715_v61 = vunpack.c.h.bf16 %v8218_v17  ;;  %v363_v33 = vmul.f32 %v8068_v3, %v6714_v28  ;;  %7161 = vmatprep.subr.bf16.mxu0 %v7515_v34  ;;  %v3685_v21 = vsel %vm8088_vm14, %v6387_v47, %v3684_v1 }
  0xac   : > { %v964_v46 = vsel %vm7817_vm11, %v743_v31, %v963_v22  ;;  %v3686_v27 = vrot.slane %v3684_v1, 4  ;;  %v6718_v45 = vunpack.c.l.bf16 %v6743_v29  ;;  %v751_v9 = vor.u32 %v749_v48, %v748_v15 }
  0xad   : > { %v1299_v26 = vsel %vm7778_vm8, %v1294_v11, %v1298_v18  ;;  %v753_v23 = vrot.slane %v748_v15, 4  ;;  %965 = vst [vmem:[#allocation2 + $0x84] sm:$0xf] %v964_v46  ;;  %v364_v17 = vmul.f32 %v8068_v3, %v6715_v61  ;;  %v402_v49 = vadd.f32 %v8080_v30, %v363_v33  ;;  %v970_v61 = vld [vmem:[#allocation2 + $0x90] sm:$0xf] }
  0xae   : > { %v6195_v12 = vcombine.low %v1289_v0, %v1299_v26  ;;  %v8256_v52 = vld [vmem:[#allocation2 + $0x78] sm:$0xf]  ;;  %v3688_v16 = vsel %vm8088_vm14, %v3686_v27, %v3687_v36  ;;  %v6719_v2 = vunpack.c.h.bf16 %v6743_v29  ;;  %v752_v53 = vsel %vm7811_vm10, %v744_v35, %v751_v9 }
  0xaf   : > { %v8261_v20 = vld [vmem:[#allocation2 + $0x7c] sm:$0xf]  ;;  %v1301_v28 = vshrl.u32 %v8256_v52, 16  ;;  %v1304_v43 = vshll.u32 %v8256_v52, 16  ;;  %v968_v5 = vsel %vm7805_vm9, %v753_v23, %v967_v4  ;;  %966 = vst.msk [vmem:[#allocation2 + $0x88] sm:$0xf] %vm412_vm0, %v752_v53  ;;  %v6407_v59 = vcombine.low %v3685_v21, %v3688_v16 }
  0xb0   : > { %6930 = vmatmul.mubr.msk.bf16.gmra.mrb[16].mxu1 %vm1509_vm4, %v6195_v12  ;;  %v1051_v39 = vld [vmem:[#allocation2 + $0x80] sm:$0x1]  ;;  %v1310_v51 = vshll.u32 %v8261_v20, 16  ;;  %v1314_v42 = vshrl.u32 %v8261_v20, 16  ;;  %969 = vst [vmem:[#allocation2 + $0x8c] sm:$0x1] %v968_v5  ;;  %v403_v25 = vadd.f32 %v8080_v30, %v364_v17  ;;  %v6626_v50 = vpack.c.bf16 %v402_v49, %v402_v49 }
  0xb1   : > { %v1303_v60 = vrot.slane %v1301_v28, 4  ;;  %v1306_v55 = vrot.slane %v1304_v43, 5  ;;  %v1320_v57 = vshll.u32 %v1051_v39, 16  ;;  %7098 = vmatmul.mubr.msk.bf16.gmra.mrb[4].mxu0 %vm1509_vm4, %v6407_v59  ;;  %v365_v44 = vmul.f32 %v8068_v3, %v6718_v45  ;;  %v974_v49 = vld [vmem:[#allocation2 + $0x98] sm:$0x1] }
  0xb2   : > { %v1312_v18 = vrot.slane %v1310_v51, 5  ;;  %v1316_v19 = vrot.slane %v1314_v42, 4  ;;  %v6627_v34 = vpack.c.bf16 %v403_v25, %v403_v25  ;;  %v755_v35 = vshrl.u32 %v6626_v50, 16  ;;  %v3601_v5 = vld [vmem:[#allocation2 + $0x3c] sm:$0xe] }
  0xb3   : > { %v1307_v58 = vor.u32 %v1306_v55, %v1303_v60  ;;  %v1322_v6 = vrot.slane %v1320_v57, 5  ;;  %v758_v13 = vshll.u32 %v6626_v50, 16  ;;  %v366_v29 = vmul.f32 %v8068_v3, %v6719_v2  ;;  %v3602_v50 = vld [vmem:[#allocation2 + $0x48] sm:$0xe] }
  0xb4   : > { %v1317_v24 = vor.u32 %v1316_v19, %v1312_v18  ;;  %v8276_v48 = vld [vmem:[#allocation2 + $0x84] sm:$0xf]  ;;  %v763_v22 = vshrl.u32 %v6627_v34, 16  ;;  %v766_v47 = vshll.u32 %v6627_v34, 16  ;;  %v757_v36 = vrot.slane %v755_v35, 7 }
  0xb5   : > { %v1308_v0 = vrot.slane %v1307_v58, 4  ;;  %v1325_v31 = vshrl.u32 %v8276_v48, 16  ;;  %v1328_v1 = vshll.u32 %v8276_v48, 16  ;;  %v404_v33 = vadd.f32 %v8080_v30, %v365_v44 }
  0xb6   : > { %v1318_v11 = vrot.slane %v1317_v24, 4  ;;  %v765_v15 = vrot.slane %v763_v22, 7  ;;  %v405_v46 = vadd.f32 %v8080_v30, %v366_v29  ;;  %v8285_v21 = vld [vmem:[#allocation2 + $0x88] sm:$0xf]  ;;  %v760_v9 = vor.u32 %v758_v13, %v757_v36 }
  0xb7   : > { %v1313_v4 = vsel %vm7778_vm8, %v1308_v0, %v1312_v18  ;;  %v1052_v27 = vld [vmem:[#allocation2 + $0x8c] sm:$0x1]  ;;  %v1327_v45 = vrot.slane %v1325_v31, 4  ;;  %v1330_v26 = vrot.slane %v1328_v1, 5  ;;  %v1334_v17 = vshll.u32 %v8285_v21, 16 }
  0xb8   : > { %v1323_v23 = vsel %vm7778_vm8, %v1318_v11, %v1322_v6  ;;  %v1338_v12 = vshrl.u32 %v8285_v21, 16  ;;  %v1344_v16 = vshll.u32 %v1052_v27, 16  ;;  %v761_v43 = vrot.slane %v757_v36, 4  ;;  %v7603_v37 = vld [vmem:[#allocation2 + $0x88] sm:$0xf] }
  0xb9   : > { %v6196_v2 = vcombine.low %v1313_v4, %v1323_v23  ;;  %v1331_v28 = vor.u32 %v1330_v26, %v1327_v45  ;;  %v768_v53 = vor.u32 %v766_v47, %v765_v15  ;;  %v1336_v39 = vrot.slane %v1334_v17, 5  ;;  %v981_v23 = vld [vmem:[#allocation2 + $0xa4] sm:$0x1] }
  0xba   : > { %v1340_v51 = vrot.slane %v1338_v12, 4  ;;  %v1346_v42 = vrot.slane %v1344_v16, 5  ;;  %v770_v59 = vrot.slane %v765_v15, 4  ;;  %v971_v55 = vsel %vm7817_vm11, %v760_v9, %v970_v61  ;;  %v977_v61 = vld [vmem:[#allocation2 + $0x9c] sm:$0xf] }
  0xbb   : > { %6933 = vmatprep.mubr.msk.bf16.mxu1 %vm1509_vm4, %v6196_v2  ;;  %v1332_v25 = vrot.slane %v1331_v28, 4  ;;  %v769_v60 = vsel %vm7811_vm10, %v761_v43, %v768_v53  ;;  %v6628_v57 = vpack.c.bf16 %v404_v33, %v404_v33  ;;  %972 = vst [vmem:[#allocation2 + $0x90] sm:$0xf] %v971_v55  ;;  %v6629_v34 = vpack.c.bf16 %v405_v46, %v405_v46  ;;  %v6744_v46 = vld [vmem:[%s7760_s14 + $0x68] sm:$0xff]   ;;  %v6745_v55 = vld [vmem:[%s7760_s14 + $0x70] sm:$0xff]  }
  0xbc   : > { %v1341_v18 = vor.u32 %v1340_v51, %v1336_v39  ;;  %973 = vst.msk [vmem:[#allocation2 + $0x94] sm:$0xf] %vm412_vm0, %v769_v60  ;;  %v975_v19 = vsel %vm7805_vm9, %v770_v59, %v974_v49  ;;  %v6388_v44 = vrot.slane %v3601_v5, 9  ;;  %v3691_v13 = vrot.slane %v8009_v10, 5 }
  0xbd   : > { %v1337_v58 = vsel %vm7778_vm8, %v1332_v25, %v1336_v39  ;;  %976 = vst [vmem:[#allocation2 + $0x98] sm:$0x1] %v975_v19  ;;  %v772_v6 = vshrl.u32 %v6628_v57, 16  ;;  %v775_v35 = vshll.u32 %v6628_v57, 16  ;;  %v780_v22 = vshrl.u32 %v6629_v34, 16 }
  0xbe   : > { %v1342_v24 = vrot.slane %v1341_v18, 4  ;;  %v783_v47 = vshll.u32 %v6629_v34, 16  ;;  %v3694_v29 = vrot.slane %v8013_v41, 5  ;;  %v3692_v31 = vsel %vm8088_vm14, %v6388_v44, %v3691_v13  ;;  %v3603_v34 = vld [vmem:[#allocation2 + $0x54] sm:$0xe] }
  0xbf   : > { %v774_v0 = vrot.slane %v772_v6, 7  ;;  %v3693_v1 = vrot.slane %v3691_v13, 4  ;;  %v6389_v36 = vrot.slane %v3602_v50, 9  ;;  %v782_v15 = vrot.slane %v780_v22, 7 }
  0xc0   : > { %v1347_v11 = vsel %vm7778_vm8, %v1342_v24, %v1346_v42  ;;  %v3698_v33 = vrot.slane %v8019_v54, 5  ;;  %v3701_v10 = vrot.slane %v8021_v56, 5  ;;  %v6722_v2 = vunpack.c.l.bf16 %v6744_v46 }
  0xc1   : > { %v6197_v4 = vcombine.low %v1337_v58, %v1347_v11  ;;  %v777_v27 = vor.u32 %v775_v35, %v774_v0  ;;  %v778_v45 = vrot.slane %v774_v0, 4  ;;  %v3695_v41 = vsel %vm8088_vm14, %v3693_v1, %v3694_v29 }
  0xc2   : > { %v785_v26 = vor.u32 %v783_v47, %v782_v15  ;;  %v787_v9 = vrot.slane %v782_v15, 4  ;;  %v6408_v17 = vcombine.low %v3692_v31, %v3695_v41  ;;  %v3699_v12 = vsel %vm8088_vm14, %v6389_v36, %v3698_v33  ;;  %v8315_v16 = vld [vmem:[#allocation2 + $0x90] sm:$0xf] }
  0xc3   : > { %6934 = vmatmul.mubr.msk.bf16.gmra.mrb[20].mxu1 %vm1509_vm4, %v6197_v4  ;;  %v8317_v54 = vld [vmem:[#allocation2 + $0x94] sm:$0xf]  ;;  %v978_v56 = vsel %vm7817_vm11, %v777_v27, %v977_v61  ;;  %v3700_v49 = vrot.slane %v3698_v33, 4  ;;  %v6723_v28 = vunpack.c.h.bf16 %v6744_v46  ;;  %v1349_v53 = vshrl.u32 %v8315_v16, 16 }
  0xc4   : > { %v1053_v43 = vld [vmem:[#allocation2 + $0x98] sm:$0x1]  ;;  %v1352_v5 = vshll.u32 %v8315_v16, 16  ;;  %v1358_v39 = vshll.u32 %v8317_v54, 16  ;;  %v1362_v51 = vshrl.u32 %v8317_v54, 16  ;;  %7101 = vmatprep.mubr.msk.bf16.mxu0 %vm1509_vm4, %v6408_v17  ;;  %v786_v59 = vsel %vm7811_vm10, %v778_v45, %v785_v26 }
  0xc5   : > { %979 = vst [vmem:[#allocation2 + $0x9c] sm:$0xf] %v978_v56  ;;  %v1368_v42 = vshll.u32 %v1053_v43, 16  ;;  %v982_v25 = vsel %vm7805_vm9, %v787_v9, %v981_v23  ;;  %v3702_v60 = vsel %vm8088_vm14, %v3700_v49, %v3701_v10  ;;  %v1351_v57 = vrot.slane %v1349_v53, 4  ;;  %980 = vst.msk [vmem:[#allocation2 + $0xa0] sm:$0xf] %vm412_vm0, %v786_v59 }
  0xc6   : > { %v1354_v50 = vrot.slane %v1352_v5, 5  ;;  %v1360_v18 = vrot.slane %v1358_v39, 5  ;;  %v1364_v19 = vrot.slane %v1362_v51, 4  ;;  %983 = vst [vmem:[#allocation2 + $0xa4] sm:$0x1] %v982_v25  ;;  %v6409_v58 = vcombine.low %v3699_v12, %v3702_v60 }
  0xc7   : > { %v1370_v44 = vrot.slane %v1368_v42, 5  ;;  %v367_v6 = vmul.f32 %v8068_v3, %v6722_v2  ;;  %v368_v35 = vmul.f32 %v8068_v3, %v6723_v28  ;;  %v6726_v22 = vunpack.c.l.bf16 %v6745_v55  ;;  %v984_v60 = vld [vmem:[#allocation2 + $0xa8] sm:$0xf] }
  0xc8   : > { %v1355_v13 = vor.u32 %v1354_v50, %v1351_v57  ;;  %v1365_v24 = vor.u32 %v1364_v19, %v1360_v18  ;;  %v6727_v47 = vunpack.c.h.bf16 %v6745_v55  ;;  %7102 = vmatmul.mubr.msk.bf16.gmra.mrb[8].mxu0 %vm1509_vm4, %v6409_v58  ;;  %v6390_v31 = vrot.slane %v3603_v34, 9  ;;  %v988_v58 = vld [vmem:[#allocation2 + $0xb0] sm:$0x1] }
  0xc9   : > { %v406_v29 = vadd.f32 %v8080_v30, %v367_v6  ;;  %v407_v0 = vadd.f32 %v8080_v30, %v368_v35  ;;  %v3705_v1 = vrot.slane %v8145_v62, 5  ;;  %v369_v15 = vmul.f32 %v8068_v3, %v6726_v22 }
  0xca   : > { %v1356_v36 = vrot.slane %v1355_v13, 4  ;;  %v1366_v11 = vrot.slane %v1365_v24, 4  ;;  %v370_v61 = vmul.f32 %v8068_v3, %v6727_v47  ;;  %v3708_v47 = vrot.slane %v8147_v8, 5 }
  0xcb   : > { %v6630_v10 = vpack.c.bf16 %v406_v29, %v406_v29  ;;  %v6631_v46 = vpack.c.bf16 %v407_v0, %v407_v0  ;;  %v8346_v4 = vsel %vm8088_vm14, %v6390_v31, %v3705_v1  ;;  %v3707_v27 = vrot.slane %v3705_v1, 4  ;;  %v3604_v29 = vld [vmem:[#allocation2 + $0x60] sm:$0xe] }
  0xcc   : > { %v8342_v33 = vld [vmem:[#allocation2 + $0x9c] sm:$0xf]  ;;  %v1361_v45 = vsel %vm7778_vm8, %v1356_v36, %v1360_v18  ;;  %v1371_v62 = vsel %vm7778_vm8, %v1366_v11, %v1370_v44  ;;  %v8354_v9 = vld [vmem:[#allocation2 + $0xa0] sm:$0xf]  ;;  %v408_v56 = vadd.f32 %v8080_v30, %v369_v15  ;;  %v409_v55 = vadd.f32 %v8080_v30, %v370_v61 }
  0xcd   : > { %v1373_v41 = vshrl.u32 %v8342_v33, 16  ;;  %v1376_v26 = vshll.u32 %v8342_v33, 16  ;;  %v6198_v3 = vcombine.low %v1361_v45, %v1371_v62  ;;  %v1054_v23 = vld [vmem:[#allocation2 + $0xa4] sm:$0x1]  ;;  %v789_v17 = vshrl.u32 %v6630_v10, 16 }
  0xce   : > { %v792_v12 = vshll.u32 %v6630_v10, 16  ;;  %v1382_v28 = vshll.u32 %v8354_v9, 16  ;;  %v1386_v43 = vshrl.u32 %v8354_v9, 16  ;;  %v1392_v53 = vshll.u32 %v1054_v23, 16 }
  0xcf   : > { %v1375_v49 = vrot.slane %v1373_v41, 4  ;;  %v1378_v2 = vrot.slane %v1376_v26, 5  ;;  %6937 = vmatprep.mubr.msk.bf16.mxu1 %vm1509_vm4, %v6198_v3  ;;  %v791_v5 = vrot.slane %v789_v17, 7  ;;  %v797_v39 = vshrl.u32 %v6631_v46, 16  ;;  %v2884_v17 = vld [vmem:[#allocation2 + $0x70] sm:$0xf] }
  0xd0   : > { %v800_v51 = vshll.u32 %v6631_v46, 16  ;;  %v1384_v59 = vrot.slane %v1382_v28, 5  ;;  %v1388_v25 = vrot.slane %v1386_v43, 4  ;;  %v1394_v57 = vrot.slane %v1392_v53, 5  ;;  %v991_v46 = vld [vmem:[#allocation2 + $0xb4] sm:$0xf] }
  0xd1   : > { %v1379_v42 = vor.u32 %v1378_v2, %v1375_v49  ;;  %v794_v50 = vor.u32 %v792_v12, %v791_v5  ;;  %v795_v18 = vrot.slane %v791_v5, 4  ;;  %v799_v19 = vrot.slane %v797_v39, 7  ;;  %v3605_v12 = vld [vmem:[#allocation2 + $0x6c] sm:$0xe]  ;;  %v995_v2 = vld [vmem:[#allocation2 + $0xbc] sm:$0x1] }
  0xd2   : > { %v1389_v44 = vor.u32 %v1388_v25, %v1384_v59  ;;  %v6632_v6 = vpack.c.bf16 %v408_v56, %v408_v56  ;;  %v6633_v35 = vpack.c.bf16 %v409_v55, %v409_v55  ;;  %v3709_v45 = vsel %vm8088_vm14, %v3707_v27, %v3708_v47  ;;  %v2885_v43 = vld [vmem:[#allocation2 + $0x74] sm:$0x1]  ;;  %v8407_v47 = vld [vmem:[#allocation2 + $0x7c] sm:$0xf] }
  0xd3   : > { %v1380_v34 = vrot.slane %v1379_v42, 4  ;;  %v802_v13 = vor.u32 %v800_v51, %v799_v19  ;;  %v804_v24 = vrot.slane %v799_v19, 4  ;;  %v985_v22 = vsel %vm7817_vm11, %v794_v50, %v984_v60 }
  0xd4   : > { %v1390_v0 = vrot.slane %v1389_v44, 4  ;;  %986 = vst [vmem:[#allocation2 + $0xa8] sm:$0xf] %v985_v22  ;;  %v806_v31 = vshrl.u32 %v6632_v6, 16  ;;  %v809_v1 = vshll.u32 %v6632_v6, 16  ;;  %v814_v15 = vshrl.u32 %v6633_v35, 16 }
  0xd5   : > { %v1385_v30 = vsel %vm7778_vm8, %v1380_v34, %v1384_v59  ;;  %v803_v36 = vsel %vm7811_vm10, %v795_v18, %v802_v13  ;;  %v989_v11 = vsel %vm7805_vm9, %v804_v24, %v988_v58  ;;  %v817_v61 = vshll.u32 %v6633_v35, 16 }
  0xd6   : > { %v1395_v10 = vsel %vm7778_vm8, %v1390_v0, %v1394_v57  ;;  %987 = vst.msk [vmem:[#allocation2 + $0xac] sm:$0xf] %vm412_vm0, %v803_v36  ;;  %990 = vst [vmem:[#allocation2 + $0xb0] sm:$0x1] %v989_v11  ;;  %v808_v8 = vrot.slane %v806_v31, 7  ;;  %v6391_v62 = vrot.slane %v3604_v29, 9  ;;  %v6410_v3 = vcombine.low %v8346_v4, %v3709_v45 }
  0xd7   : > { %v6199_v41 = vcombine.low %v1385_v30, %v1395_v10  ;;  %v816_v26 = vrot.slane %v814_v15, 7  ;;  %v3712_v23 = vrot.slane %v8151_v38, 5  ;;  %v3715_v28 = vrot.slane %v8154_v40, 5  ;;  %v3606_v29 = vld [vmem:[#allocation2 + $0x78] sm:$0xe] }
  0xd8   : > { %v811_v56 = vor.u32 %v809_v1, %v808_v8  ;;  %v812_v49 = vrot.slane %v808_v8, 4  ;;  %7105 = vmatprep.mubr.msk.bf16.mxu0 %vm1509_vm4, %v6410_v3  ;;  %v6392_v39 = vrot.slane %v3605_v12, 9  ;;  %v3719_v51 = vrot.slane %v2884_v17, 5  ;;  %v8409_v11 = vld [vmem:[#allocation2 + $0x80] sm:$0x1] }
  0xd9   : > { %6938 = vmatmul.mubr.msk.bf16.gmra.mrb[24].mxu1 %vm1509_vm4, %v6199_v41  ;;  %v819_v53 = vor.u32 %v817_v61, %v816_v26  ;;  %v821_v5 = vrot.slane %v816_v26, 4  ;;  %v3713_v27 = vsel %vm8088_vm14, %v6391_v62, %v3712_v23  ;;  %v3714_v4 = vrot.slane %v3712_v23, 4  ;;  %v2890_v3 = vld [vmem:[#allocation2 + $0x88] sm:$0xf]  ;;  %v3607_v23 = vld [vmem:[#allocation2 + $0x84] sm:$0xe] }
  0xda   : > { %v992_v38 = vsel %vm7817_vm11, %v811_v56, %v991_v46  ;;  %v3722_v60 = vrot.slane %v2885_v43, 5  ;;  %v3720_v34 = vsel %vm8088_vm14, %v6392_v39, %v3719_v51  ;;  %v3721_v44 = vrot.slane %v3719_v51, 4  ;;  %v3608_v51 = vld [vmem:[#allocation2 + $0x90] sm:$0xe] }
  0xdb   : > { %v8384_v42 = vld [vmem:[#allocation2 + $0xa8] sm:$0xf]  ;;  %v820_v40 = vsel %vm7811_vm10, %v812_v49, %v819_v53  ;;  %993 = vst [vmem:[#allocation2 + $0xb4] sm:$0xf] %v992_v38  ;;  %v996_v59 = vsel %vm7805_vm9, %v821_v5, %v995_v2  ;;  %v3716_v25 = vsel %vm8088_vm14, %v3714_v4, %v3715_v28  ;;  %v6393_v8 = vrot.slane %v3606_v29, 9 }
  0xdc   : > { %v1397_v55 = vshrl.u32 %v8384_v42, 16  ;;  %v1400_v57 = vshll.u32 %v8384_v42, 16  ;;  %994 = vst.msk [vmem:[#allocation2 + $0xb8] sm:$0xf] %vm412_vm0, %v820_v40  ;;  %997 = vst [vmem:[#allocation2 + $0xbc] sm:$0x1] %v996_v59  ;;  %v6411_v50 = vcombine.low %v3713_v27, %v3716_v25  ;;  %v3723_v22 = vsel %vm8088_vm14, %v3721_v44, %v3722_v60 }
  0xdd   : > { %v8395_v18 = vld [vmem:[#allocation2 + $0xac] sm:$0xf]  ;;  %v8397_v19 = vld [vmem:[#allocation2 + $0xb0] sm:$0x1]  ;;  %v6412_v1 = vcombine.low %v3720_v34, %v3723_v22  ;;  %v3726_v46 = vrot.slane %v8407_v47, 5  ;;  %v3729_v39 = vrot.slane %v8409_v11, 5 }
  0xde   : > { %v1399_v58 = vrot.slane %v1397_v55, 4  ;;  %v1402_v6 = vrot.slane %v1400_v57, 5  ;;  %v1406_v35 = vshll.u32 %v8395_v18, 16  ;;  %v1410_v13 = vshrl.u32 %v8395_v18, 16  ;;  %7106 = vmatmul.mubr.msk.bf16.gmra.mrb[12].mxu0 %vm1509_vm4, %v6411_v50  ;;  %v2891_v2 = vld [vmem:[#allocation2 + $0x8c] sm:$0x1] }
  0xdf   : > { %v1416_v24 = vshll.u32 %v8397_v19, 16  ;;  %7109 = vmatprep.mubr.msk.bf16.mxu0 %vm1509_vm4, %v6412_v1  ;;  %v2893_v5 = vld [vmem:[#allocation2 + $0x94] sm:$0xf]  ;;  %v3727_v60 = vsel %vm8088_vm14, %v6393_v8, %v3726_v46  ;;  %v3728_v57 = vrot.slane %v3726_v46, 4  ;;  %v6394_v50 = vrot.slane %v3607_v23, 9 }
  0xe0   : > { %v1403_v30 = vor.u32 %v1402_v6, %v1399_v58  ;;  %v1408_v0 = vrot.slane %v1406_v35, 5  ;;  %v1412_v31 = vrot.slane %v1410_v13, 4  ;;  %v3733_v34 = vrot.slane %v2890_v3, 5  ;;  %v2894_v6 = vld [vmem:[#allocation2 + $0x98] sm:$0x1] }
  0xe1   : > { %v1418_v36 = vrot.slane %v1416_v24, 5  ;;  %v3736_v58 = vrot.slane %v2891_v2, 5  ;;  %v6395_v35 = vrot.slane %v3608_v51, 9  ;;  %v3740_v13 = vrot.slane %v2893_v5, 5 }
  0xe2   : > { %v1404_v15 = vrot.slane %v1403_v30, 4  ;;  %v1413_v61 = vor.u32 %v1412_v31, %v1408_v0  ;;  %v8411_v10 = vld [vmem:[#allocation2 + $0xb4] sm:$0xf]  ;;  %v3730_v22 = vsel %vm8088_vm14, %v3728_v57, %v3729_v39  ;;  %v3734_v29 = vsel %vm8088_vm14, %v6394_v50, %v3733_v34  ;;  %v3609_v31 = vld [vmem:[#allocation2 + $0x9c] sm:$0xe] }
  0xe3   : > { %v8415_v45 = vld [vmem:[#allocation2 + $0xb8] sm:$0xf]  ;;  %v8417_v62 = vld [vmem:[#allocation2 + $0xbc] sm:$0x1]  ;;  %v1421_v41 = vshrl.u32 %v8411_v10, 16  ;;  %v1424_v26 = vshll.u32 %v8411_v10, 16  ;;  %v6413_v8 = vcombine.low %v3727_v60, %v3730_v22 }
  0xe4   : > { %v1409_v17 = vsel %vm7778_vm8, %v1404_v15, %v1408_v0  ;;  %v1414_v12 = vrot.slane %v1413_v61, 4  ;;  %v1430_v56 = vshll.u32 %v8415_v45, 16  ;;  %v1434_v49 = vshrl.u32 %v8415_v45, 16  ;;  %v2896_v0 = vld [vmem:[#allocation2 + $0xa0] sm:$0xf] }
  0xe5   : > { %v1423_v28 = vrot.slane %v1421_v41, 4  ;;  %v1426_v43 = vrot.slane %v1424_v26, 5  ;;  %v1440_v53 = vshll.u32 %v8417_v62, 16  ;;  %v3735_v30 = vrot.slane %v3733_v34, 4  ;;  %v8438_v15 = vld [vmem:[#allocation2 + $0x4] sm:$0xf] }
  0xe6   : > { %v1419_v27 = vsel %vm7778_vm8, %v1414_v12, %v1418_v36  ;;  %v1432_v4 = vrot.slane %v1430_v56, 5  ;;  %v1436_v38 = vrot.slane %v1434_v49, 4  ;;  %v7554_v36 = vld [vmem:[#allocation2] sm:$0xf]  ;;  %v3742_v46 = vrot.slane %v3740_v13, 4  ;;  %7110 = vmatmul.mubr.msk.bf16.gmra.mrb[16].mxu0 %vm1509_vm4, %v6413_v8 }
  0xe7   : > { %v6200_v40 = vcombine.low %v1409_v17, %v1419_v27  ;;  %v1427_v59 = vor.u32 %v1426_v43, %v1423_v28  ;;  %v1442_v25 = vrot.slane %v1440_v53, 5  ;;  %v6220_v61 = vcombine.low %v7554_v36, %v8438_v15  ;;  %v2897_v41 = vld [vmem:[#allocation2 + $0xa4] sm:$0x1]  ;;  %v2899_v26 = vld [vmem:[#allocation2 + $0xac] sm:$0xf] }
  0xe8   : > { %v1437_v55 = vor.u32 %v1436_v38, %v1432_v4  ;;  %v3737_v23 = vsel %vm8088_vm14, %v3735_v30, %v3736_v58  ;;  %v3741_v17 = vsel %vm8088_vm14, %v6395_v35, %v3740_v13  ;;  %v3743_v12 = vrot.slane %v2894_v6, 5  ;;  %v2900_v43 = vld [vmem:[#allocation2 + $0xb0] sm:$0x1]  ;;  %v3610_v53 = vld [vmem:[#allocation2 + $0xa8] sm:$0xe] }
  0xe9   : > { %6941 = vmatprep.mubr.msk.bf16.mxu1 %vm1509_vm4, %v6200_v40  ;;  %v1428_v44 = vrot.slane %v1427_v59, 4  ;;  %v6414_v49 = vcombine.low %v3734_v29, %v3737_v23  ;;  %v6396_v2 = vrot.slane %v3609_v31, 9  ;;  %v3747_v28 = vrot.slane %v2896_v0, 5  ;;  %v2902_v38 = vld [vmem:[#allocation2 + $0xb8] sm:$0xf] }
  0xea   : > { %v1438_v24 = vrot.slane %v1437_v55, 4  ;;  %v3744_v5 = vsel %vm8088_vm14, %v3742_v46, %v3743_v12  ;;  %v3750_v27 = vrot.slane %v2897_v41, 5  ;;  %v3611_v39 = vld [vmem:[#allocation2 + $0xb4] sm:$0xe]  ;;  %v2903_v59 = vld [vmem:[#allocation2 + $0xbc] sm:$0x1] }
  0xeb   : > { %v1433_v1 = vsel %vm7778_vm8, %v1428_v44, %v1432_v4  ;;  %v3754_v4 = vrot.slane %v2899_v26, 5  ;;  %7113 = vmatprep.mubr.msk.bf16.mxu0 %vm1509_vm4, %v6414_v49  ;;  %v3748_v51 = vsel %vm8088_vm14, %v6396_v2, %v3747_v28  ;;  %v3749_v40 = vrot.slane %v3747_v28, 4  ;;  %v7556_v22 = vld [vmem:[#allocation2 + $0xc] sm:$0xf]  ;;  %v8458_v29 = vld [vmem:[#allocation2 + $0x10] sm:$0xf] }
  0xec   : > { %v1443_v3 = vsel %vm7778_vm8, %v1438_v24, %v1442_v25  ;;  %v6746_v25 = vld [vmem:[%s7760_s14 + $0x78] sm:$0xff]   ;;  %v6415_v60 = vcombine.low %v3741_v17, %v3744_v5  ;;  %v6397_v55 = vrot.slane %v3610_v53, 9  ;;  %v3757_v57 = vrot.slane %v2900_v43, 5  ;;  %v7513_v41 = vld [vmem:[%s9670_s1 + $0x28] sm:$0xff]   ;;  %v7561_v12 = vld [vmem:[%s9672_s3] ss:$0 sm:$0xff] }
  0xed   : > { %v6201_v56 = vcombine.low %v1433_v1, %v1443_v3  ;;  %v3751_v50 = vsel %vm8088_vm14, %v3749_v40, %v3750_v27  ;;  %v3756_v34 = vrot.slane %v3754_v4, 4  ;;  %v6398_v44 = vrot.slane %v3611_v39, 9  ;;  %v7558_v31 = vld [vmem:[#allocation2 + $0x18] sm:$0xf]  ;;  %v8461_v1 = vld [vmem:[#allocation2 + $0x1c] sm:$0xf] }
  0xee   : > { %v3761_v58 = vrot.slane %v2902_v38, 5  ;;  %v6416_v6 = vcombine.low %v3748_v51, %v3751_v50  ;;  %v3764_v35 = vrot.slane %v2903_v59, 5  ;;  %v6730_v13 = vunpack.c.l.bf16 %v6746_v25  ;;  %7114 = vmatmul.mubr.msk.bf16.gmra.mrb[20].mxu0 %vm1509_vm4, %v6415_v60  ;;  %v7562_v2 = vld [vmem:[%s9670_s1 + $0x20] sm:$0xff]   ;;  %v8491_v27 = vld [vmem:[%s9670_s1 + $0x30] sm:$0xff]   ;;  %v8493_v59 = vld [vmem:[#allocation2 + $0x28] sm:$0xf] }
  0xef   : > { %6942 = vmatmul.mubr.msk.bf16.gmra.mrb[28].mxu1 %vm1509_vm4, %v6201_v56  ;;  %v6731_v24 = vunpack.c.h.bf16 %v6746_v25  ;;  %v6221_v30 = vcombine.low %v7556_v22, %v8458_v29  ;;  %v6222_v36 = vcombine.low %v7558_v31, %v8461_v1  ;;  %v3755_v26 = vsel %vm8088_vm14, %v6397_v55, %v3754_v4  ;;  %v7563_v40 = vld [vmem:[#allocation2 + $0x24] sm:$0xf]  ;;  %v7565_v60 = vld [vmem:[#allocation2 + $0x30] sm:$0xf]  ;;  %v8496_v55 = vld [vmem:[#allocation2 + $0x34] sm:$0xf] }
  0xf0   : > { %6949 = vmatprep.mubr.msk.bf16.mxu1 %vm1509_vm4, %v6220_v61  ;;  %v3763_v0 = vrot.slane %v3761_v58, 4  ;;  %v7560_v61 = vld [vmem:[%s9671_s2] ss:$0 sm:$0xff]  ;;  %v3758_v3 = vsel %vm8088_vm14, %v3756_v34, %v3757_v57  ;;  %7117 = vmatprep.mubr.msk.bf16.mxu0 %vm1509_vm4, %v6416_v6  ;;  %v3762_v23 = vsel %vm8088_vm14, %v6398_v44, %v3761_v58  ;;  %v6223_v25 = vcombine.low %v7563_v40, %v8493_v59  ;;  %v1002_v58 = vld [vmem:[#allocation2 + $0xc8] sm:$0x1] }
  0xf1   : > { %v371_v8 = vmul.f32 %v7560_v61, %v6730_v13  ;;  %v372_v46 = vmul.f32 %v7560_v61, %v6731_v24  ;;  %v6417_v53 = vcombine.low %v3755_v26, %v3758_v3  ;;  %v6224_v57 = vcombine.low %v7565_v60, %v8496_v55  ;;  %v998_v44 = vld [vmem:[#allocation2 + $0xc0] sm:$0xf]  ;;  %v7567_v31 = vld [vmem:[#allocation2 + $0x3c] sm:$0xf] }
  0xf2   : > { %v3765_v17 = vsel %vm8088_vm14, %v3763_v0, %v3764_v35  ;;  %v3133_v14 = vshll.u32 %v8407_v47, 16  ;;  %v3137_v3 = vshrl.u32 %v8407_v47, 16  ;;  %v2073_v60 = vrot.slane %v8438_v15, 5 }
  0xf3   : > { %v410_v56 = vadd.f32 %v7561_v12, %v371_v8  ;;  %v411_v49 = vadd.f32 %v7561_v12, %v372_v46  ;;  %v6418_v5 = vcombine.low %v3762_v23, %v3765_v17  ;;  %v7569_v8 = vld [vmem:[#allocation2 + $0x48] sm:$0xf]  ;;  %v8514_v46 = vld [vmem:[#allocation2 + $0x4c] sm:$0xf] }
  0xf4   : > { %v6226_v7 = vcombine.low %v7569_v8, %v8514_v46  ;;  %v3139_v47 = vrot.slane %v3137_v3, 4 }
  0xf5   : > { %v6634_v28 = vpack.c.bf16 %v410_v56, %v410_v56  ;;  %v6635_v43 = vpack.c.bf16 %v411_v49, %v411_v49  ;;  %v7571_v56 = vld [vmem:[#allocation2 + $0x54] sm:$0xf]  ;;  %v8521_v49 = vld [vmem:[#allocation2 + $0x58] sm:$0xf] }
  0xf6   : > { %7118 = vmatmul.mubr.msk.bf16.gmra.mrb[24].mxu0 %vm1509_vm4, %v6417_v53  ;;  %v7573_v53 = vld [vmem:[#allocation2 + $0x60] sm:$0xf] }
  0xf7   : > { %6950 = vmatmul.mubr.msk.bf16.vlgmr.msra.gmra.mrb[0].mxu1 %vm1509_vm4, %v6221_v30  ;;  %v823_v4 = vshrl.u32 %v6634_v28, 16  ;;  %v826_v38 = vshll.u32 %v6634_v28, 16  ;;  %v831_v39 = vshrl.u32 %v6635_v43, 16  ;;  %v834_v51 = vshll.u32 %v6635_v43, 16  ;;  %7121 = vmatprep.mubr.msk.bf16.mxu0 %vm1509_vm4, %v6418_v5  ;;  %v8526_v5 = vld [vmem:[#allocation2 + $0x64] sm:$0xf] }
  0xf8   : > { %6982 = vmatpush3.bf16.msra.mxu1 %v7562_v2  ;;  %6953 = vmatprep.mubr.msk.bf16.mxu1 %vm1509_vm4, %v6222_v36  ;;  %v8511_v36 = vld [vmem:[#allocation2 + $0x40] sm:$0xf]  ;;  %v6227_v2 = vcombine.low %v7571_v56, %v8521_v49 }
  0xf9   : > { %6983 = vmatprep.subr.bf16.mxu1 %v7513_v41  ;;  %v825_v50 = vrot.slane %v823_v4, 7  ;;  %v833_v34 = vrot.slane %v831_v39, 7  ;;  %v6225_v61 = vcombine.low %v7567_v31, %v8511_v36  ;;  %v6228_v4 = vcombine.low %v7573_v53, %v8526_v5 }
  0xfa   : > { %v6233_v53 = vcombine.low %v8342_v33, %v8354_v9 }
  0xfb   : > { %v828_v6 = vor.u32 %v826_v38, %v825_v50  ;;  %v829_v35 = vrot.slane %v825_v50, 4  ;;  %v836_v13 = vor.u32 %v834_v51, %v833_v34  ;;  %v838_v24 = vrot.slane %v833_v34, 4  ;;  %v7514_v51 = vld [vmem:[#allocation2 + $0x18] sm:$0xff]   ;;  %v2021_v50 = vld [vmem:[#allocation2 + $0xc] sm:$0xe] }
  0xfc   : > { %6984 = vmatpush3.bf16.msra.mxu1 %v7513_v41  ;;  %v8529_v38 = vrot.slane %v3133_v14, 5  ;;  %v2087_v34 = vrot.slane %v8461_v1, 5  ;;  %v8543_v1 = vld [vmem:[#allocation2 + $0x70] sm:$0xf]  ;;  %v6255_v8 = vrot.slane %v2021_v50, 9 }
  0xfd   : > { %7017 = vmatprep.subr.bf16.mxu1 %v8491_v27  ;;  %v837_v22 = vsel %vm7811_vm10, %v829_v35, %v836_v13  ;;  %v999_v30 = vsel %vm7817_vm11, %v828_v6, %v998_v44  ;;  %v1003_v0 = vsel %vm7805_vm9, %v838_v24, %v1002_v58  ;;  %v2022_v44 = vld [vmem:[#allocation2 + $0x18] sm:$0xe]  ;;  %v2094_v58 = vrot.slane %v8493_v59, 5  ;;  %v7575_v6 = vld [vmem:[#allocation2 + $0x8] sm:$0x1] }
  0xfe   : > { %1000 = vst [vmem:[#allocation2 + $0xc0] sm:$0xf] %v999_v30  ;;  %1001 = vst.msk [vmem:[#allocation2 + $0xc4] sm:$0xf] %vm412_vm0, %v837_v22  ;;  %v2076_v35 = vrot.slane %v7575_v6, 5  ;;  %v3140_v15 = vor.u32 %v3139_v47, %v8529_v38  ;;  %v2089_v14 = vrot.slane %v2087_v34, 4  ;;  %v6235_v6 = vcombine.low %v8411_v10, %v8415_v45 }
  0xff   : > { %6954 = vmatmul.mubr.msk.bf16.gmra.mrb[4].mxu1 %vm1509_vm4, %v6223_v25  ;;  %1004 = vst [vmem:[#allocation2 + $0xc8] sm:$0x1] %v1003_v0  ;;  %9703 = vst [vmem:[#allocation3_spill] sm:$0xff] %v8529_v38  ;;  %v2020_v25 = vld [vmem:[#allocation2] sm:$0xe] }
 0x100   : > { %6957 = vmatprep.mubr.msk.bf16.mxu1 %vm1509_vm4, %v6224_v57  ;;  %v2080_v57 = vrot.slane %v8458_v29, 5  ;;  %v7576_v13 = vld [vmem:[#allocation2 + $0x14] sm:$0x1]  ;;  %v3143_v29 = vshll.u32 %v8409_v11, 16  ;;  %v2023_v22 = vld [vmem:[#allocation2 + $0x24] sm:$0xe]  ;;  %v6230_v11 = vcombine.low %v8256_v52, %v8261_v20 }
 0x101   : > { %v2083_v24 = vrot.slane %v7576_v13, 5  ;;  %v7577_v30 = vld [vmem:[#allocation2 + $0x6c] sm:$0xf]  ;;  %v6254_v31 = vrot.slane %v2020_v25, 9  ;;  %v6257_v3 = vrot.slane %v2023_v22, 9  ;;  %v8548_v56 = vrot.slane %v3140_v15, 4 }
 0x102   : > { %v6229_v0 = vcombine.low %v7577_v30, %v8543_v1  ;;  %v2082_v59 = vrot.slane %v2080_v57, 4  ;;  %v7525_v20 = vld [vmem:[%s9670_s1 + $0x78] sm:$0xff]   ;;  %v8584_v25 = vrot.slane %v3143_v29, 5  ;;  %v2101_v13 = vrot.slane %v8496_v55, 5 }
 0x103   : > { %9704 = vst [vmem:[#allocation4_spill] sm:$0xff] %v8548_v56  ;;  %v4451_v15 = vld [vmem:[#allocation2 + $0x1c] sm:$0xf]  ;;  %v2030_v29 = vld [vmem:[#allocation2 + $0x78] sm:$0xe] }
 0x104   : > { %v8574_v47 = vsel %vm8088_vm14, %v2082_v59, %v2083_v24  ;;  %9705 = vst [vmem:[#allocation5_spill] sm:$0xff] %v8584_v25  ;;  %v2026_v24 = vld [vmem:[#allocation2 + $0x48] sm:$0xe]  ;;  %v8773_v56 = vld [vmem:[#allocation2 + $0x58] sm:$0xf] }
 0x105   : > { %v2905_v63 = vld [vmem:[#allocation2 + $0xc4] sm:$0xf]  ;;  %v3612_v26 = vld [vmem:[#allocation2 + $0xc0] sm:$0xe]  ;;  %9715 = vst [vmem:[#allocation15_spill] sm:$0xff] %v8773_v56 }
 0x106   : > { %v2906_v41 = vld [vmem:[#allocation2 + $0xc8] sm:$0x1]  ;;  %v6399_v23 = vrot.slane %v3612_v26, 9  ;;  %v3768_v17 = vrot.slane %v2905_v63, 5  ;;  %v7579_v63 = vld [vmem:[#allocation2 + $0x20] sm:$0x1] }
 0x107   : > { %6958 = vmatmul.mubr.msk.bf16.gmra.mrb[8].mxu1 %vm1509_vm4, %v6225_v61  ;;  %v3771_v12 = vrot.slane %v2906_v41, 5  ;;  %v2075_v61 = vrot.slane %v2073_v60, 4  ;;  %v2090_v41 = vrot.slane %v7579_v63, 5  ;;  %v7516_v26 = vld [vmem:[#allocation2 + $0x24] sm:$0xff]  }
 0x108   : > { %6961 = vmatprep.mubr.msk.bf16.mxu1 %vm1509_vm4, %v6226_v7  ;;  %v3769_v28 = vsel %vm8088_vm14, %v6399_v23, %v3768_v17  ;;  %v3770_v43 = vrot.slane %v3768_v17, 4  ;;  %v6256_v7 = vrot.slane %v2022_v44, 9  ;;  %v2096_v23 = vrot.slane %v2094_v58, 4  ;;  %v7580_v17 = vld [vmem:[#allocation2 + $0x2c] sm:$0x1]  ;;  %v7581_v44 = vld [vmem:[%s9670_s1 + $0x70] sm:$0xff]  }
 0x109   : > { %v8562_v52 = vsel %vm8088_vm14, %v2075_v61, %v2076_v35  ;;  %v7518_v61 = vld [vmem:[#allocation2 + $0x3c] sm:$0xff]  }
 0x10a   : > { %v3772_v39 = vsel %vm8088_vm14, %v3770_v43, %v3771_v12  ;;  %v2097_v12 = vrot.slane %v7580_v17, 5  ;;  %v6232_v43 = vcombine.low %v8315_v16, %v8317_v54  ;;  %v7519_v17 = vld [vmem:[#allocation2 + $0x48] sm:$0xff]  }
 0x10b   : > { %v6419_v40 = vcombine.low %v3769_v28, %v3772_v39  ;;  %v7517_v28 = vld [vmem:[#allocation2 + $0x30] sm:$0xff]   ;;  %v8578_v39 = vsel %vm8088_vm14, %v6256_v7, %v2087_v34  ;;  %v4450_v34 = vld [vmem:[#allocation2 + $0x18] sm:$0xf] }
 0x10c   : > { %v8596_v50 = vsel %vm8088_vm14, %v2096_v23, %v2097_v12  ;;  %v2027_v7 = vld [vmem:[#allocation2 + $0x54] sm:$0xe]  ;;  %v4502_v63 = vshll.u32 %v4450_v34, 16  ;;  %v4512_v23 = vshrl.u32 %v4451_v15, 16 }
 0x10d   : > { %7122 = vmatmul.mubr.msk.bf16.gmra.mrb[28].mxu0 %vm1509_vm4, %v6419_v40  ;;  %v2025_v40 = vld [vmem:[#allocation2 + $0x3c] sm:$0xe] }
 0x10e   : > { %7129 = vmatprep.mubr.msk.bf16.mxu0 %vm1509_vm4, %v7514_v51  ;;  %v8582_v51 = vsel %vm8088_vm14, %v2089_v14, %v2090_v41  ;;  %v6259_v30 = vrot.slane %v2025_v40, 9  ;;  %v4499_v14 = vshrl.u32 %v4450_v34, 16  ;;  %v7583_v41 = vld [vmem:[#allocation2 + $0x44] sm:$0x1]  ;;  %v2122_v40 = vrot.slane %v8521_v49, 5 }
 0x10f   : > { %6962 = vmatmul.mubr.msk.bf16.gmra.mrb[12].mxu1 %vm1509_vm4, %v6227_v2  ;;  %v6231_v2 = vcombine.low %v8276_v48, %v8285_v21  ;;  %v2024_v48 = vld [vmem:[#allocation2 + $0x30] sm:$0xe]  ;;  %v8570_v21 = vsel %vm8088_vm14, %v6255_v8, %v2080_v57  ;;  %v8592_v57 = vsel %vm8088_vm14, %v6257_v3, %v2094_v58  ;;  %v7582_v8 = vld [vmem:[#allocation2 + $0x38] sm:$0x1]  ;;  %v4508_v3 = vshll.u32 %v4451_v15, 16 }
 0x110   : > { %6965 = vmatprep.mubr.msk.bf16.mxu1 %vm1509_vm4, %v6228_v4  ;;  %v8558_v4 = vsel %vm8088_vm14, %v6254_v31, %v2073_v60  ;;  %v6234_v60 = vcombine.low %v8384_v42, %v8395_v18  ;;  %v6258_v58 = vrot.slane %v2024_v48, 9  ;;  %v8615_v31 = vld [vmem:[%s9670_s1 + $0x80] sm:$0xff]   ;;  %v2104_v59 = vrot.slane %v7582_v8, 5  ;;  %v7584_v8 = vld [vmem:[#allocation2 + $0x50] sm:$0x1] }
 0x111   : > { %v6274_v35 = vcombine.low %v8558_v4, %v8562_v52  ;;  %9706 = vst [vmem:[#allocation6_spill] sm:$0xff] %v8615_v31  ;;  %v2115_v48 = vrot.slane %v8514_v46, 5  ;;  %v2118_v15 = vrot.slane %v7584_v8, 5  ;;  %v8636_v46 = vrot.slane %v4508_v3, 5  ;;  %v4452_v8 = vld [vmem:[#allocation2 + $0x20] sm:$0x1] }
 0x112   : > { %v8621_v12 = vsel %vm8088_vm14, %v6258_v58, %v2101_v13  ;;  %v4504_v58 = vrot.slane %v4502_v63, 5  ;;  %v4514_v49 = vrot.slane %v4512_v23, 4  ;;  %v2136_v3 = vrot.slane %v8543_v1, 5  ;;  %v4456_v42 = vld [vmem:[#allocation2 + $0x30] sm:$0xf] }
 0x115   : > { %7130 = vmatmul.mubr.msk.bf16.vlgmr.msra.gmra.mrb[0].mxu0 %vm1509_vm4, %v7516_v26  ;;  %v2111_v26 = vrot.slane %v7583_v41, 5  ;;  %v6261_v41 = vrot.slane %v2027_v7, 9  ;;  %v2117_v7 = vrot.slane %v2115_v48, 4 }
 0x116   : > { %7162 = vmatpush3.bf16.msra.mxu0 %v7581_v44  ;;  %7133 = vmatprep.mubr.msk.bf16.mxu0 %vm1509_vm4, %v7517_v28  ;;  %v2103_v28 = vrot.slane %v2101_v13, 4  ;;  %v4454_v44 = vld [vmem:[#allocation2 + $0x28] sm:$0xf] }
 0x117   : > { %6966 = vmatmul.mubr.msk.bf16.gmra.mrb[16].mxu1 %vm1509_vm4, %v6229_v0  ;;  %7163 = vmatprep.subr.bf16.mxu0 %v7525_v20  ;;  %v2108_v0 = vrot.slane %v8511_v36, 5  ;;  %v4453_v36 = vld [vmem:[#allocation2 + $0x24] sm:$0xf]  ;;  %v8655_v23 = vsel %vm8088_vm14, %v6261_v41, %v2122_v40 }
 0x118   : > { %6969 = vmatprep.mubr.msk.bf16.mxu1 %vm1509_vm4, %v6230_v11  ;;  %v6260_v11 = vrot.slane %v2026_v24, 9  ;;  %v4523_v13 = vshrl.u32 %v4453_v36, 16  ;;  %v4526_v55 = vshll.u32 %v4453_v36, 16  ;;  %v2129_v36 = vrot.slane %v8526_v5, 5  ;;  %v2029_v5 = vld [vmem:[#allocation2 + $0x6c] sm:$0xe] }
 0x119   : > { %v8627_v34 = vsel %vm8088_vm14, %v6259_v30, %v2108_v0  ;;  %v2110_v24 = vrot.slane %v2108_v0, 4  ;;  %v4532_v30 = vshll.u32 %v4454_v44, 16  ;;  %v4536_v0 = vshrl.u32 %v4454_v44, 16 }
 0x11a   : > { %7164 = vmatpush3.bf16.msra.mxu0 %v7525_v20  ;;  %v4501_v20 = vrot.slane %v4499_v14, 4  ;;  %v7585_v14 = vld [vmem:[#allocation2 + $0x5c] sm:$0x1]  ;;  %v8650_v54 = vsel %vm8088_vm14, %v6260_v11, %v2115_v48  ;;  %v4525_v44 = vrot.slane %v4523_v13, 4  ;;  %v7521_v11 = vld [vmem:[#allocation2 + $0x60] sm:$0xff]   ;;  %v8662_v48 = vsel %vm8088_vm14, %v2117_v7, %v2118_v15 }
 0x11b   : > { %7197 = vmatprep.subr.bf16.mxu0 %v8615_v31  ;;  %v2125_v63 = vrot.slane %v7585_v14, 5  ;;  %v8646_v16 = vsel %vm8088_vm14, %v2110_v24, %v2111_v26  ;;  %v4515_v14 = vor.u32 %v4514_v49, %v8636_v46  ;;  %v4518_v26 = vshll.u32 %v4452_v8, 16  ;;  %v7587_v8 = vld [vmem:[#allocation2 + $0x74] sm:$0x1] }
 0x11c   : > { %v8658_v24 = vrot.slane %v4532_v30, 5  ;;  %v4538_v22 = vrot.slane %v4536_v0, 4  ;;  %v2131_v41 = vrot.slane %v2129_v36, 4  ;;  %v6263_v13 = vrot.slane %v2029_v5, 9 }
 0x11d   : > { %7134 = vmatmul.mubr.msk.bf16.gmra.mrb[4].mxu0 %vm1509_vm4, %v7518_v61  ;;  %v8642_v61 = vsel %vm8088_vm14, %v2103_v28, %v2104_v59  ;;  %v4528_v59 = vrot.slane %v4526_v55, 5  ;;  %v7520_v28 = vld [vmem:[#allocation2 + $0x54] sm:$0xff]   ;;  %v7586_v55 = vld [vmem:[#allocation2 + $0x68] sm:$0x1]  ;;  %v2138_v49 = vrot.slane %v2136_v3, 4  ;;  %v2139_v30 = vrot.slane %v7587_v8, 5 }
 0x11e   : > { %7137 = vmatprep.mubr.msk.bf16.mxu0 %vm1509_vm4, %v7519_v17  ;;  %v4505_v17 = vor.u32 %v4504_v58, %v4501_v20  ;;  %v4455_v20 = vld [vmem:[#allocation2 + $0x2c] sm:$0x1]  ;;  %v2132_v58 = vrot.slane %v7586_v55, 5  ;;  %v4520_v5 = vrot.slane %v4518_v26, 5  ;;  %v4539_v33 = vor.u32 %v4538_v22, %v8658_v24  ;;  %v8703_v26 = vld [vmem:[#allocation2 + $0x34] sm:$0xf] }
 0x11f   : > { %6970 = vmatmul.mubr.msk.bf16.gmra.mrb[20].mxu1 %vm1509_vm4, %v6231_v2  ;;  %v2124_v2 = vrot.slane %v2122_v40, 4  ;;  %v4529_v7 = vor.u32 %v4528_v59, %v4525_v44  ;;  %v4542_v55 = vshll.u32 %v4455_v20, 16  ;;  %v6264_v59 = vrot.slane %v2030_v29, 9  ;;  %9707 = vst [vmem:[#allocation7_spill] sm:$0xff] %v8703_v26  ;;  %v4462_v44 = vld [vmem:[#allocation2 + $0x48] sm:$0xf] }
 0x120   : > { %6973 = vmatprep.mubr.msk.bf16.mxu1 %vm1509_vm4, %v6232_v43  ;;  %v2028_v43 = vld [vmem:[#allocation2 + $0x60] sm:$0xe]  ;;  %v4506_v0 = vrot.slane %v4505_v17, 4  ;;  %v8693_v22 = vsel %vm8088_vm14, %v2131_v41, %v2132_v58  ;;  %v2031_v41 = vld [vmem:[#allocation2 + $0x84] sm:$0xe]  ;;  %v7522_v58 = vld [vmem:[#allocation2 + $0x6c] sm:$0xff]  }
 0x121   : > { %v8666_v1 = vsel %vm8088_vm14, %v2124_v2, %v2125_v63  ;;  %v6262_v40 = vrot.slane %v2028_v43, 9  ;;  %v7588_v2 = vld [vmem:[#allocation2 + $0x7c] sm:$0xf]  ;;  %v4516_v43 = vrot.slane %v4515_v14, 4  ;;  %v8701_v14 = vsel %vm8088_vm14, %v2138_v49, %v2139_v30 }
 0x122   : > { %v2143_v63 = vrot.slane %v7588_v2, 5  ;;  %v4511_v29 = vsel %vm7778_vm8, %v4506_v0, %v8636_v46  ;;  %v4544_v8 = vrot.slane %v4542_v55, 5  ;;  %v4547_v2 = vshrl.u32 %v4456_v42, 16  ;;  %v7524_v49 = vld [vmem:[#allocation2 + $0x78] sm:$0xff]  }
 0x123   : > { %v8718_v0 = vld [vmem:[#allocation2 + $0x38] sm:$0x1]  ;;  %v6265_v17 = vrot.slane %v2031_v41, 9  ;;  %v4560_v55 = vshrl.u32 %v8703_v26, 16  ;;  %v8737_v41 = vld [vmem:[#allocation2 + $0x8c] sm:$0x1] }
 0x124   : > { %v8716_v46 = vsel %vm8088_vm14, %v6264_v59, %v2143_v63  ;;  %9709 = vst [vmem:[#allocation9_spill] sm:$0xff] %v8718_v0  ;;  %v4598_v30 = vshll.u32 %v4462_v44, 16 }
 0x125   : > { %7138 = vmatmul.mubr.msk.bf16.gmra.mrb[8].mxu0 %vm1509_vm4, %v7520_v28  ;;  %v8697_v28 = vsel %vm8088_vm14, %v6263_v13, %v2136_v3  ;;  %v4521_v3 = vsel %vm7778_vm8, %v4516_v43, %v4520_v5  ;;  %v4540_v13 = vrot.slane %v4539_v33, 4  ;;  %9708 = vst [vmem:[#allocation8_spill] sm:$0xff] %v8716_v46  ;;  %v7590_v43 = vld [vmem:[#allocation2 + $0x88] sm:$0xf]  ;;  %v4556_v33 = vshll.u32 %v8703_v26, 16 }
 0x126   : > { %7141 = vmatprep.mubr.msk.bf16.mxu0 %vm1509_vm4, %v7521_v11  ;;  %v2145_v11 = vrot.slane %v2143_v63, 4  ;;  %v2150_v5 = vrot.slane %v7590_v43, 5  ;;  %v8728_v63 = vcombine.low %v4511_v29, %v4521_v3  ;;  %v4562_v52 = vrot.slane %v4560_v55, 4  ;;  %v4465_v43 = vld [vmem:[#allocation2 + $0x54] sm:$0xf] }
 0x127   : > { %6974 = vmatmul.mubr.msk.bf16.gmra.mrb[24].mxu1 %vm1509_vm4, %v6233_v53  ;;  %v8722_v53 = vld [vmem:[#allocation2 + $0x40] sm:$0xf]  ;;  %v4545_v10 = vsel %vm7778_vm8, %v4540_v13, %v4544_v8  ;;  %v8753_v4 = vrot.slane %v4556_v33, 5  ;;  %v4622_v25 = vshll.u32 %v4465_v43, 16 }
 0x128   : > { %6977 = vmatprep.mubr.msk.bf16.mxu1 %vm1509_vm4, %v6234_v60  ;;  %v8689_v60 = vsel %vm8088_vm14, %v6262_v40, %v2129_v36  ;;  %v4530_v36 = vrot.slane %v4529_v7, 4  ;;  %v7589_v40 = vld [vmem:[#allocation2 + $0x80] sm:$0x1]  ;;  %v4550_v7 = vshll.u32 %v4456_v42, 16  ;;  %9710 = vst [vmem:[#allocation10_spill] sm:$0xff] %v8722_v53  ;;  %v4584_v3 = vshrl.u32 %v8722_v53, 16 }
 0x129   : > { %v2146_v20 = vrot.slane %v7589_v40, 5  ;;  %v4459_v40 = vld [vmem:[#allocation2 + $0x3c] sm:$0xf]  ;;  %v8757_v8 = vrot.slane %v2150_v5, 4  ;;  %v8767_v33 = vsel %vm8088_vm14, %v6265_v17, %v2150_v5  ;;  %v2032_v5 = vld [vmem:[#allocation2 + $0x90] sm:$0xe] }
 0x12a   : > { %v4535_v59 = vsel %vm7778_vm8, %v4530_v36, %v8658_v24  ;;  %v4571_v24 = vshrl.u32 %v4459_v40, 16  ;;  %v4574_v29 = vshll.u32 %v4459_v40, 16  ;;  %v8747_v36 = vld [vmem:[#allocation2 + $0x4c] sm:$0xf]  ;;  %v7526_v40 = vld [vmem:[#allocation2 + $0x84] sm:$0xff]   ;;  %v4586_v38 = vrot.slane %v4584_v3, 4 }
 0x12b   : > { %v8735_v42 = vsel %vm8088_vm14, %v2145_v11, %v2146_v20  ;;  %9712 = vst [vmem:[#allocation12_spill] sm:$0xff] %v8747_v36  ;;  %v4552_v11 = vrot.slane %v4550_v7, 5  ;;  %v4566_v20 = vshll.u32 %v8718_v0, 16  ;;  %v4608_v7 = vshrl.u32 %v8747_v36, 16 }
 0x12c   : > { %9711 = vst [vmem:[#allocation11_spill] sm:$0xff] %v8735_v42  ;;  %v8763_v15 = vcombine.low %v4535_v59, %v4545_v10  ;;  %v4573_v55 = vrot.slane %v4571_v24, 4  ;;  %v7533_v59 = vld [vmem:[%s9670_s1 + $0x38] sm:$0xff]   ;;  %v4563_v10 = vor.u32 %v4562_v52, %v8753_v4  ;;  %v4619_v3 = vshrl.u32 %v4465_v43, 16 }
 0x12d   : > { %7142 = vmatmul.mubr.msk.bf16.gmra.mrb[12].mxu0 %vm1509_vm4, %v7522_v58  ;;  %v4580_v58 = vshll.u32 %v8722_v53, 16  ;;  %v7527_v53 = vld [vmem:[#allocation2 + $0x90] sm:$0xff]   ;;  %v8769_v0 = vrot.slane %v4566_v20, 5  ;;  %v6266_v43 = vrot.slane %v2032_v5, 9 }
 0x12e   : > { %7145 = vmatprep.mubr.msk.bf16.mxu0 %vm1509_vm4, %v7524_v49  ;;  %v4604_v49 = vshll.u32 %v8747_v36, 16  ;;  %9714 = vst [vmem:[#allocation14_spill] sm:$0xff] %v8763_v15  ;;  %v8809_v15 = vld [vmem:[#allocation2 + $0x5c] sm:$0x1] }
 0x12f   : > { %6978 = vmatmul.mubr.msk.bf16.gmra.mrb[28].mxu1 %vm1509_vm4, %v6235_v6  ;;  %v4549_v6 = vrot.slane %v4547_v2, 4  ;;  %v8759_v2 = vld [vmem:[#allocation2 + $0x44] sm:$0x1]  ;;  %v8771_v26 = vrot.slane %v4580_v58, 5  ;;  %v4610_v58 = vrot.slane %v4608_v7, 4  ;;  %v2164_v7 = vrot.slane %v8354_v9, 5 }
 0x130   : > { %6985 = vmatprep.mubr.msk.bf16.mxu1 %vm1509_vm4, %v6274_v35  ;;  %v4595_v35 = vshrl.u32 %v4462_v44, 16  ;;  %9713 = vst [vmem:[#allocation13_spill] sm:$0xff] %v8759_v2  ;;  %v4576_v44 = vrot.slane %v4574_v29, 5  ;;  %v4590_v17 = vshll.u32 %v8759_v2, 16  ;;  %v4600_v29 = vrot.slane %v4598_v30, 5 }
 0x131   : > { %v4553_v13 = vor.u32 %v4552_v11, %v4549_v6  ;;  %v9716_v6 = vcombine.low %v8570_v21, %v8574_v47  ;;  %v8784_v11 = vld [vmem:[#allocation2 + $0x50] sm:$0x1]  ;;  %v8786_v20 = vrot.slane %v4604_v49, 5  ;;  %v7592_v2 = vld [vmem:[#allocation2 + $0x94] sm:$0xf]  ;;  %v4628_v30 = vshll.u32 %v8773_v56, 16 }
 0x132   : > { %v4597_v24 = vrot.slane %v4595_v35, 4  ;;  %v4577_v52 = vor.u32 %v4576_v44, %v4573_v55  ;;  %v2157_v35 = vrot.slane %v7592_v2, 5  ;;  %v4632_v21 = vshrl.u32 %v8773_v56, 16  ;;  %v7593_v55 = vld [vmem:[#allocation2 + $0x98] sm:$0x1]  ;;  %v7528_v56 = vld [vmem:[#allocation2 + $0x9c] sm:$0xff]  }
 0x133   : > { %v9717_v47 = vcombine.low %v8578_v39, %v8582_v51  ;;  %v8797_v49 = vrot.slane %v4553_v13, 4  ;;  %v8801_v2 = vrot.slane %v4563_v10, 4  ;;  %v2160_v44 = vrot.slane %v7593_v55, 5  ;;  %v7594_v55 = vld [vmem:[#allocation2 + $0xa4] sm:$0x1] }
 0x134   : > { %v4614_v39 = vshll.u32 %v8784_v11, 16  ;;  %v4601_v51 = vor.u32 %v4600_v29, %v4597_v24  ;;  %v4621_v13 = vrot.slane %v4619_v3, 4  ;;  %v4578_v5 = vrot.slane %v4577_v52, 4  ;;  %v8814_v24 = vld [vmem:[%s9670_s1 + $0x40] sm:$0xff]   ;;  %v2034_v52 = vld [vmem:[#allocation2 + $0xa8] sm:$0xe] }
 0x135   : > { %7146 = vmatmul.mubr.msk.bf16.gmra.mrb[16].mxu0 %vm1509_vm4, %v7526_v40  ;;  %v8803_v40 = vrot.slane %v4590_v17, 5  ;;  %v2159_v9 = vrot.slane %v2157_v35, 4  ;;  %v8807_v36 = vrot.slane %v4628_v30, 5  ;;  %v4634_v10 = vrot.slane %v4632_v21, 4  ;;  %9718 = vst [vmem:[#allocation16_spill] sm:$0xff] %v8814_v24 }
 0x136   : > { %7149 = vmatprep.mubr.msk.bf16.mxu0 %vm1509_vm4, %v7527_v53  ;;  %v4611_v53 = vor.u32 %v4610_v58, %v8786_v20  ;;  %v2166_v42 = vrot.slane %v2164_v7, 4  ;;  %v2167_v46 = vrot.slane %v7594_v55, 5  ;;  %v4559_v29 = vsel %vm7778_vm8, %v8797_v49, %v8753_v4  ;;  %v4468_v49 = vld [vmem:[#allocation2 + $0x60] sm:$0xf] }
 0x137   : > { %6986 = vmatmul.mubr.msk.bf16.vlgmr.msra.gmra.mrb[0].mxu1 %vm1509_vm4, %v9716_v6  ;;  %v2033_v6 = vld [vmem:[#allocation2 + $0x9c] sm:$0xe]  ;;  %v8830_v58 = vsel %vm8088_vm14, %v6266_v43, %v2157_v35  ;;  %v4616_v3 = vrot.slane %v4614_v39, 5  ;;  %v9720_v30 = vcombine.low %v8592_v57, %v8596_v50  ;;  %v9721_v4 = vcombine.low %v8621_v12, %v8642_v61 }
 0x138   : > { %7018 = vmatpush3.bf16.msra.mxu1 %v8491_v27  ;;  %6989 = vmatprep.mubr.msk.bf16.mxu1 %vm1509_vm4, %v9717_v47  ;;  %v4587_v27 = vor.u32 %v4586_v38, %v8771_v26  ;;  %v4624_v47 = vrot.slane %v4622_v25, 5  ;;  %v7529_v38 = vld [vmem:[#allocation2 + $0xa8] sm:$0xff]   ;;  %v6267_v31 = vrot.slane %v2033_v6, 9  ;;  %v9719_v25 = vrot.slane %v8737_v41, 5  ;;  %v2035_v6 = vld [vmem:[#allocation2 + $0xb4] sm:$0xe] }
 0x139   : > { %7019 = vmatprep.subr.bf16.mxu1 %v7533_v59  ;;  %v4602_v41 = vrot.slane %v4601_v51, 4  ;;  %v4612_v21 = vrot.slane %v4611_v53, 4  ;;  %v4569_v57 = vsel %vm7778_vm8, %v8801_v2, %v8769_v0  ;;  %v8848_v50 = vsel %vm8088_vm14, %v2159_v9, %v2160_v44  ;;  %v7530_v51 = vld [vmem:[#allocation2 + $0xb4] sm:$0xff]   ;;  %v4471_v9 = vld [vmem:[#allocation2 + $0x6c] sm:$0xf] }
 0x13a   : > { %v4588_v17 = vrot.slane %v4587_v27, 4  ;;  %v2171_v27 = vrot.slane %v8395_v18, 5  ;;  %v4635_v35 = vor.u32 %v4634_v10, %v8807_v36  ;;  %v4638_v18 = vshll.u32 %v8809_v15, 16 }
 0x13b   : > { %v8861_v61 = vsel %vm8088_vm14, %v6267_v31, %v2164_v7  ;;  %v8865_v0 = vsel %vm8088_vm14, %v2166_v42, %v2167_v46  ;;  %v6268_v43 = vrot.slane %v2034_v52, 9  ;;  %v2174_v2 = vrot.slane %v8397_v19, 5 }
 0x13c   : > { %7020 = vmatpush3.bf16.msra.mxu1 %v7533_v59  ;;  %v8822_v59 = vsel %vm8088_vm14, %v8757_v8, %v9719_v25  ;;  %v4625_v8 = vor.u32 %v4624_v47, %v4621_v13  ;;  %v4593_v12 = vsel %vm7778_vm8, %v4588_v17, %v8803_v40  ;;  %v6269_v44 = vrot.slane %v2035_v6, 9  ;;  %v4477_v6 = vld [vmem:[#allocation2 + $0x84] sm:$0xf] }
 0x13d   : > { %7233 = vmatprep.subr.bf16.mxu1 %v8814_v24  ;;  %7150 = vmatmul.mubr.msk.bf16.gmra.mrb[20].mxu0 %vm1509_vm4, %v7528_v56  ;;  %v4583_v56 = vsel %vm7778_vm8, %v4578_v5, %v8771_v26  ;;  %v2178_v39 = vrot.slane %v8415_v45, 5  ;;  %v4607_v26 = vsel %vm7778_vm8, %v4602_v41, %v8786_v20  ;;  %v4617_v40 = vsel %vm7778_vm8, %v4612_v21, %v4616_v3  ;;  %v7531_v45 = vld [vmem:[#allocation2 + $0xc0] sm:$0xff]   ;;  %v4474_v3 = vld [vmem:[#allocation2 + $0x78] sm:$0xf] }
 0x13e   : > { %7153 = vmatprep.mubr.msk.bf16.mxu0 %vm1509_vm4, %v7529_v38  ;;  %v8874_v31 = vrot.slane %v4625_v8, 4  ;;  %v2173_v7 = vrot.slane %v2171_v27, 4  ;;  %v8878_v42 = vrot.slane %v4635_v35, 4  ;;  %v8880_v19 = vrot.slane %v4638_v18, 5  ;;  %v8890_v5 = vld [vmem:[#allocation2 + $0x64] sm:$0xf] }
 0x13f   : > { %6990 = vmatmul.mubr.msk.bf16.gmra.mrb[4].mxu1 %vm1509_vm4, %v9720_v30  ;;  %v4643_v53 = vshrl.u32 %v4468_v49, 16  ;;  %v8882_v13 = vcombine.low %v4559_v29, %v4569_v57  ;;  %v8884_v47 = vcombine.low %v4583_v56, %v4593_v12  ;;  %v8892_v10 = vcombine.low %v4607_v26, %v4617_v40  ;;  %v8904_v29 = vld [vmem:[#allocation2 + $0x70] sm:$0xf]  ;;  %v8934_v18 = vld [vmem:[#allocation2 + $0x88] sm:$0xf] }
 0x140   : > { %6993 = vmatprep.mubr.msk.bf16.mxu1 %vm1509_vm4, %v9721_v4  ;;  %v8896_v17 = vsel %vm8088_vm14, %v6268_v43, %v2171_v27  ;;  %v8900_v55 = vsel %vm8088_vm14, %v6269_v44, %v2178_v39  ;;  %v8902_v25 = vrot.slane %v2178_v39, 4  ;;  %v9722_v52 = vcombine.low %v8627_v34, %v8646_v16  ;;  %v8919_v27 = vld [vmem:[#allocation2 + $0x7c] sm:$0xf]  ;;  %9725 = vst [vmem:[#allocation18_spill] sm:$0xff] %v8934_v18  ;;  %v8937_v56 = vld [vmem:[#allocation2 + $0x68] sm:$0x1] }
 0x141   : > { %v8916_v41 = vsel %vm8088_vm14, %v2173_v7, %v2174_v2  ;;  %v4646_v8 = vshll.u32 %v4468_v49, 16  ;;  %9723 = vst [vmem:[#allocation17_spill] sm:$0xff] %v8919_v27  ;;  %v9724_v34 = vcombine.low %v8650_v54, %v8662_v48  ;;  %v8930_v4 = vrot.slane %v4643_v53, 4  ;;  %v7532_v26 = vld [vmem:[#allocation2 + $0xcc] sm:$0xff]   ;;  %v8950_v16 = vld [vmem:[#allocation2 + $0x94] sm:$0xf] }
 0x142   : > { %v4652_v57 = vshll.u32 %v8890_v5, 16  ;;  %v4656_v35 = vshrl.u32 %v8890_v5, 16  ;;  %v4667_v54 = vshrl.u32 %v4471_v9, 16  ;;  %v4670_v48 = vshll.u32 %v4471_v9, 16  ;;  %v4480_v38 = vld [vmem:[#allocation2 + $0x90] sm:$0xf] }
 0x143   : > { %v4676_v12 = vshll.u32 %v8904_v29, 16  ;;  %v4680_v49 = vshrl.u32 %v8904_v29, 16  ;;  %v4691_v43 = vshrl.u32 %v4474_v3, 16  ;;  %v4694_v2 = vshll.u32 %v4474_v3, 16  ;;  %9726 = vst [vmem:[#allocation19_spill] sm:$0xff] %v8950_v16 }
 0x144   : > { %v4700_v44 = vshll.u32 %v8919_v27, 16  ;;  %v4704_v39 = vshrl.u32 %v8919_v27, 16  ;;  %v4648_v40 = vrot.slane %v4646_v8, 5  ;;  %v4715_v7 = vshrl.u32 %v4477_v6, 16  ;;  %v8952_v8 = vld [vmem:[#allocation2 + $0x74] sm:$0x1] }
 0x145   : > { %7154 = vmatmul.mubr.msk.bf16.gmra.mrb[24].mxu0 %vm1509_vm4, %v7530_v51  ;;  %v4718_v51 = vshll.u32 %v4477_v6, 16  ;;  %v4724_v53 = vshll.u32 %v8934_v18, 16  ;;  %v4662_v9 = vshll.u32 %v8937_v56, 16  ;;  %v4669_v20 = vrot.slane %v4667_v54, 4  ;;  %9727 = vst [vmem:[#allocation20_spill] sm:$0xff] %v8952_v8 }
 0x146   : > { %7157 = vmatprep.mubr.msk.bf16.mxu0 %vm1509_vm4, %v7531_v45  ;;  %v8944_v45 = vrot.slane %v4652_v57, 5  ;;  %v4672_v3 = vrot.slane %v4670_v48, 5  ;;  %v8948_v46 = vrot.slane %v4676_v12, 5  ;;  %v4682_v30 = vrot.slane %v4680_v49, 4 }
 0x147   : > { %6994 = vmatmul.mubr.msk.bf16.gmra.mrb[8].mxu1 %vm1509_vm4, %v9722_v52  ;;  %v4658_v52 = vrot.slane %v4656_v35, 4  ;;  %v4693_v6 = vrot.slane %v4691_v43, 4  ;;  %v4696_v21 = vrot.slane %v4694_v2, 5  ;;  %v8954_v24 = vrot.slane %v4700_v44, 5  ;;  %v8969_v2 = vld [vmem:[#allocation2 + $0x8c] sm:$0x1] }
 0x148   : > { %6997 = vmatprep.mubr.msk.bf16.mxu1 %vm1509_vm4, %v9724_v34  ;;  %v4728_v34 = vshrl.u32 %v8934_v18, 16  ;;  %v4706_v57 = vrot.slane %v4704_v39, 4  ;;  %v9728_v35 = vcombine.low %v8655_v23, %v8666_v1  ;;  %v8960_v18 = vld [vmem:[#allocation2 + $0x80] sm:$0x1]  ;;  %v4717_v54 = vrot.slane %v4715_v7, 4  ;;  %9731 = vst [vmem:[#allocation22_spill] sm:$0xff] %v8969_v2 }
 0x149   : > { %9729 = vst [vmem:[#allocation21_spill] sm:$0xff] %v8960_v18  ;;  %v4720_v48 = vrot.slane %v4718_v51, 5  ;;  %v8962_v12 = vrot.slane %v4724_v53, 5  ;;  %v4739_v49 = vshrl.u32 %v4480_v38, 16  ;;  %v9730_v43 = vcombine.low %v8689_v60, %v8693_v22 }
 0x14a   : > { %v4730_v44 = vrot.slane %v4728_v34, 4  ;;  %v4742_v23 = vshll.u32 %v4480_v38, 16  ;;  %v4748_v1 = vshll.u32 %v8950_v16, 16  ;;  %v4752_v39 = vshrl.u32 %v8950_v16, 16 }
 0x14b   : > { %v4649_v7 = vor.u32 %v4648_v40, %v8930_v4  ;;  %v8977_v51 = vrot.slane %v4662_v9, 5  ;;  %v4686_v60 = vshll.u32 %v8952_v8, 16  ;;  %v4673_v22 = vor.u32 %v4672_v3, %v4669_v20  ;;  %v8987_v8 = vld [vmem:[#allocation2 + $0xa0] sm:$0xf] }
 0x14c   : > { %v4683_v53 = vor.u32 %v4682_v30, %v8948_v46  ;;  %v4697_v34 = vor.u32 %v4696_v21, %v4693_v6  ;;  %v4710_v38 = vshll.u32 %v8960_v18, 16  ;;  %v4721_v16 = vor.u32 %v4720_v48, %v4717_v54  ;;  %v8989_v21 = vld [vmem:[#allocation2 + $0x98] sm:$0x1] }
 0x14d   : > { %7158 = vmatmul.mubr.msk.bf16.gmra.mrb[28].mxu0 %vm1509_vm4, %v7532_v26  ;;  %v4659_v26 = vor.u32 %v4658_v52, %v8944_v45  ;;  %v4741_v27 = vrot.slane %v4739_v49, 4  ;;  %v4731_v4 = vor.u32 %v4730_v44, %v8962_v12  ;;  %v4744_v40 = vrot.slane %v4742_v23, 5  ;;  %v7537_v49 = vld [vmem:[%s9670_s1 + $0x88] sm:$0xff]  }
 0x14e   : > { %7165 = vmatprep.mubr.msk.bf16.mxu0 %vm1509_vm4, %v8728_v63  ;;  %v4734_v63 = vshll.u32 %v8969_v2, 16  ;;  %v8985_v52 = vrot.slane %v4748_v1, 5  ;;  %v4754_v9 = vrot.slane %v4752_v39, 4  ;;  %v4650_v20 = vrot.slane %v4649_v7, 4 }
 0x14f   : > { %6998 = vmatmul.mubr.msk.bf16.gmra.mrb[12].mxu1 %vm1509_vm4, %v9728_v35  ;;  %v4483_v35 = vld [vmem:[#allocation2 + $0x9c] sm:$0xf]  ;;  %v4688_v30 = vrot.slane %v4686_v60, 5  ;;  %v4660_v18 = vrot.slane %v4659_v26, 4  ;;  %v4684_v54 = vrot.slane %v4683_v53, 4  ;;  %v4712_v48 = vrot.slane %v4710_v38, 5 }
 0x150   : > { %7001 = vmatprep.mubr.msk.bf16.mxu1 %vm1509_vm4, %v9730_v43  ;;  %v4707_v43 = vor.u32 %v4706_v57, %v8954_v24  ;;  %v4763_v3 = vshrl.u32 %v4483_v35, 16  ;;  %v4766_v6 = vshll.u32 %v4483_v35, 16  ;;  %v4674_v57 = vrot.slane %v4673_v22, 4  ;;  %v9733_v60 = vld [vmem:[#allocation14_spill] sm:$0xff]  ;;  %v9734_v26 = vld [vmem:[#allocation8_spill] sm:$0xff]  ;;  %v9735_v22 = vld [vmem:[#allocation11_spill] sm:$0xff] }
 0x151   : > { %v9732_v44 = vcombine.low %v8697_v28, %v8701_v14  ;;  %v4698_v23 = vrot.slane %v4697_v34, 4  ;;  %v4722_v39 = vrot.slane %v4721_v16, 4  ;;  %v4736_v7 = vrot.slane %v4734_v63, 5  ;;  %v9737_v14 = vld [vmem:[#allocation6_spill] sm:$0xff]  ;;  %v9009_v16 = vld [vmem:[#allocation2 + $0xa4] sm:$0x1] }
 0x152   : > { %v4708_v1 = vrot.slane %v4707_v43, 4  ;;  %v9736_v53 = vcombine.low %v9734_v26, %v9735_v22  ;;  %v4732_v38 = vrot.slane %v4731_v4, 4  ;;  %v4745_v35 = vor.u32 %v4744_v40, %v4741_v27  ;;  %v9085_v22 = vld [vmem:[#allocation2 + $0xb0] sm:$0x1] }
 0x153   : > { %v4755_v2 = vor.u32 %v4754_v9, %v8985_v52  ;;  %v4758_v28 = vshll.u32 %v8989_v21, 16  ;;  %v4765_v34 = vrot.slane %v4763_v3, 4  ;;  %v4768_v43 = vrot.slane %v4766_v6, 5 }
 0x154   : > { %v4772_v63 = vshll.u32 %v8987_v8, 16  ;;  %v9738_v4 = vrot.slane %v8417_v62, 5  ;;  %v4655_v40 = vsel %vm7778_vm8, %v4650_v20, %v8944_v45  ;;  %v4679_v9 = vsel %vm7778_vm8, %v4674_v57, %v8948_v46 }
 0x155   : > { %7166 = vmatmul.mubr.msk.bf16.vlgmr.msra.gmra.mrb[0].mxu0 %vm1509_vm4, %v9733_v60  ;;  %v4689_v62 = vsel %vm7778_vm8, %v4684_v54, %v4688_v30  ;;  %v4713_v3 = vsel %vm7778_vm8, %v4708_v1, %v4712_v48  ;;  %v4727_v45 = vsel %vm7778_vm8, %v4722_v39, %v8962_v12  ;;  %v4756_v20 = vrot.slane %v4755_v2, 4  ;;  %v9060_v1 = vld [vmem:[#allocation2 + $0xac] sm:$0xf] }
 0x156   : > { %7198 = vmatpush3.bf16.msra.mxu0 %v9737_v14  ;;  %7169 = vmatprep.mubr.msk.bf16.mxu0 %vm1509_vm4, %v8882_v13  ;;  %v9018_v27 = vsel %vm8088_vm14, %v8902_v25, %v9738_v4  ;;  %v4665_v13 = vsel %vm7778_vm8, %v4660_v18, %v8977_v51  ;;  %v4703_v25 = vsel %vm7778_vm8, %v4698_v23, %v8954_v24  ;;  %v4486_v18 = vld [vmem:[#allocation2 + $0xa8] sm:$0xf]  ;;  %v4746_v51 = vrot.slane %v4745_v35, 4 }
 0x157   : > { %7002 = vmatmul.mubr.msk.bf16.gmra.mrb[16].mxu1 %vm1509_vm4, %v9732_v44  ;;  %v4776_v44 = vshrl.u32 %v8987_v8, 16  ;;  %7199 = vmatprep.subr.bf16.mxu0 %v7537_v49  ;;  %v4760_v6 = vrot.slane %v4758_v28, 5  ;;  %v4782_v46 = vshll.u32 %v9009_v16, 16  ;;  %v4737_v30 = vsel %vm7778_vm8, %v4732_v38, %v4736_v7  ;;  %v9743_v28 = vld [vmem:[#allocation12_spill] sm:$0xff] }
 0x158   : > { %7005 = vmatprep.mubr.msk.bf16.mxu1 %vm1509_vm4, %v9736_v53  ;;  %v4769_v57 = vor.u32 %v4768_v43, %v4765_v34  ;;  %v9042_v54 = vrot.slane %v4772_v63, 5  ;;  %v9739_v12 = vsel %vm7778_vm8, %v8878_v42, %v8880_v19  ;;  %v9740_v2 = vsel %vm7778_vm8, %v8874_v31, %v8807_v36  ;;  %v5192_v31 = vld [vmem:[#allocation2 + $0x48] sm:$0xe]  ;;  %v5193_v53 = vld [vmem:[#allocation2 + $0x54] sm:$0xe] }
 0x159   : > { %v9044_v24 = vrot.slane %v4776_v44, 4  ;;  %v6485_v48 = vcombine.low %v9740_v2, %v9739_v12  ;;  %v6288_v23 = vcombine.low %v8896_v17, %v8916_v41  ;;  %v4787_v39 = vshrl.u32 %v4486_v18, 16  ;;  %v5194_v43 = vld [vmem:[#allocation2 + $0x60] sm:$0xe] }
 0x15a   : > { %7200 = vmatpush3.bf16.msra.mxu0 %v7537_v49  ;;  %v6289_v49 = vcombine.low %v8900_v55, %v9018_v27  ;;  %v9741_v7 = vcombine.low %v8767_v33, %v8822_v59  ;;  %v6486_v42 = vcombine.low %v4655_v40, %v4665_v13  ;;  %v9066_v19 = vcombine.low %v4679_v9, %v4689_v62  ;;  %v9744_v9 = vld [vmem:[#allocation15_spill] sm:$0xff] }
 0x15b   : > { %v9068_v60 = vcombine.low %v4703_v25, %v4713_v3  ;;  %v4790_v36 = vshll.u32 %v4486_v18, 16  ;;  %v9742_v17 = vcombine.low %v8830_v58, %v8848_v50  ;;  %v9076_v41 = vcombine.low %v4727_v45, %v4737_v30  ;;  %v5195_v3 = vld [vmem:[#allocation2 + $0x6c] sm:$0xe]  ;;  %v9198_v27 = vld [vmem:[#allocation2 + $0xbc] sm:$0x1] }
 0x15c   : > { %v4751_v33 = vsel %vm7778_vm8, %v4746_v51, %v8985_v52  ;;  %v4761_v59 = vsel %vm7778_vm8, %v4756_v20, %v4760_v6  ;;  %v9083_v26 = vrot.slane %v4782_v46, 5  ;;  %v9089_v58 = vrot.slane %v4769_v57, 4  ;;  %v9110_v6 = vld [vmem:[#allocation2 + $0xb4] sm:$0xf] }
 0x15d   : > { %7170 = vmatmul.mubr.msk.bf16.gmra.mrb[4].mxu0 %vm1509_vm4, %v8884_v47  ;;  %v4779_v50 = vor.u32 %v9044_v24, %v9042_v54  ;;  %v4796_v47 = vshll.u32 %v9060_v1, 16  ;;  %v4800_v52 = vshrl.u32 %v9060_v1, 16  ;;  %v4789_v38 = vrot.slane %v4787_v39, 4 }
 0x15e   : > { %7173 = vmatprep.mubr.msk.bf16.mxu0 %vm1509_vm4, %v8892_v10  ;;  %v6518_v35 = vrot.slane %v5192_v31, 9  ;;  %v5282_v14 = vrot.slane %v9743_v28, 5  ;;  %v5285_v34 = vrot.slane %v8784_v11, 5  ;;  %v9097_v63 = vcombine.low %v4751_v33, %v4761_v59  ;;  %v2886_v33 = vld [vmem:[#allocation2 + $0x78] sm:$0xf] }
 0x15f   : > { %7006 = vmatmul.mubr.msk.bf16.gmra.mrb[20].mxu1 %vm1509_vm4, %v9741_v7  ;;  %v4792_v44 = vrot.slane %v4790_v36, 5  ;;  %v4806_v10 = vshll.u32 %v9085_v22, 16  ;;  %v6519_v4 = vrot.slane %v5193_v53, 9  ;;  %v5289_v62 = vrot.slane %v9744_v9, 5  ;;  %v9746_v7 = vld [vmem:[#allocation20_spill] sm:$0xff] }
 0x160   : > { %7009 = vmatprep.mubr.msk.bf16.mxu1 %vm1509_vm4, %v9742_v17  ;;  %v9102_v40 = vsel %vm8088_vm14, %v6518_v35, %v5282_v14  ;;  %v5284_v13 = vrot.slane %v5282_v14, 4  ;;  %v5292_v25 = vrot.slane %v8809_v15, 5  ;;  %v9106_v45 = vrot.slane %v4796_v47, 5  ;;  %v7535_v47 = vld [vmem:[#allocation2 + $0xc] sm:$0xff]   ;;  %v5196_v14 = vld [vmem:[#allocation2 + $0x78] sm:$0xe] }
 0x161   : > { %v6520_v11 = vrot.slane %v5194_v43, 9  ;;  %v5296_v18 = vrot.slane %v8890_v5, 5  ;;  %v5299_v51 = vrot.slane %v8937_v56, 5  ;;  %v4802_v20 = vrot.slane %v4800_v52, 4 }
 0x162   : > { %v9114_v46 = vsel %vm8088_vm14, %v5284_v13, %v5285_v34  ;;  %v9118_v30 = vsel %vm8088_vm14, %v6519_v4, %v5289_v62  ;;  %v5291_v15 = vrot.slane %v5289_v62, 4  ;;  %v9745_v57 = vcombine.low %v8861_v61, %v8865_v0  ;;  %v9136_v0 = vld [vmem:[#allocation2 + $0xb8] sm:$0xf]  ;;  %v9747_v4 = vld [vmem:[#allocation5_spill] sm:$0xff]  ;;  %v9748_v13 = vld [vmem:[#allocation4_spill] sm:$0xff] }
 0x163   : > { %v6538_v5 = vcombine.low %v9102_v40, %v9114_v46  ;;  %v9128_v56 = vsel %vm8088_vm14, %v6520_v11, %v5296_v18  ;;  %v5298_v24 = vrot.slane %v5296_v18, 4  ;;  %v6521_v12 = vrot.slane %v5195_v3, 9  ;;  %v5197_v62 = vld [vmem:[#allocation2 + $0x84] sm:$0xe]  ;;  %v7604_v46 = vld [vmem:[#allocation2 + $0x8c] sm:$0x1] }
 0x164   : > { %v4775_v61 = vsel %vm7778_vm8, %v9089_v58, %v9042_v54  ;;  %v9140_v2 = vsel %vm8088_vm14, %v5291_v15, %v5292_v25  ;;  %v5303_v39 = vrot.slane %v8904_v29, 5  ;;  %v5306_v36 = vrot.slane %v9746_v7, 5  ;;  %v9180_v18 = vld [vmem:[#allocation2 + $0xc4] sm:$0xf]  ;;  %v9749_v15 = vld [vmem:[#allocation17_spill] sm:$0xff] }
 0x165   : > { %7174 = vmatmul.mubr.msk.bf16.gmra.mrb[8].mxu0 %vm1509_vm4, %v6485_v48  ;;  %v4793_v48 = vor.u32 %v4792_v44, %v4789_v38  ;;  %v6539_v31 = vcombine.low %v9118_v30, %v9140_v2  ;;  %v9150_v17 = vsel %vm8088_vm14, %v5298_v24, %v5299_v51  ;;  %v9152_v59 = vrot.slane %v4779_v50, 4  ;;  %v4492_v50 = vld [vmem:[#allocation2 + $0xc0] sm:$0xf]  ;;  %v7596_v54 = vld [vmem:[%s9670_s1 + $0x48] sm:$0xff]  }
 0x166   : > { %7177 = vmatprep.mubr.msk.bf16.mxu0 %vm1509_vm4, %v6486_v42  ;;  %v6540_v29 = vcombine.low %v9128_v56, %v9150_v17  ;;  %v9158_v53 = vsel %vm8088_vm14, %v6521_v12, %v5303_v39  ;;  %v5305_v42 = vrot.slane %v5303_v39, 4  ;;  %v4803_v52 = vor.u32 %v4802_v20, %v9106_v45  ;;  %v9750_v39 = vld [vmem:[#allocation21_spill] sm:$0xff]  ;;  %v7608_v17 = vld [vmem:[#allocation2 + $0xa4] sm:$0x1] }
 0x167   : > { %7010 = vmatmul.mubr.msk.bf16.gmra.mrb[24].mxu1 %vm1509_vm4, %v9745_v57  ;;  %v9161_v38 = vrot.slane %v4806_v10, 5  ;;  %v4814_v35 = vshll.u32 %v9110_v6, 16  ;;  %v4820_v28 = vshll.u32 %v9136_v0, 16  ;;  %v3124_v43 = vshrl.u32 %v2886_v33, 16 }
 0x168   : > { %7013 = vmatprep.mubr.msk.bf16.mxu1 %vm1509_vm4, %v6288_v23  ;;  %v4811_v23 = vshrl.u32 %v9110_v6, 16  ;;  %v9167_v34 = vsel %vm8088_vm14, %v5305_v42, %v5306_v36  ;;  %v3127_v44 = vshll.u32 %v2886_v33, 16  ;;  %v3146_v9 = vsel %vm7778_vm8, %v9748_v13, %v9747_v4  ;;  %v9751_v42 = vld [vmem:[#allocation18_spill] sm:$0xff] }
 0x169   : > { %v9173_v10 = vrot.slane %v4793_v48, 4  ;;  %v4824_v3 = vshrl.u32 %v9136_v0, 16  ;;  %v6541_v11 = vcombine.low %v9158_v53, %v9167_v34  ;;  %v3126_v51 = vrot.slane %v3124_v43, 4  ;;  %v7610_v34 = vld [vmem:[#allocation2 + $0xb8] sm:$0xf] }
 0x16a   : > { %v9175_v25 = vrot.slane %v4811_v23, 4  ;;  %v3129_v20 = vrot.slane %v3127_v44, 5  ;;  %v6522_v6 = vrot.slane %v5196_v14, 9  ;;  %v5310_v57 = vrot.slane %v9749_v15, 5  ;;  %v9752_v14 = vld [vmem:[#allocation22_spill] sm:$0xff] }
 0x16b   : > { %v4804_v24 = vrot.slane %v4803_v52, 4  ;;  %v4835_v12 = vshrl.u32 %v4492_v50, 16  ;;  %v5313_v7 = vrot.slane %v9750_v39, 5  ;;  %v6523_v36 = vrot.slane %v5197_v62, 9  ;;  %v9753_v39 = vld [vmem:[#allocation3_spill] sm:$0xff] }
 0x16c   : > { %v3130_v48 = vor.u32 %v3129_v20, %v3126_v51  ;;  %v9193_v23 = vsel %vm8088_vm14, %v6522_v6, %v5310_v57  ;;  %v5312_v33 = vrot.slane %v5310_v57, 4  ;;  %v5317_v55 = vrot.slane %v9751_v42, 5  ;;  %v4495_v57 = vld [vmem:[#allocation2 + $0xcc] sm:$0xf] }
 0x16d   : > { %7178 = vmatmul.mubr.msk.bf16.gmra.mrb[12].mxu0 %vm1509_vm4, %v9066_v19  ;;  %v4844_v52 = vshll.u32 %v9180_v18, 16  ;;  %v4848_v19 = vshrl.u32 %v9180_v18, 16  ;;  %v4816_v62 = vrot.slane %v4814_v35, 5  ;;  %v9211_v51 = vrot.slane %v4820_v28, 5  ;;  %v7538_v28 = vld [vmem:[#allocation2 + $0x24] sm:$0xff]  }
 0x16e   : > { %7181 = vmatprep.mubr.msk.bf16.mxu0 %vm1509_vm4, %v9068_v60  ;;  %v3131_v43 = vrot.slane %v3130_v48, 4  ;;  %v9205_v44 = vsel %vm8088_vm14, %v5312_v33, %v5313_v7  ;;  %v9209_v4 = vsel %vm8088_vm14, %v6523_v36, %v5317_v55  ;;  %v5319_v13 = vrot.slane %v5317_v55, 4  ;;  %v7536_v60 = vld [vmem:[#allocation2 + $0x18] sm:$0xff]  }
 0x16f   : > { %7014 = vmatmul.mubr.msk.bf16.gmra.mrb[28].mxu1 %vm1509_vm4, %v6289_v49  ;;  %v4838_v49 = vshll.u32 %v4492_v50, 16  ;;  %v4826_v50 = vrot.slane %v4824_v3, 4  ;;  %v6542_v20 = vcombine.low %v9193_v23, %v9205_v44  ;;  %v4785_v6 = vsel %vm7778_vm8, %v9152_v59, %v9083_v26  ;;  %v2904_v44 = vld [vmem:[#allocation2 + $0xc0] sm:$0xf] }
 0x170   : > { %7021 = vmatprep.mubr.msk.bf16.mxu1 %vm1509_vm4, %v7535_v47  ;;  %v5320_v47 = vrot.slane %v9752_v14, 5  ;;  %v4830_v15 = vshll.u32 %v9198_v27, 16  ;;  %v3136_v7 = vsel %vm7778_vm8, %v3131_v43, %v9753_v39  ;;  %v4837_v3 = vrot.slane %v4835_v12, 4  ;;  %v9240_v14 = vld [vmem:[#allocation2 + $0xd0] sm:$0xf] }
 0x171   : > { %v4840_v36 = vrot.slane %v4838_v49, 5  ;;  %v9227_v48 = vcombine.low %v3136_v7, %v3146_v9  ;;  %v4799_v26 = vsel %vm7778_vm8, %v9173_v10, %v9106_v45  ;;  %v4809_v59 = vsel %vm7778_vm8, %v4804_v24, %v9161_v38  ;;  %v9245_v49 = vld [vmem:[#allocation2 + $0xc8] sm:$0x1]  ;;  %v5198_v43 = vld [vmem:[#allocation2 + $0x90] sm:$0xe]  ;;  %v9754_v45 = vld [vmem:[#allocation16_spill] sm:$0xff] }
 0x172   : > { %v9225_v35 = vsel %vm8088_vm14, %v5319_v13, %v5320_v47  ;;  %v9238_v42 = vrot.slane %v4844_v52, 5  ;;  %v4850_v55 = vrot.slane %v4848_v19, 4  ;;  %v4817_v9 = vor.u32 %v4816_v62, %v9175_v25  ;;  %v7540_v7 = vld [vmem:[#allocation2 + $0x3c] sm:$0xff]  }
 0x173   : > { %v6543_v33 = vcombine.low %v9209_v4, %v9225_v35  ;;  %v4827_v12 = vor.u32 %v4826_v50, %v9211_v51  ;;  %v4859_v47 = vshrl.u32 %v4495_v57, 16  ;;  %v6491_v38 = vcombine.low %v4775_v61, %v4785_v6  ;;  %v9755_v61 = vld [vmem:[#allocation19_spill] sm:$0xff] }
 0x174   : > { %v4832_v10 = vrot.slane %v4830_v15, 5  ;;  %v4862_v24 = vshll.u32 %v4495_v57, 16  ;;  %v6492_v25 = vcombine.low %v4799_v26, %v4809_v59  ;;  %v4841_v52 = vor.u32 %v4840_v36, %v4837_v3  ;;  %v9271_v59 = vld [vmem:[#allocation2 + $0xd4] sm:$0x1] }
 0x175   : > { %7182 = vmatmul.mubr.msk.bf16.gmra.mrb[16].mxu0 %vm1509_vm4, %v9076_v41  ;;  %v4868_v19 = vshll.u32 %v9240_v14, 16  ;;  %v4872_v13 = vshrl.u32 %v9240_v14, 16  ;;  %v5199_v41 = vld [vmem:[#allocation2 + $0x9c] sm:$0xe]  ;;  %v4854_v62 = vshll.u32 %v9245_v49, 16  ;;  %v6524_v58 = vrot.slane %v5198_v43, 9 }
 0x176   : > { %7185 = vmatprep.mubr.msk.bf16.mxu0 %vm1509_vm4, %v9097_v63  ;;  %v5324_v50 = vrot.slane %v9755_v61, 5  ;;  %v7539_v63 = vld [vmem:[#allocation2 + $0x30] sm:$0xff]   ;;  %v4818_v6 = vrot.slane %v4817_v9, 4  ;;  %v4828_v15 = vrot.slane %v4827_v12, 4  ;;  %v4861_v57 = vrot.slane %v4859_v47, 4 }
 0x177   : > { %7022 = vmatmul.mubr.msk.bf16.vlgmr.msra.gmra.mrb[0].mxu1 %vm1509_vm4, %v7536_v60  ;;  %v4851_v60 = vor.u32 %v4850_v55, %v9238_v42  ;;  %v5327_v39 = vrot.slane %v8989_v21, 5  ;;  %v6525_v26 = vrot.slane %v5199_v41, 9  ;;  %v9273_v55 = vrot.slane %v4868_v19, 5 }
 0x178   : > { %7235 = vmatpush3.bf16.msra.mxu1 %v9754_v45  ;;  %7025 = vmatprep.mubr.msk.bf16.mxu1 %vm1509_vm4, %v7538_v28  ;;  %v4864_v28 = vrot.slane %v4862_v24, 5  ;;  %v9269_v3 = vsel %vm8088_vm14, %v6524_v58, %v5324_v50  ;;  %v5326_v36 = vrot.slane %v5324_v50, 4  ;;  %v4874_v43 = vrot.slane %v4872_v13, 4  ;;  %v7597_v58 = vld [vmem:[#allocation2 + $0x1c] sm:$0xf] }
 0x179   : > { %7234 = vmatprep.subr.bf16.mxu1 %v7596_v54  ;;  %v5331_v9 = vrot.slane %v8987_v8, 5  ;;  %v5334_v12 = vrot.slane %v9009_v16, 5  ;;  %v4842_v47 = vrot.slane %v4841_v52, 4  ;;  %v4852_v21 = vrot.slane %v4851_v60, 4  ;;  %v5200_v50 = vld [vmem:[#allocation2 + $0xa8] sm:$0xe] }
 0x17a   : > { %v4856_v45 = vrot.slane %v4854_v62, 5  ;;  %v9279_v24 = vsel %vm8088_vm14, %v5326_v36, %v5327_v39  ;;  %v4865_v8 = vor.u32 %v4864_v28, %v4861_v57  ;;  %v4878_v16 = vshll.u32 %v9271_v59, 16 }
 0x17b   : > { %v6544_v41 = vcombine.low %v9269_v3, %v9279_v24  ;;  %v9286_v19 = vsel %vm8088_vm14, %v6525_v26, %v5331_v9  ;;  %v5333_v13 = vrot.slane %v5331_v9, 4  ;;  %v4823_v52 = vsel %vm7778_vm8, %v4818_v6, %v9211_v51  ;;  %v5201_v26 = vld [vmem:[#allocation2 + $0xb4] sm:$0xe] }
 0x17c   : > { %7236 = vmatpush3.bf16.msra.mxu1 %v7596_v54  ;;  %v4833_v60 = vsel %vm7778_vm8, %v4828_v15, %v4832_v10  ;;  %v4875_v62 = vor.u32 %v4874_v43, %v9273_v55  ;;  %v5254_v61 = vrot.slane %v7597_v58, 5  ;;  %v7541_v10 = vld [vmem:[#allocation2 + $0x48] sm:$0xff]   ;;  %v7542_v15 = vld [vmem:[#allocation2 + $0x54] sm:$0xff]   ;;  %v4866_v57 = vrot.slane %v4865_v8, 4  ;;  %v5189_v8 = vld [vmem:[#allocation2 + $0x24] sm:$0xe] }
 0x17d   : > { %7186 = vmatmul.mubr.msk.bf16.gmra.mrb[20].mxu0 %vm1509_vm4, %v6491_v38  ;;  %v9300_v54 = vsel %vm8088_vm14, %v5333_v13, %v5334_v12  ;;  %v4847_v38 = vsel %vm7778_vm8, %v4842_v47, %v9238_v42  ;;  %v6493_v6 = vcombine.low %v4823_v52, %v4833_v60  ;;  %v4880_v39 = vrot.slane %v4878_v16, 5  ;;  %v7598_v12 = vld [vmem:[#allocation2 + $0x20] sm:$0x1]  ;;  %v7599_v16 = vld [vmem:[#allocation2 + $0x28] sm:$0xf]  ;;  %v9756_v60 = vld [vmem:[#allocation7_spill] sm:$0xff] }
 0x17e   : > { %7189 = vmatprep.mubr.msk.bf16.mxu0 %vm1509_vm4, %v6492_v25  ;;  %v4857_v25 = vsel %vm7778_vm8, %v4852_v21, %v4856_v45  ;;  %v6545_v51 = vcombine.low %v9286_v19, %v9300_v54  ;;  %v4876_v28 = vrot.slane %v4875_v62, 4  ;;  %v6526_v36 = vrot.slane %v5200_v50, 9 }
 0x17f   : > { %7026 = vmatmul.mubr.msk.bf16.gmra.mrb[4].mxu1 %vm1509_vm4, %v7539_v63  ;;  %v5188_v63 = vld [vmem:[#allocation2 + $0x18] sm:$0xe]  ;;  %v5338_v42 = vrot.slane %v9060_v1, 5  ;;  %v5256_v9 = vrot.slane %v5254_v61, 4  ;;  %v5257_v47 = vrot.slane %v7598_v12, 5  ;;  %v5341_v13 = vrot.slane %v9085_v22, 5 }
 0x180   : > { %7029 = vmatprep.mubr.msk.bf16.mxu1 %vm1509_vm4, %v7540_v7  ;;  %v6494_v7 = vcombine.low %v4847_v38, %v4857_v25  ;;  %v6514_v43 = vrot.slane %v5188_v63, 9  ;;  %v4871_v1 = vsel %vm7778_vm8, %v4866_v57, %v9273_v55  ;;  %v5261_v52 = vrot.slane %v7599_v16, 5  ;;  %v5190_v22 = vld [vmem:[#allocation2 + $0x30] sm:$0xe]  ;;  %v9757_v12 = vld [vmem:[#allocation9_spill] sm:$0xff] }
 0x181   : > { %v9313_v21 = vsel %vm8088_vm14, %v6526_v36, %v5338_v42  ;;  %v5340_v45 = vrot.slane %v5338_v42, 4  ;;  %v5268_v62 = vrot.slane %v9756_v60, 5  ;;  %v6527_v38 = vrot.slane %v5201_v26, 9  ;;  %v9758_v60 = vld [vmem:[#allocation10_spill] sm:$0xff] }
 0x182   : > { %v4881_v25 = vsel %vm7778_vm8, %v4876_v28, %v4880_v39  ;;  %v5345_v50 = vrot.slane %v9136_v0, 5  ;;  %v5348_v55 = vrot.slane %v9198_v27, 5  ;;  %v5258_v63 = vsel %vm8088_vm14, %v5256_v9, %v5257_v47  ;;  %v7544_v0 = vld [vmem:[#allocation2 + $0x6c] sm:$0xff]  }
 0x183   : > { %v9327_v58 = vsel %vm8088_vm14, %v5340_v45, %v5341_v13  ;;  %v6515_v57 = vrot.slane %v5189_v8, 9  ;;  %v6495_v28 = vcombine.low %v4871_v1, %v4881_v25  ;;  %v5263_v36 = vrot.slane %v5261_v52, 4  ;;  %v7600_v27 = vld [vmem:[#allocation2 + $0x2c] sm:$0x1]  ;;  %v5202_v45 = vld [vmem:[#allocation2 + $0xc0] sm:$0xe] }
 0x184   : > { %v9339_v39 = vsel %vm8088_vm14, %v6527_v38, %v5345_v50  ;;  %v5264_v42 = vrot.slane %v7600_v27, 5  ;;  %v6516_v26 = vrot.slane %v5190_v22, 9  ;;  %v5271_v9 = vrot.slane %v9757_v12, 5  ;;  %v5191_v1 = vld [vmem:[#allocation2 + $0x3c] sm:$0xe]  ;;  %v7546_v27 = vld [vmem:[#allocation2 + $0x84] sm:$0xff]  }
 0x185   : > { %7190 = vmatmul.mubr.msk.bf16.gmra.mrb[24].mxu0 %vm1509_vm4, %v6493_v6  ;;  %v6546_v6 = vcombine.low %v9313_v21, %v9327_v58  ;;  %v5262_v8 = vsel %vm8088_vm14, %v6515_v57, %v5261_v52  ;;  %v5275_v38 = vrot.slane %v9758_v60, 5  ;;  %v6528_v25 = vrot.slane %v5202_v45, 9  ;;  %v5203_v22 = vld [vmem:[#allocation2 + $0xcc] sm:$0xe]  ;;  %v7545_v52 = vld [vmem:[#allocation2 + $0x78] sm:$0xff]  }
 0x186   : > { %7193 = vmatprep.mubr.msk.bf16.mxu0 %vm1509_vm4, %v6494_v7  ;;  %v5347_v7 = vrot.slane %v5345_v50, 4  ;;  %v5265_v16 = vsel %vm8088_vm14, %v5263_v36, %v5264_v42  ;;  %v5269_v50 = vsel %vm8088_vm14, %v6516_v26, %v5268_v62  ;;  %v6529_v36 = vrot.slane %v5203_v22, 9  ;;  %v7601_v45 = vld [vmem:[#allocation2 + $0x70] sm:$0xf] }
 0x187   : > { %7030 = vmatmul.mubr.msk.bf16.gmra.mrb[8].mxu1 %vm1509_vm4, %v7541_v10  ;;  %v5255_v10 = vsel %vm8088_vm14, %v6514_v43, %v5254_v61  ;;  %v5270_v43 = vrot.slane %v5268_v62, 4  ;;  %v6535_v57 = vcombine.low %v5262_v8, %v5265_v16  ;;  %v3113_v8 = vshrl.u32 %v7601_v45, 16 }
 0x188   : > { %7033 = vmatprep.mubr.msk.bf16.mxu1 %vm1509_vm4, %v7542_v15  ;;  %v7543_v15 = vld [vmem:[#allocation2 + $0x60] sm:$0xff]   ;;  %v6534_v61 = vcombine.low %v5255_v10, %v5258_v63  ;;  %v9344_v47 = vsel %vm8088_vm14, %v5347_v7, %v5348_v55  ;;  %v6517_v10 = vrot.slane %v5191_v1, 9  ;;  %v2883_v63 = vld [vmem:[#allocation2 + $0x6c] sm:$0xf]  ;;  %v3109_v1 = vshll.u32 %v7601_v45, 16 }
 0x189   : > { %v6547_v13 = vcombine.low %v9339_v39, %v9344_v47  ;;  %v5272_v55 = vsel %vm8088_vm14, %v5270_v43, %v5271_v9  ;;  %v9759_v7 = vld [vmem:[#allocation13_spill] sm:$0xff]  ;;  %v3100_v43 = vshrl.u32 %v2883_v63, 16  ;;  %v3103_v12 = vshll.u32 %v2883_v63, 16 }
 0x18a   : > { %v6536_v42 = vcombine.low %v5269_v50, %v5272_v55  ;;  %v5359_v9 = vrot.slane %v9240_v14, 5  ;;  %v5276_v14 = vsel %vm8088_vm14, %v6517_v10, %v5275_v38  ;;  %v3111_v63 = vrot.slane %v3109_v1, 5  ;;  %v7549_v1 = vld [vmem:[#allocation2 + $0xa8] sm:$0xff]  }
 0x18b   : > { %v3102_v22 = vrot.slane %v3100_v43, 4  ;;  %v3105_v50 = vrot.slane %v3103_v12, 5  ;;  %v3161_v43 = vshrl.u32 %v7603_v37, 16 }
 0x18c   : > { %v9379_v60 = vsel %vm8088_vm14, %v6529_v36, %v5359_v9 }
 0x18d   : > { %7194 = vmatmul.mubr.msk.bf16.gmra.mrb[28].mxu0 %vm1509_vm4, %v6495_v28  ;;  %v5278_v28 = vrot.slane %v9759_v7, 5  ;;  %v3106_v10 = vor.u32 %v3105_v50, %v3102_v22  ;;  %v3163_v22 = vrot.slane %v3161_v43, 4 }
 0x18e   : > { %7201 = vmatprep.mubr.msk.bf16.mxu0 %vm1509_vm4, %v6534_v61  ;;  %v5277_v61 = vrot.slane %v5275_v38, 4  ;;  %v2889_v38 = vld [vmem:[#allocation2 + $0x84] sm:$0xf] }
 0x18f   : > { %7034 = vmatmul.mubr.msk.bf16.gmra.mrb[12].mxu1 %vm1509_vm4, %v7543_v15  ;;  %v5352_v15 = vrot.slane %v9180_v18, 5  ;;  %v5362_v18 = vrot.slane %v9271_v59, 5  ;;  %v3107_v12 = vrot.slane %v3106_v10, 4 }
 0x190   : > { %7037 = vmatprep.mubr.msk.bf16.mxu1 %vm1509_vm4, %v7544_v0  ;;  %v5355_v0 = vrot.slane %v9245_v49, 5  ;;  %v5279_v59 = vsel %vm8088_vm14, %v5277_v61, %v5278_v28  ;;  %v3148_v28 = vshrl.u32 %v2889_v38, 16  ;;  %v3151_v61 = vshll.u32 %v2889_v38, 16 }
 0x191   : > { %v9366_v62 = vsel %vm8088_vm14, %v6528_v25, %v5352_v15  ;;  %v5354_v26 = vrot.slane %v5352_v15, 4  ;;  %v5361_v25 = vrot.slane %v5359_v9, 4  ;;  %v3115_v15 = vrot.slane %v3113_v8, 4  ;;  %v2892_v9 = vld [vmem:[#allocation2 + $0x90] sm:$0xf]  ;;  %v7550_v8 = vld [vmem:[#allocation2 + $0xb4] sm:$0xff]  }
 0x192   : > { %v6537_v7 = vcombine.low %v5276_v14, %v5279_v59  ;;  %v3153_v14 = vrot.slane %v3151_v61, 5  ;;  %v3172_v50 = vshrl.u32 %v2892_v9, 16 }
 0x193   : > { %v9372_v49 = vsel %vm8088_vm14, %v5354_v26, %v5355_v0  ;;  %v9390_v55 = vsel %vm8088_vm14, %v5361_v25, %v5362_v18  ;;  %v7548_v0 = vld [vmem:[#allocation2 + $0x9c] sm:$0xff]   ;;  %v3116_v36 = vor.u32 %v3115_v15, %v3111_v63  ;;  %v3157_v26 = vshll.u32 %v7603_v37, 16 }
 0x194   : > { %v6548_v16 = vcombine.low %v9366_v62, %v9372_v49  ;;  %v3150_v25 = vrot.slane %v3148_v28, 4  ;;  %v3175_v15 = vshll.u32 %v2892_v9, 16 }
 0x195   : > { %7202 = vmatmul.mubr.msk.bf16.vlgmr.msra.gmra.mrb[0].mxu0 %vm1509_vm4, %v6535_v57  ;;  %v7547_v57 = vld [vmem:[#allocation2 + $0x90] sm:$0xff]   ;;  %v3117_v18 = vrot.slane %v3116_v36, 4  ;;  %v9401_v59 = vrot.slane %v3157_v26, 5  ;;  %v3174_v26 = vrot.slane %v3172_v50, 4 }
 0x196   : > { %7205 = vmatprep.mubr.msk.bf16.mxu0 %vm1509_vm4, %v6536_v42  ;;  %v3177_v43 = vrot.slane %v3175_v15, 5  ;;  %v7607_v15 = vld [vmem:[#allocation2 + $0x98] sm:$0x1] }
 0x197   : > { %7038 = vmatmul.mubr.msk.bf16.gmra.mrb[16].mxu1 %vm1509_vm4, %v7545_v52  ;;  %v6549_v52 = vcombine.low %v9379_v60, %v9390_v55  ;;  %v3164_v37 = vor.u32 %v3163_v22, %v9401_v59 }
 0x198   : > { %7041 = vmatprep.mubr.msk.bf16.mxu1 %vm1509_vm4, %v7546_v27  ;;  %v7602_v27 = vld [vmem:[#allocation2 + $0x74] sm:$0x1]  ;;  %v3178_v50 = vor.u32 %v3177_v43, %v3174_v26 }
 0x199   : > { %v3119_v42 = vshll.u32 %v7602_v27, 16  ;;  %v3165_v22 = vrot.slane %v3164_v37, 4  ;;  %v3257_v37 = vshrl.u32 %v7610_v34, 16 }
 0x19b   : > { %v3121_v45 = vrot.slane %v3119_v42, 5  ;;  %v7606_v42 = vld [vmem:[#allocation2 + $0xa0] sm:$0xf]  ;;  %v3259_v23 = vrot.slane %v3257_v37, 4  ;;  %v7614_v37 = vld [vmem:[#allocation2 + $0xc8] sm:$0x1] }
 0x19c   : > { %v3205_v28 = vshll.u32 %v7606_v42, 16  ;;  %v3209_v61 = vshrl.u32 %v7606_v42, 16 }
 0x19d   : > { %7206 = vmatmul.mubr.msk.bf16.gmra.mrb[4].mxu0 %vm1509_vm4, %v6537_v7  ;;  %v3112_v7 = vsel %vm7778_vm8, %v3107_v12, %v3111_v63  ;;  %v3122_v40 = vsel %vm7778_vm8, %v3117_v18, %v3121_v45  ;;  %v3154_v63 = vor.u32 %v3153_v14, %v3150_v25  ;;  %v7551_v12 = vld [vmem:[#allocation2 + $0xc0] sm:$0xff]   ;;  %v2898_v25 = vld [vmem:[#allocation2 + $0xa8] sm:$0xf] }
 0x19e   : > { %7209 = vmatprep.mubr.msk.bf16.mxu0 %vm1509_vm4, %v6538_v5  ;;  %v3167_v5 = vshll.u32 %v7604_v46, 16  ;;  %v6358_v9 = vcombine.low %v3112_v7, %v3122_v40  ;;  %v3220_v7 = vshrl.u32 %v2898_v25, 16  ;;  %v3223_v40 = vshll.u32 %v2898_v25, 16  ;;  %v2901_v46 = vld [vmem:[#allocation2 + $0xb4] sm:$0xf] }
 0x19f   : > { %7042 = vmatmul.mubr.msk.bf16.gmra.mrb[20].mxu1 %vm1509_vm4, %v7547_v57  ;;  %v2895_v57 = vld [vmem:[#allocation2 + $0x9c] sm:$0xf]  ;;  %v3155_v14 = vrot.slane %v3154_v63, 4  ;;  %v3244_v63 = vshrl.u32 %v2901_v46, 16  ;;  %v3247_v53 = vshll.u32 %v2901_v46, 16 }
 0x1a0   : > { %7045 = vmatprep.mubr.msk.bf16.mxu1 %vm1509_vm4, %v7548_v0  ;;  %v7605_v0 = vld [vmem:[#allocation2 + $0x94] sm:$0xf]  ;;  %v3196_v36 = vshrl.u32 %v2895_v57, 16  ;;  %v3199_v27 = vshll.u32 %v2895_v57, 16  ;;  %v3169_v18 = vrot.slane %v3167_v5, 5  ;;  %v3191_v57 = vshll.u32 %v7607_v15, 16 }
 0x1a1   : > { %v3181_v38 = vshll.u32 %v7605_v0, 16  ;;  %v3185_v10 = vshrl.u32 %v7605_v0, 16  ;;  %v3249_v25 = vrot.slane %v3247_v53, 5 }
 0x1a2   : > { %v3198_v2 = vrot.slane %v3196_v36, 4  ;;  %v3170_v42 = vsel %vm7778_vm8, %v3165_v22, %v3169_v18 }
 0x1a3   : > { %v9418_v45 = vrot.slane %v3181_v38, 5  ;;  %v3187_v30 = vrot.slane %v3185_v10, 4  ;;  %v7609_v38 = vld [vmem:[#allocation2 + $0xac] sm:$0xf] }
 0x1a4   : > { %v3229_v10 = vshll.u32 %v7609_v38, 16  ;;  %v3233_v36 = vshrl.u32 %v7609_v38, 16 }
 0x1a5   : > { %7210 = vmatmul.mubr.msk.bf16.gmra.mrb[8].mxu0 %vm1509_vm4, %v6539_v31  ;;  %v3201_v31 = vrot.slane %v3199_v27, 5  ;;  %v3188_v56 = vor.u32 %v3187_v30, %v9418_v45  ;;  %v3160_v27 = vsel %vm7778_vm8, %v3155_v14, %v9401_v59 }
 0x1a6   : > { %7213 = vmatprep.mubr.msk.bf16.mxu0 %vm1509_vm4, %v6540_v29  ;;  %v3215_v29 = vshll.u32 %v7608_v17, 16  ;;  %v3235_v18 = vrot.slane %v3233_v36, 4 }
 0x1a7   : > { %7046 = vmatmul.mubr.msk.bf16.gmra.mrb[24].mxu1 %vm1509_vm4, %v7549_v1  ;;  %v9420_v1 = vrot.slane %v3205_v28, 5  ;;  %v3202_v5 = vor.u32 %v3201_v31, %v3198_v2  ;;  %v3179_v28 = vrot.slane %v3178_v50, 4  ;;  %v3189_v26 = vrot.slane %v3188_v56, 4  ;;  %v7611_v50 = vld [vmem:[#allocation2 + $0xb0] sm:$0x1] }
 0x1a8   : > { %7049 = vmatprep.mubr.msk.bf16.mxu1 %vm1509_vm4, %v7550_v8  ;;  %v3211_v8 = vrot.slane %v3209_v61, 4  ;;  %v3193_v61 = vrot.slane %v3191_v57, 5  ;;  %v3217_v43 = vrot.slane %v3215_v29, 5  ;;  %v3231_v2 = vrot.slane %v3229_v10, 5 }
 0x1a9   : > { %v3203_v59 = vrot.slane %v3202_v5, 4  ;;  %v6360_v31 = vcombine.low %v3160_v27, %v3170_v42  ;;  %v3239_v15 = vshll.u32 %v7611_v50, 16 }
 0x1aa   : > { %v3212_v0 = vor.u32 %v3211_v8, %v9420_v1  ;;  %v3246_v8 = vrot.slane %v3244_v63, 4  ;;  %v3194_v22 = vsel %vm7778_vm8, %v3189_v26, %v3193_v61  ;;  %v3236_v29 = vor.u32 %v3235_v18, %v3231_v2 }
 0x1ab   : > { %v3208_v57 = vsel %vm7778_vm8, %v3203_v59, %v9420_v1  ;;  %v3241_v36 = vrot.slane %v3239_v15, 5  ;;  %v3287_v26 = vshll.u32 %v7614_v37, 16 }
 0x1ac   : > { %v3213_v30 = vrot.slane %v3212_v0, 4  ;;  %v3250_v1 = vor.u32 %v3249_v25, %v3246_v8  ;;  %v7613_v0 = vld [vmem:[#allocation2 + $0xbc] sm:$0x1] }
 0x1ad   : > { %7214 = vmatmul.mubr.msk.bf16.gmra.mrb[12].mxu0 %vm1509_vm4, %v6541_v11  ;;  %v3253_v11 = vshll.u32 %v7610_v34, 16  ;;  %v3263_v38 = vshll.u32 %v7613_v0, 16  ;;  %v3289_v59 = vrot.slane %v3287_v26, 5 }
 0x1ae   : > { %7217 = vmatprep.mubr.msk.bf16.mxu0 %vm1509_vm4, %v6542_v20  ;;  %v3184_v20 = vsel %vm7778_vm8, %v3179_v28, %v9418_v45  ;;  %v3218_v56 = vsel %vm7778_vm8, %v3213_v30, %v3217_v43  ;;  %v3268_v45 = vshrl.u32 %v2904_v44, 16  ;;  %v3251_v63 = vrot.slane %v3250_v1, 4 }
 0x1af   : > { %7050 = vmatmul.mubr.msk.bf16.gmra.mrb[28].mxu1 %vm1509_vm4, %v7551_v12  ;;  %v3222_v12 = vrot.slane %v3220_v7, 4  ;;  %v3255_v14 = vrot.slane %v3253_v11, 5  ;;  %v3271_v7 = vshll.u32 %v2904_v44, 16  ;;  %v6361_v10 = vcombine.low %v3184_v20, %v3194_v22 }
 0x1b0   : > { %7073 = vmatprep.mubr.msk.bf16.mxu1 %vm1509_vm4, %v6358_v9  ;;  %v3225_v9 = vrot.slane %v3223_v40, 5  ;;  %v7612_v40 = vld [vmem:[#allocation2 + $0xc4] sm:$0xf]  ;;  %v6362_v4 = vcombine.low %v3208_v57, %v3218_v56  ;;  %v3270_v27 = vrot.slane %v3268_v45, 4  ;;  %v3265_v34 = vrot.slane %v3263_v38, 5 }
 0x1b1   : > { %v3281_v46 = vshrl.u32 %v7612_v40, 16  ;;  %v3260_v5 = vor.u32 %v3259_v23, %v3255_v14  ;;  %v3273_v42 = vrot.slane %v3271_v7, 5  ;;  %v3256_v43 = vsel %vm7778_vm8, %v3251_v63, %v3255_v14 }
 0x1b2   : > { %v3226_v17 = vor.u32 %v3225_v9, %v3222_v12 }
 0x1b3   : > { %v3283_v61 = vrot.slane %v3281_v46, 4  ;;  %v3261_v53 = vrot.slane %v3260_v5, 4 }
 0x1b4   : > { %v3227_v35 = vrot.slane %v3226_v17, 4 }
 0x1b5   : > { %7218 = vmatmul.mubr.msk.bf16.gmra.mrb[16].mxu0 %vm1509_vm4, %v6543_v33  ;;  %v3237_v33 = vrot.slane %v3236_v29, 4  ;;  %v3266_v19 = vsel %vm7778_vm8, %v3261_v53, %v3265_v34 }
 0x1b6   : > { %7221 = vmatprep.mubr.msk.bf16.mxu0 %vm1509_vm4, %v6544_v41  ;;  %v3232_v3 = vsel %vm7778_vm8, %v3227_v35, %v3231_v2  ;;  %v3274_v41 = vor.u32 %v3273_v42, %v3270_v27 }
 0x1b7   : > { %7074 = vmatmul.mubr.msk.bf16.vlgmr.msra.gmra.mrb[16].mxu1 %vm1509_vm4, %v9227_v48  ;;  %v3277_v48 = vshll.u32 %v7612_v40, 16  ;;  %v3242_v24 = vsel %vm7778_vm8, %v3237_v33, %v3241_v36 }
 0x1b8   : > { %7077 = vmatprep.mubr.msk.bf16.mxu1 %vm1509_vm4, %v6360_v31  ;;  %v6363_v54 = vcombine.low %v3232_v3, %v3242_v24  ;;  %v3275_v12 = vrot.slane %v3274_v41, 4 }
 0x1b9   : > { %v3279_v28 = vrot.slane %v3277_v48, 5 }
 0x1bb   : > { %v3284_v11 = vor.u32 %v3283_v61, %v3279_v28  ;;  %v3280_v21 = vsel %vm7778_vm8, %v3275_v12, %v3279_v28 }
 0x1bd   : > { %7222 = vmatmul.mubr.msk.bf16.gmra.mrb[20].mxu0 %vm1509_vm4, %v6545_v51  ;;  %v6364_v51 = vcombine.low %v3256_v43, %v3266_v19  ;;  %v3285_v9 = vrot.slane %v3284_v11, 4 }
 0x1be   : > { %7225 = vmatprep.mubr.msk.bf16.mxu0 %vm1509_vm4, %v6546_v6 }
 0x1bf   : > { %7078 = vmatmul.mubr.msk.bf16.gmra.mrb[20].mxu1 %vm1509_vm4, %v6361_v10  ;;  %v3290_v58 = vsel %vm7778_vm8, %v3285_v9, %v3289_v59 }
 0x1c0   : > { %7081 = vmatprep.mubr.msk.bf16.mxu1 %vm1509_vm4, %v6362_v4  ;;  %v6365_v6 = vcombine.low %v3280_v21, %v3290_v58 }
 0x1c5   : > { %7226 = vmatmul.mubr.msk.bf16.gmra.mrb[24].mxu0 %vm1509_vm4, %v6547_v13 }
 0x1c6   : > { %7229 = vmatprep.mubr.msk.bf16.mxu0 %vm1509_vm4, %v6548_v16 }
 0x1c7   : > { %7082 = vmatmul.mubr.msk.bf16.gmra.mrb[24].mxu1 %vm1509_vm4, %v6363_v54 }
 0x1c8   : > { %7085 = vmatprep.mubr.msk.bf16.mxu1 %vm1509_vm4, %v6364_v51 }
 0x1cd   : > { %7230 = vmatmul.mubr.msk.bf16.gmra.mrb[28].mxu0 %vm1509_vm4, %v6549_v52 }
 0x1cf   : > { %7086 = vmatmul.mubr.msk.bf16.gmra.mrb[28].mxu1 %vm1509_vm4, %v6365_v6 }
 0x24a   : > { %v7023_v39 = vpop.f32.mrb[0].mxu1 }
 0x24b   : > { %v2700_v47 = vpop.f32.mrb[1].mxu1 }
 0x24c   : > { %v7024_v13 = vpop.f32.mrb[2].mxu1 }
 0x24d   : > { %v2703_v30 = vpop.f32.mrb[3].mxu1 }
 0x252   : > { %v7027_v2 = vpop.f32.mrb[4].mxu1 }
 0x253   : > { %v2716_v32 = vpop.f32.mrb[5].mxu1 }
 0x254   : > { %v7028_v18 = vpop.f32.mrb[6].mxu1 }
 0x255   : > { %v2719_v31 = vpop.f32.mrb[7].mxu1 }
 0x25a   : > { %v9497_v8 = vpop.f32.mrb[8].mxu1 }
 0x25b   : > { %v9499_v62 = vpop.f32.mrb[9].mxu1 }
 0x25c   : > { %v9501_v49 = vpop.f32.mrb[10].mxu1 }
 0x25d   : > { %v9503_v16 = vpop.f32.mrb[11].mxu1 }
 0x262   : > { %v9505_v60 = vpop.f32.mrb[12].mxu1 }
 0x263   : > { %v9507_v55 = vpop.f32.mrb[13].mxu1 }
 0x264   : > { %v9509_v52 = vpop.f32.mrb[14].mxu1 }
 0x265   : > { %v9511_v25 = vpop.f32.mrb[15].mxu1 }
 0x268   : > { %v7203_v14 = vpop.f32.mrb[0].mxu0 }
 0x269   : > { %v7237_v23 = vadd.f32 %v7203_v14, %v7023_v39  ;;  %v5511_v44 = vpop.f32.mrb[1].mxu0 }
 0x26a   : > { %v7238_v20 = vadd.f32 %v5511_v44, %v2700_v47  ;;  %v7204_v22 = vpop.f32.mrb[2].mxu0 }
 0x26b   : > { %v5672_v50 = vmax.f32 %v7237_v23, 0.0  ;;  %v7239_v15 = vadd.f32 %v7204_v22, %v7024_v13  ;;  %v5514_v57 = vpop.f32.mrb[3].mxu0 }
 0x26c   : > { %v5670_v56 = vmax.f32 %v7238_v20, 0.0  ;;  %v7240_v17 = vadd.f32 %v5514_v57, %v2703_v30 }
 0x26d   : > { %v6638_v29 = vpack.c.bf16 %v5672_v50, %v5672_v50  ;;  %v5673_v45 = vmax.f32 %v7239_v15, 0.0  ;;  %v5774_v46 = vmul.f32 %v5672_v50, %v5672_v50  ;;  %v5705_v42 = vsel %vm1509_vm4, %v5672_v50, 0.0 }
 0x26e   : > { %v5772_v7 = vmul.f32 %v5670_v56, %v5670_v56  ;;  %v6636_v40 = vpack.c.bf16 %v5670_v56, %v5670_v56  ;;  %v5671_v48 = vmax.f32 %v7240_v17, 0.0  ;;  %v5702_v5 = vsel %vm1509_vm4, %v5670_v56, 0.0 }
 0x26f   : > { %6004 = vst.msk [vmem:[%s9518_s19 + $0x8] sm:$0xf] %vm412_vm0, %v6638_v29  ;;  %v6639_v1 = vpack.c.bf16 %v5673_v45, %v5673_v45  ;;  %v5775_v35 = vmul.f32 %v5673_v45, %v5673_v45  ;;  %v5807_v37 = vsel %vm1509_vm4, %v5774_v46, 0.0  ;;  %v5707_v19 = vsel %vm1509_vm4, %v5673_v45, 0.0 }
 0x270   : > { %6002 = vst.msk [vmem:[%s9518_s19] sm:$0xf] %vm412_vm0, %v6636_v40  ;;  %v5703_v0 = vsel %vm1509_vm4, %v5671_v48, 0.0  ;;  %v5773_v38 = vmul.f32 %v5671_v48, %v5671_v48  ;;  %v6637_v10 = vpack.c.bf16 %v5671_v48, %v5671_v48  ;;  %v7207_v4 = vpop.f32.mrb[4].mxu0  ;;  %v5804_v28 = vsel %vm1509_vm4, %v5772_v7, 0.0 }
 0x271   : > { %6005 = vst.msk [vmem:[%s9518_s19 + $0xc] sm:$0xf] %vm412_vm0, %v6639_v1  ;;  %v5704_v33 = vadd.f32 %v5703_v0, %v5702_v5  ;;  %v7241_v36 = vadd.f32 %v7207_v4, %v7027_v2  ;;  %v5527_v27 = vpop.f32.mrb[5].mxu0  ;;  %v5809_v54 = vsel %vm1509_vm4, %v5775_v35, 0.0 }
 0x272   : > { %v5805_v61 = vsel %vm1509_vm4, %v5773_v38, 0.0  ;;  %6003 = vst.msk [vmem:[%s9518_s19 + $0x4] sm:$0xf] %vm412_vm0, %v6637_v10  ;;  %v7242_v63 = vadd.f32 %v5527_v27, %v2716_v32  ;;  %v7208_v53 = vpop.f32.mrb[6].mxu0 }
 0x273   : > { %v5706_v34 = vadd.f32 %v5705_v42, %v5704_v33  ;;  %v5806_v3 = vadd.f32 %v5805_v61, %v5804_v28  ;;  %v5676_v24 = vmax.f32 %v7241_v36, 0.0  ;;  %v7243_v41 = vadd.f32 %v7208_v53, %v7028_v18  ;;  %v5530_v11 = vpop.f32.mrb[7].mxu0 }
 0x274   : > { %v5674_v26 = vmax.f32 %v7242_v63, 0.0  ;;  %v7244_v43 = vadd.f32 %v5530_v11, %v2719_v31 }
 0x275   : > { %v5808_v51 = vadd.f32 %v5807_v37, %v5806_v3  ;;  %v6642_v12 = vpack.c.bf16 %v5676_v24, %v5676_v24  ;;  %v5708_v9 = vadd.f32 %v5707_v19, %v5706_v34  ;;  %v5677_v39 = vmax.f32 %v7243_v41, 0.0 }
 0x276   : > { %v5709_v59 = vsel %vm1509_vm4, %v5674_v26, 0.0  ;;  %v5776_v21 = vmul.f32 %v5674_v26, %v5674_v26  ;;  %v6640_v58 = vpack.c.bf16 %v5674_v26, %v5674_v26  ;;  %v5675_v47 = vmax.f32 %v7244_v43, 0.0 }
 0x277   : > { %6008 = vst.msk [vmem:[%s9518_s19 + $0x18] sm:$0xf] %vm412_vm0, %v6642_v12  ;;  %v5810_v6 = vadd.f32 %v5809_v54, %v5808_v51  ;;  %v5710_v13 = vadd.f32 %v5709_v59, %v5708_v9  ;;  %v5778_v32 = vmul.f32 %v5676_v24, %v5676_v24  ;;  %v6643_v31 = vpack.c.bf16 %v5677_v39, %v5677_v39 }
 0x278   : > { %v5811_v30 = vsel %vm1509_vm4, %v5776_v21, 0.0  ;;  %6006 = vst.msk [vmem:[%s9518_s19 + $0x10] sm:$0xf] %vm412_vm0, %v6640_v58  ;;  %v7211_v2 = vpop.f32.mrb[8].mxu0  ;;  %v5711_v23 = vsel %vm1509_vm4, %v5675_v47, 0.0  ;;  %v5777_v44 = vmul.f32 %v5675_v47, %v5675_v47  ;;  %v6641_v20 = vpack.c.bf16 %v5675_v47, %v5675_v47 }
 0x279   : > { %v5812_v18 = vadd.f32 %v5811_v30, %v5810_v6  ;;  %v5543_v14 = vpop.f32.mrb[9].mxu0  ;;  %v7245_v22 = vadd.f32 %v7211_v2, %v9497_v8  ;;  %v5713_v15 = vsel %vm1509_vm4, %v5676_v24, 0.0  ;;  %6009 = vst.msk [vmem:[%s9518_s19 + $0x1c] sm:$0xf] %vm412_vm0, %v6643_v31  ;;  %v5712_v57 = vadd.f32 %v5711_v23, %v5710_v13 }
 0x27a   : > { %v7212_v50 = vpop.f32.mrb[10].mxu0  ;;  %v7246_v56 = vadd.f32 %v5543_v14, %v9499_v62  ;;  %v5779_v45 = vmul.f32 %v5677_v39, %v5677_v39  ;;  %v5813_v7 = vsel %vm1509_vm4, %v5777_v44, 0.0  ;;  %6007 = vst.msk [vmem:[%s9518_s19 + $0x14] sm:$0xf] %vm412_vm0, %v6641_v20  ;;  %v5815_v0 = vsel %vm1509_vm4, %v5778_v32, 0.0 }
 0x27b   : > { %v7247_v17 = vadd.f32 %v7212_v50, %v9501_v49  ;;  %v5546_v29 = vpop.f32.mrb[11].mxu0  ;;  %v5680_v40 = vmax.f32 %v7245_v22, 0.0  ;;  %v5714_v48 = vadd.f32 %v5713_v15, %v5712_v57  ;;  %v5814_v46 = vadd.f32 %v5813_v7, %v5812_v18 }
 0x27c   : > { %v7248_v8 = vadd.f32 %v5546_v29, %v9503_v16  ;;  %v5678_v1 = vmax.f32 %v7246_v56, 0.0  ;;  %v5715_v62 = vsel %vm1509_vm4, %v5677_v39, 0.0  ;;  %v5817_v36 = vsel %vm1509_vm4, %v5779_v45, 0.0 }
 0x27d   : > { %v5681_v5 = vmax.f32 %v7247_v17, 0.0  ;;  %v6646_v38 = vpack.c.bf16 %v5680_v40, %v5680_v40  ;;  %v5816_v10 = vadd.f32 %v5815_v0, %v5814_v46  ;;  %v5716_v4 = vadd.f32 %v5715_v62, %v5714_v48 }
 0x27e   : > { %v5679_v49 = vmax.f32 %v7248_v8, 0.0  ;;  %v5717_v35 = vsel %vm1509_vm4, %v5678_v1, 0.0  ;;  %v5780_v33 = vmul.f32 %v5678_v1, %v5678_v1  ;;  %v5782_v27 = vmul.f32 %v5680_v40, %v5680_v40 }
 0x27f   : > { %6012 = vst.msk [vmem:[%s9518_s19 + $0x28] sm:$0xf] %vm412_vm0, %v6646_v38  ;;  %v6644_v16 = vpack.c.bf16 %v5678_v1, %v5678_v1  ;;  %v5718_v28 = vadd.f32 %v5717_v35, %v5716_v4  ;;  %v5818_v61 = vadd.f32 %v5817_v36, %v5816_v10  ;;  %v6647_v53 = vpack.c.bf16 %v5681_v5, %v5681_v5 }
 0x280   : > { %v7215_v42 = vpop.f32.mrb[12].mxu0  ;;  %v5819_v63 = vsel %vm1509_vm4, %v5780_v33, 0.0  ;;  %v5783_v3 = vmul.f32 %v5681_v5, %v5681_v5  ;;  %v5719_v24 = vsel %vm1509_vm4, %v5679_v49, 0.0  ;;  %v5781_v41 = vmul.f32 %v5679_v49, %v5679_v49 }
 0x281   : > { %v5559_v34 = vpop.f32.mrb[13].mxu0  ;;  %6010 = vst.msk [vmem:[%s9518_s19 + $0x20] sm:$0xf] %vm412_vm0, %v6644_v16  ;;  %v6645_v11 = vpack.c.bf16 %v5679_v49, %v5679_v49  ;;  %v5820_v26 = vadd.f32 %v5819_v63, %v5818_v61  ;;  %6013 = vst.msk [vmem:[%s9518_s19 + $0x2c] sm:$0xf] %vm412_vm0, %v6647_v53  ;;  %v5720_v43 = vadd.f32 %v5719_v24, %v5718_v28  ;;  %v5721_v12 = vsel %vm1509_vm4, %v5680_v40, 0.0 }
 0x282   : > { %v7216_v37 = vpop.f32.mrb[14].mxu0  ;;  %v7249_v19 = vadd.f32 %v7215_v42, %v9505_v60  ;;  %v7250_v54 = vadd.f32 %v5559_v34, %v9507_v55  ;;  %v5821_v9 = vsel %vm1509_vm4, %v5781_v41, 0.0  ;;  %v5823_v60 = vsel %vm1509_vm4, %v5782_v27, 0.0 }
 0x283   : > { %v5562_v51 = vpop.f32.mrb[15].mxu0  ;;  %6011 = vst.msk [vmem:[%s9518_s19 + $0x24] sm:$0xf] %vm412_vm0, %v6645_v11  ;;  %v7251_v59 = vadd.f32 %v7216_v37, %v9509_v52  ;;  %v5722_v58 = vadd.f32 %v5721_v12, %v5720_v43  ;;  %v5822_v6 = vadd.f32 %v5821_v9, %v5820_v26  ;;  %v5723_v30 = vsel %vm1509_vm4, %v5681_v5, 0.0 }
 0x284   : > { %v7252_v21 = vadd.f32 %v5562_v51, %v9511_v25  ;;  %v5684_v39 = vmax.f32 %v7249_v19, 0.0  ;;  %v5682_v47 = vmax.f32 %v7250_v54, 0.0  ;;  %v5825_v2 = vsel %vm1509_vm4, %v5783_v3, 0.0 }
 0x285   : > { %v5685_v13 = vmax.f32 %v7251_v59, 0.0  ;;  %v5824_v32 = vadd.f32 %v5823_v60, %v5822_v6  ;;  %v5724_v52 = vadd.f32 %v5723_v30, %v5722_v58 }
 0x286   : > { %v5683_v55 = vmax.f32 %v7252_v21, 0.0  ;;  %v6650_v18 = vpack.c.bf16 %v5684_v39, %v5684_v39  ;;  %v5725_v25 = vsel %vm1509_vm4, %v5682_v47, 0.0  ;;  %v5784_v14 = vmul.f32 %v5682_v47, %v5682_v47 }
 0x287   : > { %v6648_v23 = vpack.c.bf16 %v5682_v47, %v5682_v47  ;;  %v5786_v22 = vmul.f32 %v5684_v39, %v5684_v39  ;;  %v5826_v50 = vadd.f32 %v5825_v2, %v5824_v32  ;;  %v5726_v56 = vadd.f32 %v5725_v25, %v5724_v52 }
 0x288   : > { %v7219_v20 = vpop.f32.mrb[16].mxu0  ;;  %6016 = vst.msk [vmem:[%s9518_s19 + $0x38] sm:$0xf] %vm412_vm0, %v6650_v18  ;;  %v5827_v17 = vsel %vm1509_vm4, %v5784_v14, 0.0  ;;  %v6651_v29 = vpack.c.bf16 %v5685_v13, %v5685_v13  ;;  %v5727_v45 = vsel %vm1509_vm4, %v5683_v55, 0.0  ;;  %v5787_v48 = vmul.f32 %v5685_v13, %v5685_v13 }
 0x289   : > { %v5575_v57 = vpop.f32.mrb[17].mxu0  ;;  %6014 = vst.msk [vmem:[%s9518_s19 + $0x30] sm:$0xf] %vm412_vm0, %v6648_v23  ;;  %v5828_v8 = vadd.f32 %v5827_v17, %v5826_v50  ;;  %v5785_v46 = vmul.f32 %v5683_v55, %v5683_v55  ;;  %v6649_v1 = vpack.c.bf16 %v5683_v55, %v5683_v55  ;;  %v5728_v0 = vadd.f32 %v5727_v45, %v5726_v56 }
 0x28a   : > { %v7075_v31 = vpop.f32.mrb[16].mxu1  ;;  %v7220_v40 = vpop.f32.mrb[18].mxu0  ;;  %6017 = vst.msk [vmem:[%s9518_s19 + $0x3c] sm:$0xf] %vm412_vm0, %v6651_v29  ;;  %v5729_v10 = vsel %vm1509_vm4, %v5684_v39, 0.0  ;;  %v5831_v42 = vsel %vm1509_vm4, %v5786_v22, 0.0 }
 0x28b   : > { %v3502_v44 = vpop.f32.mrb[17].mxu1  ;;  %v5578_v5 = vpop.f32.mrb[19].mxu0  ;;  %v7253_v62 = vadd.f32 %v7219_v20, %v7075_v31  ;;  %v5829_v4 = vsel %vm1509_vm4, %v5785_v46, 0.0  ;;  %6015 = vst.msk [vmem:[%s9518_s19 + $0x34] sm:$0xf] %vm412_vm0, %v6649_v1  ;;  %v5730_v33 = vadd.f32 %v5729_v10, %v5728_v0  ;;  %v5731_v53 = vsel %vm1509_vm4, %v5685_v13, 0.0 }
 0x28c   : > { %v7076_v15 = vpop.f32.mrb[18].mxu1  ;;  %v7254_v38 = vadd.f32 %v5575_v57, %v3502_v44  ;;  %v5830_v36 = vadd.f32 %v5829_v4, %v5828_v8  ;;  %v5833_v34 = vsel %vm1509_vm4, %v5787_v48, 0.0 }
 0x28d   : > { %v3505_v7 = vpop.f32.mrb[19].mxu1  ;;  %v7255_v49 = vadd.f32 %v7220_v40, %v7076_v15  ;;  %v5688_v27 = vmax.f32 %v7253_v62, 0.0  ;;  %v5732_v37 = vadd.f32 %v5731_v53, %v5730_v33 }
 0x28e   : > { %v7256_v35 = vadd.f32 %v5578_v5, %v3505_v7  ;;  %v5686_v16 = vmax.f32 %v7254_v38, 0.0  ;;  %v5832_v3 = vadd.f32 %v5831_v42, %v5830_v36 }
 0x28f   : > { %v5689_v28 = vmax.f32 %v7255_v49, 0.0  ;;  %v6654_v24 = vpack.c.bf16 %v5688_v27, %v5688_v27  ;;  %v5790_v12 = vmul.f32 %v5688_v27, %v5688_v27  ;;  %v5737_v25 = vsel %vm1509_vm4, %v5688_v27, 0.0 }
 0x290   : > { %v5687_v61 = vmax.f32 %v7256_v35, 0.0  ;;  %v7223_v11 = vpop.f32.mrb[20].mxu0  ;;  %v5733_v26 = vsel %vm1509_vm4, %v5686_v16, 0.0  ;;  %v5788_v43 = vmul.f32 %v5686_v16, %v5686_v16  ;;  %v6652_v19 = vpack.c.bf16 %v5686_v16, %v5686_v16 }
 0x291   : > { %v5591_v51 = vpop.f32.mrb[21].mxu0  ;;  %6020 = vst.msk [vmem:[%s9518_s19 + $0x48] sm:$0xf] %vm412_vm0, %v6654_v24  ;;  %v5834_v9 = vadd.f32 %v5833_v34, %v5832_v3  ;;  %v5734_v58 = vadd.f32 %v5733_v26, %v5732_v37  ;;  %v6655_v39 = vpack.c.bf16 %v5689_v28, %v5689_v28  ;;  %v5791_v55 = vmul.f32 %v5689_v28, %v5689_v28 }
 0x292   : > { %v7079_v63 = vpop.f32.mrb[20].mxu1  ;;  %v7224_v21 = vpop.f32.mrb[22].mxu0  ;;  %v5835_v6 = vsel %vm1509_vm4, %v5788_v43, 0.0  ;;  %6018 = vst.msk [vmem:[%s9518_s19 + $0x40] sm:$0xf] %vm412_vm0, %v6652_v19  ;;  %v5735_v47 = vsel %vm1509_vm4, %v5687_v61, 0.0  ;;  %v5789_v30 = vmul.f32 %v5687_v61, %v5687_v61  ;;  %v6653_v2 = vpack.c.bf16 %v5687_v61, %v5687_v61 }
 0x293   : > { %v3518_v41 = vpop.f32.mrb[21].mxu1  ;;  %v5594_v60 = vpop.f32.mrb[23].mxu0  ;;  %v5836_v13 = vadd.f32 %v5835_v6, %v5834_v9  ;;  %6021 = vst.msk [vmem:[%s9518_s19 + $0x4c] sm:$0xf] %vm412_vm0, %v6655_v39  ;;  %v5736_v32 = vadd.f32 %v5735_v47, %v5734_v58  ;;  %v7257_v18 = vadd.f32 %v7223_v11, %v7079_v63  ;;  %v5839_v57 = vsel %vm1509_vm4, %v5790_v12, 0.0 }
 0x294   : > { %v7080_v54 = vpop.f32.mrb[22].mxu1  ;;  %v7258_v31 = vadd.f32 %v5591_v51, %v3518_v41  ;;  %v5837_v14 = vsel %vm1509_vm4, %v5789_v30, 0.0  ;;  %6019 = vst.msk [vmem:[%s9518_s19 + $0x44] sm:$0xf] %vm412_vm0, %v6653_v2  ;;  %v5739_v7 = vsel %vm1509_vm4, %v5689_v28, 0.0  ;;  %v5841_v40 = vsel %vm1509_vm4, %v5791_v55, 0.0 }
 0x295   : > { %v3521_v59 = vpop.f32.mrb[23].mxu1  ;;  %v7259_v52 = vadd.f32 %v7224_v21, %v7080_v54  ;;  %v5738_v44 = vadd.f32 %v5737_v25, %v5736_v32  ;;  %v5838_v20 = vadd.f32 %v5837_v14, %v5836_v13  ;;  %v5692_v22 = vmax.f32 %v7257_v18, 0.0 }
 0x296   : > { %v7260_v23 = vadd.f32 %v5594_v60, %v3521_v59  ;;  %v5690_v50 = vmax.f32 %v7258_v31, 0.0 }
 0x297   : > { %v5693_v56 = vmax.f32 %v7259_v52, 0.0  ;;  %v5840_v8 = vadd.f32 %v5839_v57, %v5838_v20  ;;  %v6658_v48 = vpack.c.bf16 %v5692_v22, %v5692_v22  ;;  %v5740_v5 = vadd.f32 %v5739_v7, %v5738_v44 }
 0x298   : > { %v5691_v17 = vmax.f32 %v7260_v23, 0.0  ;;  %v7227_v45 = vpop.f32.mrb[24].mxu0  ;;  %v5741_v0 = vsel %vm1509_vm4, %v5690_v50, 0.0  ;;  %v5792_v62 = vmul.f32 %v5690_v50, %v5690_v50  ;;  %v6656_v38 = vpack.c.bf16 %v5690_v50, %v5690_v50 }
 0x299   : > { %v5607_v1 = vpop.f32.mrb[25].mxu0  ;;  %v5794_v4 = vmul.f32 %v5692_v22, %v5692_v22  ;;  %6024 = vst.msk [vmem:[%s9518_s19 + $0x58] sm:$0xf] %vm412_vm0, %v6658_v48  ;;  %v5842_v35 = vadd.f32 %v5841_v40, %v5840_v8  ;;  %v5742_v36 = vadd.f32 %v5741_v0, %v5740_v5  ;;  %v6659_v16 = vpack.c.bf16 %v5693_v56, %v5693_v56 }
 0x29a   : > { %v7083_v15 = vpop.f32.mrb[24].mxu1  ;;  %v7228_v10 = vpop.f32.mrb[26].mxu0  ;;  %v5843_v27 = vsel %vm1509_vm4, %v5792_v62, 0.0  ;;  %6022 = vst.msk [vmem:[%s9518_s19 + $0x50] sm:$0xf] %vm412_vm0, %v6656_v38  ;;  %v5743_v42 = vsel %vm1509_vm4, %v5691_v17, 0.0  ;;  %v5795_v61 = vmul.f32 %v5693_v56, %v5693_v56  ;;  %v5793_v63 = vmul.f32 %v5691_v17, %v5691_v17 }
 0x29b   : > { %v3534_v29 = vpop.f32.mrb[25].mxu1  ;;  %v5610_v33 = vpop.f32.mrb[27].mxu0  ;;  %v5844_v28 = vadd.f32 %v5843_v27, %v5842_v35  ;;  %v6657_v53 = vpack.c.bf16 %v5691_v17, %v5691_v17  ;;  %6025 = vst.msk [vmem:[%s9518_s19 + $0x5c] sm:$0xf] %vm412_vm0, %v6659_v16  ;;  %v5744_v34 = vadd.f32 %v5743_v42, %v5742_v36  ;;  %v7261_v3 = vadd.f32 %v7227_v45, %v7083_v15 }
 0x29c   : > { %v7084_v46 = vpop.f32.mrb[26].mxu1  ;;  %v7262_v24 = vadd.f32 %v5607_v1, %v3534_v29  ;;  %v5745_v11 = vsel %vm1509_vm4, %v5692_v22, 0.0  ;;  %v5845_v37 = vsel %vm1509_vm4, %v5793_v63, 0.0  ;;  %v5847_v21 = vsel %vm1509_vm4, %v5794_v4, 0.0 }
 0x29d   : > { %v3537_v49 = vpop.f32.mrb[27].mxu1  ;;  %v7263_v41 = vadd.f32 %v7228_v10, %v7084_v46  ;;  %6023 = vst.msk [vmem:[%s9518_s19 + $0x54] sm:$0xf] %vm412_vm0, %v6657_v53  ;;  %v5746_v19 = vadd.f32 %v5745_v11, %v5744_v34  ;;  %v5846_v54 = vadd.f32 %v5845_v37, %v5844_v28  ;;  %v5696_v51 = vmax.f32 %v7261_v3, 0.0 }
 0x29e   : > { %v7264_v26 = vadd.f32 %v5610_v33, %v3537_v49  ;;  %v5694_v12 = vmax.f32 %v7262_v24, 0.0  ;;  %v5747_v13 = vsel %vm1509_vm4, %v5693_v56, 0.0  ;;  %v5849_v55 = vsel %vm1509_vm4, %v5795_v61, 0.0 }
 0x29f   : > { %v5697_v58 = vmax.f32 %v7263_v41, 0.0  ;;  %v5848_v30 = vadd.f32 %v5847_v21, %v5846_v54  ;;  %v6662_v2 = vpack.c.bf16 %v5696_v51, %v5696_v51  ;;  %v5748_v31 = vadd.f32 %v5747_v13, %v5746_v19 }
 0x2a0   : > { %v7231_v59 = vpop.f32.mrb[28].mxu0  ;;  %v5695_v6 = vmax.f32 %v7264_v26, 0.0  ;;  %v5749_v52 = vsel %vm1509_vm4, %v5694_v12, 0.0  ;;  %v5796_v25 = vmul.f32 %v5694_v12, %v5694_v12  ;;  %v6660_v14 = vpack.c.bf16 %v5694_v12, %v5694_v12 }
 0x2a1   : > { %v5623_v60 = vpop.f32.mrb[29].mxu0  ;;  %v5798_v44 = vmul.f32 %v5696_v51, %v5696_v51  ;;  %6028 = vst.msk [vmem:[%s9518_s19 + $0x68] sm:$0xf] %vm412_vm0, %v6662_v2  ;;  %v5850_v20 = vadd.f32 %v5849_v55, %v5848_v30  ;;  %v5750_v22 = vadd.f32 %v5749_v52, %v5748_v31  ;;  %v6663_v15 = vpack.c.bf16 %v5697_v58, %v5697_v58 }
 0x2a2   : > { %v7087_v43 = vpop.f32.mrb[28].mxu1  ;;  %v7232_v18 = vpop.f32.mrb[30].mxu0  ;;  %v5851_v50 = vsel %vm1509_vm4, %v5796_v25, 0.0  ;;  %6026 = vst.msk [vmem:[%s9518_s19 + $0x60] sm:$0xf] %vm412_vm0, %v6660_v14  ;;  %v5751_v57 = vsel %vm1509_vm4, %v5695_v6, 0.0  ;;  %v5797_v17 = vmul.f32 %v5695_v6, %v5695_v6  ;;  %v6661_v29 = vpack.c.bf16 %v5695_v6, %v5695_v6 }
 0x2a3   : > { %v3550_v9 = vpop.f32.mrb[29].mxu1  ;;  %v7265_v39 = vadd.f32 %v7231_v59, %v7087_v43  ;;  %v5626_v23 = vpop.f32.mrb[31].mxu0  ;;  %v5852_v56 = vadd.f32 %v5851_v50, %v5850_v20  ;;  %6029 = vst.msk [vmem:[%s9518_s19 + $0x6c] sm:$0xf] %vm412_vm0, %v6663_v15  ;;  %v5752_v45 = vadd.f32 %v5751_v57, %v5750_v22  ;;  %v5753_v48 = vsel %vm1509_vm4, %v5696_v51, 0.0 }
 0x2a4   : > { %v7088_v47 = vpop.f32.mrb[30].mxu1  ;;  %v7266_v40 = vadd.f32 %v5623_v60, %v3550_v9  ;;  %v5799_v46 = vmul.f32 %v5697_v58, %v5697_v58  ;;  %v5853_v1 = vsel %vm1509_vm4, %v5797_v17, 0.0  ;;  %6027 = vst.msk [vmem:[%s9518_s19 + $0x64] sm:$0xf] %vm412_vm0, %v6661_v29  ;;  %v5855_v0 = vsel %vm1509_vm4, %v5798_v44, 0.0 }
 0x2a5   : > { %v3553_v32 = vpop.f32.mrb[31].mxu1  ;;  %v5700_v7 = vmax.f32 %v7265_v39, 0.0  ;;  %v7267_v8 = vadd.f32 %v7232_v18, %v7088_v47  ;;  %v5755_v62 = vsel %vm1509_vm4, %v5697_v58, 0.0  ;;  %v5754_v38 = vadd.f32 %v5753_v48, %v5752_v45 }
 0x2a6   : > { %v7268_v5 = vadd.f32 %v5626_v23, %v3553_v32  ;;  %v5854_v49 = vadd.f32 %v5853_v1, %v5852_v56  ;;  %v5698_v4 = vmax.f32 %v7266_v40, 0.0  ;;  %v5857_v16 = vsel %vm1509_vm4, %v5799_v46, 0.0 }
 0x2a7   : > { %v6666_v10 = vpack.c.bf16 %v5700_v7, %v5700_v7  ;;  %v5701_v35 = vmax.f32 %v7267_v8, 0.0  ;;  %v5756_v27 = vadd.f32 %v5755_v62, %v5754_v38  ;;  %v5802_v63 = vmul.f32 %v5700_v7, %v5700_v7 }
 0x2a8   : > { %v5699_v33 = vmax.f32 %v7268_v5, 0.0  ;;  %v5856_v36 = vadd.f32 %v5855_v0, %v5854_v49  ;;  %v5757_v42 = vsel %vm1509_vm4, %v5698_v4, 0.0  ;;  %v5800_v28 = vmul.f32 %v5698_v4, %v5698_v4 }
 0x2a9   : > { %6032 = vst.msk [vmem:[%s9518_s19 + $0x78] sm:$0xf] %vm412_vm0, %v6666_v10  ;;  %v6664_v61 = vpack.c.bf16 %v5698_v4, %v5698_v4  ;;  %v5758_v53 = vadd.f32 %v5757_v42, %v5756_v27  ;;  %v6667_v3 = vpack.c.bf16 %v5701_v35, %v5701_v35  ;;  %v5761_v19 = vsel %vm1509_vm4, %v5700_v7, 0.0 }
 0x2aa   : > { %v5858_v34 = vadd.f32 %v5857_v16, %v5856_v36  ;;  %v5859_v24 = vsel %vm1509_vm4, %v5800_v28, 0.0  ;;  %v5759_v41 = vsel %vm1509_vm4, %v5699_v33, 0.0  ;;  %v5801_v11 = vmul.f32 %v5699_v33, %v5699_v33 }
 0x2ab   : > { %6030 = vst.msk [vmem:[%s9518_s19 + $0x70] sm:$0xf] %vm412_vm0, %v6664_v61  ;;  %v6665_v37 = vpack.c.bf16 %v5699_v33, %v5699_v33  ;;  %6033 = vst.msk [vmem:[%s9518_s19 + $0x7c] sm:$0xf] %vm412_vm0, %v6667_v3  ;;  %v5760_v43 = vadd.f32 %v5759_v41, %v5758_v53  ;;  %v5803_v54 = vmul.f32 %v5701_v35, %v5701_v35  ;;  %v5863_v59 = vsel %vm1509_vm4, %v5802_v63, 0.0 }
 0x2ac   : > { %v5860_v26 = vadd.f32 %v5859_v24, %v5858_v34  ;;  %v5861_v51 = vsel %vm1509_vm4, %v5801_v11, 0.0  ;;  %v5763_v21 = vsel %vm1509_vm4, %v5701_v35, 0.0 }
 0x2ad   : > { %6031 = vst.msk [vmem:[%s9518_s19 + $0x74] sm:$0xf] %vm412_vm0, %v6665_v37  ;;  %v5762_v12 = vadd.f32 %v5761_v19, %v5760_v43  ;;  %v5865_v39 = vsel %vm1509_vm4, %v5803_v54, 0.0 }
 0x2ae   : > { %v5862_v9 = vadd.f32 %v5861_v51, %v5860_v26 }
 0x2af   : > { %v5764_v58 = vadd.f32 %v5763_v21, %v5762_v12 }
 0x2b0   : > { %v5864_v6 = vadd.f32 %v5863_v59, %v5862_v9 }
 0x2b1   : > { %v5765_v47 = vrot.slane %v5764_v58, 4 }
 0x2b2   : > { %v5866_v60 = vadd.f32 %v5865_v39, %v5864_v6 }
 0x2b3   : > { %v5766_v13 = vadd.f32 %v5765_v47, %v5764_v58 }
 0x2b4   : > { %v5867_v55 = vrot.slane %v5866_v60, 4 }
 0x2b5   : > { %v5767_v30 = vrot.slane %v5766_v13, 2 }
 0x2b6   : > { %v5868_v2 = vadd.f32 %v5867_v55, %v5866_v60 }
 0x2b7   : > { %v5768_v32 = vadd.f32 %v5767_v30, %v5766_v13 }
 0x2b8   : > { %v5869_v18 = vrot.slane %v5868_v2, 2 }
 0x2b9   : > { %v5769_v31 = vrot.slane %v5768_v32, 1 }
 0x2ba   : > { %v5870_v52 = vadd.f32 %v5869_v18, %v5868_v2 }
 0x2bb   : > { %v5770_v25 = vadd.f32 %v5769_v31, %v5768_v32 }
 0x2bc   : > { %v5871_v14 = vrot.slane %v5870_v52, 1 }
 0x2bd   : > { %5771 = vst.msk [vmem:[%s265_s23] sm:$0x1] %vm415_vm1, %v5770_v25 }
 0x2be   : > { %v5872_v23 = vadd.f32 %v5871_v14, %v5870_v52 }
 0x2c0   : > { %5873 = vst.msk [vmem:[%s268_s26] sm:$0x1] %vm415_vm1, %v5872_v23 }
 0x2c1 PF: > { %s17_s21 = sadd.s32 1, %s7621_s21  }
 0x2c2   : > { %p14_p4 = scmp.ge.s32.totalorder %s17_s21, 4  }
 0x2c4   :  { %16 = sbr.rel (!%p14_p4) target bundleno = 1 (0x1), region = 100 }

// kernel: double_conv_forward.3
= control target key start
LH: loop header
LB: loop body
LE: loop exit
PB: predicated region body
PF: predicated region fallthrough
CT: control target
= control target key end

     0   :  { %s7216_s15 = smov 0   ;;  %s9134_s0 = inlined_call_operand.vmem [shape: f32[2,16,16,4], index: 0, kind: input, shape index: {}]   ;;  %s9135_s1 = inlined_call_operand.vmem [shape: bf16[9,4,32], index: 1, kind: input, shape index: {}]   ;;  %s9136_s2 = inlined_call_operand.vmem [shape: bf16[2,16,16,32], index: 2, kind: output, shape index: {0}]   ;;  %s9137_s3 = inlined_call_operand.vmem [shape: f32[2,1,32], index: 3, kind: output, shape index: {1}]   ;;  %s9138_s4 = inlined_call_operand.vmem [shape: f32[2,1,32], index: 4, kind: output, shape index: {2}]  }
   0x1 LB: > { %s5871_s16 = sadd.s32 4294967295, %s7188_s15   ;;  %p5875_p0 = scmp.ge.s32.totalorder %s7188_s15, 1  ;;  %s7188_s15 = sphi %s7216_s15, %s15_s15  }
   0x2   : > { %p167_p1 = scmp.lt.s32.totalorder %s7188_s15, 3 }
   0x4   : > { %p168_p2 = pnand %p5875_p0, %p167_p1 }
   0x6   : > { %171 = sbr.rel (%p168_p2) target bundleno = 685 (0x2ad), region = 28 }
   0xd   : > { %v5912_v0 = vld [vmem:[%s9135_s1 + $0x2] sm:$0x3]  ;;  %vm1376_vm0 = vcmask 1041408   ;;  %v6059_v1 = vld [vmem:[%s9135_s1 + $0x8] sm:$0x3]  ;;  %vm248_vm1 = vcmask 27648  }
   0xe   : > { %7073 = vmatprep.subr.msk.bf16.mxu1 %vm1376_vm0, %v5912_v0  ;;  %7077 = vmatprep.subr.msk.bf16.mxu0 %vm1376_vm0, %v6059_v1  ;;  %v1378_v2 = vsel %vm1376_vm0, %v5912_v0, 0  ;;  %v7234_v3 = vsel %vm1376_vm0, %v6059_v1, 0  ;;  %vm251_vm2 = vcmask 24576   ;;  %p7238_p3 = scmp.lt.s32.totalorder %s5871_s16, 1  ;;  %v7190_v4 = vmov 0  }
   0xf   : > { %9153 = vst [vmem:[#allocation3_spill] sm:$0xff] %v7234_v3  ;;  %6510 = vmatpush3.bf16.msra.mxu1 %v1378_v2  ;;  %6646 = vmatpush3.bf16.msra.mxu0 %v7234_v3  ;;  %249 = vst.msk [vmem:[#allocation2] sm:$0xf] %vm248_vm1, %v7190_v4  ;;  %v873_v5 = vld [vmem:[%s9135_s1] sm:$0x3]  ;;  %vm1327_vm8 = vcmask 31744  }
  0x10   : > { %250 = vst.msk [vmem:[#allocation2 + $0x4] sm:$0xf] %vm248_vm1, %v7190_v4  ;;  %253 = vst.msk [vmem:[#allocation2 + $0xc] sm:$0xf] %vm248_vm1, %v7190_v4  ;;  %s9218_s16 = smov (!%p7238_p3, %s5871_s16), 1  ;;  %7074 = vmatprep.subr.msk.bf16.mxu1 %vm1376_vm0, %v873_v5  ;;  %v7324_v11 = vsel %vm1376_vm0, %v873_v5, 0 }
  0x11   : > { %252 = vst.msk [vmem:[#allocation2 + $0x8] sm:$0x1] %vm251_vm2, %v7190_v4  ;;  %255 = vst.msk [vmem:[#allocation2 + $0x14] sm:$0x1] %vm251_vm2, %v7190_v4  ;;  %v7309_v6 = vld [vmem:[%s9135_s1 + $0xa] sm:$0x3] }
  0x12   : > { %254 = vst.msk [vmem:[#allocation2 + $0x10] sm:$0xf] %vm248_vm1, %v7190_v4  ;;  %256 = vst.msk [vmem:[#allocation2 + $0x18] sm:$0xf] %vm248_vm1, %v7190_v4  ;;  %s6290_s26 = sshll.u32 %s9218_s16, 8  ;;  %7079 = vmatprep.subr.msk.bf16.mxu0 %vm1376_vm0, %v7309_v6  ;;  %vm1881_vm13 = vcmask 1042432  }
  0x13   : > { %257 = vst.msk [vmem:[#allocation2 + $0x1c] sm:$0xf] %vm248_vm1, %v7190_v4  ;;  %259 = vst.msk [vmem:[#allocation2 + $0x24] sm:$0xf] %vm248_vm1, %v7190_v4  ;;  %vm890_vm3 = vsmask.f32 3328  ;;  %s7318_s29 = scalar_lea.vmem %s9134_s0, %s6290_s26  ;;  %s211_s26 = scalar_lea.vmem %s9137_s3, %s9218_s16 }
  0x14   : > { %258 = vst.msk [vmem:[#allocation2 + $0x20] sm:$0x1] %vm251_vm2, %v7190_v4  ;;  %261 = vst.msk [vmem:[#allocation2 + $0x2c] sm:$0x1] %vm251_vm2, %v7190_v4  ;;  %vm891_vm4 = vsmask.f32 7440 }
  0x15   : > { %260 = vst.msk [vmem:[#allocation2 + $0x28] sm:$0xf] %vm248_vm1, %v7190_v4  ;;  %262 = vst.msk [vmem:[#allocation2 + $0x30] sm:$0xf] %vm248_vm1, %v7190_v4  ;;  %vm400_vm5 = vsmask.f32 256 }
  0x16   : > { %263 = vst.msk [vmem:[#allocation2 + $0x34] sm:$0xf] %vm248_vm1, %v7190_v4  ;;  %265 = vst.msk [vmem:[#allocation2 + $0x3c] sm:$0xf] %vm248_vm1, %v7190_v4  ;;  %v216_v7 = vld [vmem:[%s7318_s29] sm:$0xff]  ;;  %v217_v8 = vld [vmem:[%s7318_s29 + $0x8] sm:$0xff] }
  0x17   : > { %264 = vst.msk [vmem:[#allocation2 + $0x38] sm:$0x1] %vm251_vm2, %v7190_v4  ;;  %267 = vst.msk [vmem:[#allocation2 + $0x44] sm:$0x1] %vm251_vm2, %v7190_v4  ;;  %vm401_vm6 = vsmask.f32 4368  ;;  %v6292_v10 = vpack.c.bf16 %v216_v7, %v216_v7  ;;  %v6293_v18 = vpack.c.bf16 %v217_v8, %v217_v8 }
  0x18   : > { %266 = vst.msk [vmem:[#allocation2 + $0x40] sm:$0xf] %vm248_vm1, %v7190_v4  ;;  %268 = vst.msk [vmem:[#allocation2 + $0x48] sm:$0xf] %vm248_vm1, %v7190_v4  ;;  %v218_v9 = vld [vmem:[%s7318_s29 + $0x10] sm:$0xff]  ;;  %v219_v12 = vld [vmem:[%s7318_s29 + $0x18] sm:$0xff] }
  0x19   : > { %269 = vst.msk [vmem:[#allocation2 + $0x4c] sm:$0xf] %vm248_vm1, %v7190_v4  ;;  %271 = vst.msk [vmem:[#allocation2 + $0x54] sm:$0xf] %vm248_vm1, %v7190_v4  ;;  %vm725_vm7 = vsmask.f32 7938  ;;  %v6294_v19 = vpack.c.bf16 %v218_v9, %v218_v9  ;;  %v6295_v20 = vpack.c.bf16 %v219_v12, %v219_v12 }
  0x1a   : > { %270 = vst.msk [vmem:[#allocation2 + $0x50] sm:$0x1] %vm251_vm2, %v7190_v4  ;;  %273 = vst.msk [vmem:[#allocation2 + $0x5c] sm:$0x1] %vm251_vm2, %v7190_v4  ;;  %v220_v13 = vld [vmem:[%s7318_s29 + $0x20] sm:$0xff]  ;;  %v221_v14 = vld [vmem:[%s7318_s29 + $0x28] sm:$0xff] }
  0x1b   : > { %272 = vst.msk [vmem:[#allocation2 + $0x58] sm:$0xf] %vm248_vm1, %v7190_v4  ;;  %274 = vst.msk [vmem:[#allocation2 + $0x60] sm:$0xf] %vm248_vm1, %v7190_v4  ;;  %v841_v15 = vld [vmem:[#allocation2] sm:$0xf]  ;;  %v7329_v21 = vpack.c.bf16 %v220_v13, %v220_v13  ;;  %v7331_v29 = vpack.c.bf16 %v221_v14, %v221_v14 }
  0x1c   : > { %275 = vst.msk [vmem:[#allocation2 + $0x64] sm:$0xf] %vm248_vm1, %v7190_v4  ;;  %277 = vst.msk [vmem:[#allocation2 + $0x6c] sm:$0xf] %vm248_vm1, %v7190_v4  ;;  %v842_v16 = vld [vmem:[#allocation2 + $0x4] sm:$0xf] }
  0x1d   : > { %276 = vst.msk [vmem:[#allocation2 + $0x68] sm:$0x1] %vm251_vm2, %v7190_v4  ;;  %279 = vst.msk [vmem:[#allocation2 + $0x74] sm:$0x1] %vm251_vm2, %v7190_v4  ;;  %v874_v17 = vld [vmem:[#allocation2 + $0x8] sm:$0x1] }
  0x1e   : > { %278 = vst.msk [vmem:[#allocation2 + $0x70] sm:$0xf] %vm248_vm1, %v7190_v4  ;;  %280 = vst.msk [vmem:[#allocation2 + $0x78] sm:$0xf] %vm248_vm1, %v7190_v4  ;;  %v894_v22 = vshrl.u32 %v841_v15, 16  ;;  %v897_v23 = vshll.u32 %v841_v15, 16 }
  0x1f   : > { %281 = vst.msk [vmem:[#allocation2 + $0x7c] sm:$0xf] %vm248_vm1, %v7190_v4  ;;  %283 = vst.msk [vmem:[#allocation2 + $0x84] sm:$0xf] %vm248_vm1, %v7190_v4  ;;  %v903_v24 = vshll.u32 %v842_v16, 16  ;;  %v907_v25 = vshrl.u32 %v842_v16, 16 }
  0x20   : > { %282 = vst.msk [vmem:[#allocation2 + $0x80] sm:$0x1] %vm251_vm2, %v7190_v4  ;;  %285 = vst.msk [vmem:[#allocation2 + $0x8c] sm:$0x1] %vm251_vm2, %v7190_v4  ;;  %v913_v26 = vshll.u32 %v874_v17, 16  ;;  %v404_v27 = vshrl.u32 %v6292_v10, 16 }
  0x21   : > { %284 = vst.msk [vmem:[#allocation2 + $0x88] sm:$0xf] %vm248_vm1, %v7190_v4  ;;  %286 = vst.msk [vmem:[#allocation2 + $0x90] sm:$0xf] %vm248_vm1, %v7190_v4  ;;  %v407_v28 = vshll.u32 %v6292_v10, 16  ;;  %v896_v30 = vrot.slane %v894_v22, 4 }
  0x22   : > { %287 = vst.msk [vmem:[#allocation2 + $0x94] sm:$0xf] %vm248_vm1, %v7190_v4  ;;  %289 = vst.msk [vmem:[#allocation2 + $0x9c] sm:$0xf] %vm248_vm1, %v7190_v4  ;;  %v899_v31 = vrot.slane %v897_v23, 5  ;;  %v905_v32 = vrot.slane %v903_v24, 5 }
  0x23   : > { %288 = vst.msk [vmem:[#allocation2 + $0x98] sm:$0x1] %vm251_vm2, %v7190_v4  ;;  %291 = vst.msk [vmem:[#allocation2 + $0xa4] sm:$0x1] %vm251_vm2, %v7190_v4  ;;  %v909_v33 = vrot.slane %v907_v25, 4  ;;  %v915_v35 = vrot.slane %v913_v26, 5 }
  0x24   : > { %290 = vst.msk [vmem:[#allocation2 + $0xa0] sm:$0xf] %vm248_vm1, %v7190_v4  ;;  %292 = vst.msk [vmem:[#allocation2 + $0xa8] sm:$0xf] %vm248_vm1, %v7190_v4  ;;  %v406_v36 = vrot.slane %v404_v27, 7  ;;  %v412_v37 = vshrl.u32 %v6293_v18, 16  ;;  %v900_v39 = vor.u32 %v899_v31, %v896_v30 }
  0x25   : > { %293 = vst.msk [vmem:[#allocation2 + $0xac] sm:$0xf] %vm248_vm1, %v7190_v4  ;;  %295 = vst.msk [vmem:[#allocation2 + $0xb4] sm:$0xf] %vm248_vm1, %v7190_v4  ;;  %v415_v38 = vshll.u32 %v6293_v18, 16  ;;  %v910_v40 = vor.u32 %v909_v33, %v905_v32  ;;  %v421_v43 = vshrl.u32 %v6294_v19, 16 }
  0x26   : > { %294 = vst.msk [vmem:[#allocation2 + $0xb0] sm:$0x1] %vm251_vm2, %v7190_v4  ;;  %297 = vst.msk [vmem:[#allocation2 + $0xbc] sm:$0x1] %vm251_vm2, %v7190_v4  ;;  %v727_v42 = vld [vmem:[#allocation2 + $0xc] sm:$0xf]  ;;  %v409_v46 = vor.u32 %v407_v28, %v406_v36 }
  0x27   : > { %296 = vst.msk [vmem:[#allocation2 + $0xb8] sm:$0xf] %vm248_vm1, %v7190_v4  ;;  %298 = vst.msk [vmem:[#allocation2 + $0xc0] sm:$0xf] %vm248_vm1, %v7190_v4  ;;  %v424_v44 = vshll.u32 %v6294_v19, 16  ;;  %v410_v47 = vrot.slane %v406_v36, 4 }
  0x28   : > { %299 = vst.msk [vmem:[#allocation2 + $0xc4] sm:$0xf] %vm248_vm1, %v7190_v4  ;;  %301 = vst.msk [vmem:[#allocation2 + $0xcc] sm:$0xf] %vm248_vm1, %v7190_v4  ;;  %v414_v48 = vrot.slane %v412_v37, 7  ;;  %v429_v49 = vshrl.u32 %v6295_v20, 16 }
  0x29   : > { %300 = vst.msk [vmem:[#allocation2 + $0xc8] sm:$0x1] %vm251_vm2, %v7190_v4  ;;  %303 = vst.msk [vmem:[#allocation2 + $0xd4] sm:$0x1] %vm251_vm2, %v7190_v4  ;;  %v901_v50 = vrot.slane %v900_v39, 4  ;;  %v911_v51 = vrot.slane %v910_v40, 4 }
  0x2a   : > { %302 = vst.msk [vmem:[#allocation2 + $0xd0] sm:$0xf] %vm248_vm1, %v7190_v4  ;;  %vm7335_vm9 = vmor %vm890_vm3, %vm891_vm4  ;;  %v733_v53 = vld [vmem:[#allocation2 + $0x14] sm:$0x1]  ;;  %v423_v54 = vrot.slane %v421_v43, 7  ;;  %v432_v55 = vshll.u32 %v6295_v20, 16  ;;  %v417_v56 = vor.u32 %v415_v38, %v414_v48 }
  0x2b   : > { %vm7341_vm10 = vmand %vm248_vm1, %vm725_vm7  ;;  %v419_v57 = vrot.slane %v414_v48, 4  ;;  %v431_v59 = vrot.slane %v429_v49, 7  ;;  %v736_v60 = vld [vmem:[#allocation2 + $0x18] sm:$0xf]  ;;  %v906_v61 = vsel %vm7335_vm9, %v901_v50, %v905_v32  ;;  %v916_v62 = vsel %vm7335_vm9, %v911_v51, %v915_v35  ;;  %v222_v1 = vld [vmem:[%s7318_s29 + $0x30] sm:$0xff]  ;;  %s6291_s20 = sshll.u32 %s9218_s16, 7 }
  0x2c   : > { %vm7347_vm11 = vmor %vm400_vm5, %vm401_vm6  ;;  %v728_v58 = vsel %vm7341_vm10, %v409_v46, %v727_v42  ;;  %v426_v63 = vor.u32 %v424_v44, %v423_v54  ;;  %v427_v0 = vrot.slane %v423_v54, 4  ;;  %v5913_v2 = vcombine.low %v906_v61, %v916_v62  ;;  %v740_v8 = vld [vmem:[#allocation2 + $0x20] sm:$0x1]  ;;  %v223_v9 = vld [vmem:[%s7318_s29 + $0x38] sm:$0xff]  ;;  %s8985_s23 = scalar_lea.vmem %s9136_s2, %s6291_s20 }
  0x2d   : > { %vm7353_vm12 = vmand %vm251_vm2, %vm400_vm5  ;;  %729 = vst [vmem:[#allocation2 + $0xc] sm:$0xf] %v728_v58  ;;  %v418_v4 = vsel %vm7347_vm11, %v410_v47, %v417_v56  ;;  %v434_v7 = vor.u32 %v432_v55, %v431_v59  ;;  %v436_v10 = vrot.slane %v431_v59, 4  ;;  %v438_v13 = vshrl.u32 %v7329_v21, 16  ;;  %v7377_v15 = vld [vmem:[%s9135_s1 + $0xc] sm:$0x3] }
  0x2e   : > { %v734_v5 = vsel %vm7353_vm12, %v419_v57, %v733_v53  ;;  %730 = vst.msk [vmem:[#allocation2 + $0x10] sm:$0xf] %vm248_vm1, %v418_v4  ;;  %v737_v12 = vsel %vm7341_vm10, %v426_v63, %v736_v60  ;;  %v441_v14 = vshll.u32 %v7329_v21, 16  ;;  %6511 = vmatprep.mubr.msk.bf16.mxu1 %vm1327_vm8, %v5913_v2  ;;  %v446_v17 = vshrl.u32 %v7331_v29, 16  ;;  %v224_v24 = vld [vmem:[%s7318_s29 + $0x40] sm:$0xff]  ;;  %v225_v35 = vld [vmem:[%s7318_s29 + $0x48] sm:$0xff] }
  0x2f   : > { %735 = vst [vmem:[#allocation2 + $0x14] sm:$0x1] %v734_v5  ;;  %v435_v16 = vsel %vm7347_vm11, %v427_v0, %v434_v7  ;;  %738 = vst [vmem:[#allocation2 + $0x18] sm:$0xf] %v737_v12  ;;  %v449_v18 = vshll.u32 %v7331_v29, 16  ;;  %v6298_v19 = vpack.c.bf16 %v222_v1, %v222_v1  ;;  %v741_v20 = vsel %vm7353_vm12, %v436_v10, %v740_v8  ;;  %v226_v48 = vld [vmem:[%s7318_s29 + $0x50] sm:$0xff] }
  0x30   : > { %739 = vst.msk [vmem:[#allocation2 + $0x1c] sm:$0xf] %vm248_vm1, %v435_v16  ;;  %v7389_v21 = vsel %vm1376_vm0, %v7309_v6, 0  ;;  %v440_v22 = vrot.slane %v438_v13, 7  ;;  %v7391_v23 = vpack.c.bf16 %v223_v9, %v223_v9  ;;  %742 = vst [vmem:[#allocation2 + $0x20] sm:$0x1] %v741_v20  ;;  %v7403_v42 = vpack.c.bf16 %v224_v24, %v224_v24 }
  0x31   : > { %v448_v25 = vrot.slane %v446_v17, 7  ;;  %v743_v26 = vld [vmem:[#allocation2 + $0x24] sm:$0xf]  ;;  %v455_v27 = vshrl.u32 %v6298_v19, 16  ;;  %v458_v28 = vshll.u32 %v6298_v19, 16  ;;  %v7396_v29 = vsel %vm1376_vm0, %v7377_v15, 0 }
  0x32   : > { %v443_v30 = vor.u32 %v441_v14, %v440_v22  ;;  %v444_v31 = vrot.slane %v440_v22, 4  ;;  %v747_v32 = vld [vmem:[#allocation2 + $0x2c] sm:$0x1]  ;;  %v463_v6 = vshrl.u32 %v7391_v23, 16  ;;  %v466_v33 = vshll.u32 %v7391_v23, 16 }
  0x33   : > { %v451_v38 = vor.u32 %v449_v18, %v448_v25  ;;  %v453_v39 = vrot.slane %v448_v25, 4  ;;  %v7401_v40 = vrot.slane %v455_v27, 7  ;;  %v7414_v56 = vpack.c.bf16 %v225_v35, %v225_v35 }
  0x34   : > { %v843_v36 = vld [vmem:[#allocation2 + $0xc] sm:$0xf]  ;;  %v744_v54 = vsel %vm7341_vm10, %v443_v30, %v743_v26  ;;  %v7422_v1 = vpack.c.bf16 %v226_v48, %v226_v48  ;;  %vm1882_vm14 = vcmask 1046532   ;;  %vm5501_vm2 = vcmask 253952  }
  0x35   : > { %v2648_v37 = vld [vmem:[#allocation2 + $0xc] sm:$0xf]  ;;  %v918_v43 = vshrl.u32 %v843_v36, 16  ;;  %v921_v44 = vshll.u32 %v843_v36, 16  ;;  %v844_v49 = vld [vmem:[#allocation2 + $0x10] sm:$0xf]  ;;  %v452_v53 = vsel %vm7347_vm11, %v444_v31, %v451_v38  ;;  %v748_v55 = vsel %vm7353_vm12, %v453_v39, %v747_v32  ;;  %vm7616_vm15 = vmor %vm1881_vm13, %vm1882_vm14 }
  0x36   : > { %v2697_v46 = vshrl.u32 %v2648_v37, 16  ;;  %v2700_v47 = vshll.u32 %v2648_v37, 16  ;;  %v875_v50 = vld [vmem:[#allocation2 + $0x14] sm:$0x1]  ;;  %v7406_v51 = vld [vmem:[#allocation2 + $0x10] sm:$0xf]  ;;  %v7420_v0 = vor.u32 %v458_v28, %v7401_v40 }
  0x37   : > { %v920_v57 = vrot.slane %v918_v43, 4  ;;  %v923_v58 = vrot.slane %v921_v44, 5  ;;  %v927_v59 = vshll.u32 %v844_v49, 16  ;;  %v931_v60 = vshrl.u32 %v844_v49, 16  ;;  %v7416_v61 = vld [vmem:[#allocation2 + $0x14] sm:$0x1] }
  0x38   : > { %745 = vst [vmem:[#allocation2 + $0x24] sm:$0xf] %v744_v54  ;;  %746 = vst.msk [vmem:[#allocation2 + $0x28] sm:$0xf] %vm248_vm1, %v452_v53  ;;  %v937_v62 = vshll.u32 %v875_v50, 16  ;;  %v2699_v63 = vrot.slane %v2697_v46, 4 }
  0x39   : > { %749 = vst [vmem:[#allocation2 + $0x2c] sm:$0x1] %v748_v55  ;;  %v924_v2 = vor.u32 %v923_v58, %v920_v57  ;;  %v929_v4 = vrot.slane %v927_v59, 5  ;;  %v933_v5 = vrot.slane %v931_v60, 4  ;;  %v2702_v7 = vrot.slane %v2700_v47, 5 }
  0x3a   : > { %v939_v8 = vrot.slane %v937_v62, 5  ;;  %v2706_v9 = vshll.u32 %v7406_v51, 16  ;;  %v2710_v10 = vshrl.u32 %v7406_v51, 16  ;;  %v2716_v12 = vshll.u32 %v7416_v61, 16  ;;  %v2651_v13 = vld [vmem:[#allocation2 + $0x18] sm:$0xf] }
  0x3b   : > { %v925_v14 = vrot.slane %v924_v2, 4  ;;  %v934_v16 = vor.u32 %v933_v5, %v929_v4  ;;  %v2703_v17 = vor.u32 %v2702_v7, %v2699_v63  ;;  %v3440_v18 = vrot.slane %v7406_v51, 5  ;;  %v7428_v19 = vld [vmem:[#allocation2 + $0x1c] sm:$0xf]  ;;  %v7431_v26 = vld [vmem:[#allocation2 + $0x20] sm:$0x1] }
  0x3c   : > { %v2708_v20 = vrot.slane %v2706_v9, 5  ;;  %v2712_v22 = vrot.slane %v2710_v10, 4  ;;  %v2718_v24 = vrot.slane %v2716_v12, 5  ;;  %v3443_v25 = vrot.slane %v7416_v61, 5  ;;  %v845_v46 = vld [vmem:[#allocation2 + $0x18] sm:$0xf] }
  0x3d   : > { %v930_v27 = vsel %vm7335_vm9, %v925_v14, %v929_v4  ;;  %v935_v28 = vrot.slane %v934_v16, 4  ;;  %v2704_v30 = vrot.slane %v2703_v17, 4  ;;  %v2721_v31 = vshrl.u32 %v2651_v13, 16  ;;  %v846_v53 = vld [vmem:[#allocation2 + $0x1c] sm:$0xf] }
  0x3e   : > { %v2713_v32 = vor.u32 %v2712_v22, %v2708_v20  ;;  %v2724_v35 = vshll.u32 %v2651_v13, 16  ;;  %v2730_v36 = vshll.u32 %v7428_v19, 16  ;;  %v2734_v37 = vshrl.u32 %v7428_v19, 16  ;;  %v876_v62 = vld [vmem:[#allocation2 + $0x20] sm:$0x1] }
  0x3f   : > { %v940_v38 = vsel %vm7335_vm9, %v935_v28, %v939_v8  ;;  %v2709_v39 = vsel %vm7335_vm9, %v2704_v30, %v2708_v20  ;;  %v2723_v43 = vrot.slane %v2721_v31, 4  ;;  %v2740_v44 = vshll.u32 %v7431_v26, 16  ;;  %v847_v4 = vld [vmem:[#allocation2 + $0x24] sm:$0xf]  ;;  %v848_v16 = vld [vmem:[#allocation2 + $0x28] sm:$0xf] }
  0x40   : > { %v5914_v47 = vcombine.low %v930_v27, %v940_v38  ;;  %v2714_v48 = vrot.slane %v2713_v32, 4  ;;  %v2726_v49 = vrot.slane %v2724_v35, 5  ;;  %v2732_v50 = vrot.slane %v2730_v36, 5  ;;  %v877_v30 = vld [vmem:[#allocation2 + $0x2c] sm:$0x1] }
  0x41   : > { %v2736_v54 = vrot.slane %v2734_v37, 4  ;;  %v2742_v55 = vrot.slane %v2740_v44, 5  ;;  %v3447_v57 = vrot.slane %v7428_v19, 5  ;;  %v3450_v58 = vrot.slane %v7431_v26, 5  ;;  %v2654_v32 = vld [vmem:[#allocation2 + $0x24] sm:$0xf] }
  0x42   : > { %6512 = vmatmul.mubr.msk.bf16.vlgmr.msra.gmra.mrb[0].mxu1 %vm1327_vm8, %v5914_v47  ;;  %v2719_v59 = vsel %vm7335_vm9, %v2714_v48, %v2718_v24  ;;  %v2727_v60 = vor.u32 %v2726_v49, %v2723_v43  ;;  %v942_v63 = vshrl.u32 %v845_v46, 16  ;;  %v945_v2 = vshll.u32 %v845_v46, 16  ;;  %v7457_v47 = vld [vmem:[#allocation2 + $0x28] sm:$0xf] }
  0x43   : > { %v6060_v5 = vcombine.low %v2709_v39, %v2719_v59  ;;  %6544 = vmatpush3.bf16.msra.mxu1 %v7324_v11  ;;  %v2737_v7 = vor.u32 %v2736_v54, %v2732_v50  ;;  %v7450_v8 = vrot.slane %v3447_v57, 4  ;;  %v951_v9 = vshll.u32 %v846_v53, 16 }
  0x44   : > { %v2728_v10 = vrot.slane %v2727_v60, 4  ;;  %v944_v12 = vrot.slane %v942_v63, 4  ;;  %v947_v13 = vrot.slane %v945_v2, 5  ;;  %v955_v14 = vshrl.u32 %v846_v53, 16  ;;  %v7462_v60 = vld [vmem:[#allocation2 + $0x2c] sm:$0x1] }
  0x45   : > { %6647 = vmatprep.mubr.msk.bf16.mxu0 %vm1327_vm8, %v6060_v5  ;;  %v2738_v17 = vrot.slane %v2737_v7, 4  ;;  %v953_v20 = vrot.slane %v951_v9, 5  ;;  %v961_v22 = vshll.u32 %v876_v62, 16  ;;  %v966_v24 = vshrl.u32 %v847_v4, 16 }
  0x46   : > { %v2733_v11 = vsel %vm7335_vm9, %v2728_v10, %v2732_v50  ;;  %v948_v27 = vor.u32 %v947_v13, %v944_v12  ;;  %v957_v28 = vrot.slane %v955_v14, 4  ;;  %v969_v31 = vshll.u32 %v847_v4, 16  ;;  %v750_v13 = vld [vmem:[#allocation2 + $0x30] sm:$0xf] }
  0x47   : > { %v2743_v35 = vsel %vm7335_vm9, %v2738_v17, %v2742_v55  ;;  %v963_v36 = vrot.slane %v961_v22, 5  ;;  %v968_v37 = vrot.slane %v966_v24, 4  ;;  %v975_v38 = vshll.u32 %v848_v16, 16 }
  0x48   : > { %v6061_v39 = vcombine.low %v2733_v11, %v2743_v35  ;;  %v949_v43 = vrot.slane %v948_v27, 4  ;;  %v958_v44 = vor.u32 %v957_v28, %v953_v20  ;;  %v971_v46 = vrot.slane %v969_v31, 5  ;;  %v754_v27 = vld [vmem:[#allocation2 + $0x38] sm:$0x1] }
  0x49   : > { %v977_v48 = vrot.slane %v975_v38, 5  ;;  %v979_v49 = vshrl.u32 %v848_v16, 16  ;;  %v985_v50 = vshll.u32 %v877_v30, 16  ;;  %v2745_v53 = vshrl.u32 %v2654_v32, 16 }
  0x4a   : > { %6648 = vmatmul.mubr.msk.bf16.vlgmr.msra.gmra.mrb[0].mxu0 %vm1327_vm8, %v6061_v39  ;;  %v954_v54 = vsel %vm7335_vm9, %v949_v43, %v953_v20  ;;  %v959_v59 = vrot.slane %v958_v44, 4  ;;  %v972_v55 = vor.u32 %v971_v46, %v968_v37  ;;  %v2748_v62 = vshll.u32 %v2654_v32, 16  ;;  %v757_v44 = vld [vmem:[#allocation2 + $0x3c] sm:$0xf] }
  0x4b   : > { %6680 = vmatpush3.bf16.msra.mxu0 %v7389_v21  ;;  %v981_v63 = vrot.slane %v979_v49, 4  ;;  %v987_v2 = vrot.slane %v985_v50, 5  ;;  %v2747_v4 = vrot.slane %v2745_v53, 4  ;;  %v2754_v5 = vshll.u32 %v7457_v47, 16 }
  0x4c   : > { %v964_v7 = vsel %vm7335_vm9, %v959_v59, %v963_v36  ;;  %v973_v9 = vrot.slane %v972_v55, 4  ;;  %v2750_v10 = vrot.slane %v2748_v62, 5  ;;  %v2758_v12 = vshrl.u32 %v7457_v47, 16  ;;  %7080 = vmatprep.subr.msk.bf16.mxu0 %vm1376_vm0, %v7377_v15  ;;  %v761_v55 = vld [vmem:[#allocation2 + $0x44] sm:$0x1] }
  0x4d   : > { %v5915_v14 = vcombine.low %v954_v54, %v964_v7  ;;  %v982_v16 = vor.u32 %v981_v63, %v977_v48  ;;  %v2756_v17 = vrot.slane %v2754_v5, 5  ;;  %v2764_v21 = vshll.u32 %v7462_v60, 16  ;;  %v228_v63 = vld [vmem:[%s7318_s29 + $0x60] sm:$0xff] }
  0x4e   : > { %v978_v20 = vsel %vm7335_vm9, %v973_v9, %v977_v48  ;;  %v2751_v22 = vor.u32 %v2750_v10, %v2747_v4  ;;  %v2760_v24 = vrot.slane %v2758_v12, 4  ;;  %v461_v11 = vrot.slane %v7401_v40, 4  ;;  %v227_v40 = vld [vmem:[%s7318_s29 + $0x58] sm:$0xff] }
  0x4f   : > { %6515 = vmatprep.mubr.msk.bf16.mxu1 %vm1327_vm8, %v5915_v14  ;;  %v983_v28 = vrot.slane %v982_v16, 4  ;;  %v2766_v30 = vrot.slane %v2764_v21, 5  ;;  %v465_v15 = vrot.slane %v463_v6, 7  ;;  %v751_v31 = vsel %vm7341_vm10, %v7420_v0, %v750_v13  ;;  %v764_v13 = vld [vmem:[#allocation2 + $0x48] sm:$0xf] }
  0x50   : > { %v2752_v32 = vrot.slane %v2751_v22, 4  ;;  %v2761_v35 = vor.u32 %v2760_v24, %v2756_v17  ;;  %752 = vst [vmem:[#allocation2 + $0x30] sm:$0xf] %v751_v31  ;;  %v472_v36 = vshrl.u32 %v7403_v42, 16  ;;  %v475_v37 = vshll.u32 %v7403_v42, 16  ;;  %v229_v14 = vld [vmem:[%s7318_s29 + $0x68] sm:$0xff] }
  0x51   : > { %v988_v38 = vsel %vm7335_vm9, %v983_v28, %v987_v2  ;;  %v468_v39 = vor.u32 %v466_v33, %v465_v15  ;;  %v470_v43 = vrot.slane %v465_v15, 4  ;;  %v480_v6 = vshrl.u32 %v7414_v56, 16  ;;  %v231_v15 = vld [vmem:[%s7318_s29 + $0x78] sm:$0xff] }
  0x52   : > { %v5916_v46 = vcombine.low %v978_v20, %v988_v38  ;;  %v2757_v0 = vsel %vm7335_vm9, %v2752_v32, %v2756_v17  ;;  %v2762_v48 = vrot.slane %v2761_v35, 4  ;;  %v474_v49 = vrot.slane %v472_v36, 7 }
  0x53   : > { %v469_v42 = vsel %vm7347_vm11, %v461_v11, %v468_v39  ;;  %v755_v50 = vsel %vm7353_vm12, %v470_v43, %v754_v27  ;;  %v482_v53 = vrot.slane %v480_v6, 7  ;;  %v483_v23 = vshll.u32 %v7414_v56, 16 }
  0x54   : > { %6516 = vmatmul.mubr.msk.bf16.gmra.mrb[4].mxu1 %vm1327_vm8, %v5916_v46  ;;  %v2767_v33 = vsel %vm7335_vm9, %v2762_v48, %v2766_v30  ;;  %753 = vst.msk [vmem:[#allocation2 + $0x34] sm:$0xf] %vm248_vm1, %v469_v42  ;;  %756 = vst [vmem:[#allocation2 + $0x38] sm:$0x1] %v755_v50  ;;  %v477_v54 = vor.u32 %v475_v37, %v474_v49  ;;  %v478_v59 = vrot.slane %v474_v49, 4  ;;  %v489_v7 = vshrl.u32 %v7422_v1, 16 }
  0x55   : > { %v6303_v62 = vpack.c.bf16 %v227_v40, %v227_v40  ;;  %v6062_v2 = vcombine.low %v2757_v0, %v2767_v33  ;;  %v485_v4 = vor.u32 %v483_v23, %v482_v53  ;;  %v487_v5 = vrot.slane %v482_v53, 4  ;;  %v230_v30 = vld [vmem:[%s7318_s29 + $0x70] sm:$0xff] }
  0x56   : > { %v758_v56 = vsel %vm7341_vm10, %v477_v54, %v757_v44  ;;  %v492_v9 = vshll.u32 %v7422_v1, 16  ;;  %v7511_v22 = vrot.slane %v489_v7, 7  ;;  %v7513_v1 = vpack.c.bf16 %v228_v63, %v228_v63 }
  0x57   : > { %v497_v10 = vshrl.u32 %v6303_v62, 16  ;;  %v500_v12 = vshll.u32 %v6303_v62, 16  ;;  %6651 = vmatprep.mubr.msk.bf16.mxu0 %vm1327_vm8, %v6062_v2  ;;  %v2657_v16 = vld [vmem:[#allocation2 + $0x30] sm:$0xf]  ;;  %v486_v21 = vsel %vm7347_vm11, %v478_v59, %v485_v4  ;;  %759 = vst [vmem:[#allocation2 + $0x3c] sm:$0xf] %v758_v56  ;;  %v762_v20 = vsel %vm7353_vm12, %v487_v5, %v761_v55 }
  0x58   : > { %v849_v17 = vld [vmem:[#allocation2 + $0x30] sm:$0xf]  ;;  %v2769_v24 = vshrl.u32 %v2657_v16, 16  ;;  %v2772_v11 = vshll.u32 %v2657_v16, 16  ;;  %760 = vst.msk [vmem:[#allocation2 + $0x40] sm:$0xf] %vm248_vm1, %v486_v21  ;;  %v494_v31 = vor.u32 %v492_v9, %v7511_v22  ;;  %v7522_v36 = vpack.c.bf16 %v229_v14, %v229_v14 }
  0x59   : > { %v990_v27 = vshrl.u32 %v849_v17, 16  ;;  %v993_v28 = vshll.u32 %v849_v17, 16  ;;  %763 = vst [vmem:[#allocation2 + $0x44] sm:$0x1] %v762_v20  ;;  %v495_v32 = vrot.slane %v7511_v22, 4  ;;  %v7520_v35 = vrot.slane %v497_v10, 7 }
  0x5a   : > { %v2771_v37 = vrot.slane %v2769_v24, 4  ;;  %v2774_v40 = vrot.slane %v2772_v11, 5  ;;  %v765_v0 = vsel %vm7341_vm10, %v494_v31, %v764_v13  ;;  %v7533_v48 = vpack.c.bf16 %v230_v30, %v230_v30 }
  0x5b   : > { %v992_v38 = vrot.slane %v990_v27, 4  ;;  %v995_v39 = vrot.slane %v993_v28, 5  ;;  %v7524_v43 = vld [vmem:[#allocation2 + $0x34] sm:$0xf]  ;;  %v7526_v6 = vld [vmem:[#allocation2 + $0x38] sm:$0x1]  ;;  %v7529_v46 = vor.u32 %v500_v12, %v7520_v35  ;;  %v7535_v49 = vpack.c.bf16 %v231_v15, %v231_v15 }
  0x5c   : > { %v850_v44 = vld [vmem:[#allocation2 + $0x34] sm:$0xf]  ;;  %v2775_v42 = vor.u32 %v2774_v40, %v2771_v37  ;;  %v2778_v50 = vshll.u32 %v7524_v43, 16  ;;  %v2782_v53 = vshrl.u32 %v7524_v43, 16  ;;  %v2788_v23 = vshll.u32 %v7526_v6, 16 }
  0x5d   : > { %v878_v33 = vld [vmem:[#allocation2 + $0x38] sm:$0x1]  ;;  %766 = vst [vmem:[#allocation2 + $0x48] sm:$0xf] %v765_v0  ;;  %v996_v54 = vor.u32 %v995_v39, %v992_v38  ;;  %v999_v59 = vshll.u32 %v850_v44, 16  ;;  %v1003_v55 = vshrl.u32 %v850_v44, 16 }
  0x5e   : > { %v1009_v62 = vshll.u32 %v878_v33, 16  ;;  %v2776_v63 = vrot.slane %v2775_v42, 4  ;;  %v2780_v2 = vrot.slane %v2778_v50, 5  ;;  %v2784_v4 = vrot.slane %v2782_v53, 4  ;;  %v851_v7 = vld [vmem:[#allocation2 + $0x3c] sm:$0xf] }
  0x5f   : > { %v2790_v5 = vrot.slane %v2788_v23, 5  ;;  %v997_v56 = vrot.slane %v996_v54, 4  ;;  %v1001_v9 = vrot.slane %v999_v59, 5  ;;  %v1005_v10 = vrot.slane %v1003_v55, 4  ;;  %v852_v13 = vld [vmem:[#allocation2 + $0x40] sm:$0xf] }
  0x60   : > { %v1011_v12 = vrot.slane %v1009_v62, 5  ;;  %v2781_v14 = vsel %vm7335_vm9, %v2776_v63, %v2780_v2  ;;  %v2785_v16 = vor.u32 %v2784_v4, %v2780_v2  ;;  %v879_v17 = vld [vmem:[#allocation2 + $0x44] sm:$0x1]  ;;  %v1014_v21 = vshrl.u32 %v851_v7, 16  ;;  %v2660_v24 = vld [vmem:[#allocation2 + $0x3c] sm:$0xf] }
  0x61   : > { %v1017_v20 = vshll.u32 %v851_v7, 16  ;;  %v1002_v11 = vsel %vm7335_vm9, %v997_v56, %v1001_v9  ;;  %v1006_v27 = vor.u32 %v1005_v10, %v1001_v9  ;;  %v1023_v28 = vshll.u32 %v852_v13, 16  ;;  %v7544_v0 = vld [vmem:[#allocation2 + $0x40] sm:$0xf]  ;;  %v7548_v33 = vld [vmem:[#allocation2 + $0x44] sm:$0x1] }
  0x62   : > { %v1027_v30 = vshrl.u32 %v852_v13, 16  ;;  %v2786_v15 = vrot.slane %v2785_v16, 4  ;;  %v1016_v31 = vrot.slane %v1014_v21, 4  ;;  %v1033_v40 = vshll.u32 %v879_v17, 16  ;;  %v768_v2 = vld [vmem:[#allocation2 + $0x50] sm:$0x1] }
  0x63   : > { %v1019_v37 = vrot.slane %v1017_v20, 5  ;;  %v1007_v38 = vrot.slane %v1006_v27, 4  ;;  %v1025_v39 = vrot.slane %v1023_v28, 5  ;;  %v2793_v42 = vshrl.u32 %v2660_v24, 16  ;;  %v5993_v7 = vld [vmem:[%s9135_s1 + $0x4] sm:$0x3] }
  0x64   : > { %v1029_v44 = vrot.slane %v1027_v30, 4  ;;  %v2791_v50 = vsel %vm7335_vm9, %v2786_v15, %v2790_v5  ;;  %v1035_v23 = vrot.slane %v1033_v40, 5  ;;  %v2796_v54 = vshll.u32 %v2660_v24, 16  ;;  %v2663_v4 = vld [vmem:[#allocation2 + $0x48] sm:$0xf]  ;;  %7075 = vmatprep.subr.msk.bf16.mxu1 %vm1376_vm0, %v5993_v7 }
  0x65   : > { %v1020_v53 = vor.u32 %v1019_v37, %v1016_v31  ;;  %v6063_v59 = vcombine.low %v2781_v14, %v2791_v50  ;;  %v1012_v55 = vsel %vm7335_vm9, %v1007_v38, %v1011_v12  ;;  %v2795_v63 = vrot.slane %v2793_v42, 4  ;;  %v853_v13 = vld [vmem:[#allocation2 + $0x48] sm:$0xf]  ;;  %v7135_v52 = vld [vmem:[#allocation2 + $0x3c] sm:$0xf] }
  0x66   : > { %v1030_v62 = vor.u32 %v1029_v44, %v1025_v39  ;;  %v5917_v56 = vcombine.low %v1002_v11, %v1012_v55  ;;  %v2798_v5 = vrot.slane %v2796_v54, 5  ;;  %v2802_v10 = vshll.u32 %v7544_v0, 16 }
  0x67   : > { %v1021_v9 = vrot.slane %v1020_v53, 4  ;;  %6652 = vmatmul.mubr.msk.bf16.gmra.mrb[4].mxu0 %vm1327_vm8, %v6063_v59  ;;  %v2806_v12 = vshrl.u32 %v7544_v0, 16  ;;  %v2812_v16 = vshll.u32 %v7548_v33, 16  ;;  %v503_v17 = vsel %vm7347_vm11, %v495_v32, %v7529_v46 }
  0x68   : > { %v1031_v14 = vrot.slane %v1030_v62, 4  ;;  %6519 = vmatprep.mubr.msk.bf16.mxu1 %vm1327_vm8, %v5917_v56  ;;  %v2799_v20 = vor.u32 %v2798_v5, %v2795_v63  ;;  %v2804_v24 = vrot.slane %v2802_v10, 5  ;;  %v504_v11 = vrot.slane %v7520_v35, 4  ;;  %767 = vst.msk [vmem:[#allocation2 + $0x4c] sm:$0xf] %vm248_vm1, %v503_v17 }
  0x69   : > { %v1026_v21 = vsel %vm7335_vm9, %v1021_v9, %v1025_v39  ;;  %v2808_v28 = vrot.slane %v2806_v12, 4  ;;  %v2814_v30 = vrot.slane %v2812_v16, 5  ;;  %v2817_v22 = vshrl.u32 %v2663_v4, 16 }
  0x6a   : > { %v1036_v27 = vsel %vm7335_vm9, %v1031_v14, %v1035_v23  ;;  %v2800_v31 = vrot.slane %v2799_v20, 4  ;;  %v769_v32 = vsel %vm7353_vm12, %v504_v11, %v768_v2  ;;  %v2820_v46 = vshll.u32 %v2663_v4, 16  ;;  %v232_v4 = vld [vmem:[%s7318_s29 + $0x80] sm:$0xff] }
  0x6b   : > { %v5918_v15 = vcombine.low %v1026_v21, %v1036_v27  ;;  %v2809_v37 = vor.u32 %v2808_v28, %v2804_v24  ;;  %770 = vst [vmem:[#allocation2 + $0x50] sm:$0x1] %v769_v32  ;;  %v2819_v40 = vrot.slane %v2817_v22, 4  ;;  %v1038_v38 = vshrl.u32 %v853_v13, 16 }
  0x6c   : > { %v1041_v35 = vshll.u32 %v853_v13, 16  ;;  %v2805_v39 = vsel %vm7335_vm9, %v2800_v31, %v2804_v24  ;;  %v2822_v44 = vrot.slane %v2820_v46, 5  ;;  %v506_v42 = vshrl.u32 %v7513_v1, 16  ;;  %v771_v24 = vld [vmem:[#allocation2 + $0x54] sm:$0xf] }
  0x6d   : > { %6520 = vmatmul.mubr.msk.bf16.gmra.mrb[8].mxu1 %vm1327_vm8, %v5918_v15  ;;  %v509_v50 = vshll.u32 %v7513_v1, 16  ;;  %v2810_v53 = vrot.slane %v2809_v37, 4  ;;  %v1040_v23 = vrot.slane %v1038_v38, 4  ;;  %v514_v59 = vshrl.u32 %v7522_v36, 16  ;;  %v775_v37 = vld [vmem:[#allocation2 + $0x5c] sm:$0x1] }
  0x6e   : > { %v1043_v54 = vrot.slane %v1041_v35, 5  ;;  %v2823_v55 = vor.u32 %v2822_v44, %v2819_v40  ;;  %v508_v62 = vrot.slane %v506_v42, 7  ;;  %v517_v63 = vshll.u32 %v7522_v36, 16 }
  0x6f   : > { %v523_v2 = vshrl.u32 %v7533_v48, 16  ;;  %v2815_v7 = vsel %vm7335_vm9, %v2810_v53, %v2814_v30  ;;  %v7585_v56 = vld [vmem:[#allocation2 + $0x4c] sm:$0xf]  ;;  %v516_v1 = vrot.slane %v514_v59, 7  ;;  %v526_v10 = vshll.u32 %v7533_v48, 16 }
  0x70   : > { %v854_v9 = vld [vmem:[#allocation2 + $0x4c] sm:$0xf]  ;;  %v1044_v5 = vor.u32 %v1043_v54, %v1040_v23  ;;  %v6064_v13 = vcombine.low %v2805_v39, %v2815_v7  ;;  %v2824_v14 = vrot.slane %v2823_v55, 4  ;;  %v2826_v12 = vshll.u32 %v7585_v56, 16 }
  0x71   : > { %v2830_v36 = vshrl.u32 %v7585_v56, 16  ;;  %v1047_v17 = vshll.u32 %v854_v9, 16  ;;  %v1051_v21 = vshrl.u32 %v854_v9, 16  ;;  %v511_v20 = vor.u32 %v509_v50, %v508_v62  ;;  %v233_v23 = vld [vmem:[%s7318_s29 + $0x88] sm:$0xff] }
  0x72   : > { %v1045_v16 = vrot.slane %v1044_v5, 4  ;;  %6655 = vmatprep.mubr.msk.bf16.mxu0 %vm1327_vm8, %v6064_v13  ;;  %v7591_v11 = vld [vmem:[#allocation2 + $0x50] sm:$0x1]  ;;  %v2828_v27 = vrot.slane %v2826_v12, 5  ;;  %v519_v30 = vor.u32 %v517_v63, %v516_v1  ;;  %v6308_v22 = vpack.c.bf16 %v232_v4, %v232_v4 }
  0x73   : > { %v2832_v28 = vrot.slane %v2830_v36, 4  ;;  %v880_v48 = vld [vmem:[#allocation2 + $0x50] sm:$0x1]  ;;  %v2836_v15 = vshll.u32 %v7591_v11, 16  ;;  %v1049_v31 = vrot.slane %v1047_v17, 5  ;;  %v1053_v32 = vrot.slane %v1051_v21, 4 }
  0x74   : > { %v1057_v46 = vshll.u32 %v880_v48, 16  ;;  %v2829_v40 = vsel %vm7335_vm9, %v2824_v14, %v2828_v27  ;;  %v512_v35 = vrot.slane %v508_v62, 4  ;;  %v521_v39 = vrot.slane %v516_v1, 4  ;;  %v778_v1 = vld [vmem:[#allocation2 + $0x60] sm:$0xf] }
  0x75   : > { %v2833_v38 = vor.u32 %v2832_v28, %v2828_v27  ;;  %v2838_v44 = vrot.slane %v2836_v15, 5  ;;  %v1050_v42 = vsel %vm7335_vm9, %v1045_v16, %v1049_v31  ;;  %v1054_v50 = vor.u32 %v1053_v32, %v1049_v31  ;;  %v3374_v36 = vld [vmem:[#allocation2 + $0xc] sm:$0xe] }
  0x76   : > { %v1059_v53 = vrot.slane %v1057_v46, 5  ;;  %v520_v59 = vsel %vm7347_vm11, %v512_v35, %v519_v30  ;;  %v772_v55 = vsel %vm7341_vm10, %v511_v20, %v771_v24  ;;  %v776_v63 = vsel %vm7353_vm12, %v521_v39, %v775_v37  ;;  %v782_v24 = vld [vmem:[#allocation2 + $0x68] sm:$0x1]  ;;  %v3375_v30 = vld [vmem:[#allocation2 + $0x18] sm:$0xe] }
  0x77   : > { %v2834_v54 = vrot.slane %v2833_v38, 4  ;;  %v1055_v4 = vrot.slane %v1054_v50, 4  ;;  %773 = vst [vmem:[#allocation2 + $0x54] sm:$0xf] %v772_v55  ;;  %774 = vst.msk [vmem:[#allocation2 + $0x58] sm:$0xf] %vm248_vm1, %v520_v59  ;;  %v6309_v13 = vpack.c.bf16 %v233_v23, %v233_v23 }
  0x78   : > { %777 = vst [vmem:[#allocation2 + $0x5c] sm:$0x1] %v776_v63  ;;  %v525_v62 = vrot.slane %v523_v2, 7  ;;  %v531_v7 = vshrl.u32 %v7535_v49, 16  ;;  %v534_v9 = vshll.u32 %v7535_v49, 16  ;;  %v540_v14 = vshrl.u32 %v6308_v22, 16 }
  0x79   : > { %v2839_v5 = vsel %vm7335_vm9, %v2834_v54, %v2838_v44  ;;  %v543_v12 = vshll.u32 %v6308_v22, 16  ;;  %v1060_v17 = vsel %vm7335_vm9, %v1055_v4, %v1059_v53  ;;  %v548_v49 = vshrl.u32 %v6309_v13, 16  ;;  %v785_v15 = vld [vmem:[#allocation2 + $0x6c] sm:$0xf] }
  0x7a   : > { %v6065_v16 = vcombine.low %v2829_v40, %v2839_v5  ;;  %v528_v21 = vor.u32 %v526_v10, %v525_v62  ;;  %v529_v20 = vrot.slane %v525_v62, 4  ;;  %v5919_v2 = vcombine.low %v1050_v42, %v1060_v17 }
  0x7b   : > { %v533_v27 = vrot.slane %v531_v7, 7  ;;  %v7612_v28 = vrot.slane %v540_v14, 7  ;;  %v551_v10 = vshll.u32 %v6309_v13, 16  ;;  %v6092_v31 = vrot.slane %v3374_v36, 9 }
  0x7c   : > { %6656 = vmatmul.mubr.msk.bf16.gmra.mrb[8].mxu0 %vm1327_vm8, %v6065_v16  ;;  %v779_v22 = vsel %vm7341_vm10, %v528_v21, %v778_v1  ;;  %v3442_v32 = vrot.slane %v3440_v18, 4  ;;  %6523 = vmatprep.mubr.msk.bf16.mxu1 %vm1327_vm8, %v5919_v2  ;;  %v7628_v35 = vrot.slane %v548_v49, 7  ;;  %v6093_v42 = vrot.slane %v3375_v30, 9 }
  0x7d   : > { %v536_v46 = vor.u32 %v534_v9, %v533_v27  ;;  %v538_v37 = vrot.slane %v533_v27, 4  ;;  %780 = vst [vmem:[#allocation2 + $0x60] sm:$0xf] %v779_v22  ;;  %v545_v40 = vor.u32 %v543_v12, %v7612_v28  ;;  %v546_v38 = vrot.slane %v7612_v28, 4 }
  0x7e   : > { %v7634_v39 = vsel %vm7616_vm15, %v6092_v31, %v3440_v18  ;;  %v7640_v44 = vsel %vm7616_vm15, %v3442_v32, %v3443_v25  ;;  %v855_v50 = vld [vmem:[#allocation2 + $0x54] sm:$0xf]  ;;  %v856_v53 = vld [vmem:[#allocation2 + $0x58] sm:$0xf]  ;;  %v553_v1 = vor.u32 %v551_v10, %v7628_v35  ;;  %v7660_v13 = vsel %vm7616_vm15, %v6093_v42, %v3447_v57 }
  0x7f   : > { %v881_v23 = vld [vmem:[#allocation2 + $0x5c] sm:$0x1]  ;;  %v537_v54 = vsel %vm7347_vm11, %v529_v20, %v536_v46  ;;  %v783_v51 = vsel %vm7353_vm12, %v538_v37, %v782_v24  ;;  %v786_v18 = vsel %vm7341_vm10, %v545_v40, %v785_v15  ;;  %v6109_v61 = vcombine.low %v7634_v39, %v7640_v44  ;;  %v2666_v4 = vld [vmem:[#allocation2 + $0x54] sm:$0xf]  ;;  %v7651_v7 = vld [vmem:[#allocation2 + $0x58] sm:$0xf] }
  0x80   : > { %v1062_v59 = vshrl.u32 %v855_v50, 16  ;;  %v1065_v55 = vshll.u32 %v855_v50, 16  ;;  %v1071_v25 = vshll.u32 %v856_v53, 16  ;;  %v1075_v63 = vshrl.u32 %v856_v53, 16  ;;  %781 = vst.msk [vmem:[#allocation2 + $0x64] sm:$0xf] %vm248_vm1, %v537_v54 }
  0x81   : > { %784 = vst [vmem:[#allocation2 + $0x68] sm:$0x1] %v783_v51  ;;  %787 = vst [vmem:[#allocation2 + $0x6c] sm:$0xf] %v786_v18  ;;  %v1081_v62 = vshll.u32 %v881_v23, 16  ;;  %v2841_v5 = vshrl.u32 %v2666_v4, 16  ;;  %v554_v54 = vsel %vm7347_vm11, %v546_v38, %v553_v1 }
  0x82   : > { %v7653_v9 = vld [vmem:[#allocation2 + $0x5c] sm:$0x1]  ;;  %v1064_v14 = vrot.slane %v1062_v59, 4  ;;  %v1067_v12 = vrot.slane %v1065_v55, 5  ;;  %v1073_v36 = vrot.slane %v1071_v25, 5  ;;  %v1077_v16 = vrot.slane %v1075_v63, 4 }
  0x83   : > { %v1083_v17 = vrot.slane %v1081_v62, 5  ;;  %v2843_v21 = vrot.slane %v2841_v5, 4  ;;  %v2844_v20 = vshll.u32 %v2666_v4, 16  ;;  %v2850_v24 = vshll.u32 %v7651_v7, 16  ;;  %788 = vst.msk [vmem:[#allocation2 + $0x70] sm:$0xf] %vm248_vm1, %v554_v54 }
  0x84   : > { %v1068_v2 = vor.u32 %v1067_v12, %v1064_v14  ;;  %v1078_v27 = vor.u32 %v1077_v16, %v1073_v36  ;;  %v2854_v28 = vshrl.u32 %v7651_v7, 16  ;;  %v2860_v49 = vshll.u32 %v7653_v9, 16  ;;  %v2669_v19 = vld [vmem:[#allocation2 + $0x60] sm:$0xf] }
  0x85   : > { %v2846_v30 = vrot.slane %v2844_v20, 5  ;;  %v2852_v22 = vrot.slane %v2850_v24, 5  ;;  %v2865_v57 = vshrl.u32 %v2669_v19, 16  ;;  %v2868_v10 = vshll.u32 %v2669_v19, 16  ;;  %v857_v37 = vld [vmem:[#allocation2 + $0x60] sm:$0xf] }
  0x86   : > { %v1069_v15 = vrot.slane %v1068_v2, 4  ;;  %v1079_v31 = vrot.slane %v1078_v27, 4  ;;  %v2856_v32 = vrot.slane %v2854_v28, 4  ;;  %v2862_v46 = vrot.slane %v2860_v49, 5  ;;  %v789_v2 = vld [vmem:[#allocation2 + $0x74] sm:$0x1] }
  0x87   : > { %v2847_v40 = vor.u32 %v2846_v30, %v2843_v21  ;;  %v7665_v42 = vld [vmem:[#allocation2 + $0x64] sm:$0xf]  ;;  %v2867_v53 = vrot.slane %v2865_v57, 4  ;;  %v2870_v23 = vrot.slane %v2868_v10, 5  ;;  %v1089_v24 = vshll.u32 %v857_v37, 16 }
  0x88   : > { %v7667_v50 = vld [vmem:[#allocation2 + $0x68] sm:$0x1]  ;;  %v1074_v51 = vsel %vm7335_vm9, %v1069_v15, %v1073_v36  ;;  %v1084_v18 = vsel %vm7335_vm9, %v1079_v31, %v1083_v17  ;;  %v2857_v59 = vor.u32 %v2856_v32, %v2852_v22  ;;  %v2874_v55 = vshll.u32 %v7665_v42, 16  ;;  %v858_v5 = vld [vmem:[#allocation2 + $0x64] sm:$0xf] }
  0x89   : > { %v5920_v25 = vcombine.low %v1074_v51, %v1084_v18  ;;  %v2848_v63 = vrot.slane %v2847_v40, 4  ;;  %v2871_v4 = vor.u32 %v2870_v23, %v2867_v53  ;;  %v2878_v62 = vshrl.u32 %v7665_v42, 16  ;;  %v882_v14 = vld [vmem:[#allocation2 + $0x68] sm:$0x1]  ;;  %v859_v16 = vld [vmem:[#allocation2 + $0x6c] sm:$0xf] }
  0x8a   : > { %v2858_v12 = vrot.slane %v2857_v59, 4  ;;  %v2876_v38 = vrot.slane %v2874_v55, 5  ;;  %v2884_v1 = vshll.u32 %v7667_v50, 16  ;;  %v1086_v36 = vshrl.u32 %v857_v37, 16  ;;  %v860_v53 = vld [vmem:[#allocation2 + $0x70] sm:$0xf] }
  0x8b   : > { %6524 = vmatmul.mubr.msk.bf16.gmra.mrb[12].mxu1 %vm1327_vm8, %v5920_v25  ;;  %v2853_v17 = vsel %vm7335_vm9, %v2848_v63, %v2852_v22  ;;  %v2872_v21 = vrot.slane %v2871_v4, 4  ;;  %v2880_v20 = vrot.slane %v2878_v62, 4  ;;  %v1095_v19 = vshll.u32 %v858_v5, 16  ;;  %v234_v25 = vld [vmem:[%s7318_s29 + $0x90] sm:$0xff]  ;;  %v796_v39 = vld [vmem:[#allocation2 + $0x80] sm:$0x1] }
  0x8c   : > { %v2863_v27 = vsel %vm7335_vm9, %v2858_v12, %v2862_v46  ;;  %v2886_v28 = vrot.slane %v2884_v1, 5  ;;  %v1088_v49 = vrot.slane %v1086_v36, 4  ;;  %v1091_v15 = vrot.slane %v1089_v24, 5  ;;  %v236_v36 = vld [vmem:[%s7318_s29 + $0xa0] sm:$0xff]  ;;  %v237_v24 = vld [vmem:[%s7318_s29 + $0xa8] sm:$0xff] }
  0x8d   : > { %v6066_v30 = vcombine.low %v2853_v17, %v2863_v27  ;;  %v2877_v57 = vsel %vm7335_vm9, %v2872_v21, %v2876_v38  ;;  %v2881_v10 = vor.u32 %v2880_v20, %v2876_v38  ;;  %v1097_v31 = vrot.slane %v1095_v19, 5 }
  0x8e   : > { %v1099_v32 = vshrl.u32 %v858_v5, 16  ;;  %v1105_v22 = vshll.u32 %v882_v14, 16  ;;  %v555_v40 = vrot.slane %v7628_v35, 4  ;;  %v1092_v46 = vor.u32 %v1091_v15, %v1088_v49  ;;  %v235_v5 = vld [vmem:[%s7318_s29 + $0x98] sm:$0xff] }
  0x8f   : > { %6659 = vmatprep.mubr.msk.bf16.mxu0 %vm1327_vm8, %v6066_v30  ;;  %v2882_v37 = vrot.slane %v2881_v10, 4  ;;  %v1110_v23 = vshrl.u32 %v859_v16, 16  ;;  %v1113_v54 = vshll.u32 %v859_v16, 16  ;;  %v1119_v55 = vshll.u32 %v860_v53, 16 }
  0x90   : > { %v1101_v51 = vrot.slane %v1099_v32, 4  ;;  %v1107_v18 = vrot.slane %v1105_v22, 5  ;;  %v790_v59 = vsel %vm7353_vm12, %v555_v40, %v789_v2  ;;  %v1093_v63 = vrot.slane %v1092_v46, 4 }
  0x91   : > { %v2887_v35 = vsel %vm7335_vm9, %v2882_v37, %v2886_v28  ;;  %791 = vst [vmem:[#allocation2 + $0x74] sm:$0x1] %v790_v59  ;;  %v1112_v4 = vrot.slane %v1110_v23, 4  ;;  %v1115_v62 = vrot.slane %v1113_v54, 5  ;;  %v7694_v38 = vrot.slane %v1119_v55, 5 }
  0x92   : > { %v6067_v14 = vcombine.low %v2877_v57, %v2887_v35  ;;  %v1102_v12 = vor.u32 %v1101_v51, %v1097_v31  ;;  %v1123_v1 = vshrl.u32 %v860_v53, 16  ;;  %v1098_v16 = vsel %vm7335_vm9, %v1093_v63, %v1097_v31  ;;  %v792_v31 = vld [vmem:[#allocation2 + $0x78] sm:$0xf]  ;;  %v799_v55 = vld [vmem:[#allocation2 + $0x84] sm:$0xf] }
  0x93   : > { %v1116_v17 = vor.u32 %v1115_v62, %v1112_v4  ;;  %v3451_v21 = vsel %vm7616_vm15, %v7450_v8, %v3450_v58  ;;  %v6310_v20 = vpack.c.bf16 %v234_v25, %v234_v25  ;;  %v6311_v49 = vpack.c.bf16 %v235_v5, %v235_v5  ;;  %v3377_v62 = vld [vmem:[#allocation2 + $0x30] sm:$0xe] }
  0x94   : > { %6660 = vmatmul.mubr.msk.bf16.gmra.mrb[12].mxu0 %vm1327_vm8, %v6067_v14  ;;  %v1103_v2 = vrot.slane %v1102_v12, 4  ;;  %v1125_v27 = vrot.slane %v1123_v1, 4  ;;  %v6110_v28 = vcombine.low %v7660_v13, %v3451_v21  ;;  %v6312_v57 = vpack.c.bf16 %v236_v36, %v236_v36  ;;  %v7723_v1 = vld [vmem:[%s9135_s1 + $0xe] sm:$0x3] }
  0x95   : > { %v1117_v19 = vrot.slane %v1116_v17, 4  ;;  %6681 = vmatprep.mubr.msk.bf16.mxu0 %vm1327_vm8, %v6109_v61  ;;  %v557_v26 = vshrl.u32 %v6310_v20, 16  ;;  %v560_v30 = vshll.u32 %v6310_v20, 16  ;;  %v565_v10 = vshrl.u32 %v6311_v49, 16  ;;  %v3376_v61 = vld [vmem:[#allocation2 + $0x24] sm:$0xe] }
  0x96   : > { %v1108_v58 = vsel %vm7335_vm9, %v1103_v2, %v1107_v18  ;;  %v1126_v8 = vor.u32 %v1125_v27, %v7694_v38  ;;  %v568_v15 = vshll.u32 %v6311_v49, 16  ;;  %v6313_v44 = vpack.c.bf16 %v237_v24, %v237_v24  ;;  %v803_v20 = vld [vmem:[#allocation2 + $0x8c] sm:$0x1]  ;;  %v238_v49 = vld [vmem:[%s7318_s29 + $0xb0] sm:$0xff] }
  0x97   : > { %v5921_v32 = vcombine.low %v1098_v16, %v1108_v58  ;;  %v1122_v13 = vsel %vm7335_vm9, %v1117_v19, %v7694_v38  ;;  %v559_v22 = vrot.slane %v557_v26, 7  ;;  %v567_v46 = vrot.slane %v565_v10, 7  ;;  %v239_v19 = vld [vmem:[%s7318_s29 + $0xb8] sm:$0xff]  ;;  %v241_v10 = vld [vmem:[%s7318_s29 + $0xc8] sm:$0xff] }
  0x98   : > { %v883_v40 = vld [vmem:[#allocation2 + $0x74] sm:$0x1]  ;;  %v1127_v37 = vrot.slane %v1126_v8, 4  ;;  %v574_v53 = vshrl.u32 %v6312_v57, 16  ;;  %v577_v23 = vshll.u32 %v6312_v57, 16  ;;  %v582_v59 = vshrl.u32 %v6313_v44, 16 }
  0x99   : > { %6527 = vmatprep.mubr.msk.bf16.mxu1 %vm1327_vm8, %v5921_v32  ;;  %v1129_v54 = vshll.u32 %v883_v40, 16  ;;  %v562_v51 = vor.u32 %v560_v30, %v559_v22  ;;  %v563_v18 = vrot.slane %v559_v22, 4  ;;  %v570_v25 = vor.u32 %v568_v15, %v567_v46  ;;  %v240_v8 = vld [vmem:[%s7318_s29 + $0xc0] sm:$0xff]  ;;  %v7742_v15 = vld [vmem:[#allocation2 + $0x3c] sm:$0xe] }
  0x9a   : > { %v572_v35 = vrot.slane %v567_v46, 4  ;;  %v576_v63 = vrot.slane %v574_v53, 7  ;;  %v585_v4 = vshll.u32 %v6313_v44, 16  ;;  %v584_v12 = vrot.slane %v582_v59, 7  ;;  %v242_v46 = vld [vmem:[%s7318_s29 + $0xd0] sm:$0xff] }
  0x9b   : > { %v1131_v5 = vrot.slane %v1129_v54, 5  ;;  %v793_v14 = vsel %vm7341_vm10, %v562_v51, %v792_v31  ;;  %v6094_v38 = vrot.slane %v3376_v61, 9  ;;  %v571_v36 = vsel %vm7347_vm11, %v563_v18, %v570_v25  ;;  %v7169_v48 = vld [vmem:[#allocation2 + $0x74] sm:$0x1] }
  0x9c   : > { %6682 = vmatmul.mubr.msk.bf16.vlgmr.msra.gmra.mrb[0].mxu0 %vm1327_vm8, %v6110_v28  ;;  %794 = vst [vmem:[#allocation2 + $0x78] sm:$0xf] %v793_v14  ;;  %v797_v16 = vsel %vm7353_vm12, %v572_v35, %v796_v39  ;;  %v579_v17 = vor.u32 %v577_v23, %v576_v63  ;;  %v580_v21 = vrot.slane %v576_v63, 4  ;;  %795 = vst.msk [vmem:[#allocation2 + $0x7c] sm:$0xf] %vm248_vm1, %v571_v36  ;;  %v589_v27 = vrot.slane %v584_v12, 4 }
  0x9d   : > { %v1132_v24 = vsel %vm7335_vm9, %v1127_v37, %v1131_v5  ;;  %6714 = vmatpush3.bf16.msra.mxu0 %v7396_v29  ;;  %798 = vst [vmem:[#allocation2 + $0x80] sm:$0x1] %v797_v16  ;;  %v587_v2 = vor.u32 %v585_v4, %v584_v12  ;;  %v3454_v28 = vrot.slane %v7457_v47, 5  ;;  %v3457_v57 = vrot.slane %v7462_v60, 5 }
  0x9e   : > { %v5922_v26 = vcombine.low %v1122_v13, %v1132_v24  ;;  %v800_v30 = vsel %vm7341_vm10, %v579_v17, %v799_v55  ;;  %v6095_v58 = vrot.slane %v3377_v62, 9  ;;  %7081 = vmatprep.subr.msk.bf16.mxu0 %vm1376_vm0, %v7723_v1  ;;  %v804_v47 = vsel %vm7353_vm12, %v589_v27, %v803_v20 }
  0x9f   : > { %v588_v29 = vsel %vm7347_vm11, %v580_v21, %v587_v2  ;;  %801 = vst [vmem:[#allocation2 + $0x84] sm:$0xf] %v800_v30  ;;  %v3455_v31 = vsel %vm7616_vm15, %v6094_v38, %v3454_v28  ;;  %v3456_v60 = vrot.slane %v3454_v28, 4  ;;  %805 = vst [vmem:[#allocation2 + $0x8c] sm:$0x1] %v804_v47  ;;  %v3461_v32 = vrot.slane %v7524_v43, 5 }
  0xa0   : > { %6528 = vmatmul.mubr.msk.bf16.gmra.mrb[16].mxu1 %vm1327_vm8, %v5922_v26  ;;  %802 = vst.msk [vmem:[#allocation2 + $0x88] sm:$0xf] %vm248_vm1, %v588_v29  ;;  %v3464_v13 = vrot.slane %v7526_v6, 5  ;;  %v6314_v22 = vpack.c.bf16 %v238_v49, %v238_v49  ;;  %v6315_v39 = vpack.c.bf16 %v239_v19, %v239_v19  ;;  %v7758_v61 = vpack.c.bf16 %v240_v8, %v240_v8 }
  0xa1   : > { %v3458_v44 = vsel %vm7616_vm15, %v3456_v60, %v3457_v57  ;;  %v7760_v40 = vpack.c.bf16 %v241_v10, %v241_v10  ;;  %v6096_v37 = vrot.slane %v7742_v15, 9  ;;  %v3462_v23 = vsel %vm7616_vm15, %v6095_v58, %v3461_v32 }
  0xa2   : > { %v6111_v53 = vcombine.low %v3455_v31, %v3458_v44  ;;  %v3463_v54 = vrot.slane %v3461_v32, 4  ;;  %v591_v43 = vshrl.u32 %v6314_v22, 16  ;;  %v594_v6 = vshll.u32 %v6314_v22, 16 }
  0xa3   : > { %v7766_v51 = vld [vmem:[#allocation2 + $0x78] sm:$0xf]  ;;  %v599_v18 = vshrl.u32 %v6315_v39, 16  ;;  %v602_v59 = vshll.u32 %v6315_v39, 16  ;;  %v608_v55 = vshrl.u32 %v7758_v61, 16  ;;  %v7776_v5 = vpack.c.bf16 %v242_v46, %v242_v46 }
  0xa4   : > { %v7769_v25 = vld [vmem:[#allocation2 + $0x7c] sm:$0xf]  ;;  %v884_v35 = vld [vmem:[#allocation2 + $0x80] sm:$0x1]  ;;  %v1134_v63 = vshrl.u32 %v7766_v51, 16  ;;  %v1137_v4 = vshll.u32 %v7766_v51, 16  ;;  %6685 = vmatprep.mubr.msk.bf16.mxu0 %vm1327_vm8, %v6111_v53  ;;  %v3465_v62 = vsel %vm7616_vm15, %v3463_v54, %v3464_v13 }
  0xa5   : > { %v1143_v14 = vshll.u32 %v7769_v25, 16  ;;  %v1147_v12 = vshrl.u32 %v7769_v25, 16  ;;  %v1153_v38 = vshll.u32 %v884_v35, 16  ;;  %v6112_v36 = vcombine.low %v3462_v23, %v3465_v62  ;;  %v806_v39 = vld [vmem:[#allocation2 + $0x90] sm:$0xf] }
  0xa6   : > { %v1136_v16 = vrot.slane %v1134_v63, 4  ;;  %v1139_v17 = vrot.slane %v1137_v4, 5  ;;  %v7780_v21 = vld [vmem:[#allocation2 + $0x84] sm:$0xf]  ;;  %v593_v20 = vrot.slane %v591_v43, 7  ;;  %v601_v24 = vrot.slane %v599_v18, 7 }
  0xa7   : > { %v1145_v2 = vrot.slane %v1143_v14, 5  ;;  %v1149_v27 = vrot.slane %v1147_v12, 4  ;;  %v1155_v28 = vrot.slane %v1153_v38, 5  ;;  %v7782_v49 = vld [vmem:[#allocation2 + $0x88] sm:$0xf]  ;;  %v1158_v19 = vshrl.u32 %v7780_v21, 16  ;;  %6686 = vmatmul.mubr.msk.bf16.gmra.mrb[4].mxu0 %vm1327_vm8, %v6112_v36 }
  0xa8   : > { %v1140_v26 = vor.u32 %v1139_v17, %v1136_v16  ;;  %v885_v30 = vld [vmem:[#allocation2 + $0x8c] sm:$0x1]  ;;  %v1161_v57 = vshll.u32 %v7780_v21, 16  ;;  %v1167_v58 = vshll.u32 %v7782_v49, 16  ;;  %v1171_v8 = vshrl.u32 %v7782_v49, 16 }
  0xa9   : > { %v1150_v10 = vor.u32 %v1149_v27, %v1145_v2  ;;  %v1160_v29 = vrot.slane %v1158_v19, 4  ;;  %v1177_v47 = vshll.u32 %v885_v30, 16  ;;  %v596_v31 = vor.u32 %v594_v6, %v593_v20  ;;  %v810_v54 = vld [vmem:[#allocation2 + $0x98] sm:$0x1]  ;;  %v3379_v4 = vld [vmem:[#allocation2 + $0x48] sm:$0xe] }
  0xaa   : > { %v1141_v60 = vrot.slane %v1140_v26, 4  ;;  %v1163_v32 = vrot.slane %v1161_v57, 5  ;;  %v1169_v13 = vrot.slane %v1167_v58, 5  ;;  %v1173_v22 = vrot.slane %v1171_v8, 4  ;;  %v243_v30 = vld [vmem:[%s7318_s29 + $0xd8] sm:$0xff] }
  0xab   : > { %v1151_v44 = vrot.slane %v1150_v10, 4  ;;  %v1179_v46 = vrot.slane %v1177_v47, 5  ;;  %v597_v53 = vrot.slane %v593_v20, 4  ;;  %v604_v23 = vor.u32 %v602_v59, %v601_v24  ;;  %v817_v8 = vld [vmem:[#allocation2 + $0xa4] sm:$0x1] }
  0xac   : > { %v1146_v43 = vsel %vm7335_vm9, %v1141_v60, %v1145_v2  ;;  %v1164_v18 = vor.u32 %v1163_v32, %v1160_v29  ;;  %v1174_v35 = vor.u32 %v1173_v22, %v1169_v13  ;;  %v606_v63 = vrot.slane %v601_v24, 4  ;;  %v7157_v3 = vld [vmem:[#allocation2 + $0x80] sm:$0x1] }
  0xad   : > { %v1156_v6 = vsel %vm7335_vm9, %v1151_v44, %v1155_v28  ;;  %v605_v62 = vsel %vm7347_vm11, %v597_v53, %v604_v23  ;;  %v807_v14 = vsel %vm7341_vm10, %v596_v31, %v806_v39  ;;  %v610_v12 = vrot.slane %v608_v55, 7  ;;  %v813_v28 = vld [vmem:[#allocation2 + $0x9c] sm:$0xf] }
  0xae   : > { %v5923_v38 = vcombine.low %v1146_v43, %v1156_v6  ;;  %v1165_v59 = vrot.slane %v1164_v18, 4  ;;  %v1175_v36 = vrot.slane %v1174_v35, 4  ;;  %808 = vst [vmem:[#allocation2 + $0x90] sm:$0xf] %v807_v14  ;;  %809 = vst.msk [vmem:[#allocation2 + $0x94] sm:$0xf] %vm248_vm1, %v605_v62  ;;  %v811_v16 = vsel %vm7353_vm12, %v606_v63, %v810_v54 }
  0xaf   : > { %812 = vst [vmem:[#allocation2 + $0x98] sm:$0x1] %v811_v16  ;;  %v611_v17 = vshll.u32 %v7758_v61, 16  ;;  %v614_v20 = vrot.slane %v610_v12, 4  ;;  %v616_v24 = vshrl.u32 %v7760_v40, 16  ;;  %v619_v2 = vshll.u32 %v7760_v40, 16 }
  0xb0   : > { %6531 = vmatprep.mubr.msk.bf16.mxu1 %vm1327_vm8, %v5923_v38  ;;  %v1170_v55 = vsel %vm7335_vm9, %v1165_v59, %v1169_v13  ;;  %v1180_v27 = vsel %vm7335_vm9, %v1175_v36, %v1179_v46  ;;  %v3468_v19 = vrot.slane %v7544_v0, 5  ;;  %v3471_v26 = vrot.slane %v7548_v33, 5  ;;  %v820_v62 = vld [vmem:[#allocation2 + $0xa8] sm:$0xf]  ;;  %v244_v14 = vld [vmem:[%s7318_s29 + $0xe0] sm:$0xff] }
  0xb1   : > { %v5924_v61 = vcombine.low %v1170_v55, %v1180_v27  ;;  %v613_v57 = vor.u32 %v611_v17, %v610_v12  ;;  %v618_v58 = vrot.slane %v616_v24, 7  ;;  %v6097_v10 = vrot.slane %v3379_v4, 9  ;;  %v7843_v16 = vld [vmem:[#allocation2 + $0x54] sm:$0xe] }
  0xb2   : > { %v3469_v40 = vsel %vm7616_vm15, %v6096_v37, %v3468_v19  ;;  %v3470_v29 = vrot.slane %v3468_v19, 4  ;;  %v3475_v47 = vrot.slane %v7585_v56, 5  ;;  %v3478_v31 = vrot.slane %v7591_v11, 5  ;;  %v245_v19 = vld [vmem:[%s7318_s29 + $0xe8] sm:$0xff] }
  0xb3   : > { %6532 = vmatmul.mubr.msk.bf16.gmra.mrb[20].mxu1 %vm1327_vm8, %v5924_v61  ;;  %v621_v0 = vor.u32 %v619_v2, %v618_v58  ;;  %v623_v33 = vrot.slane %v618_v58, 4  ;;  %v814_v60 = vsel %vm7341_vm10, %v613_v57, %v813_v28  ;;  %v6319_v32 = vpack.c.bf16 %v243_v30, %v243_v30  ;;  %v824_v57 = vld [vmem:[#allocation2 + $0xb0] sm:$0x1] }
  0xb4   : > { %815 = vst [vmem:[#allocation2 + $0x9c] sm:$0xf] %v814_v60  ;;  %v3472_v15 = vsel %vm7616_vm15, %v3470_v29, %v3471_v26  ;;  %v3476_v37 = vsel %vm7616_vm15, %v6097_v10, %v3475_v47  ;;  %v3477_v13 = vrot.slane %v3475_v47, 4  ;;  %v625_v56 = vshrl.u32 %v7776_v5, 16 }
  0xb5   : > { %v7825_v22 = vld [vmem:[#allocation2 + $0x90] sm:$0xf]  ;;  %v7827_v11 = vld [vmem:[#allocation2 + $0x94] sm:$0xf]  ;;  %v622_v39 = vsel %vm7347_vm11, %v614_v20, %v621_v0  ;;  %v818_v44 = vsel %vm7353_vm12, %v623_v33, %v817_v8  ;;  %v6113_v46 = vcombine.low %v3469_v40, %v3472_v15  ;;  %v628_v53 = vshll.u32 %v7776_v5, 16 }
  0xb6   : > { %v886_v23 = vld [vmem:[#allocation2 + $0x98] sm:$0x1]  ;;  %v1182_v54 = vshrl.u32 %v7825_v22, 16  ;;  %v1185_v43 = vshll.u32 %v7825_v22, 16  ;;  %v1191_v18 = vshll.u32 %v7827_v11, 16  ;;  %v1195_v35 = vshrl.u32 %v7827_v11, 16 }
  0xb7   : > { %816 = vst.msk [vmem:[#allocation2 + $0xa0] sm:$0xf] %vm248_vm1, %v622_v39  ;;  %819 = vst [vmem:[#allocation2 + $0xa4] sm:$0x1] %v818_v44  ;;  %v1201_v63 = vshll.u32 %v886_v23, 16  ;;  %6689 = vmatprep.mubr.msk.bf16.mxu0 %vm1327_vm8, %v6113_v46  ;;  %v3479_v4 = vsel %vm7616_vm15, %v3477_v13, %v3478_v31  ;;  %v627_v6 = vrot.slane %v625_v56, 7  ;;  %v6320_v58 = vpack.c.bf16 %v244_v14, %v244_v14 }
  0xb8   : > { %v633_v5 = vshrl.u32 %v6319_v32, 16  ;;  %v1184_v12 = vrot.slane %v1182_v54, 4  ;;  %v1187_v38 = vrot.slane %v1185_v43, 5  ;;  %v1193_v59 = vrot.slane %v1191_v18, 5 }
  0xb9   : > { %v1197_v36 = vrot.slane %v1195_v35, 4  ;;  %v1203_v17 = vrot.slane %v1201_v63, 5  ;;  %v6114_v20 = vcombine.low %v3476_v37, %v3479_v4  ;;  %v630_v24 = vor.u32 %v628_v53, %v627_v6 }
  0xba   : > { %v1188_v2 = vor.u32 %v1187_v38, %v1184_v12  ;;  %v635_v27 = vrot.slane %v633_v5, 7  ;;  %v636_v28 = vshll.u32 %v6319_v32, 16  ;;  %v631_v30 = vrot.slane %v627_v6, 4 }
  0xbb   : > { %v1198_v55 = vor.u32 %v1197_v36, %v1193_v59  ;;  %v7846_v26 = vld [vmem:[#allocation2 + $0x9c] sm:$0xf]  ;;  %6690 = vmatmul.mubr.msk.bf16.gmra.mrb[8].mxu0 %vm1327_vm8, %v6114_v20  ;;  %v821_v61 = vsel %vm7341_vm10, %v630_v24, %v820_v62  ;;  %v6098_v8 = vrot.slane %v7843_v16, 9  ;;  %v6321_v32 = vpack.c.bf16 %v245_v19, %v245_v19 }
  0xbc   : > { %v1189_v10 = vrot.slane %v1188_v2, 4  ;;  %v1206_v29 = vshrl.u32 %v7846_v26, 16  ;;  %v1209_v47 = vshll.u32 %v7846_v26, 16  ;;  %822 = vst [vmem:[#allocation2 + $0xa8] sm:$0xf] %v821_v61  ;;  %v638_v33 = vor.u32 %v636_v28, %v635_v27 }
  0xbd   : > { %v1199_v40 = vrot.slane %v1198_v55, 4  ;;  %v640_v60 = vrot.slane %v635_v27, 4  ;;  %v642_v15 = vshrl.u32 %v6320_v58, 16  ;;  %v645_v5 = vshll.u32 %v6320_v58, 16  ;;  %v3381_v2 = vld [vmem:[#allocation2 + $0x60] sm:$0xe] }
  0xbe   : > { %v7854_v31 = vld [vmem:[#allocation2 + $0xa0] sm:$0xf]  ;;  %v887_v0 = vld [vmem:[#allocation2 + $0xa4] sm:$0x1]  ;;  %v1194_v37 = vsel %vm7335_vm9, %v1189_v10, %v1193_v59  ;;  %v1208_v56 = vrot.slane %v1206_v29, 4  ;;  %v1211_v39 = vrot.slane %v1209_v47, 5  ;;  %v639_v43 = vsel %vm7347_vm11, %v631_v30, %v638_v33 }
  0xbf   : > { %v1204_v13 = vsel %vm7335_vm9, %v1199_v40, %v1203_v17  ;;  %v1215_v46 = vshll.u32 %v7854_v31, 16  ;;  %v1219_v53 = vshrl.u32 %v7854_v31, 16  ;;  %v1225_v23 = vshll.u32 %v887_v0, 16  ;;  %823 = vst.msk [vmem:[#allocation2 + $0xac] sm:$0xf] %vm248_vm1, %v639_v43 }
  0xc0   : > { %v5925_v44 = vcombine.low %v1194_v37, %v1204_v13  ;;  %v1212_v54 = vor.u32 %v1211_v39, %v1208_v56  ;;  %v825_v18 = vsel %vm7353_vm12, %v640_v60, %v824_v57  ;;  %v644_v35 = vrot.slane %v642_v15, 7  ;;  %v827_v59 = vld [vmem:[#allocation2 + $0xb4] sm:$0xf]  ;;  %v831_v57 = vld [vmem:[#allocation2 + $0xbc] sm:$0x1] }
  0xc1   : > { %v1217_v63 = vrot.slane %v1215_v46, 5  ;;  %v1221_v4 = vrot.slane %v1219_v53, 4  ;;  %v1227_v6 = vrot.slane %v1225_v23, 5  ;;  %826 = vst [vmem:[#allocation2 + $0xb0] sm:$0x1] %v825_v18  ;;  %v650_v12 = vshrl.u32 %v6321_v32, 16 }
  0xc2   : > { %6535 = vmatprep.mubr.msk.bf16.mxu1 %vm1327_vm8, %v5925_v44  ;;  %v1213_v62 = vrot.slane %v1212_v54, 4  ;;  %v648_v14 = vrot.slane %v644_v35, 4  ;;  %v653_v38 = vshll.u32 %v6321_v32, 16  ;;  %v647_v17 = vor.u32 %v645_v5, %v644_v35  ;;  %v3382_v32 = vld [vmem:[#allocation2 + $0x6c] sm:$0xe] }
  0xc3   : > { %v1222_v36 = vor.u32 %v1221_v4, %v1217_v63  ;;  %v7868_v16 = vld [vmem:[#allocation2 + $0xa8] sm:$0xf]  ;;  %v3482_v20 = vrot.slane %v7651_v7, 5  ;;  %v3485_v24 = vrot.slane %v7653_v9, 5  ;;  %v652_v19 = vrot.slane %v650_v12, 7 }
  0xc4   : > { %v1218_v55 = vsel %vm7335_vm9, %v1213_v62, %v1217_v63  ;;  %v1230_v27 = vshrl.u32 %v7868_v16, 16  ;;  %v1233_v28 = vshll.u32 %v7868_v16, 16  ;;  %v828_v61 = vsel %vm7341_vm10, %v647_v17, %v827_v59  ;;  %v2673_v44 = vld [vmem:[#allocation2 + $0x70] sm:$0xf]  ;;  %v2674_v54 = vld [vmem:[#allocation2 + $0x74] sm:$0x1] }
  0xc5   : > { %v1223_v30 = vrot.slane %v1222_v36, 4  ;;  %v3483_v58 = vsel %vm7616_vm15, %v6098_v8, %v3482_v20  ;;  %v3484_v7 = vrot.slane %v3482_v20, 4  ;;  %v655_v40 = vor.u32 %v653_v38, %v652_v19  ;;  %829 = vst [vmem:[#allocation2 + $0xb4] sm:$0xf] %v828_v61 }
  0xc6   : > { %v1232_v10 = vrot.slane %v1230_v27, 4  ;;  %v1235_v9 = vrot.slane %v1233_v28, 5  ;;  %v657_v29 = vrot.slane %v652_v19, 4  ;;  %v6099_v33 = vrot.slane %v3381_v2, 9  ;;  %v7885_v37 = vld [vmem:[#allocation2 + $0xac] sm:$0xf] }
  0xc7   : > { %v1228_v47 = vsel %vm7335_vm9, %v1223_v30, %v1227_v6  ;;  %v3486_v0 = vsel %vm7616_vm15, %v3484_v7, %v3485_v24  ;;  %v3489_v60 = vrot.slane %v7665_v42, 5  ;;  %v656_v56 = vsel %vm7347_vm11, %v648_v14, %v655_v40  ;;  %v7913_v28 = vld [vmem:[#allocation2 + $0x7c] sm:$0xf] }
  0xc8   : > { %v5926_v15 = vcombine.low %v1218_v55, %v1228_v47  ;;  %v7887_v8 = vld [vmem:[#allocation2 + $0xb0] sm:$0x1]  ;;  %v1236_v13 = vor.u32 %v1235_v9, %v1232_v10  ;;  %v832_v39 = vsel %vm7353_vm12, %v657_v29, %v831_v57  ;;  %v1239_v46 = vshll.u32 %v7885_v37, 16  ;;  %830 = vst.msk [vmem:[#allocation2 + $0xb8] sm:$0xf] %vm248_vm1, %v656_v56 }
  0xc9   : > { %v1243_v53 = vshrl.u32 %v7885_v37, 16  ;;  %v1249_v42 = vshll.u32 %v7887_v8, 16  ;;  %833 = vst [vmem:[#allocation2 + $0xbc] sm:$0x1] %v832_v39  ;;  %v6115_v23 = vcombine.low %v3483_v58, %v3486_v0  ;;  %v3490_v43 = vsel %vm7616_vm15, %v6099_v33, %v3489_v60  ;;  %v3383_v29 = vld [vmem:[#allocation2 + $0x78] sm:$0xe] }
  0xca   : > { %6536 = vmatmul.mubr.msk.bf16.gmra.mrb[24].mxu1 %vm1327_vm8, %v5926_v15  ;;  %v3491_v18 = vrot.slane %v3489_v60, 4  ;;  %v3492_v35 = vrot.slane %v7667_v50, 5  ;;  %v1237_v63 = vrot.slane %v1236_v13, 4  ;;  %v1241_v4 = vrot.slane %v1239_v46, 5  ;;  %v7926_v60 = vld [vmem:[#allocation2 + $0x80] sm:$0x1] }
  0xcb   : > { %v1245_v6 = vrot.slane %v1243_v53, 4  ;;  %6693 = vmatprep.mubr.msk.bf16.mxu0 %vm1327_vm8, %v6115_v23  ;;  %v6100_v62 = vrot.slane %v3382_v32, 9  ;;  %v3496_v14 = vrot.slane %v2673_v44, 5  ;;  %v3499_v12 = vrot.slane %v2674_v54, 5  ;;  %v2679_v32 = vld [vmem:[#allocation2 + $0x88] sm:$0xf] }
  0xcc   : > { %v3493_v5 = vsel %vm7616_vm15, %v3491_v18, %v3492_v35  ;;  %v1251_v59 = vrot.slane %v1249_v42, 5  ;;  %v7904_v36 = vld [vmem:[#allocation2 + $0xb4] sm:$0xf]  ;;  %v1242_v2 = vsel %vm7335_vm9, %v1237_v63, %v1241_v4  ;;  %v2680_v56 = vld [vmem:[#allocation2 + $0x8c] sm:$0x1]  ;;  %v6101_v46 = vrot.slane %v3383_v29, 9 }
  0xcd   : > { %v1246_v38 = vor.u32 %v1245_v6, %v1241_v4  ;;  %v6116_v17 = vcombine.low %v3490_v43, %v3493_v5  ;;  %v1254_v20 = vshrl.u32 %v7904_v36, 16  ;;  %v1257_v50 = vshll.u32 %v7904_v36, 16  ;;  %v3384_v39 = vld [vmem:[#allocation2 + $0x84] sm:$0xe]  ;;  %v2682_v42 = vld [vmem:[#allocation2 + $0x94] sm:$0xf] }
  0xce   : > { %v3498_v24 = vrot.slane %v3496_v14, 4  ;;  %v3497_v27 = vsel %vm7616_vm15, %v6100_v62, %v3496_v14  ;;  %v3503_v53 = vrot.slane %v7913_v28, 5  ;;  %v3506_v43 = vrot.slane %v7926_v60, 5  ;;  %v2683_v18 = vld [vmem:[#allocation2 + $0x98] sm:$0x1] }
  0xcf   : > { %v1247_v55 = vrot.slane %v1246_v38, 4  ;;  %6694 = vmatmul.mubr.msk.bf16.gmra.mrb[12].mxu0 %vm1327_vm8, %v6116_v17  ;;  %v7915_v19 = vld [vmem:[#allocation2 + $0xb8] sm:$0xf]  ;;  %v1256_v61 = vrot.slane %v1254_v20, 4  ;;  %v1259_v57 = vrot.slane %v1257_v50, 5  ;;  %v6102_v14 = vrot.slane %v3384_v39, 9 }
  0xd0   : > { %v7917_v30 = vld [vmem:[#allocation2 + $0xbc] sm:$0x1]  ;;  %v3500_v58 = vsel %vm7616_vm15, %v3498_v24, %v3499_v12  ;;  %v1263_v10 = vshll.u32 %v7915_v19, 16  ;;  %v1267_v9 = vshrl.u32 %v7915_v19, 16  ;;  %v3385_v35 = vld [vmem:[#allocation2 + $0x90] sm:$0xe]  ;;  %v3504_v5 = vsel %vm7616_vm15, %v6101_v46, %v3503_v53 }
  0xd1   : > { %v1252_v7 = vsel %vm7335_vm9, %v1247_v55, %v1251_v59  ;;  %v1273_v40 = vshll.u32 %v7917_v30, 16  ;;  %v1260_v0 = vor.u32 %v1259_v57, %v1256_v61  ;;  %v6117_v33 = vcombine.low %v3497_v27, %v3500_v58  ;;  %v7124_v63 = vld [vmem:[#allocation2] sm:$0xf]  ;;  %v7932_v4 = vld [vmem:[#allocation2 + $0x4] sm:$0xf] }
  0xd2   : > { %v5927_v47 = vcombine.low %v1242_v2, %v1252_v7  ;;  %v1265_v15 = vrot.slane %v1263_v10, 5  ;;  %v1269_v13 = vrot.slane %v1267_v9, 4  ;;  %v5945_v6 = vcombine.low %v7124_v63, %v7932_v4  ;;  %v3386_v20 = vld [vmem:[#allocation2 + $0x9c] sm:$0xe]  ;;  %v2685_v27 = vld [vmem:[#allocation2 + $0xa0] sm:$0xf] }
  0xd3   : > { %v1261_v44 = vrot.slane %v1260_v0, 4  ;;  %6697 = vmatprep.mubr.msk.bf16.mxu0 %vm1327_vm8, %v6117_v33  ;;  %v1275_v54 = vrot.slane %v1273_v40, 5  ;;  %v3505_v62 = vrot.slane %v3503_v53, 4  ;;  %v3510_v59 = vrot.slane %v2679_v32, 5  ;;  %v2686_v10 = vld [vmem:[#allocation2 + $0xa4] sm:$0x1] }
  0xd4   : > { %6539 = vmatprep.mubr.msk.bf16.mxu1 %vm1327_vm8, %v5927_v47  ;;  %v1270_v23 = vor.u32 %v1269_v13, %v1265_v15  ;;  %v3513_v17 = vrot.slane %v2680_v56, 5  ;;  %v6103_v24 = vrot.slane %v3385_v35, 9  ;;  %v3517_v2 = vrot.slane %v2682_v42, 5  ;;  %v2688_v29 = vld [vmem:[#allocation2 + $0xac] sm:$0xf] }
  0xd5   : > { %v1266_v12 = vsel %vm7335_vm9, %v1261_v44, %v1265_v15  ;;  %v3507_v50 = vsel %vm7616_vm15, %v3505_v62, %v3506_v43  ;;  %v3520_v55 = vrot.slane %v2683_v18, 5  ;;  %v3511_v58 = vsel %vm7616_vm15, %v6102_v14, %v3510_v59  ;;  %v3387_v32 = vld [vmem:[#allocation2 + $0xa8] sm:$0xe]  ;;  %v2689_v44 = vld [vmem:[#allocation2 + $0xb0] sm:$0x1]  ;;  %v247_v43 = vld [vmem:[%s7318_s29 + $0xf8] sm:$0xff] }
  0xd6   : > { %v1271_v38 = vrot.slane %v1270_v23, 4  ;;  %v6118_v57 = vcombine.low %v3504_v5, %v3507_v50  ;;  %v3512_v7 = vrot.slane %v3510_v59, 4  ;;  %v3519_v40 = vrot.slane %v3517_v2, 4  ;;  %v2691_v46 = vld [vmem:[#allocation2 + $0xb8] sm:$0xf] }
  0xd7   : > { %v6104_v0 = vrot.slane %v3386_v20, 9  ;;  %v3524_v33 = vrot.slane %v2685_v27, 5  ;;  %v3518_v13 = vsel %vm7616_vm15, %v6103_v24, %v3517_v2  ;;  %v3527_v39 = vrot.slane %v2686_v10, 5  ;;  %v7126_v18 = vld [vmem:[#allocation2 + $0xc] sm:$0xf] }
  0xd8   : > { %v1276_v61 = vsel %vm7335_vm9, %v1271_v38, %v1275_v54  ;;  %6698 = vmatmul.mubr.msk.bf16.gmra.mrb[16].mxu0 %vm1327_vm8, %v6118_v57  ;;  %v3514_v47 = vsel %vm7616_vm15, %v3512_v7, %v3513_v17  ;;  %v3521_v56 = vsel %vm7616_vm15, %v3519_v40, %v3520_v55  ;;  %v3531_v23 = vrot.slane %v2688_v29, 5  ;;  %v246_v54 = vld [vmem:[%s7318_s29 + $0xf0] sm:$0xff]  ;;  %v2692_v62 = vld [vmem:[#allocation2 + $0xbc] sm:$0x1]  ;;  %v7128_v2 = vld [vmem:[#allocation2 + $0x18] sm:$0xf]  ;;  %s214_s29 = scalar_lea.vmem %s9138_s4, %s9218_s16 }
  0xd9   : > { %v5928_v9 = vcombine.low %v1266_v12, %v1276_v61  ;;  %v6119_v15 = vcombine.low %v3511_v58, %v3514_v47  ;;  %v3525_v53 = vsel %vm7616_vm15, %v6104_v0, %v3524_v33  ;;  %v3526_v42 = vrot.slane %v3524_v33, 4  ;;  %v7958_v35 = vld [vmem:[#allocation2 + $0x10] sm:$0xf]  ;;  %v3388_v14 = vld [vmem:[#allocation2 + $0xb4] sm:$0xe] }
  0xda   : > { %v5946_v63 = vcombine.low %v7126_v18, %v7958_v35  ;;  %v6105_v5 = vrot.slane %v3387_v32, 9  ;;  %v6120_v12 = vcombine.low %v3518_v13, %v3521_v56  ;;  %v3534_v38 = vrot.slane %v2689_v44, 5  ;;  %v7964_v55 = vld [vmem:[#allocation2 + $0x1c] sm:$0xf]  ;;  %v7130_v7 = vld [vmem:[%s9135_s1 + $0x4] sm:$0x3] }
  0xdb   : > { %6540 = vmatmul.mubr.msk.bf16.gmra.mrb[28].mxu1 %vm1327_vm8, %v5928_v9  ;;  %6701 = vmatprep.mubr.msk.bf16.mxu0 %vm1327_vm8, %v6119_v15  ;;  %v3538_v59 = vrot.slane %v2691_v46, 5  ;;  %v3533_v20 = vrot.slane %v3531_v23, 4  ;;  %v6322_v50 = vpack.c.bf16 %v246_v54, %v246_v54  ;;  %v6323_v24 = vpack.c.bf16 %v247_v43, %v247_v43  ;;  %v7975_v0 = vld [vmem:[%s9135_s1 + $0x6] sm:$0x3]  ;;  %v834_v44 = vld [vmem:[#allocation2 + $0xc0] sm:$0xf] }
  0xdc   : > { %6545 = vmatprep.mubr.msk.bf16.mxu1 %vm1327_vm8, %v5945_v6  ;;  %v3528_v6 = vsel %vm7616_vm15, %v3526_v42, %v3527_v39  ;;  %v5947_v27 = vcombine.low %v7128_v2, %v7964_v55  ;;  %v6106_v61 = vrot.slane %v3388_v14, 9  ;;  %v3541_v58 = vrot.slane %v2692_v62, 5  ;;  %v838_v46 = vld [vmem:[#allocation2 + $0xc8] sm:$0x1]  ;;  %v7131_v43 = vld [vmem:[#allocation2 + $0x24] sm:$0xf] }
  0xdd   : > { %v6121_v17 = vcombine.low %v3525_v53, %v3528_v6  ;;  %v3540_v57 = vrot.slane %v3538_v59, 4  ;;  %v2095_v10 = vsel %vm1376_vm0, %v7130_v7, 0  ;;  %v659_v9 = vshrl.u32 %v6322_v50, 16  ;;  %v7990_v18 = vld [vmem:[#allocation2 + $0x28] sm:$0xf] }
  0xde   : > { %v662_v40 = vshll.u32 %v6322_v50, 16  ;;  %v667_v29 = vshrl.u32 %v6323_v24, 16  ;;  %v670_v47 = vshll.u32 %v6323_v24, 16  ;;  %v3532_v33 = vsel %vm7616_vm15, %v6105_v5, %v3531_v23 }
  0xdf   : > { %v3535_v32 = vsel %vm7616_vm15, %v3533_v20, %v3534_v38  ;;  %v661_v15 = vrot.slane %v659_v9, 7  ;;  %v3539_v56 = vsel %vm7616_vm15, %v6106_v61, %v3538_v59  ;;  %v3542_v39 = vsel %vm7616_vm15, %v3540_v57, %v3541_v58  ;;  %v7133_v38 = vld [vmem:[#allocation2 + $0x30] sm:$0xf]  ;;  %v7999_v59 = vld [vmem:[#allocation2 + $0x34] sm:$0xf] }
  0xe0   : > { %6702 = vmatmul.mubr.msk.bf16.gmra.mrb[20].mxu0 %vm1327_vm8, %v6120_v12  ;;  %v669_v13 = vrot.slane %v667_v29, 7  ;;  %v6122_v5 = vcombine.low %v3532_v33, %v3535_v32  ;;  %v6123_v62 = vcombine.low %v3539_v56, %v3542_v39  ;;  %v2922_v41 = vshll.u32 %v7913_v28, 16  ;;  %v8009_v20 = vld [vmem:[#allocation2 + $0x40] sm:$0xf]  ;;  %v7137_v61 = vld [vmem:[#allocation2 + $0x48] sm:$0xf] }
  0xe1   : > { %6705 = vmatprep.mubr.msk.bf16.mxu0 %vm1327_vm8, %v6121_v17  ;;  %v664_v53 = vor.u32 %v662_v40, %v661_v15  ;;  %v665_v42 = vrot.slane %v661_v15, 4  ;;  %v5949_v17 = vcombine.low %v7133_v38, %v7999_v59  ;;  %v2926_v45 = vshrl.u32 %v7913_v28, 16  ;;  %v8012_v57 = vld [vmem:[#allocation2 + $0x4c] sm:$0xf]  ;;  %v7092_v32 = vld [vmem:[#allocation2 + $0x18] sm:$0xff]  }
  0xe2   : > { %v672_v54 = vor.u32 %v670_v47, %v669_v13  ;;  %v674_v23 = vrot.slane %v669_v13, 4  ;;  %v5950_v50 = vcombine.low %v7135_v52, %v8009_v20  ;;  %v5951_v58 = vcombine.low %v7137_v61, %v8012_v57  ;;  %v7144_v38 = vld [vmem:[#allocation2 + $0x14] sm:$0x1]  ;;  %v8041_v52 = vld [vmem:[#allocation2 + $0x70] sm:$0xf] }
  0xe3   : > { %6546 = vmatmul.mubr.msk.bf16.vlgmr.msra.gmra.mrb[0].mxu1 %vm1327_vm8, %v5946_v63  ;;  %v5948_v63 = vcombine.low %v7131_v43, %v7990_v18  ;;  %v835_v12 = vsel %vm7341_vm10, %v664_v53, %v834_v44  ;;  %v8015_v40 = vrot.slane %v2922_v41, 5  ;;  %v2928_v29 = vrot.slane %v2926_v45, 4  ;;  %v7139_v44 = vld [vmem:[#allocation2 + $0x54] sm:$0xf]  ;;  %v7145_v45 = vld [vmem:[#allocation2 + $0x6c] sm:$0xf] }
  0xe4   : > { %6578 = vmatpush3.bf16.msra.mxu1 %v2095_v10  ;;  %6549 = vmatprep.mubr.msk.bf16.mxu1 %vm1327_vm8, %v5947_v27  ;;  %v673_v14 = vsel %vm7347_vm11, %v665_v42, %v672_v54  ;;  %v839_v6 = vsel %vm7353_vm12, %v674_v23, %v838_v46  ;;  %836 = vst [vmem:[#allocation2 + $0xc0] sm:$0xf] %v835_v12  ;;  %v2932_v56 = vshll.u32 %v7926_v60, 16  ;;  %v1893_v39 = vrot.slane %v7958_v35, 5  ;;  %v8026_v46 = vld [vmem:[#allocation2 + $0x58] sm:$0xf] }
  0xe5   : > { %7076 = vmatprep.subr.msk.bf16.mxu1 %vm1376_vm0, %v7975_v0  ;;  %837 = vst.msk [vmem:[#allocation2 + $0xc4] sm:$0xf] %vm248_vm1, %v673_v14  ;;  %840 = vst [vmem:[#allocation2 + $0xc8] sm:$0x1] %v839_v6  ;;  %v2929_v13 = vor.u32 %v2928_v29, %v8015_v40  ;;  %v5952_v53 = vcombine.low %v7139_v44, %v8026_v46  ;;  %v1886_v42 = vrot.slane %v7932_v4, 5  ;;  %v1900_v35 = vrot.slane %v7964_v55, 5 }
  0xe6   : > { %9165 = vst [vmem:[#allocation4_spill] sm:$0xff] %v8015_v40  ;;  %v7141_v54 = vld [vmem:[#allocation2 + $0x60] sm:$0xf]  ;;  %v8031_v23 = vld [vmem:[#allocation2 + $0x64] sm:$0xf]  ;;  %v1907_v6 = vrot.slane %v7990_v18, 5  ;;  %v5956_v44 = vcombine.low %v7780_v21, %v7782_v49 }
  0xe7   : > { %v5953_v43 = vcombine.low %v7141_v54, %v8031_v23  ;;  %v1834_v60 = vld [vmem:[#allocation2 + $0xc] sm:$0xe]  ;;  %v1835_v14 = vld [vmem:[#allocation2 + $0x18] sm:$0xe]  ;;  %v1836_v12 = vld [vmem:[#allocation2 + $0x24] sm:$0xe] }
  0xe8   : > { %6706 = vmatmul.mubr.msk.bf16.gmra.mrb[24].mxu0 %vm1327_vm8, %v6122_v5  ;;  %v7143_v5 = vld [vmem:[#allocation2 + $0x8] sm:$0x1]  ;;  %v8037_v4 = vrot.slane %v2929_v13, 4  ;;  %v8039_v41 = vrot.slane %v2932_v56, 5  ;;  %v1895_v61 = vrot.slane %v1893_v39, 4  ;;  %v7094_v18 = vld [vmem:[#allocation2 + $0x30] sm:$0xff]   ;;  %v5955_v56 = vcombine.low %v7766_v51, %v7769_v25 }
  0xe9   : > { %6709 = vmatprep.mubr.msk.bf16.mxu0 %vm1327_vm8, %v6123_v62  ;;  %v1889_v62 = vrot.slane %v7143_v5, 5  ;;  %v7093_v55 = vld [vmem:[#allocation2 + $0x24] sm:$0xff]   ;;  %v5980_v29 = vrot.slane %v1836_v12, 9  ;;  %v1914_v13 = vrot.slane %v7999_v59, 5  ;;  %v1838_v54 = vld [vmem:[#allocation2 + $0x3c] sm:$0xe] }
  0xea   : > { %9166 = vst [vmem:[#allocation5_spill] sm:$0xff] %v8037_v4  ;;  %9167 = vst [vmem:[#allocation6_spill] sm:$0xff] %v8039_v41  ;;  %v4208_v21 = vld [vmem:[#allocation2 + $0x2c] sm:$0x1]  ;;  %vm5431_vm1 = vcmask 261120  }
  0xeb   : > { %6550 = vmatmul.mubr.msk.bf16.gmra.mrb[4].mxu1 %vm1327_vm8, %v5948_v63  ;;  %v3389_v27 = vld [vmem:[#allocation2 + $0xc0] sm:$0xe]  ;;  %v7158_v4 = vld [vmem:[#allocation2 + $0x8c] sm:$0x1] }
  0xec   : > { %6553 = vmatprep.mubr.msk.bf16.mxu1 %vm1327_vm8, %v5949_v17  ;;  %v2694_v24 = vld [vmem:[#allocation2 + $0xc4] sm:$0xf]  ;;  %v2695_v2 = vld [vmem:[#allocation2 + $0xc8] sm:$0x1]  ;;  %v6107_v7 = vrot.slane %v3389_v27, 9  ;;  %v1896_v17 = vrot.slane %v7144_v38, 5 }
  0xed   : > { %v3545_v10 = vrot.slane %v2694_v24, 5  ;;  %v3548_v9 = vrot.slane %v2695_v2, 5  ;;  %v1833_v63 = vld [vmem:[#allocation2] sm:$0xe]  ;;  %v1888_v2 = vrot.slane %v1886_v42, 4  ;;  %v5978_v27 = vrot.slane %v1834_v60, 9 }
  0xee   : > { %v5977_v24 = vrot.slane %v1833_v63, 9  ;;  %v8089_v60 = vsel %vm7616_vm15, %v5980_v29, %v1907_v6  ;;  %v5982_v38 = vrot.slane %v1838_v54, 9  ;;  %v4206_v54 = vld [vmem:[#allocation2 + $0x24] sm:$0xf]  ;;  %v1966_v41 = vrot.slane %v7158_v4, 5 }
  0xef   : > { %v3546_v28 = vsel %vm7616_vm15, %v6107_v7, %v3545_v10  ;;  %v3547_v47 = vrot.slane %v3545_v10, 4  ;;  %v1902_v7 = vrot.slane %v1900_v35, 4  ;;  %v7147_v10 = vld [vmem:[#allocation2 + $0x20] sm:$0x1]  ;;  %v8068_v51 = vsel %vm7616_vm15, %v1888_v2, %v1889_v62  ;;  %v1839_v2 = vld [vmem:[#allocation2 + $0x48] sm:$0xe] }
  0xf0   : > { %v8064_v59 = vsel %vm7616_vm15, %v5977_v24, %v1886_v42  ;;  %v8072_v25 = vsel %vm7616_vm15, %v5978_v27, %v1893_v39  ;;  %v1916_v62 = vrot.slane %v1914_v13, 4 }
  0xf1   : > { %v3549_v33 = vsel %vm7616_vm15, %v3547_v47, %v3548_v9  ;;  %v1903_v9 = vrot.slane %v7147_v10, 5  ;;  %v1909_v47 = vrot.slane %v1907_v6, 4  ;;  %v4203_v10 = vld [vmem:[#allocation2 + $0x18] sm:$0xf] }
  0xf2   : > { %v6124_v15 = vcombine.low %v3546_v28, %v3549_v33  ;;  %v4734_v28 = vsel %vm1376_vm0, %v7723_v1, 0  ;;  %v7148_v33 = vld [vmem:[#allocation2 + $0x2c] sm:$0x1]  ;;  %v8059_v1 = vld [vmem:[%s9135_s1 + $0x10] sm:$0x3] }
  0xf3   : > { %6554 = vmatmul.mubr.msk.bf16.gmra.mrb[8].mxu1 %vm1327_vm8, %v5950_v50  ;;  %v5954_v50 = vcombine.low %v7145_v45, %v8041_v52  ;;  %v8085_v42 = vsel %vm7616_vm15, %v1902_v7, %v1903_v9  ;;  %v1840_v7 = vld [vmem:[#allocation2 + $0x54] sm:$0xe]  ;;  %v7096_v9 = vld [vmem:[#allocation2 + $0x48] sm:$0xff]  }
  0xf4   : > { %6557 = vmatprep.mubr.msk.bf16.mxu1 %vm1327_vm8, %v5951_v58  ;;  %6710 = vmatmul.mubr.msk.bf16.gmra.mrb[28].mxu0 %vm1327_vm8, %v6124_v15  ;;  %v5979_v58 = vrot.slane %v1835_v14, 9  ;;  %v1837_v15 = vld [vmem:[#allocation2 + $0x30] sm:$0xe]  ;;  %v7149_v14 = vld [vmem:[#allocation2 + $0x38] sm:$0x1] }
  0xf5   : > { %6715 = vmatprep.mubr.msk.bf16.mxu0 %vm1327_vm8, %v7092_v32  ;;  %v1910_v32 = vrot.slane %v7148_v33, 5  ;;  %v5981_v39 = vrot.slane %v1837_v15, 9  ;;  %v1917_v12 = vrot.slane %v7149_v14, 5  ;;  %v7151_v15 = vld [vmem:[#allocation2 + $0x50] sm:$0x1] }
  0xf6   : > { %v8081_v63 = vsel %vm7616_vm15, %v5979_v58, %v1900_v35  ;;  %v7095_v35 = vld [vmem:[#allocation2 + $0x3c] sm:$0xff]   ;;  %v1928_v58 = vrot.slane %v8012_v57, 5 }
  0xf7   : > { %v8093_v5 = vsel %vm7616_vm15, %v1909_v47, %v1910_v32  ;;  %v4204_v47 = vld [vmem:[#allocation2 + $0x1c] sm:$0xf]  ;;  %v8124_v57 = vsel %vm7616_vm15, %v1916_v62, %v1917_v12  ;;  %v5983_v32 = vrot.slane %v1839_v2, 9  ;;  %v1935_v12 = vrot.slane %v8026_v46, 5  ;;  %v1842_v46 = vld [vmem:[#allocation2 + $0x6c] sm:$0xe] }
  0xf8   : > { %v1930_v62 = vrot.slane %v1928_v58, 4  ;;  %v4261_v29 = vshll.u32 %v4204_v47, 16  ;;  %v7152_v2 = vld [vmem:[#allocation2 + $0x5c] sm:$0x1] }
  0xfa   : > { %v8158_v27 = vrot.slane %v4261_v29, 5  ;;  %v4212_v29 = vld [vmem:[#allocation2 + $0x3c] sm:$0xf] }
  0xfb   : > { %6558 = vmatmul.mubr.msk.bf16.gmra.mrb[12].mxu1 %vm1327_vm8, %v5952_v53  ;;  %v5957_v53 = vcombine.low %v7825_v22, %v7827_v11  ;;  %v4209_v11 = vld [vmem:[#allocation2 + $0x30] sm:$0xf] }
  0xfc   : > { %6561 = vmatprep.mubr.msk.bf16.mxu1 %vm1327_vm8, %v5953_v43  ;;  %v1921_v43 = vrot.slane %v8009_v20, 5  ;;  %6716 = vmatmul.mubr.msk.bf16.vlgmr.msra.gmra.mrb[0].mxu0 %vm1327_vm8, %v7093_v55  ;;  %v8076_v20 = vsel %vm7616_vm15, %v1895_v61, %v1896_v17  ;;  %v7150_v55 = vld [vmem:[#allocation2 + $0x44] sm:$0x1] }
  0xfd   : > { %6748 = vmatpush3.bf16.msra.mxu0 %v4734_v28  ;;  %6719 = vmatprep.mubr.msk.bf16.mxu0 %vm1327_vm8, %v7094_v18  ;;  %v1924_v24 = vrot.slane %v7150_v55, 5  ;;  %v8108_v18 = vsel %vm1376_vm0, %v7975_v0, 0  ;;  %v8120_v0 = vsel %vm7616_vm15, %v5981_v39, %v1914_v13  ;;  %v5984_v55 = vrot.slane %v1840_v7, 9  ;;  %v4207_v28 = vld [vmem:[#allocation2 + $0x28] sm:$0xf] }
  0xfe   : > { %7082 = vmatprep.subr.msk.bf16.mxu0 %vm1376_vm0, %v8059_v1  ;;  %v1923_v45 = vrot.slane %v1921_v43, 4  ;;  %v8128_v33 = vsel %vm7616_vm15, %v5982_v38, %v1921_v43  ;;  %v4252_v13 = vshrl.u32 %v4203_v10, 16  ;;  %v4255_v39 = vshll.u32 %v4203_v10, 16  ;;  %v1841_v10 = vld [vmem:[#allocation2 + $0x60] sm:$0xe] }
  0xff   : > { %v4265_v43 = vshrl.u32 %v4204_v47, 16  ;;  %v4285_v61 = vshll.u32 %v4207_v28, 16  ;;  %v4289_v47 = vshrl.u32 %v4207_v28, 16  ;;  %v1937_v28 = vrot.slane %v1935_v12, 4  ;;  %v4205_v7 = vld [vmem:[#allocation2 + $0x20] sm:$0x1] }
 0x100   : > { %v8132_v14 = vsel %vm7616_vm15, %v1923_v45, %v1924_v24  ;;  %v4276_v45 = vshrl.u32 %v4206_v54, 16  ;;  %v4279_v24 = vshll.u32 %v4206_v54, 16  ;;  %v4254_v38 = vrot.slane %v4252_v13, 4 }
 0x101   : > { %v4257_v54 = vrot.slane %v4255_v39, 5  ;;  %v5986_v13 = vrot.slane %v1842_v46, 9  ;;  %v7153_v39 = vld [vmem:[#allocation2 + $0x68] sm:$0x1]  ;;  %v4271_v22 = vshll.u32 %v4205_v7, 16 }
 0x102   : > { %v4278_v49 = vrot.slane %v4276_v45, 4  ;;  %v1945_v6 = vrot.slane %v7153_v39, 5  ;;  %v7154_v45 = vld [vmem:[#allocation2 + $0x74] sm:$0x1]  ;;  %v7155_v7 = vld [vmem:[#allocation2 + $0x7c] sm:$0xf] }
 0x103   : > { %6562 = vmatmul.mubr.msk.bf16.gmra.mrb[16].mxu1 %vm1327_vm8, %v5954_v50  ;;  %v7097_v50 = vld [vmem:[#allocation2 + $0x54] sm:$0xff]   ;;  %v4258_v17 = vor.u32 %v4257_v54, %v4254_v38  ;;  %v1956_v46 = vrot.slane %v7155_v7, 5  ;;  %v4273_v39 = vrot.slane %v4271_v22, 5 }
 0x104   : > { %6565 = vmatprep.mubr.msk.bf16.mxu1 %vm1327_vm8, %v5955_v56  ;;  %v1931_v56 = vrot.slane %v7151_v15, 5  ;;  %6720 = vmatmul.mubr.msk.bf16.gmra.mrb[4].mxu0 %vm1327_vm8, %v7095_v35  ;;  %v1938_v15 = vrot.slane %v7152_v2, 5  ;;  %v8143_v35 = vsel %vm7616_vm15, %v5983_v32, %v1928_v58  ;;  %v1942_v2 = vrot.slane %v8031_v23, 5  ;;  %v7098_v58 = vld [vmem:[#allocation2 + $0x60] sm:$0xff]  }
 0x105   : > { %6723 = vmatprep.mubr.msk.bf16.mxu0 %vm1327_vm8, %v7096_v9  ;;  %9168 = vst [vmem:[#allocation7_spill] sm:$0xff] %v8143_v35  ;;  %v8147_v9 = vsel %vm7616_vm15, %v5984_v55, %v1935_v12  ;;  %v4267_v55 = vrot.slane %v4265_v43, 4  ;;  %v5985_v23 = vrot.slane %v1841_v10, 9  ;;  %v4291_v12 = vrot.slane %v4289_v47, 4 }
 0x106   : > { %v8156_v32 = vsel %vm7616_vm15, %v1930_v62, %v1931_v56  ;;  %v1949_v56 = vrot.slane %v8041_v52, 5  ;;  %v8165_v62 = vrot.slane %v4285_v61, 5  ;;  %v1944_v43 = vrot.slane %v1942_v2, 4 }
 0x107   : > { %9169 = vst [vmem:[#allocation8_spill] sm:$0xff] %v8156_v32  ;;  %v4268_v52 = vor.u32 %v4267_v55, %v8158_v27  ;;  %v4295_v61 = vshll.u32 %v4208_v21, 16  ;;  %v8178_v10 = vsel %vm7616_vm15, %v5985_v23, %v1942_v2  ;;  %v4300_v55 = vshrl.u32 %v4209_v11, 16 }
 0x108   : > { %v8182_v38 = vsel %vm7616_vm15, %v5986_v13, %v1949_v56  ;;  %v1951_v47 = vrot.slane %v1949_v56, 4  ;;  %v4292_v54 = vor.u32 %v4291_v12, %v8165_v62  ;;  %v4303_v21 = vshll.u32 %v4209_v11, 16  ;;  %v1844_v13 = vld [vmem:[#allocation2 + $0x84] sm:$0xe] }
 0x109   : > { %v8189_v2 = vsel %vm7616_vm15, %v1944_v43, %v1945_v6  ;;  %v4259_v23 = vrot.slane %v4258_v17, 4  ;;  %v4269_v56 = vrot.slane %v4268_v52, 4  ;;  %v4297_v12 = vrot.slane %v4295_v61, 5  ;;  %v7100_v17 = vld [vmem:[#allocation2 + $0x78] sm:$0xff]  }
 0x10a   : > { %v9172_v6 = vcombine.low %v7868_v16, %v7885_v37  ;;  %v4302_v52 = vrot.slane %v4300_v55, 4  ;;  %v4305_v61 = vrot.slane %v4303_v21, 5  ;;  %v4324_v32 = vshrl.u32 %v4212_v29, 16 }
 0x10b   : > { %6566 = vmatmul.mubr.msk.bf16.gmra.mrb[20].mxu1 %vm1327_vm8, %v5956_v44  ;;  %v4281_v44 = vrot.slane %v4279_v24, 5  ;;  %v1952_v24 = vrot.slane %v7154_v45, 5  ;;  %v7156_v45 = vld [vmem:[#allocation2 + $0x88] sm:$0xf]  ;;  %v4327_v35 = vshll.u32 %v4212_v29, 16  ;;  %v4274_v4 = vsel %vm7335_vm9, %v4269_v56, %v4273_v39 }
 0x10c   : > { %6569 = vmatprep.mubr.msk.bf16.mxu1 %vm1327_vm8, %v5957_v53  ;;  %6724 = vmatmul.mubr.msk.bf16.gmra.mrb[8].mxu0 %vm1327_vm8, %v7097_v50  ;;  %v8172_v53 = vsel %vm7616_vm15, %v1937_v28, %v1938_v15  ;;  %v8184_v15 = vld [vmem:[#allocation2 + $0x34] sm:$0xf]  ;;  %v1843_v28 = vld [vmem:[#allocation2 + $0x78] sm:$0xe]  ;;  %v4306_v21 = vor.u32 %v4305_v61, %v4302_v52  ;;  %v7101_v56 = vld [vmem:[#allocation2 + $0x84] sm:$0xff]  }
 0x10d   : > { %6727 = vmatprep.mubr.msk.bf16.mxu0 %vm1327_vm8, %v7098_v58  ;;  %v4282_v50 = vor.u32 %v4281_v44, %v4278_v49  ;;  %9170 = vst [vmem:[#allocation9_spill] sm:$0xff] %v8184_v15  ;;  %v7099_v58 = vld [vmem:[#allocation2 + $0x6c] sm:$0xff]   ;;  %v1963_v49 = vrot.slane %v7156_v45, 5  ;;  %v9171_v44 = vcombine.low %v7846_v26, %v7854_v31  ;;  %v4309_v7 = vshll.u32 %v8184_v15, 16 }
 0x10e   : > { %v4313_v11 = vshrl.u32 %v8184_v15, 16  ;;  %v5987_v22 = vrot.slane %v1843_v28, 9  ;;  %v1958_v45 = vrot.slane %v1956_v46, 4  ;;  %v1959_v26 = vrot.slane %v7157_v3, 5  ;;  %v8201_v15 = vld [vmem:[#allocation2 + $0x38] sm:$0x1] }
 0x10f   : > { %v4283_v43 = vrot.slane %v4282_v50, 4  ;;  %v4293_v31 = vrot.slane %v4292_v54, 4  ;;  %v1965_v40 = vrot.slane %v1963_v49, 4  ;;  %9173 = vst [vmem:[#allocation10_spill] sm:$0xff] %v8201_v15  ;;  %v8206_v16 = vsel %vm7616_vm15, %v1951_v47, %v1952_v24  ;;  %v8213_v28 = vld [vmem:[#allocation2 + $0x40] sm:$0xf] }
 0x110   : > { %v4264_v3 = vsel %vm7335_vm9, %v4259_v23, %v8158_v27  ;;  %v8211_v50 = vrot.slane %v4309_v7, 5  ;;  %v4315_v54 = vrot.slane %v4313_v11, 4  ;;  %9174 = vst [vmem:[#allocation11_spill] sm:$0xff] %v8213_v28  ;;  %v8223_v24 = vsel %vm7616_vm15, %v5987_v22, %v1956_v46  ;;  %v7102_v7 = vld [vmem:[#allocation2 + $0x90] sm:$0xff]   ;;  %v4215_v22 = vld [vmem:[#allocation2 + $0x48] sm:$0xf] }
 0x111   : > { %v4288_v29 = vsel %vm7335_vm9, %v4283_v43, %v8165_v62  ;;  %v8227_v27 = vsel %vm7616_vm15, %v1958_v45, %v1959_v26  ;;  %v4298_v47 = vsel %vm7335_vm9, %v4293_v31, %v4297_v12  ;;  %v8238_v62 = vsel %vm7616_vm15, %v1965_v40, %v1966_v41  ;;  %v8268_v45 = vld [vmem:[#allocation2 + $0x4c] sm:$0xf] }
 0x112   : > { %v4326_v46 = vrot.slane %v4324_v32, 4  ;;  %v4329_v23 = vrot.slane %v4327_v35, 5  ;;  %v4333_v39 = vshll.u32 %v8213_v28, 16  ;;  %v4316_v41 = vor.u32 %v4315_v54, %v8211_v50  ;;  %v8252_v35 = vld [vmem:[#allocation2 + $0x44] sm:$0x1] }
 0x113   : > { %6570 = vmatmul.mubr.msk.bf16.gmra.mrb[24].mxu1 %vm1327_vm8, %v9171_v44  ;;  %v5988_v44 = vrot.slane %v1844_v13, 9  ;;  %v9175_v13 = vcombine.low %v7904_v36, %v7915_v19  ;;  %9176 = vst [vmem:[#allocation12_spill] sm:$0xff] %v8252_v35  ;;  %v1845_v32 = vld [vmem:[#allocation2 + $0x90] sm:$0xe]  ;;  %v9177_v36 = vcombine.low %v8064_v59, %v8068_v51  ;;  %v8258_v11 = vcombine.low %v4264_v3, %v4274_v4  ;;  %v8276_v54 = vld [vmem:[#allocation2 + $0x58] sm:$0xf] }
 0x114   : > { %6573 = vmatprep.mubr.msk.bf16.mxu1 %vm1327_vm8, %v9172_v6  ;;  %6728 = vmatmul.mubr.msk.bf16.gmra.mrb[12].mxu0 %vm1327_vm8, %v7099_v58  ;;  %v4319_v58 = vshll.u32 %v8201_v15, 16  ;;  %v8260_v6 = vcombine.low %v4288_v29, %v4298_v47  ;;  %v4307_v51 = vrot.slane %v4306_v21, 4  ;;  %v4337_v31 = vshrl.u32 %v8213_v28, 16  ;;  %9178 = vst [vmem:[#allocation13_spill] sm:$0xff] %v8276_v54  ;;  %v7159_v29 = vld [vmem:[#allocation2 + $0x94] sm:$0xf] }
 0x115   : > { %6731 = vmatprep.mubr.msk.bf16.mxu0 %vm1327_vm8, %v7100_v17  ;;  %v8233_v55 = vsel %vm7616_vm15, %v5988_v44, %v1963_v49  ;;  %v8264_v17 = vsel %vm1376_vm0, %v8059_v1, 0  ;;  %v4218_v44 = vld [vmem:[#allocation2 + $0x54] sm:$0xf]  ;;  %v4330_v52 = vor.u32 %v4329_v23, %v4326_v46  ;;  %v8273_v61 = vrot.slane %v4333_v39, 5  ;;  %v7104_v49 = vld [vmem:[#allocation2 + $0xa8] sm:$0xff]  }
 0x116   : > { %v4321_v26 = vrot.slane %v4319_v58, 5  ;;  %v4343_v1 = vshll.u32 %v8252_v35, 16  ;;  %v5989_v3 = vrot.slane %v1845_v32, 9  ;;  %v4317_v4 = vrot.slane %v4316_v41, 4  ;;  %v1848_v28 = vld [vmem:[#allocation2 + $0xb4] sm:$0xe] }
 0x117   : > { %v1970_v47 = vrot.slane %v7159_v29, 5  ;;  %v4351_v21 = vshll.u32 %v4215_v22, 16  ;;  %v4357_v58 = vshll.u32 %v8268_v45, 16  ;;  %v4361_v46 = vshrl.u32 %v8268_v45, 16  ;;  %v7103_v29 = vld [vmem:[#allocation2 + $0x9c] sm:$0xff]  }
 0x118   : > { %v4372_v23 = vshrl.u32 %v4218_v44, 16  ;;  %v4375_v39 = vshll.u32 %v4218_v44, 16  ;;  %v4312_v32 = vsel %vm7335_vm9, %v4307_v51, %v8211_v50  ;;  %v4339_v59 = vrot.slane %v4337_v31, 4  ;;  %v8297_v31 = vld [vmem:[#allocation2 + $0x50] sm:$0x1] }
 0x119   : > { %v4385_v41 = vshrl.u32 %v8276_v54, 16  ;;  %v8287_v43 = vrot.slane %v4330_v52, 4  ;;  %v9179_v44 = vcombine.low %v8072_v25, %v8076_v20  ;;  %v4322_v50 = vsel %vm7335_vm9, %v4317_v4, %v4321_v26  ;;  %9180 = vst [vmem:[#allocation14_spill] sm:$0xff] %v8297_v31  ;;  %v8306_v20 = vld [vmem:[#allocation2 + $0x5c] sm:$0x1] }
 0x11a   : > { %v1972_v51 = vrot.slane %v1970_v47, 4  ;;  %v4353_v52 = vrot.slane %v4351_v21, 5  ;;  %v4363_v25 = vrot.slane %v4361_v46, 4  ;;  %9182 = vst [vmem:[#allocation15_spill] sm:$0xff] %v8306_v20  ;;  %v4340_v26 = vor.u32 %v4339_v59, %v8273_v61  ;;  %v7162_v21 = vld [vmem:[#allocation2 + $0xa0] sm:$0xf] }
 0x11b   : > { %6574 = vmatmul.mubr.msk.bf16.gmra.mrb[28].mxu1 %vm1327_vm8, %v9175_v13  ;;  %v1846_v13 = vld [vmem:[#allocation2 + $0x9c] sm:$0xe]  ;;  %v8311_v4 = vsel %vm7616_vm15, %v5989_v3, %v1970_v47  ;;  %v7163_v3 = vld [vmem:[#allocation2 + $0xa4] sm:$0x1]  ;;  %v4221_v46 = vld [vmem:[#allocation2 + $0x60] sm:$0xf] }
 0x11c   : > { %6579 = vmatprep.mubr.msk.bf16.mxu1 %vm1327_vm8, %v9177_v36  ;;  %6732 = vmatmul.mubr.msk.bf16.gmra.mrb[16].mxu0 %vm1327_vm8, %v7101_v56  ;;  %v4348_v36 = vshrl.u32 %v4215_v22, 16  ;;  %v4381_v56 = vshll.u32 %v8276_v54, 16  ;;  %v8289_v22 = vrot.slane %v4343_v1, 5  ;;  %v5990_v12 = vrot.slane %v1846_v13, 9 }
 0x11d   : > { %6735 = vmatprep.mubr.msk.bf16.mxu0 %vm1327_vm8, %v7102_v7  ;;  %v7160_v7 = vld [vmem:[#allocation2 + $0x98] sm:$0x1]  ;;  %v9181_v1 = vcombine.low %v8081_v63, %v8085_v42  ;;  %v8304_v13 = vrot.slane %v4357_v58, 5  ;;  %v7161_v63 = vld [vmem:[%s9135_s1 + $0x8] sm:$0x3]  ;;  %v8319_v42 = vcombine.low %v4312_v32, %v4322_v50  ;;  %v1977_v58 = vrot.slane %v7162_v21, 5 }
 0x11e   : > { %v1973_v40 = vrot.slane %v7160_v7, 5  ;;  %v4350_v35 = vrot.slane %v4348_v36, 4  ;;  %v4374_v7 = vrot.slane %v4372_v23, 4  ;;  %v8313_v36 = vrot.slane %v4381_v56, 5 }
 0x11f   : > { %v1980_v47 = vrot.slane %v7163_v3, 5  ;;  %v4367_v32 = vshll.u32 %v8297_v31, 16  ;;  %v4391_v56 = vshll.u32 %v8306_v20, 16  ;;  %v8337_v50 = vsel %vm7616_vm15, %v5990_v12, %v1977_v58 }
 0x120   : > { %v8328_v23 = vsel %vm7616_vm15, %v1972_v51, %v1973_v40  ;;  %v1984_v40 = vrot.slane %v7885_v37, 5  ;;  %v7105_v51 = vld [vmem:[#allocation2 + $0xb4] sm:$0xff]   ;;  %v4396_v21 = vshrl.u32 %v4221_v46, 16  ;;  %v4399_v3 = vshll.u32 %v4221_v46, 16 }
 0x121   : > { %v1979_v59 = vrot.slane %v1977_v58, 4  ;;  %v9185_v58 = vcombine.low %v8120_v0, %v8124_v57 }
 0x122   : > { %v1986_v54 = vrot.slane %v1984_v40, 4 }
 0x123   : > { %6580 = vmatmul.mubr.msk.bf16.vlgmr.msra.gmra.mrb[0].mxu1 %vm1327_vm8, %v9179_v44  ;;  %v4377_v44 = vrot.slane %v4375_v39, 5  ;;  %v4354_v39 = vor.u32 %v4353_v52, %v4350_v35  ;;  %v4341_v35 = vrot.slane %v4340_v26, 4  ;;  %v8363_v57 = vsel %vm7616_vm15, %v1979_v59, %v1980_v47  ;;  %v8382_v47 = vld [vmem:[#allocation2 + $0x74] sm:$0x1] }
 0x124   : > { %6612 = vmatpush3.bf16.msra.mxu1 %v8108_v18  ;;  %6583 = vmatprep.mubr.msk.bf16.mxu1 %vm1327_vm8, %v9181_v1  ;;  %v4387_v18 = vrot.slane %v4385_v41, 4  ;;  %v8332_v41 = vld [vmem:[#allocation2 + $0x64] sm:$0xf]  ;;  %v4364_v1 = vor.u32 %v4363_v25, %v8304_v13  ;;  %v9184_v25 = vcombine.low %v8089_v60, %v8093_v5  ;;  %v5992_v60 = vrot.slane %v1848_v28, 9  ;;  %v8367_v28 = vld [vmem:[#allocation2 + $0x70] sm:$0xf] }
 0x125   : > { %7078 = vmatprep.subr.msk.bf16.mxu1 %vm1376_vm0, %v7161_v63  ;;  %6736 = vmatmul.mubr.msk.bf16.gmra.mrb[20].mxu0 %vm1327_vm8, %v7103_v29  ;;  %9183 = vst [vmem:[#allocation16_spill] sm:$0xff] %v8332_v41  ;;  %v4378_v29 = vor.u32 %v4377_v44, %v4374_v7  ;;  %v1847_v63 = vld [vmem:[#allocation2 + $0xa8] sm:$0xe]  ;;  %v4405_v15 = vshll.u32 %v8332_v41, 16  ;;  %v4409_v12 = vshrl.u32 %v8332_v41, 16  ;;  %v4355_v37 = vrot.slane %v4354_v39, 4 }
 0x126   : > { %6739 = vmatprep.mubr.msk.bf16.mxu0 %vm1327_vm8, %v7104_v49  ;;  %v4388_v52 = vor.u32 %v4387_v18, %v8313_v36  ;;  %v1991_v49 = vrot.slane %v7915_v19, 5  ;;  %v4369_v7 = vrot.slane %v4367_v32, 5  ;;  %v4393_v44 = vrot.slane %v4391_v56, 5  ;;  %v4224_v18 = vld [vmem:[#allocation2 + $0x6c] sm:$0xf]  ;;  %v7106_v19 = vld [vmem:[#allocation2 + $0xc0] sm:$0xff]  }
 0x127   : > { %v5991_v26 = vrot.slane %v1847_v63, 9  ;;  %v4365_v46 = vrot.slane %v4364_v1, 4  ;;  %v4379_v20 = vrot.slane %v4378_v29, 4  ;;  %v1987_v41 = vrot.slane %v7887_v8, 5  ;;  %v8365_v8 = vld [vmem:[#allocation2 + $0x68] sm:$0x1] }
 0x128   : > { %v4389_v31 = vrot.slane %v4388_v52, 4  ;;  %v4398_v5 = vrot.slane %v4396_v21, 4  ;;  %v1993_v39 = vrot.slane %v1991_v49, 4  ;;  %v1994_v32 = vrot.slane %v7917_v30, 5 }
 0x129   : > { %v8355_v56 = vrot.slane %v4405_v15, 5  ;;  %v4411_v63 = vrot.slane %v4409_v12, 4  ;;  %v4346_v0 = vsel %vm7335_vm9, %v4341_v35, %v8289_v22  ;;  %v4420_v1 = vshrl.u32 %v4224_v18, 16 }
 0x12a   : > { %v4423_v29 = vshll.u32 %v4224_v18, 16  ;;  %v4360_v30 = vsel %vm7335_vm9, %v4355_v37, %v8304_v13  ;;  %v4370_v15 = vsel %vm7335_vm9, %v4365_v46, %v4369_v7  ;;  %v4384_v22 = vsel %vm7335_vm9, %v4379_v20, %v8313_v36  ;;  %v9187_v7 = vld [vmem:[#allocation7_spill] sm:$0xff] }
 0x12b   : > { %6584 = vmatmul.mubr.msk.bf16.gmra.mrb[4].mxu1 %vm1327_vm8, %v9184_v25  ;;  %v4401_v25 = vrot.slane %v4399_v3, 5  ;;  %v8380_v59 = vsel %vm7616_vm15, %v5991_v26, %v1984_v40  ;;  %v8388_v35 = vsel %vm7616_vm15, %v1986_v54, %v1987_v41  ;;  %v8392_v13 = vsel %vm7616_vm15, %v5992_v60, %v1991_v49  ;;  %v7107_v41 = vld [vmem:[#allocation2 + $0xcc] sm:$0xff]   ;;  %v8424_v46 = vld [vmem:[#allocation2 + $0x7c] sm:$0xf] }
 0x12c   : > { %6587 = vmatprep.mubr.msk.bf16.mxu1 %vm1327_vm8, %v9185_v58  ;;  %v8396_v20 = vsel %vm7616_vm15, %v1993_v39, %v1994_v32  ;;  %v4412_v36 = vor.u32 %v4411_v63, %v8355_v56  ;;  %v4415_v40 = vshll.u32 %v8365_v8, 16  ;;  %v4429_v21 = vshll.u32 %v8367_v28, 16 }
 0x12d   : > { %6740 = vmatmul.mubr.msk.bf16.gmra.mrb[24].mxu0 %vm1327_vm8, %v7105_v51  ;;  %v4394_v51 = vsel %vm7335_vm9, %v4389_v31, %v4393_v44  ;;  %v4402_v52 = vor.u32 %v4401_v25, %v4398_v5  ;;  %v4227_v31 = vld [vmem:[#allocation2 + $0x78] sm:$0xf]  ;;  %v9186_v54 = vcombine.low %v8128_v33, %v8132_v14  ;;  %v4422_v3 = vrot.slane %v4420_v1, 4  ;;  %v9188_v44 = vld [vmem:[#allocation8_spill] sm:$0xff] }
 0x12e   : > { %6743 = vmatprep.mubr.msk.bf16.mxu0 %vm1327_vm8, %v7106_v19  ;;  %v4425_v49 = vrot.slane %v4423_v29, 5  ;;  %v4433_v12 = vshrl.u32 %v8367_v28, 16  ;;  %v4439_v37 = vshll.u32 %v8382_v47, 16  ;;  %v9189_v26 = vcombine.low %v9187_v7, %v9188_v44  ;;  %v4233_v29 = vld [vmem:[#allocation2 + $0x90] sm:$0xf] }
 0x12f   : > { %v9190_v18 = vsel %vm7335_vm9, %v8287_v43, %v8273_v61  ;;  %v8422_v19 = vcombine.low %v4360_v30, %v4370_v15  ;;  %v8426_v60 = vcombine.low %v4384_v22, %v4394_v51  ;;  %v4403_v25 = vrot.slane %v4402_v52, 4  ;;  %v4230_v43 = vld [vmem:[#allocation2 + $0x84] sm:$0xf]  ;;  %v8430_v61 = vld [vmem:[#allocation2 + $0x88] sm:$0xf] }
 0x130   : > { %v8416_v33 = vcombine.low %v9190_v18, %v4346_v0  ;;  %v4444_v39 = vshrl.u32 %v4227_v31, 16  ;;  %v4413_v63 = vrot.slane %v4412_v36, 4  ;;  %v4417_v0 = vrot.slane %v4415_v40, 5  ;;  %v8439_v52 = vld [vmem:[#allocation2 + $0x94] sm:$0xf] }
 0x131   : > { %v8434_v1 = vrot.slane %v4429_v21, 5  ;;  %v4426_v30 = vor.u32 %v4425_v49, %v4422_v3  ;;  %v4435_v15 = vrot.slane %v4433_v12, 4  ;;  %v8437_v22 = vrot.slane %v4439_v37, 5  ;;  %v4236_v44 = vld [vmem:[#allocation2 + $0x9c] sm:$0xf] }
 0x132   : > { %v4447_v51 = vshll.u32 %v4227_v31, 16  ;;  %v4457_v36 = vshrl.u32 %v8424_v46, 16  ;;  %v4468_v40 = vshrl.u32 %v4230_v43, 16  ;;  %v4471_v21 = vshll.u32 %v4230_v43, 16  ;;  %v8469_v5 = vld [vmem:[#allocation2 + $0xa0] sm:$0xf] }
 0x133   : > { %6588 = vmatmul.mubr.msk.bf16.gmra.mrb[8].mxu1 %vm1327_vm8, %v9186_v54  ;;  %v4453_v54 = vshll.u32 %v8424_v46, 16  ;;  %v4446_v3 = vrot.slane %v4444_v39, 4  ;;  %v4477_v49 = vshll.u32 %v8430_v61, 16  ;;  %v4481_v31 = vshrl.u32 %v8430_v61, 16  ;;  %v8461_v39 = vld [vmem:[#allocation2 + $0x80] sm:$0x1] }
 0x134   : > { %6591 = vmatprep.mubr.msk.bf16.mxu1 %vm1327_vm8, %v9189_v26  ;;  %v4492_v12 = vshrl.u32 %v4233_v29, 16  ;;  %v4495_v37 = vshll.u32 %v4233_v29, 16  ;;  %v4501_v7 = vshll.u32 %v8439_v52, 16  ;;  %v9191_v26 = vcombine.low %v8147_v9, %v8172_v53  ;;  %9193 = vst [vmem:[#allocation7_spill] sm:$0xff] %v8469_v5 }
 0x135   : > { %6744 = vmatmul.mubr.msk.bf16.gmra.mrb[28].mxu0 %vm1327_vm8, %v7107_v41  ;;  %v4408_v41 = vsel %vm7335_vm9, %v4403_v25, %v8355_v56  ;;  %v4418_v56 = vsel %vm7335_vm9, %v4413_v63, %v4417_v0  ;;  %v8458_v18 = vrot.slane %v4426_v30, 4  ;;  %v4436_v25 = vor.u32 %v4435_v15, %v8434_v1  ;;  %v8471_v63 = vld [vmem:[#allocation2 + $0x8c] sm:$0x1] }
 0x136   : > { %6749 = vmatprep.mubr.msk.bf16.mxu0 %vm1327_vm8, %v8258_v11  ;;  %v4505_v11 = vshrl.u32 %v8439_v52, 16  ;;  %v4449_v43 = vrot.slane %v4447_v51, 5  ;;  %v9192_v29 = vcombine.low %v8178_v10, %v8189_v2  ;;  %v8467_v32 = vrot.slane %v4453_v54, 5  ;;  %v8475_v51 = vld [vmem:[#allocation2 + $0x98] sm:$0x1] }
 0x137   : > { %v4459_v9 = vrot.slane %v4457_v36, 4  ;;  %v4470_v53 = vrot.slane %v4468_v40, 4  ;;  %v8473_v0 = vrot.slane %v4477_v49, 5  ;;  %v4483_v30 = vrot.slane %v4481_v31, 4  ;;  %9194 = vst [vmem:[#allocation8_spill] sm:$0xff] %v8475_v51 }
 0x138   : > { %v4516_v15 = vshrl.u32 %v4236_v44, 16  ;;  %v4519_v58 = vshll.u32 %v4236_v44, 16  ;;  %v4494_v14 = vrot.slane %v4492_v12, 4  ;;  %v4497_v10 = vrot.slane %v4495_v37, 5 }
 0x139   : > { %v8477_v2 = vrot.slane %v4501_v7, 5  ;;  %v4507_v54 = vrot.slane %v4505_v11, 4  ;;  %v8481_v36 = vcombine.low %v4408_v41, %v4418_v56  ;;  %v4463_v40 = vshll.u32 %v8461_v39, 16 }
 0x13a   : > { %v4529_v49 = vshrl.u32 %v8469_v5, 16  ;;  %v4450_v31 = vor.u32 %v4449_v43, %v4446_v3  ;;  %v4460_v12 = vor.u32 %v4459_v9, %v8467_v32  ;;  %v4487_v7 = vshll.u32 %v8471_v63, 16  ;;  %v8498_v43 = vld [vmem:[#allocation2 + $0xa4] sm:$0x1] }
 0x13b   : > { %6592 = vmatmul.mubr.msk.bf16.gmra.mrb[12].mxu1 %vm1327_vm8, %v9191_v26  ;;  %v4473_v26 = vrot.slane %v4471_v21, 5  ;;  %v4525_v21 = vshll.u32 %v8469_v5, 16  ;;  %v4484_v41 = vor.u32 %v4483_v30, %v8473_v0  ;;  %v4511_v11 = vshll.u32 %v8475_v51, 16 }
 0x13c   : > { %6595 = vmatprep.mubr.msk.bf16.mxu1 %vm1327_vm8, %v9192_v29  ;;  %v4518_v44 = vrot.slane %v4516_v15, 4  ;;  %v4521_v56 = vrot.slane %v4519_v58, 5  ;;  %v4437_v29 = vrot.slane %v4436_v25, 4  ;;  %v4508_v3 = vor.u32 %v4507_v54, %v8477_v2  ;;  %v8506_v58 = vld [vmem:[#allocation2 + $0xac] sm:$0xf] }
 0x13d   : > { %6750 = vmatmul.mubr.msk.bf16.vlgmr.msra.gmra.mrb[0].mxu0 %vm1327_vm8, %v8260_v6  ;;  %v4474_v37 = vor.u32 %v4473_v26, %v4470_v53  ;;  %v4239_v6 = vld [vmem:[#allocation2 + $0xa8] sm:$0xf]  ;;  %v9195_v9 = vcombine.low %v8182_v38, %v8206_v16  ;;  %v8504_v53 = vrot.slane %v4525_v21, 5  ;;  %v4531_v26 = vrot.slane %v4529_v49, 4 }
 0x13e   : > { %6782 = vmatpush3.bf16.msra.mxu0 %v8264_v17  ;;  %6753 = vmatprep.mubr.msk.bf16.mxu0 %vm1327_vm8, %v8319_v42  ;;  %v4432_v17 = vsel %vm7335_vm9, %v8458_v18, %v8434_v1  ;;  %v4498_v42 = vor.u32 %v4497_v10, %v4494_v14  ;;  %v4540_v30 = vshrl.u32 %v4239_v6, 16  ;;  %v4543_v15 = vshll.u32 %v4239_v6, 16  ;;  %v4242_v6 = vld [vmem:[#allocation2 + $0xb4] sm:$0xf] }
 0x13f   : > { %v9196_v1 = vcombine.low %v8223_v24, %v8227_v27  ;;  %v4451_v14 = vrot.slane %v4450_v31, 4  ;;  %v4461_v18 = vrot.slane %v4460_v12, 4  ;;  %v4465_v25 = vrot.slane %v4463_v40, 5 }
 0x140   : > { %v4475_v10 = vrot.slane %v4474_v37, 4  ;;  %v4485_v54 = vrot.slane %v4484_v41, 4  ;;  %v4489_v38 = vrot.slane %v4487_v7, 5  ;;  %v4513_v16 = vrot.slane %v4511_v11, 5  ;;  %v8531_v41 = vld [vmem:[#allocation2 + $0xb0] sm:$0x1] }
 0x141   : > { %v4499_v21 = vrot.slane %v4498_v42, 4  ;;  %v4509_v5 = vrot.slane %v4508_v3, 4  ;;  %v4535_v49 = vshll.u32 %v8498_v43, 16  ;;  %v4549_v51 = vshll.u32 %v8506_v58, 16 }
 0x142   : > { %v4532_v24 = vor.u32 %v4531_v26, %v8504_v53  ;;  %v4542_v27 = vrot.slane %v4540_v30, 4  ;;  %v4545_v31 = vrot.slane %v4543_v15, 5  ;;  %v4553_v40 = vshrl.u32 %v8506_v58, 16 }
 0x143   : > { %6596 = vmatmul.mubr.msk.bf16.gmra.mrb[16].mxu1 %vm1327_vm8, %v9195_v9  ;;  %v4522_v9 = vor.u32 %v4521_v56, %v4518_v44  ;;  %v4442_v12 = vsel %vm7335_vm9, %v4437_v29, %v8437_v22  ;;  %v4456_v37 = vsel %vm7335_vm9, %v4451_v14, %v8467_v32  ;;  %v4480_v7 = vsel %vm7335_vm9, %v4475_v10, %v8473_v0  ;;  %v8537_v44 = vld [vmem:[#allocation2 + $0xb8] sm:$0xf]  ;;  %v4933_v14 = vld [vmem:[#allocation2 + $0x48] sm:$0xe] }
 0x144   : > { %6599 = vmatprep.mubr.msk.bf16.mxu1 %vm1327_vm8, %v9196_v1  ;;  %v4564_v22 = vshrl.u32 %v4242_v6, 16  ;;  %v4567_v56 = vshll.u32 %v4242_v6, 16  ;;  %v4504_v32 = vsel %vm7335_vm9, %v4499_v21, %v8477_v2  ;;  %v4514_v29 = vsel %vm7335_vm9, %v4509_v5, %v4513_v16  ;;  %v9199_v16 = vld [vmem:[#allocation14_spill] sm:$0xff]  ;;  %v4935_v21 = vld [vmem:[#allocation2 + $0x60] sm:$0xe] }
 0x145   : > { %6754 = vmatmul.mubr.msk.bf16.gmra.mrb[4].mxu0 %vm1327_vm8, %v8416_v33  ;;  %v4466_v33 = vsel %vm7335_vm9, %v4461_v18, %v4465_v25  ;;  %v8535_v11 = vrot.slane %v4522_v9, 4  ;;  %v8544_v42 = vrot.slane %v4535_v49, 5  ;;  %v8546_v0 = vrot.slane %v4549_v51, 5 }
 0x146   : > { %6757 = vmatprep.mubr.msk.bf16.mxu0 %vm1327_vm8, %v8422_v19  ;;  %v4490_v19 = vsel %vm7335_vm9, %v4485_v54, %v4489_v38  ;;  %v9197_v3 = vcombine.low %v8233_v55, %v8238_v62  ;;  %v8552_v26 = vrot.slane %v4532_v24, 4  ;;  %v4546_v30 = vor.u32 %v4545_v31, %v4542_v27 }
 0x147   : > { %v4555_v15 = vrot.slane %v4553_v40, 4  ;;  %v4559_v1 = vshll.u32 %v8531_v41, 16  ;;  %v9198_v2 = vcombine.low %v8311_v4, %v8328_v23  ;;  %v6182_v5 = vcombine.low %v4432_v17, %v4442_v12  ;;  %v4934_v4 = vld [vmem:[#allocation2 + $0x54] sm:$0xe]  ;;  %v4936_v12 = vld [vmem:[#allocation2 + $0x6c] sm:$0xe] }
 0x148   : > { %v6183_v51 = vcombine.low %v4456_v37, %v4466_v33  ;;  %v8559_v18 = vcombine.low %v4480_v7, %v4490_v19  ;;  %v4573_v55 = vshll.u32 %v8537_v44, 16  ;;  %v8562_v62 = vcombine.low %v4504_v32, %v4514_v29  ;;  %v9200_v33 = vld [vmem:[#allocation13_spill] sm:$0xff]  ;;  %v9201_v19 = vld [vmem:[#allocation15_spill] sm:$0xff] }
 0x149   : > { %v4528_v25 = vsel %vm7335_vm9, %v8535_v11, %v8504_v53  ;;  %v8568_v10 = vrot.slane %v4564_v22, 4  ;;  %v8570_v54 = vrot.slane %v4567_v56, 5  ;;  %v4577_v23 = vshrl.u32 %v8537_v44, 16 }
 0x14a   : > { %v6211_v17 = vrot.slane %v4933_v14, 9  ;;  %v5023_v38 = vrot.slane %v8268_v45, 5  ;;  %v5026_v9 = vrot.slane %v9199_v16, 5  ;;  %v4538_v49 = vsel %vm7335_vm9, %v8552_v26, %v8544_v42  ;;  %v8610_v14 = vld [vmem:[#allocation2 + $0xbc] sm:$0x1] }
 0x14b   : > { %6600 = vmatmul.mubr.msk.bf16.gmra.mrb[20].mxu1 %vm1327_vm8, %v9197_v3  ;;  %v8581_v6 = vrot.slane %v4546_v30, 4  ;;  %v4556_v24 = vor.u32 %v4555_v15, %v8546_v0  ;;  %v8584_v27 = vrot.slane %v4559_v1, 5  ;;  %v8588_v45 = vrot.slane %v4573_v55, 5  ;;  %v9202_v3 = vld [vmem:[#allocation16_spill] sm:$0xff]  ;;  %v8732_v42 = vld [vmem:[#allocation2 + $0xd4] sm:$0x1] }
 0x14c   : > { %6603 = vmatprep.mubr.msk.bf16.mxu1 %vm1327_vm8, %v9198_v2  ;;  %v8592_v31 = vsel %vm7616_vm15, %v6211_v17, %v5023_v38  ;;  %v6212_v40 = vrot.slane %v4934_v4, 9  ;;  %v4570_v37 = vor.u32 %v8570_v54, %v8568_v10  ;;  %v5030_v7 = vrot.slane %v9200_v33, 5 }
 0x14d   : > { %6758 = vmatmul.mubr.msk.bf16.gmra.mrb[8].mxu0 %vm1327_vm8, %v8426_v60  ;;  %v5025_v60 = vrot.slane %v5023_v38, 4  ;;  %v5033_v22 = vrot.slane %v9201_v19, 5  ;;  %v6213_v56 = vrot.slane %v4935_v21, 9  ;;  %v8598_v32 = vrot.slane %v4577_v23, 4 }
 0x14e   : > { %6761 = vmatprep.mubr.msk.bf16.mxu0 %vm1327_vm8, %v8481_v36  ;;  %v4245_v36 = vld [vmem:[#allocation2 + $0xc0] sm:$0xf]  ;;  %v5037_v30 = vrot.slane %v9202_v3, 5  ;;  %v5040_v15 = vrot.slane %v8365_v8, 5  ;;  %v9203_v1 = vcombine.low %v8337_v50, %v8363_v57  ;;  %v8616_v55 = vsel %vm7616_vm15, %v6212_v40, %v5030_v7  ;;  %v8622_v8 = vld [vmem:[#allocation2 + $0xc4] sm:$0xf] }
 0x14f   : > { %v8602_v29 = vsel %vm7616_vm15, %v5025_v60, %v5026_v9  ;;  %v5032_v4 = vrot.slane %v5030_v7, 4  ;;  %v6214_v23 = vrot.slane %v4936_v12, 9  ;;  %v9204_v17 = vcombine.low %v8380_v59, %v8388_v35  ;;  %v2675_v35 = vld [vmem:[#allocation2 + $0x78] sm:$0xf] }
 0x150   : > { %v6228_v2 = vcombine.low %v8592_v31, %v8602_v29  ;;  %v8626_v50 = vsel %vm7616_vm15, %v6213_v56, %v5037_v30  ;;  %v5039_v57 = vrot.slane %v5037_v30, 4  ;;  %v5044_v38 = vrot.slane %v8367_v28, 5  ;;  %v7108_v56 = vld [vmem:[#allocation2 + $0xc] sm:$0xff]  }
 0x151   : > { %v5047_v16 = vrot.slane %v8382_v47, 5  ;;  %v8630_v9 = vrot.slane %v4556_v24, 4  ;;  %v4588_v21 = vshrl.u32 %v4245_v36, 16  ;;  %v4591_v60 = vshll.u32 %v4245_v36, 16  ;;  %v7121_v29 = vld [vmem:[#allocation2 + $0xa8] sm:$0xff]  }
 0x152   : > { %v8634_v59 = vsel %vm7616_vm15, %v5032_v4, %v5033_v22  ;;  %v8640_v12 = vsel %vm7616_vm15, %v5039_v57, %v5040_v15  ;;  %v8644_v28 = vsel %vm7616_vm15, %v6214_v23, %v5044_v38  ;;  %v5046_v47 = vrot.slane %v5044_v38, 4  ;;  %v4937_v22 = vld [vmem:[#allocation2 + $0x78] sm:$0xe]  ;;  %v9206_v4 = vld [vmem:[#allocation5_spill] sm:$0xff]  ;;  %v4938_v23 = vld [vmem:[#allocation2 + $0x84] sm:$0xe] }
 0x153   : > { %6604 = vmatmul.mubr.msk.bf16.gmra.mrb[24].mxu1 %vm1327_vm8, %v9203_v1  ;;  %v6229_v40 = vcombine.low %v8616_v55, %v8634_v59  ;;  %v4552_v24 = vsel %vm7335_vm9, %v8581_v6, %v8546_v0  ;;  %v4583_v33 = vshll.u32 %v8610_v14, 16  ;;  %v4597_v7 = vshll.u32 %v8622_v8, 16  ;;  %v9205_v1 = vld [vmem:[#allocation6_spill] sm:$0xff]  ;;  %v7171_v59 = vld [vmem:[#allocation2 + $0x8c] sm:$0x1] }
 0x154   : > { %6607 = vmatprep.mubr.msk.bf16.mxu1 %vm1327_vm8, %v9204_v17  ;;  %v6230_v19 = vcombine.low %v8626_v50, %v8640_v12  ;;  %v4580_v36 = vor.u32 %v8598_v32, %v8588_v45  ;;  %v8661_v3 = vsel %vm7616_vm15, %v5046_v47, %v5047_v16  ;;  %v2913_v0 = vshrl.u32 %v2675_v35, 16  ;;  %v8673_v17 = vld [vmem:[#allocation2 + $0xc8] sm:$0x1]  ;;  %v4248_v47 = vld [vmem:[#allocation2 + $0xcc] sm:$0xf] }
 0x155   : > { %6762 = vmatmul.mubr.msk.bf16.gmra.mrb[12].mxu0 %vm1327_vm8, %v6182_v5  ;;  %v4601_v5 = vshrl.u32 %v8622_v8, 16  ;;  %v4590_v6 = vrot.slane %v4588_v21, 4  ;;  %v2916_v15 = vshll.u32 %v2675_v35, 16  ;;  %v4562_v32 = vsel %vm7335_vm9, %v8630_v9, %v8584_v27  ;;  %v8684_v9 = vld [vmem:[#allocation2 + $0xd0] sm:$0xf] }
 0x156   : > { %6765 = vmatprep.mubr.msk.bf16.mxu0 %vm1327_vm8, %v6183_v51  ;;  %v2935_v51 = vsel %vm7335_vm9, %v9206_v4, %v9205_v1  ;;  %v4593_v57 = vrot.slane %v4591_v60, 5  ;;  %v2915_v38 = vrot.slane %v2913_v0, 4  ;;  %v6215_v16 = vrot.slane %v4937_v22, 9 }
 0x157   : > { %v9207_v21 = vcombine.low %v8392_v13, %v8396_v20  ;;  %v8679_v35 = vrot.slane %v4597_v7, 5  ;;  %v2918_v1 = vrot.slane %v2916_v15, 5  ;;  %v5051_v4 = vrot.slane %v8424_v46, 5 }
 0x158   : > { %v5054_v30 = vrot.slane %v8461_v39, 5  ;;  %v4603_v27 = vrot.slane %v4601_v5, 4  ;;  %v6216_v60 = vrot.slane %v4938_v23, 9  ;;  %v5058_v22 = vrot.slane %v8430_v61, 5  ;;  %v7109_v23 = vld [vmem:[#allocation2 + $0x18] sm:$0xff]  }
 0x159   : > { %v5061_v13 = vrot.slane %v8471_v63, 5  ;;  %v4607_v20 = vshll.u32 %v8673_v17, 16  ;;  %v2919_v7 = vor.u32 %v2918_v1, %v2915_v38  ;;  %v8691_v0 = vsel %vm7616_vm15, %v6215_v16, %v5051_v4 }
 0x15a   : > { %v5053_v46 = vrot.slane %v5051_v4, 4  ;;  %v4594_v15 = vor.u32 %v4593_v57, %v4590_v6  ;;  %v4612_v39 = vshrl.u32 %v4248_v47, 16  ;;  %v5060_v5 = vrot.slane %v5058_v22, 4 }
 0x15b   : > { %6608 = vmatmul.mubr.msk.bf16.gmra.mrb[28].mxu1 %vm1327_vm8, %v9207_v21  ;;  %v4615_v61 = vshll.u32 %v4248_v47, 16  ;;  %v4621_v63 = vshll.u32 %v8684_v9, 16  ;;  %v2920_v38 = vrot.slane %v2919_v7, 4  ;;  %v7110_v21 = vld [vmem:[#allocation2 + $0x24] sm:$0xff]   ;;  %v4604_v6 = vor.u32 %v4603_v27, %v8679_v35  ;;  %v9209_v7 = vld [vmem:[#allocation3_spill] sm:$0xff] }
 0x15c   : > { %6613 = vmatprep.mubr.msk.bf16.mxu1 %vm1327_vm8, %v7108_v56  ;;  %v8695_v56 = vsel %vm7616_vm15, %v6216_v60, %v5058_v22  ;;  %v8702_v16 = vsel %vm7616_vm15, %v5053_v46, %v5054_v30  ;;  %v4625_v57 = vshrl.u32 %v8684_v9, 16  ;;  %v9208_v30 = vld [vmem:[#allocation4_spill] sm:$0xff]  ;;  %v4571_v27 = vrot.slane %v4570_v37, 4 }
 0x15d   : > { %6766 = vmatmul.mubr.msk.bf16.gmra.mrb[16].mxu0 %vm1327_vm8, %v8559_v18  ;;  %v6232_v1 = vcombine.low %v8691_v0, %v8702_v16  ;;  %v8712_v18 = vsel %vm7616_vm15, %v5060_v5, %v5061_v13  ;;  %v2925_v47 = vsel %vm7335_vm9, %v2920_v38, %v9208_v30  ;;  %v4581_v60 = vrot.slane %v4580_v36, 4  ;;  %v4939_v13 = vld [vmem:[#allocation2 + $0x90] sm:$0xe]  ;;  %v7176_v0 = vld [vmem:[#allocation2 + $0xac] sm:$0xf] }
 0x15e   : > { %6769 = vmatprep.mubr.msk.bf16.mxu0 %vm1327_vm8, %v8562_v62  ;;  %v6186_v62 = vcombine.low %v4528_v25, %v4538_v49  ;;  %v6233_v4 = vcombine.low %v8695_v56, %v8712_v18  ;;  %v4585_v22 = vrot.slane %v4583_v33, 5  ;;  %v8734_v26 = vcombine.low %v2925_v47, %v2935_v51  ;;  %v4940_v33 = vld [vmem:[#allocation2 + $0x9c] sm:$0xe] }
 0x15f   : > { %v6187_v53 = vcombine.low %v4552_v24, %v4562_v32  ;;  %v4595_v11 = vrot.slane %v4594_v15, 4  ;;  %v4614_v25 = vrot.slane %v4612_v39, 4  ;;  %v4617_v49 = vrot.slane %v4615_v61, 5  ;;  %v7111_v15 = vld [vmem:[#allocation2 + $0x30] sm:$0xff]  }
 0x160   : > { %v4605_v46 = vrot.slane %v4604_v6, 4  ;;  %v4609_v10 = vrot.slane %v4607_v20, 5  ;;  %v4623_v54 = vrot.slane %v4621_v63, 5  ;;  %v4627_v37 = vrot.slane %v4625_v57, 4  ;;  %v7112_v63 = vld [vmem:[#allocation2 + $0x3c] sm:$0xff]  }
 0x161   : > { %v4576_v36 = vsel %vm7335_vm9, %v4571_v27, %v8588_v45  ;;  %v4586_v24 = vsel %vm7335_vm9, %v4581_v60, %v4585_v22  ;;  %v4631_v51 = vshll.u32 %v8732_v42, 16  ;;  %v6217_v32 = vrot.slane %v4939_v13, 9  ;;  %v9211_v6 = vld [vmem:[#allocation7_spill] sm:$0xff] }
 0x162   : > { %v4600_v20 = vsel %vm7335_vm9, %v4595_v11, %v8679_v35  ;;  %v4618_v39 = vor.u32 %v4617_v49, %v4614_v25  ;;  %v5065_v5 = vrot.slane %v8439_v52, 5  ;;  %v4610_v45 = vsel %vm7335_vm9, %v4605_v46, %v4609_v10  ;;  %v4929_v27 = vld [vmem:[#allocation2 + $0x18] sm:$0xe] }
 0x163   : > { %6614 = vmatmul.mubr.msk.bf16.vlgmr.msra.gmra.mrb[0].mxu1 %vm1327_vm8, %v7109_v23  ;;  %v9210_v23 = vld [vmem:[#allocation8_spill] sm:$0xff]  ;;  %v4628_v38 = vor.u32 %v4627_v37, %v4623_v54  ;;  %v5072_v57 = vrot.slane %v9211_v6, 5  ;;  %v5075_v52 = vrot.slane %v8498_v43, 5  ;;  %v6189_v11 = vcombine.low %v4600_v20, %v4610_v45  ;;  %v7114_v20 = vld [vmem:[#allocation2 + $0x54] sm:$0xff]  }
 0x164   : > { %6816 = vmatpush3.bf16.msra.mxu1 %v9209_v7  ;;  %6617 = vmatprep.mubr.msk.bf16.mxu1 %vm1327_vm8, %v7110_v21  ;;  %v5068_v61 = vrot.slane %v9210_v23, 5  ;;  %v6218_v21 = vrot.slane %v4940_v33, 9  ;;  %v8757_v35 = vsel %vm7616_vm15, %v6217_v32, %v5065_v5  ;;  %v5067_v47 = vrot.slane %v5065_v5, 4  ;;  %v7165_v33 = vld [vmem:[#allocation2 + $0x20] sm:$0x1] }
 0x165   : > { %6770 = vmatmul.mubr.msk.bf16.gmra.mrb[20].mxu0 %vm1327_vm8, %v6186_v62  ;;  %v7164_v62 = vld [vmem:[#allocation2 + $0x1c] sm:$0xf]  ;;  %v5074_v22 = vrot.slane %v5072_v57, 4  ;;  %v4633_v25 = vrot.slane %v4631_v51, 5  ;;  %v4619_v13 = vrot.slane %v4618_v39, 4  ;;  %v4629_v7 = vrot.slane %v4628_v38, 4 }
 0x166   : > { %6773 = vmatprep.mubr.msk.bf16.mxu0 %vm1327_vm8, %v6187_v53  ;;  %v4995_v30 = vrot.slane %v7164_v62, 5  ;;  %v8762_v60 = vsel %vm7616_vm15, %v6218_v21, %v5072_v57  ;;  %v6188_v53 = vcombine.low %v4576_v36, %v4586_v24  ;;  %v8767_v49 = vsel %vm7616_vm15, %v5067_v47, %v5068_v61  ;;  %v7113_v51 = vld [vmem:[#allocation2 + $0x48] sm:$0xff]   ;;  %v4930_v32 = vld [vmem:[#allocation2 + $0x24] sm:$0xe] }
 0x167   : > { %v6234_v43 = vcombine.low %v8757_v35, %v8767_v49  ;;  %v8774_v46 = vsel %vm7616_vm15, %v5074_v22, %v5075_v52  ;;  %v6207_v10 = vrot.slane %v4929_v27, 9  ;;  %v4998_v36 = vrot.slane %v7165_v33, 5  ;;  %v7166_v23 = vld [vmem:[#allocation2 + $0x28] sm:$0xf]  ;;  %v4942_v52 = vld [vmem:[#allocation2 + $0xb4] sm:$0xe] }
 0x168   : > { %v4997_v37 = vrot.slane %v4995_v30, 4  ;;  %v6235_v24 = vcombine.low %v8762_v60, %v8774_v46  ;;  %v4624_v39 = vsel %vm7335_vm9, %v4619_v13, %v4623_v54  ;;  %v4634_v5 = vsel %vm7335_vm9, %v4629_v7, %v4633_v25  ;;  %v9212_v21 = vld [vmem:[#allocation9_spill] sm:$0xff] }
 0x169   : > { %v5002_v61 = vrot.slane %v7166_v23, 5  ;;  %v4996_v45 = vsel %vm7616_vm15, %v6207_v10, %v4995_v30  ;;  %v5009_v6 = vrot.slane %v9212_v21, 5  ;;  %v6208_v57 = vrot.slane %v4930_v32, 9  ;;  %v7167_v27 = vld [vmem:[#allocation2 + $0x2c] sm:$0x1]  ;;  %v7115_v32 = vld [vmem:[#allocation2 + $0x60] sm:$0xff]  }
 0x16a   : > { %v4999_v38 = vsel %vm7616_vm15, %v4997_v37, %v4998_v36  ;;  %v5079_v47 = vrot.slane %v8506_v58, 5  ;;  %v6190_v54 = vcombine.low %v4624_v39, %v4634_v5  ;;  %v5005_v22 = vrot.slane %v7167_v27, 5  ;;  %v9213_v58 = vld [vmem:[#allocation10_spill] sm:$0xff]  ;;  %v4932_v5 = vld [vmem:[#allocation2 + $0x3c] sm:$0xe] }
 0x16b   : > { %6618 = vmatmul.mubr.msk.bf16.gmra.mrb[4].mxu1 %vm1327_vm8, %v7111_v15  ;;  %v4941_v15 = vld [vmem:[#allocation2 + $0xa8] sm:$0xe]  ;;  %v6224_v30 = vcombine.low %v4996_v45, %v4999_v38  ;;  %v5004_v25 = vrot.slane %v5002_v61, 4  ;;  %v5011_v10 = vrot.slane %v5009_v6, 4  ;;  %v5012_v37 = vrot.slane %v9213_v58, 5  ;;  %v7116_v39 = vld [vmem:[#allocation2 + $0x6c] sm:$0xff]  }
 0x16c   : > { %6621 = vmatprep.mubr.msk.bf16.mxu1 %vm1327_vm8, %v7112_v63  ;;  %v4931_v63 = vld [vmem:[#allocation2 + $0x30] sm:$0xe]  ;;  %v6219_v62 = vrot.slane %v4941_v15, 9  ;;  %v5081_v7 = vrot.slane %v5079_v47, 4  ;;  %v6220_v33 = vrot.slane %v4942_v52, 9  ;;  %v5086_v36 = vrot.slane %v8537_v44, 5 }
 0x16d   : > { %6774 = vmatmul.mubr.msk.bf16.gmra.mrb[24].mxu0 %vm1327_vm8, %v6188_v53  ;;  %v6209_v53 = vrot.slane %v4931_v63, 9  ;;  %v5003_v15 = vsel %vm7616_vm15, %v6208_v57, %v5002_v61  ;;  %v5006_v44 = vsel %vm7616_vm15, %v5004_v25, %v5005_v22  ;;  %v9214_v23 = vld [vmem:[#allocation11_spill] sm:$0xff]  ;;  %v5013_v38 = vsel %vm7616_vm15, %v5011_v10, %v5012_v37  ;;  %v4943_v52 = vld [vmem:[#allocation2 + $0xc0] sm:$0xe]  ;;  %v7118_v37 = vld [vmem:[#allocation2 + $0x84] sm:$0xff]  }
 0x16e   : > { %6777 = vmatprep.mubr.msk.bf16.mxu0 %vm1327_vm8, %v6189_v11  ;;  %v5082_v11 = vrot.slane %v8531_v41, 5  ;;  %v8795_v13 = vsel %vm7616_vm15, %v6219_v62, %v5079_v47  ;;  %v5089_v41 = vrot.slane %v8610_v14, 5  ;;  %v5016_v63 = vrot.slane %v9214_v23, 5  ;;  %v7117_v10 = vld [vmem:[#allocation2 + $0x78] sm:$0xff]  }
 0x16f   : > { %v8815_v14 = vsel %vm7616_vm15, %v6220_v33, %v5086_v36  ;;  %v5088_v45 = vrot.slane %v5086_v36, 4  ;;  %v5010_v61 = vsel %vm7616_vm15, %v6209_v53, %v5009_v6  ;;  %v6225_v57 = vcombine.low %v5003_v15, %v5006_v44  ;;  %v9215_v6 = vld [vmem:[#allocation12_spill] sm:$0xff]  ;;  %v4944_v53 = vld [vmem:[#allocation2 + $0xcc] sm:$0xe] }
 0x170   : > { %v6210_v62 = vrot.slane %v4932_v5, 9  ;;  %v5018_v27 = vrot.slane %v5016_v63, 4  ;;  %v5019_v22 = vrot.slane %v9215_v6, 5  ;;  %v5093_v25 = vrot.slane %v8622_v8, 5  ;;  %v7119_v6 = vld [vmem:[#allocation2 + $0x90] sm:$0xff]  }
 0x171   : > { %v8823_v21 = vsel %vm7616_vm15, %v5088_v45, %v5089_v41  ;;  %v6222_v8 = vrot.slane %v4944_v53, 9  ;;  %v5100_v15 = vrot.slane %v8684_v9, 5  ;;  %v2678_v53 = vld [vmem:[#allocation2 + $0x84] sm:$0xf]  ;;  %v3018_v16 = vshll.u32 %v7176_v0, 16 }
 0x172   : > { %v6237_v47 = vcombine.low %v8815_v14, %v8823_v21  ;;  %v5017_v58 = vsel %vm7616_vm15, %v6210_v62, %v5016_v63  ;;  %v5020_v33 = vsel %vm7616_vm15, %v5018_v27, %v5019_v22  ;;  %v5095_v41 = vrot.slane %v5093_v25, 4  ;;  %v7120_v22 = vld [vmem:[#allocation2 + $0x9c] sm:$0xff]  }
 0x173   : > { %6622 = vmatmul.mubr.msk.bf16.gmra.mrb[8].mxu1 %vm1327_vm8, %v7113_v51  ;;  %v8801_v51 = vsel %vm7616_vm15, %v5081_v7, %v5082_v11  ;;  %v2672_v11 = vld [vmem:[#allocation2 + $0x6c] sm:$0xf]  ;;  %v5096_v7 = vrot.slane %v8673_v17, 5  ;;  %v5103_v63 = vrot.slane %v8732_v42, 5  ;;  %v6227_v45 = vcombine.low %v5017_v58, %v5020_v33  ;;  %v7170_v58 = vld [vmem:[#allocation2 + $0x88] sm:$0xf] }
 0x174   : > { %6625 = vmatprep.mubr.msk.bf16.mxu1 %vm1327_vm8, %v7114_v20  ;;  %v6236_v20 = vcombine.low %v8795_v13, %v8801_v51  ;;  %v2892_v17 = vshll.u32 %v2672_v11, 16  ;;  %v5102_v9 = vrot.slane %v5100_v15, 4  ;;  %v2950_v33 = vshrl.u32 %v7170_v58, 16  ;;  %v7181_v51 = vld [vmem:[#allocation2 + $0xc8] sm:$0x1] }
 0x175   : > { %6778 = vmatmul.mubr.msk.bf16.gmra.mrb[28].mxu0 %vm1327_vm8, %v6190_v54  ;;  %v6226_v54 = vcombine.low %v5010_v61, %v5013_v38  ;;  %v8845_v23 = vsel %vm7616_vm15, %v5095_v41, %v5096_v7  ;;  %v8853_v38 = vsel %vm7616_vm15, %v6222_v8, %v5100_v15  ;;  %v2937_v7 = vshrl.u32 %v2678_v53, 16  ;;  %v2681_v8 = vld [vmem:[#allocation2 + $0x90] sm:$0xf] }
 0x176   : > { %6783 = vmatprep.mubr.msk.bf16.mxu0 %vm1327_vm8, %v6224_v30  ;;  %v6221_v30 = vrot.slane %v4943_v52, 9  ;;  %v2894_v62 = vrot.slane %v2892_v17, 5  ;;  %v8858_v52 = vsel %vm7616_vm15, %v5102_v9, %v5103_v63  ;;  %v2964_v63 = vshll.u32 %v2681_v8, 16 }
 0x177   : > { %v6239_v27 = vcombine.low %v8853_v38, %v8858_v52  ;;  %v2939_v17 = vrot.slane %v2937_v7, 4  ;;  %vm5733_vm0 = vcmask 257024  }
 0x178   : > { %v8840_v36 = vsel %vm7616_vm15, %v6221_v30, %v5093_v25  ;;  %v2908_v25 = vshll.u32 %v7169_v48, 16  ;;  %v7123_v48 = vld [vmem:[#allocation2 + $0xc0] sm:$0xff]  }
 0x179   : > { %v6238_v61 = vcombine.low %v8840_v36, %v8845_v23 }
 0x17a   : > { %v2910_v31 = vrot.slane %v2908_v25, 5 }
 0x17b   : > { %6626 = vmatmul.mubr.msk.bf16.gmra.mrb[12].mxu1 %vm1327_vm8, %v7115_v32  ;;  %v2889_v32 = vshrl.u32 %v2672_v11, 16 }
 0x17c   : > { %6629 = vmatprep.mubr.msk.bf16.mxu1 %vm1327_vm8, %v7116_v39  ;;  %v7168_v39 = vld [vmem:[#allocation2 + $0x70] sm:$0xf] }
 0x17d   : > { %6784 = vmatmul.mubr.msk.bf16.vlgmr.msra.gmra.mrb[0].mxu0 %vm1327_vm8, %v6225_v57  ;;  %v2898_v44 = vshll.u32 %v7168_v39, 16  ;;  %v2902_v5 = vshrl.u32 %v7168_v39, 16  ;;  %v2891_v57 = vrot.slane %v2889_v32, 4 }
 0x17e   : > { %6787 = vmatprep.mubr.msk.bf16.mxu0 %vm1327_vm8, %v6226_v54 }
 0x17f   : > { %v2900_v42 = vrot.slane %v2898_v44, 5  ;;  %v2904_v54 = vrot.slane %v2902_v5, 4  ;;  %v2895_v11 = vor.u32 %v2894_v62, %v2891_v57  ;;  %v2952_v44 = vrot.slane %v2950_v33, 4  ;;  %v7172_v57 = vld [vmem:[#allocation2 + $0x94] sm:$0xf] }
 0x180   : > { %v2961_v5 = vshrl.u32 %v2681_v8, 16  ;;  %v2970_v62 = vshll.u32 %v7172_v57, 16 }
 0x181   : > { %v2905_v30 = vor.u32 %v2904_v54, %v2900_v42  ;;  %v2896_v41 = vrot.slane %v2895_v11, 4  ;;  %v2974_v54 = vshrl.u32 %v7172_v57, 16 }
 0x182   : > { %v2963_v11 = vrot.slane %v2961_v5, 4 }
 0x183   : > { %6630 = vmatmul.mubr.msk.bf16.gmra.mrb[16].mxu1 %vm1327_vm8, %v7117_v10  ;;  %v2940_v10 = vshll.u32 %v2678_v53, 16  ;;  %v2906_v32 = vrot.slane %v2905_v30, 4  ;;  %v2901_v9 = vsel %vm7335_vm9, %v2896_v41, %v2900_v42  ;;  %v2966_v30 = vrot.slane %v2964_v63, 5 }
 0x184   : > { %6633 = vmatprep.mubr.msk.bf16.mxu1 %vm1327_vm8, %v7118_v37  ;;  %v2946_v37 = vshll.u32 %v7170_v58, 16  ;;  %v2976_v58 = vrot.slane %v2974_v54, 4 }
 0x185   : > { %6788 = vmatmul.mubr.msk.bf16.gmra.mrb[4].mxu0 %vm1327_vm8, %v6227_v45  ;;  %v2942_v15 = vrot.slane %v2940_v10, 5  ;;  %v2684_v45 = vld [vmem:[#allocation2 + $0x9c] sm:$0xf]  ;;  %v2911_v55 = vsel %vm7335_vm9, %v2906_v32, %v2910_v31  ;;  %v8886_v10 = vrot.slane %v2970_v62, 5  ;;  %v2687_v31 = vld [vmem:[#allocation2 + $0xa8] sm:$0xf] }
 0x186   : > { %6791 = vmatprep.mubr.msk.bf16.mxu0 %vm1327_vm8, %v6228_v2  ;;  %v7122_v2 = vld [vmem:[#allocation2 + $0xb4] sm:$0xff]   ;;  %v8877_v39 = vrot.slane %v2946_v37, 5  ;;  %v2985_v50 = vshrl.u32 %v2684_v45, 16  ;;  %v2988_v12 = vshll.u32 %v2684_v45, 16  ;;  %v6068_v25 = vcombine.low %v2901_v9, %v2911_v55 }
 0x187   : > { %v2943_v53 = vor.u32 %v2942_v15, %v2939_v17  ;;  %v9216_v37 = vcombine.low %v8644_v28, %v8661_v3  ;;  %v2967_v17 = vor.u32 %v2966_v30, %v2963_v11  ;;  %v7174_v15 = vld [vmem:[#allocation2 + $0x98] sm:$0x1]  ;;  %v2977_v28 = vor.u32 %v2976_v58, %v8886_v10  ;;  %v7175_v3 = vld [vmem:[#allocation2 + $0xa4] sm:$0x1]  ;;  %v2690_v9 = vld [vmem:[#allocation2 + $0xb4] sm:$0xf] }
 0x188   : > { %v2953_v42 = vor.u32 %v2952_v44, %v8877_v39  ;;  %v2987_v33 = vrot.slane %v2985_v50, 4  ;;  %v2990_v41 = vrot.slane %v2988_v12, 5  ;;  %v2980_v44 = vshll.u32 %v7174_v15, 16  ;;  %v7179_v15 = vld [vmem:[#allocation2 + $0xc4] sm:$0xf] }
 0x189   : > { %v3004_v5 = vshll.u32 %v7175_v3, 16  ;;  %v3009_v63 = vshrl.u32 %v2687_v31, 16  ;;  %v3012_v45 = vshll.u32 %v2687_v31, 16  ;;  %v2968_v62 = vrot.slane %v2967_v17, 4  ;;  %v2693_v31 = vld [vmem:[#allocation2 + $0xc0] sm:$0xf] }
 0x18a   : > { %v2991_v55 = vor.u32 %v2990_v41, %v2987_v33  ;;  %v2982_v54 = vrot.slane %v2980_v44, 5  ;;  %v3033_v50 = vshrl.u32 %v2690_v9, 16  ;;  %v3036_v12 = vshll.u32 %v2690_v9, 16 }
 0x18b   : > { %6634 = vmatmul.mubr.msk.bf16.gmra.mrb[20].mxu1 %vm1327_vm8, %v7119_v6  ;;  %v3011_v11 = vrot.slane %v3009_v63, 4  ;;  %v3014_v30 = vrot.slane %v3012_v45, 5  ;;  %v2973_v56 = vsel %vm7335_vm9, %v2968_v62, %v8886_v10  ;;  %v3057_v10 = vshrl.u32 %v2693_v31, 16  ;;  %v7180_v63 = vld [vmem:[#allocation2 + $0xbc] sm:$0x1] }
 0x18c   : > { %6637 = vmatprep.mubr.msk.bf16.mxu1 %vm1327_vm8, %v7120_v22  ;;  %v3038_v33 = vrot.slane %v3036_v12, 5  ;;  %v3060_v17 = vshll.u32 %v2693_v31, 16  ;;  %v3066_v44 = vshll.u32 %v7179_v15, 16 }
 0x18d   : > { %6792 = vmatmul.mubr.msk.bf16.gmra.mrb[8].mxu0 %vm1327_vm8, %v6229_v40  ;;  %v2956_v40 = vshll.u32 %v7171_v59, 16 }
 0x18e   : > { %6795 = vmatprep.mubr.msk.bf16.mxu0 %vm1327_vm8, %v6230_v19  ;;  %v7173_v19 = vld [vmem:[#allocation2 + $0xa0] sm:$0xf] }
 0x18f   : > { %v2994_v6 = vshll.u32 %v7173_v19, 16  ;;  %v2998_v22 = vshrl.u32 %v7173_v19, 16  ;;  %v2958_v7 = vrot.slane %v2956_v40, 5  ;;  %v7177_v19 = vld [vmem:[#allocation2 + $0xb8] sm:$0xf] }
 0x191   : > { %v8892_v8 = vrot.slane %v2994_v6, 5  ;;  %v3000_v32 = vrot.slane %v2998_v22, 4  ;;  %v3042_v6 = vshll.u32 %v7177_v19, 16  ;;  %v3046_v22 = vshrl.u32 %v7177_v19, 16 }
 0x193   : > { %6638 = vmatmul.mubr.msk.bf16.gmra.mrb[24].mxu1 %vm1327_vm8, %v7121_v29  ;;  %v2944_v29 = vrot.slane %v2943_v53, 4  ;;  %v3001_v59 = vor.u32 %v3000_v32, %v8892_v8  ;;  %v2978_v53 = vrot.slane %v2977_v28, 4  ;;  %v3044_v41 = vrot.slane %v3042_v6, 5 }
 0x194   : > { %6641 = vmatprep.mubr.msk.bf16.mxu1 %vm1327_vm8, %v7122_v2  ;;  %v2954_v2 = vrot.slane %v2953_v42, 4  ;;  %v3006_v42 = vrot.slane %v3004_v5, 5  ;;  %v3048_v32 = vrot.slane %v3046_v22, 4  ;;  %v3070_v28 = vshrl.u32 %v7179_v15, 16 }
 0x195   : > { %6796 = vmatmul.mubr.msk.bf16.gmra.mrb[12].mxu0 %vm1327_vm8, %v9216_v37  ;;  %v2949_v40 = vsel %vm7335_vm9, %v2944_v29, %v8877_v39  ;;  %v2992_v39 = vrot.slane %v2991_v55, 4  ;;  %v3035_v37 = vrot.slane %v3033_v50, 4  ;;  %v2983_v18 = vsel %vm7335_vm9, %v2978_v53, %v2982_v54 }
 0x196   : > { %6799 = vmatprep.mubr.msk.bf16.mxu0 %vm1327_vm8, %v6232_v1  ;;  %v3022_v1 = vshrl.u32 %v7176_v0, 16  ;;  %v2959_v57 = vsel %vm7335_vm9, %v2954_v2, %v2958_v7  ;;  %v3049_v5 = vor.u32 %v3048_v32, %v3044_v41  ;;  %v6071_v45 = vcombine.low %v2973_v56, %v2983_v18 }
 0x197   : > { %v6070_v58 = vcombine.low %v2949_v40, %v2959_v57  ;;  %v2997_v35 = vsel %vm7335_vm9, %v2992_v39, %v8892_v8  ;;  %v3039_v3 = vor.u32 %v3038_v33, %v3035_v37  ;;  %v3059_v0 = vrot.slane %v3057_v10, 4 }
 0x198   : > { %v3024_v7 = vrot.slane %v3022_v1, 4  ;;  %v3068_v1 = vrot.slane %v3066_v44, 5  ;;  %v3072_v40 = vrot.slane %v3070_v28, 4  ;;  %v3050_v62 = vrot.slane %v3049_v5, 4 }
 0x199   : > { %v3040_v57 = vrot.slane %v3039_v3, 4 }
 0x19a   : > { %v3073_v13 = vor.u32 %v3072_v40, %v3068_v1 }
 0x19b   : > { %6642 = vmatmul.mubr.msk.bf16.gmra.mrb[28].mxu1 %vm1327_vm8, %v7123_v48  ;;  %v3002_v48 = vrot.slane %v3001_v59, 4  ;;  %v3045_v50 = vsel %vm7335_vm9, %v3040_v57, %v3044_v41 }
 0x19c   : > { %6663 = vmatprep.mubr.msk.bf16.mxu1 %vm1327_vm8, %v6068_v25  ;;  %v3020_v25 = vrot.slane %v3018_v16, 5  ;;  %v3062_v16 = vrot.slane %v3060_v17, 5  ;;  %v3074_v53 = vrot.slane %v3073_v13, 4 }
 0x19d   : > { %6800 = vmatmul.mubr.msk.bf16.gmra.mrb[16].mxu0 %vm1327_vm8, %v6233_v4  ;;  %v7178_v4 = vld [vmem:[#allocation2 + $0xb0] sm:$0x1]  ;;  %v3007_v49 = vsel %vm7335_vm9, %v3002_v48, %v3006_v42 }
 0x19e   : > { %6803 = vmatprep.mubr.msk.bf16.mxu0 %vm1327_vm8, %v6234_v43  ;;  %v3028_v29 = vshll.u32 %v7178_v4, 16  ;;  %v3015_v43 = vor.u32 %v3014_v30, %v3011_v11  ;;  %v3025_v2 = vor.u32 %v3024_v7, %v3020_v25  ;;  %v6072_v8 = vcombine.low %v2997_v35, %v3007_v49 }
 0x1a0   : > { %v3016_v9 = vrot.slane %v3015_v43, 4  ;;  %v3026_v55 = vrot.slane %v3025_v2, 4  ;;  %v3030_v59 = vrot.slane %v3028_v29, 5 }
 0x1a2   : > { %v3021_v60 = vsel %vm7335_vm9, %v3016_v9, %v3020_v25  ;;  %v3031_v46 = vsel %vm7335_vm9, %v3026_v55, %v3030_v59 }
 0x1a3   : > { %6664 = vmatmul.mubr.msk.bf16.vlgmr.msra.gmra.mrb[16].mxu1 %vm1327_vm8, %v8734_v26  ;;  %v3052_v26 = vshll.u32 %v7180_v63, 16  ;;  %v6073_v19 = vcombine.low %v3021_v60, %v3031_v46 }
 0x1a4   : > { %6667 = vmatprep.mubr.msk.bf16.mxu1 %vm1327_vm8, %v6070_v58 }
 0x1a5   : > { %6804 = vmatmul.mubr.msk.bf16.gmra.mrb[20].mxu0 %vm1327_vm8, %v6235_v24  ;;  %v3054_v54 = vrot.slane %v3052_v26, 5  ;;  %v3063_v24 = vor.u32 %v3062_v16, %v3059_v0 }
 0x1a6   : > { %6807 = vmatprep.mubr.msk.bf16.mxu0 %vm1327_vm8, %v6236_v20  ;;  %v3076_v20 = vshll.u32 %v7181_v51, 16 }
 0x1a7   : > { %v3055_v12 = vsel %vm7335_vm9, %v3050_v62, %v3054_v54  ;;  %v3064_v22 = vrot.slane %v3063_v24, 4 }
 0x1a8   : > { %v6074_v6 = vcombine.low %v3045_v50, %v3055_v12  ;;  %v3078_v42 = vrot.slane %v3076_v20, 5 }
 0x1a9   : > { %v3069_v11 = vsel %vm7335_vm9, %v3064_v22, %v3068_v1 }
 0x1aa   : > { %v3079_v14 = vsel %vm7335_vm9, %v3074_v53, %v3078_v42 }
 0x1ab   : > { %6668 = vmatmul.mubr.msk.bf16.gmra.mrb[20].mxu1 %vm1327_vm8, %v6071_v45  ;;  %v6075_v21 = vcombine.low %v3069_v11, %v3079_v14 }
 0x1ac   : > { %6671 = vmatprep.mubr.msk.bf16.mxu1 %vm1327_vm8, %v6072_v8 }
 0x1ad   : > { %6808 = vmatmul.mubr.msk.bf16.gmra.mrb[24].mxu0 %vm1327_vm8, %v6237_v47 }
 0x1ae   : > { %6811 = vmatprep.mubr.msk.bf16.mxu0 %vm1327_vm8, %v6238_v61 }
 0x1b3   : > { %6672 = vmatmul.mubr.msk.bf16.gmra.mrb[24].mxu1 %vm1327_vm8, %v6073_v19 }
 0x1b4   : > { %6675 = vmatprep.mubr.msk.bf16.mxu1 %vm1327_vm8, %v6074_v6 }
 0x1b5   : > { %6812 = vmatmul.mubr.msk.bf16.gmra.mrb[28].mxu0 %vm1327_vm8, %v6239_v27 }
 0x1bb   : > { %6676 = vmatmul.mubr.msk.bf16.gmra.mrb[28].mxu1 %vm1327_vm8, %v6075_v21 }
 0x236   : > { %v6615_v47 = vpop.f32.mrb[0].mxu1 }
 0x237   : > { %v2489_v36 = vpop.f32.mrb[1].mxu1 }
 0x238   : > { %v6616_v23 = vpop.f32.mrb[2].mxu1 }
 0x239   : > { %v2492_v61 = vpop.f32.mrb[3].mxu1 }
 0x23e   : > { %v6619_v30 = vpop.f32.mrb[4].mxu1 }
 0x23f   : > { %v2505_v39 = vpop.f32.mrb[5].mxu1 }
 0x240   : > { %v6620_v48 = vpop.f32.mrb[6].mxu1 }
 0x241   : > { %v2508_v25 = vpop.f32.mrb[7].mxu1 }
 0x246   : > { %v8965_v7 = vpop.f32.mrb[8].mxu1 }
 0x247   : > { %v8967_v34 = vpop.f32.mrb[9].mxu1 }
 0x248   : > { %v8969_v58 = vpop.f32.mrb[10].mxu1 }
 0x249   : > { %v8971_v38 = vpop.f32.mrb[11].mxu1 }
 0x24e   : > { %v8973_v52 = vpop.f32.mrb[12].mxu1 }
 0x24f   : > { %v8975_v27 = vpop.f32.mrb[13].mxu1 }
 0x250   : > { %v8977_v37 = vpop.f32.mrb[14].mxu1  ;;  %v6785_v41 = vpop.f32.mrb[0].mxu0 }
 0x251   : > { %v8979_v33 = vpop.f32.mrb[15].mxu1  ;;  %v6817_v32 = vadd.f32 %v6785_v41, %v6615_v47  ;;  %v5240_v31 = vpop.f32.mrb[1].mxu0 }
 0x252   : > { %v6818_v56 = vadd.f32 %v5240_v31, %v2489_v36  ;;  %v6786_v18 = vpop.f32.mrb[2].mxu0 }
 0x253   : > { %v5401_v4 = vmax.f32 %v6817_v32, 0.0  ;;  %v6819_v29 = vadd.f32 %v6786_v18, %v6616_v23  ;;  %v5243_v35 = vpop.f32.mrb[3].mxu0 }
 0x254   : > { %v5399_v49 = vmax.f32 %v6818_v56, 0.0  ;;  %v6820_v43 = vadd.f32 %v5243_v35, %v2492_v61 }
 0x255   : > { %v6326_v2 = vpack.c.bf16 %v5401_v4, %v5401_v4  ;;  %v5402_v10 = vmax.f32 %v6819_v29, 0.0  ;;  %v5505_v28 = vmul.f32 %v5401_v4, %v5401_v4  ;;  %v5435_v16 = vsel %vm5431_vm1, %v5401_v4, 0.0 }
 0x256   : > { %v5503_v17 = vmul.f32 %v5399_v49, %v5399_v49  ;;  %v6324_v15 = vpack.c.bf16 %v5399_v49, %v5399_v49  ;;  %v5400_v44 = vmax.f32 %v6820_v43, 0.0  ;;  %v5432_v5 = vsel %vm5431_vm1, %v5399_v49, 0.0 }
 0x257   : > { %5736 = vst.msk [vmem:[%s8985_s23 + $0x8] sm:$0xf] %vm5733_vm0, %v6326_v2  ;;  %v6327_v3 = vpack.c.bf16 %v5402_v10, %v5402_v10  ;;  %v5506_v9 = vmul.f32 %v5402_v10, %v5402_v10  ;;  %v5538_v51 = vsel %vm5431_vm1, %v5505_v28, 0.0  ;;  %v5437_v12 = vsel %vm5431_vm1, %v5402_v10, 0.0 }
 0x258   : > { %5734 = vst.msk [vmem:[%s8985_s23] sm:$0xf] %vm5733_vm0, %v6324_v15  ;;  %v5433_v63 = vsel %vm5431_vm1, %v5400_v44, 0.0  ;;  %v5504_v26 = vmul.f32 %v5400_v44, %v5400_v44  ;;  %v6325_v45 = vpack.c.bf16 %v5400_v44, %v5400_v44  ;;  %v6789_v8 = vpop.f32.mrb[4].mxu0  ;;  %v5535_v1 = vsel %vm5431_vm1, %v5503_v17, 0.0 }
 0x259   : > { %5737 = vst.msk [vmem:[%s8985_s23 + $0xc] sm:$0xf] %vm5733_vm0, %v6327_v3  ;;  %v5434_v55 = vadd.f32 %v5433_v63, %v5432_v5  ;;  %v6821_v59 = vadd.f32 %v6789_v8, %v6619_v30  ;;  %v5256_v0 = vpop.f32.mrb[5].mxu0  ;;  %v5540_v19 = vsel %vm5431_vm1, %v5506_v9, 0.0 }
 0x25a   : > { %v5536_v40 = vsel %vm5431_vm1, %v5504_v26, 0.0  ;;  %5735 = vst.msk [vmem:[%s8985_s23 + $0x4] sm:$0xf] %vm5733_vm0, %v6325_v45  ;;  %v6822_v57 = vadd.f32 %v5256_v0, %v2505_v39  ;;  %v6790_v62 = vpop.f32.mrb[6].mxu0 }
 0x25b   : > { %v5436_v54 = vadd.f32 %v5435_v16, %v5434_v55  ;;  %v5537_v60 = vadd.f32 %v5536_v40, %v5535_v1  ;;  %v5405_v46 = vmax.f32 %v6821_v59, 0.0  ;;  %v6823_v24 = vadd.f32 %v6790_v62, %v6620_v48  ;;  %v5259_v13 = vpop.f32.mrb[7].mxu0 }
 0x25c   : > { %v5403_v20 = vmax.f32 %v6822_v57, 0.0  ;;  %v6824_v50 = vadd.f32 %v5259_v13, %v2508_v25 }
 0x25d   : > { %v5539_v6 = vadd.f32 %v5538_v51, %v5537_v60  ;;  %v6330_v22 = vpack.c.bf16 %v5405_v46, %v5405_v46  ;;  %v5438_v53 = vadd.f32 %v5437_v12, %v5436_v54  ;;  %v5406_v47 = vmax.f32 %v6823_v24, 0.0 }
 0x25e   : > { %v5439_v42 = vsel %vm5431_vm1, %v5403_v20, 0.0  ;;  %v5507_v11 = vmul.f32 %v5403_v20, %v5403_v20  ;;  %v6328_v14 = vpack.c.bf16 %v5403_v20, %v5403_v20  ;;  %v5404_v36 = vmax.f32 %v6824_v50, 0.0 }
 0x25f   : > { %5740 = vst.msk [vmem:[%s8985_s23 + $0x18] sm:$0xf] %vm5733_vm0, %v6330_v22  ;;  %v5541_v21 = vadd.f32 %v5540_v19, %v5539_v6  ;;  %v5440_v23 = vadd.f32 %v5439_v42, %v5438_v53  ;;  %v5509_v39 = vmul.f32 %v5405_v46, %v5405_v46  ;;  %v6331_v25 = vpack.c.bf16 %v5406_v47, %v5406_v47 }
 0x260   : > { %v5542_v61 = vsel %vm5431_vm1, %v5507_v11, 0.0  ;;  %5738 = vst.msk [vmem:[%s8985_s23 + $0x10] sm:$0xf] %vm5733_vm0, %v6328_v14  ;;  %v6793_v30 = vpop.f32.mrb[8].mxu0  ;;  %v5441_v32 = vsel %vm5431_vm1, %v5404_v36, 0.0  ;;  %v5508_v31 = vmul.f32 %v5404_v36, %v5404_v36  ;;  %v6329_v56 = vpack.c.bf16 %v5404_v36, %v5404_v36 }
 0x261   : > { %v5543_v48 = vadd.f32 %v5542_v61, %v5541_v21  ;;  %v5272_v41 = vpop.f32.mrb[9].mxu0  ;;  %v6825_v18 = vadd.f32 %v6793_v30, %v8965_v7  ;;  %v5443_v29 = vsel %vm5431_vm1, %v5405_v46, 0.0  ;;  %5741 = vst.msk [vmem:[%s8985_s23 + $0x1c] sm:$0xf] %vm5733_vm0, %v6331_v25  ;;  %v5442_v35 = vadd.f32 %v5441_v32, %v5440_v23 }
 0x262   : > { %v6794_v4 = vpop.f32.mrb[10].mxu0  ;;  %v6826_v49 = vadd.f32 %v5272_v41, %v8967_v34  ;;  %v5510_v10 = vmul.f32 %v5406_v47, %v5406_v47  ;;  %v5544_v17 = vsel %vm5431_vm1, %v5508_v31, 0.0  ;;  %5739 = vst.msk [vmem:[%s8985_s23 + $0x14] sm:$0xf] %vm5733_vm0, %v6329_v56  ;;  %v5546_v63 = vsel %vm5431_vm1, %v5509_v39, 0.0 }
 0x263   : > { %v6827_v43 = vadd.f32 %v6794_v4, %v8969_v58  ;;  %v5275_v2 = vpop.f32.mrb[11].mxu0  ;;  %v5409_v15 = vmax.f32 %v6825_v18, 0.0  ;;  %v5444_v44 = vadd.f32 %v5443_v29, %v5442_v35  ;;  %v5545_v28 = vadd.f32 %v5544_v17, %v5543_v48 }
 0x264   : > { %v6828_v7 = vadd.f32 %v5275_v2, %v8971_v38  ;;  %v5407_v3 = vmax.f32 %v6826_v49, 0.0  ;;  %v5445_v34 = vsel %vm5431_vm1, %v5406_v47, 0.0  ;;  %v5548_v59 = vsel %vm5431_vm1, %v5510_v10, 0.0 }
 0x265   : > { %v5410_v5 = vmax.f32 %v6827_v43, 0.0  ;;  %v6334_v26 = vpack.c.bf16 %v5409_v15, %v5409_v15  ;;  %v5547_v45 = vadd.f32 %v5546_v63, %v5545_v28  ;;  %v5446_v8 = vadd.f32 %v5445_v34, %v5444_v44 }
 0x266   : > { %v5408_v58 = vmax.f32 %v6828_v7, 0.0  ;;  %v5447_v9 = vsel %vm5431_vm1, %v5407_v3, 0.0  ;;  %v5511_v55 = vmul.f32 %v5407_v3, %v5407_v3  ;;  %v5513_v0 = vmul.f32 %v5409_v15, %v5409_v15 }
 0x267   : > { %5744 = vst.msk [vmem:[%s8985_s23 + $0x28] sm:$0xf] %vm5733_vm0, %v6334_v26  ;;  %v6332_v38 = vpack.c.bf16 %v5407_v3, %v5407_v3  ;;  %v5448_v1 = vadd.f32 %v5447_v9, %v5446_v8  ;;  %v5549_v40 = vadd.f32 %v5548_v59, %v5547_v45  ;;  %v6335_v62 = vpack.c.bf16 %v5410_v5, %v5410_v5 }
 0x268   : > { %v6797_v16 = vpop.f32.mrb[12].mxu0  ;;  %v5550_v57 = vsel %vm5431_vm1, %v5511_v55, 0.0  ;;  %v5514_v60 = vmul.f32 %v5410_v5, %v5410_v5  ;;  %v5449_v46 = vsel %vm5431_vm1, %v5408_v58, 0.0  ;;  %v5512_v24 = vmul.f32 %v5408_v58, %v5408_v58 }
 0x269   : > { %v5288_v54 = vpop.f32.mrb[13].mxu0  ;;  %5742 = vst.msk [vmem:[%s8985_s23 + $0x20] sm:$0xf] %vm5733_vm0, %v6332_v38  ;;  %v6333_v13 = vpack.c.bf16 %v5408_v58, %v5408_v58  ;;  %v5551_v20 = vadd.f32 %v5550_v57, %v5549_v40  ;;  %5745 = vst.msk [vmem:[%s8985_s23 + $0x2c] sm:$0xf] %vm5733_vm0, %v6335_v62  ;;  %v5450_v50 = vadd.f32 %v5449_v46, %v5448_v1  ;;  %v5451_v22 = vsel %vm5431_vm1, %v5409_v15, 0.0 }
 0x26a   : > { %v6798_v51 = vpop.f32.mrb[14].mxu0  ;;  %v6829_v12 = vadd.f32 %v6797_v16, %v8973_v52  ;;  %v6830_v19 = vadd.f32 %v5288_v54, %v8975_v27  ;;  %v5552_v53 = vsel %vm5431_vm1, %v5512_v24, 0.0  ;;  %v5554_v52 = vsel %vm5431_vm1, %v5513_v0, 0.0 }
 0x26b   : > { %v5291_v6 = vpop.f32.mrb[15].mxu0  ;;  %5743 = vst.msk [vmem:[%s8985_s23 + $0x24] sm:$0xf] %vm5733_vm0, %v6333_v13  ;;  %v6831_v42 = vadd.f32 %v6798_v51, %v8977_v37  ;;  %v5452_v14 = vadd.f32 %v5451_v22, %v5450_v50  ;;  %v5553_v21 = vadd.f32 %v5552_v53, %v5551_v20  ;;  %v5453_v61 = vsel %vm5431_vm1, %v5410_v5, 0.0 }
 0x26c   : > { %v6832_v11 = vadd.f32 %v5291_v6, %v8979_v33  ;;  %v5413_v47 = vmax.f32 %v6829_v12, 0.0  ;;  %v5411_v36 = vmax.f32 %v6830_v19, 0.0  ;;  %v5556_v30 = vsel %vm5431_vm1, %v5514_v60, 0.0 }
 0x26d   : > { %v5414_v23 = vmax.f32 %v6831_v42, 0.0  ;;  %v5555_v39 = vadd.f32 %v5554_v52, %v5553_v21  ;;  %v5454_v25 = vadd.f32 %v5453_v61, %v5452_v14 }
 0x26e   : > { %v5412_v27 = vmax.f32 %v6832_v11, 0.0  ;;  %v6338_v48 = vpack.c.bf16 %v5413_v47, %v5413_v47  ;;  %v5455_v37 = vsel %vm5431_vm1, %v5411_v36, 0.0  ;;  %v5515_v33 = vmul.f32 %v5411_v36, %v5411_v36 }
 0x26f   : > { %v6336_v41 = vpack.c.bf16 %v5411_v36, %v5411_v36  ;;  %v5557_v31 = vadd.f32 %v5556_v30, %v5555_v39  ;;  %v5456_v18 = vadd.f32 %v5455_v37, %v5454_v25  ;;  %v6339_v29 = vpack.c.bf16 %v5414_v23, %v5414_v23 }
 0x270   : > { %v6801_v32 = vpop.f32.mrb[16].mxu0  ;;  %5748 = vst.msk [vmem:[%s8985_s23 + $0x38] sm:$0xf] %vm5733_vm0, %v6338_v48  ;;  %v5558_v4 = vsel %vm5431_vm1, %v5515_v33, 0.0  ;;  %v5457_v35 = vsel %vm5431_vm1, %v5412_v27, 0.0  ;;  %v5517_v43 = vmul.f32 %v5413_v47, %v5413_v47  ;;  %v5516_v10 = vmul.f32 %v5412_v27, %v5412_v27 }
 0x271   : > { %v5304_v56 = vpop.f32.mrb[17].mxu0  ;;  %5746 = vst.msk [vmem:[%s8985_s23 + $0x30] sm:$0xf] %vm5733_vm0, %v6336_v41  ;;  %v5559_v2 = vadd.f32 %v5558_v4, %v5557_v31  ;;  %v6337_v17 = vpack.c.bf16 %v5412_v27, %v5412_v27  ;;  %5749 = vst.msk [vmem:[%s8985_s23 + $0x3c] sm:$0xf] %vm5733_vm0, %v6339_v29  ;;  %v5458_v7 = vadd.f32 %v5457_v35, %v5456_v18  ;;  %v5459_v28 = vsel %vm5431_vm1, %v5413_v47, 0.0 }
 0x272   : > { %v6802_v49 = vpop.f32.mrb[18].mxu0  ;;  %v5518_v3 = vmul.f32 %v5414_v23, %v5414_v23  ;;  %v5560_v5 = vsel %vm5431_vm1, %v5516_v10, 0.0  ;;  %v5562_v9 = vsel %vm5431_vm1, %v5517_v43, 0.0  ;;  %v5461_v55 = vsel %vm5431_vm1, %v5414_v23, 0.0 }
 0x273   : > { %v5307_v15 = vpop.f32.mrb[19].mxu0  ;;  %5747 = vst.msk [vmem:[%s8985_s23 + $0x34] sm:$0xf] %vm5733_vm0, %v6337_v17  ;;  %v5460_v26 = vadd.f32 %v5459_v28, %v5458_v7  ;;  %v5561_v58 = vadd.f32 %v5560_v5, %v5559_v2 }
 0x274   : > { %v5564_v54 = vsel %vm5431_vm1, %v5518_v3, 0.0 }
 0x275   : > { %v5563_v16 = vadd.f32 %v5562_v9, %v5561_v58  ;;  %v5462_v40 = vadd.f32 %v5461_v55, %v5460_v26 }
 0x276   : > { %v6665_v44 = vpop.f32.mrb[16].mxu1 }
 0x277   : > { %v3279_v63 = vpop.f32.mrb[17].mxu1  ;;  %v6833_v34 = vadd.f32 %v6801_v32, %v6665_v44  ;;  %v5565_v20 = vadd.f32 %v5564_v54, %v5563_v16 }
 0x278   : > { %v6666_v45 = vpop.f32.mrb[18].mxu1  ;;  %v6834_v8 = vadd.f32 %v5304_v56, %v3279_v63  ;;  %v6805_v62 = vpop.f32.mrb[20].mxu0 }
 0x279   : > { %v5417_v59 = vmax.f32 %v6833_v34, 0.0  ;;  %v3282_v0 = vpop.f32.mrb[19].mxu1  ;;  %v6835_v38 = vadd.f32 %v6802_v49, %v6666_v45  ;;  %v5320_v24 = vpop.f32.mrb[21].mxu0 }
 0x27a   : > { %v5415_v1 = vmax.f32 %v6834_v8, 0.0  ;;  %v6836_v57 = vadd.f32 %v5307_v15, %v3282_v0  ;;  %v6806_v12 = vpop.f32.mrb[22].mxu0 }
 0x27b   : > { %v6342_v60 = vpack.c.bf16 %v5417_v59, %v5417_v59  ;;  %v5418_v46 = vmax.f32 %v6835_v38, 0.0  ;;  %v5323_v6 = vpop.f32.mrb[23].mxu0  ;;  %v5521_v14 = vmul.f32 %v5417_v59, %v5417_v59  ;;  %v5467_v39 = vsel %vm5431_vm1, %v5417_v59, 0.0 }
 0x27c   : > { %v5463_v13 = vsel %vm5431_vm1, %v5415_v1, 0.0  ;;  %v5519_v51 = vmul.f32 %v5415_v1, %v5415_v1  ;;  %v6340_v50 = vpack.c.bf16 %v5415_v1, %v5415_v1  ;;  %v5416_v42 = vmax.f32 %v6836_v57, 0.0 }
 0x27d   : > { %5752 = vst.msk [vmem:[%s8985_s23 + $0x48] sm:$0xf] %vm5733_vm0, %v6342_v60  ;;  %v5464_v19 = vadd.f32 %v5463_v13, %v5462_v40  ;;  %v6343_v53 = vpack.c.bf16 %v5418_v46, %v5418_v46  ;;  %v5522_v41 = vmul.f32 %v5418_v46, %v5418_v46  ;;  %v5570_v4 = vsel %vm5431_vm1, %v5521_v14, 0.0 }
 0x27e   : > { %v5566_v22 = vsel %vm5431_vm1, %v5519_v51, 0.0  ;;  %5750 = vst.msk [vmem:[%s8985_s23 + $0x40] sm:$0xf] %vm5733_vm0, %v6340_v50  ;;  %v6669_v11 = vpop.f32.mrb[20].mxu1  ;;  %v5465_v52 = vsel %vm5431_vm1, %v5416_v42, 0.0  ;;  %v5520_v23 = vmul.f32 %v5416_v42, %v5416_v42  ;;  %v6341_v27 = vpack.c.bf16 %v5416_v42, %v5416_v42 }
 0x27f   : > { %v5567_v21 = vadd.f32 %v5566_v22, %v5565_v20  ;;  %v3295_v47 = vpop.f32.mrb[21].mxu1  ;;  %v6837_v36 = vadd.f32 %v6805_v62, %v6669_v11  ;;  %5753 = vst.msk [vmem:[%s8985_s23 + $0x4c] sm:$0xf] %vm5733_vm0, %v6343_v53  ;;  %v5466_v48 = vadd.f32 %v5465_v52, %v5464_v19  ;;  %v5469_v29 = vsel %vm5431_vm1, %v5418_v46, 0.0 }
 0x280   : > { %v6670_v61 = vpop.f32.mrb[22].mxu1  ;;  %v6838_v30 = vadd.f32 %v5320_v24, %v3295_v47  ;;  %v5568_v32 = vsel %vm5431_vm1, %v5520_v23, 0.0  ;;  %5751 = vst.msk [vmem:[%s8985_s23 + $0x44] sm:$0xf] %vm5733_vm0, %v6341_v27  ;;  %v6809_v18 = vpop.f32.mrb[24].mxu0  ;;  %v5572_v63 = vsel %vm5431_vm1, %v5522_v41, 0.0 }
 0x281   : > { %v5421_v25 = vmax.f32 %v6837_v36, 0.0  ;;  %v3298_v37 = vpop.f32.mrb[23].mxu1  ;;  %v6839_v33 = vadd.f32 %v6806_v12, %v6670_v61  ;;  %v5468_v35 = vadd.f32 %v5467_v39, %v5466_v48  ;;  %v5569_v49 = vadd.f32 %v5568_v32, %v5567_v21  ;;  %v5336_v43 = vpop.f32.mrb[25].mxu0 }
 0x282   : > { %v5419_v31 = vmax.f32 %v6838_v30, 0.0  ;;  %v6840_v56 = vadd.f32 %v5323_v6, %v3298_v37  ;;  %v6810_v7 = vpop.f32.mrb[26].mxu0 }
 0x283   : > { %v6346_v2 = vpack.c.bf16 %v5421_v25, %v5421_v25  ;;  %v5571_v44 = vadd.f32 %v5570_v4, %v5569_v49  ;;  %v5470_v28 = vadd.f32 %v5469_v29, %v5468_v35  ;;  %v5422_v3 = vmax.f32 %v6839_v33, 0.0  ;;  %v5339_v5 = vpop.f32.mrb[27].mxu0 }
 0x284   : > { %v5471_v10 = vsel %vm5431_vm1, %v5419_v31, 0.0  ;;  %v5523_v17 = vmul.f32 %v5419_v31, %v5419_v31  ;;  %v6344_v15 = vpack.c.bf16 %v5419_v31, %v5419_v31  ;;  %v5420_v26 = vmax.f32 %v6840_v56, 0.0 }
 0x285   : > { %5756 = vst.msk [vmem:[%s8985_s23 + $0x58] sm:$0xf] %vm5733_vm0, %v6346_v2  ;;  %v5475_v45 = vsel %vm5431_vm1, %v5421_v25, 0.0  ;;  %v5525_v8 = vmul.f32 %v5421_v25, %v5421_v25  ;;  %v5472_v9 = vadd.f32 %v5471_v10, %v5470_v28  ;;  %v5573_v55 = vadd.f32 %v5572_v63, %v5571_v44 }
 0x286   : > { %v5574_v34 = vsel %vm5431_vm1, %v5523_v17, 0.0  ;;  %5754 = vst.msk [vmem:[%s8985_s23 + $0x50] sm:$0xf] %vm5733_vm0, %v6344_v15  ;;  %v6673_v58 = vpop.f32.mrb[24].mxu1  ;;  %v6347_v0 = vpack.c.bf16 %v5422_v3, %v5422_v3  ;;  %v5473_v38 = vsel %vm5431_vm1, %v5420_v26, 0.0  ;;  %v5524_v16 = vmul.f32 %v5420_v26, %v5420_v26 }
 0x287   : > { %v3311_v59 = vpop.f32.mrb[25].mxu1  ;;  %v6345_v1 = vpack.c.bf16 %v5420_v26, %v5420_v26  ;;  %v5575_v57 = vadd.f32 %v5574_v34, %v5573_v55  ;;  %v5526_v62 = vmul.f32 %v5422_v3, %v5422_v3  ;;  %v5474_v54 = vadd.f32 %v5473_v38, %v5472_v9 }
 0x288   : > { %v6674_v40 = vpop.f32.mrb[26].mxu1  ;;  %v6841_v60 = vadd.f32 %v6809_v18, %v6673_v58  ;;  %5757 = vst.msk [vmem:[%s8985_s23 + $0x5c] sm:$0xf] %vm5733_vm0, %v6347_v0  ;;  %v5576_v24 = vsel %vm5431_vm1, %v5524_v16, 0.0  ;;  %v6842_v13 = vadd.f32 %v5336_v43, %v3311_v59  ;;  %v6813_v50 = vpop.f32.mrb[28].mxu0  ;;  %v5578_v53 = vsel %vm5431_vm1, %v5525_v8, 0.0 }
 0x289   : > { %v3314_v46 = vpop.f32.mrb[27].mxu1  ;;  %5755 = vst.msk [vmem:[%s8985_s23 + $0x54] sm:$0xf] %vm5733_vm0, %v6345_v1  ;;  %v6843_v51 = vadd.f32 %v6810_v7, %v6674_v40  ;;  %v5476_v12 = vadd.f32 %v5475_v45, %v5474_v54  ;;  %v5577_v19 = vadd.f32 %v5576_v24, %v5575_v57  ;;  %v5352_v22 = vpop.f32.mrb[29].mxu0  ;;  %v5477_v47 = vsel %vm5431_vm1, %v5422_v3, 0.0 }
 0x28a   : > { %v6844_v20 = vadd.f32 %v5339_v5, %v3314_v46  ;;  %v5425_v6 = vmax.f32 %v6841_v60, 0.0  ;;  %v5423_v42 = vmax.f32 %v6842_v13, 0.0  ;;  %v6814_v21 = vpop.f32.mrb[30].mxu0  ;;  %v5580_v36 = vsel %vm5431_vm1, %v5526_v62, 0.0 }
 0x28b   : > { %v5426_v11 = vmax.f32 %v6843_v51, 0.0  ;;  %v5579_v52 = vadd.f32 %v5578_v53, %v5577_v19  ;;  %v5355_v27 = vpop.f32.mrb[31].mxu0  ;;  %v5478_v61 = vadd.f32 %v5477_v47, %v5476_v12 }
 0x28c   : > { %v5424_v14 = vmax.f32 %v6844_v20, 0.0  ;;  %v6350_v23 = vpack.c.bf16 %v5425_v6, %v5425_v6  ;;  %v5479_v30 = vsel %vm5431_vm1, %v5423_v42, 0.0  ;;  %v5527_v39 = vmul.f32 %v5423_v42, %v5423_v42 }
 0x28d   : > { %v6348_v48 = vpack.c.bf16 %v5423_v42, %v5423_v42  ;;  %v5529_v37 = vmul.f32 %v5425_v6, %v5425_v6  ;;  %v5581_v33 = vadd.f32 %v5580_v36, %v5579_v52  ;;  %v5480_v32 = vadd.f32 %v5479_v30, %v5478_v61 }
 0x28e   : > { %v6677_v25 = vpop.f32.mrb[28].mxu1  ;;  %5760 = vst.msk [vmem:[%s8985_s23 + $0x68] sm:$0xf] %vm5733_vm0, %v6350_v23  ;;  %v5582_v31 = vsel %vm5431_vm1, %v5527_v39, 0.0  ;;  %v6351_v56 = vpack.c.bf16 %v5426_v11, %v5426_v11  ;;  %v5481_v18 = vsel %vm5431_vm1, %v5424_v14, 0.0  ;;  %v5530_v35 = vmul.f32 %v5426_v11, %v5426_v11 }
 0x28f   : > { %v3327_v41 = vpop.f32.mrb[29].mxu1  ;;  %5758 = vst.msk [vmem:[%s8985_s23 + $0x60] sm:$0xf] %vm5733_vm0, %v6348_v48  ;;  %v5583_v29 = vadd.f32 %v5582_v31, %v5581_v33  ;;  %v5528_v49 = vmul.f32 %v5424_v14, %v5424_v14  ;;  %v6349_v43 = vpack.c.bf16 %v5424_v14, %v5424_v14  ;;  %v5482_v10 = vadd.f32 %v5481_v18, %v5480_v32 }
 0x290   : > { %v6678_v4 = vpop.f32.mrb[30].mxu1  ;;  %5761 = vst.msk [vmem:[%s8985_s23 + $0x6c] sm:$0xf] %vm5733_vm0, %v6351_v56  ;;  %v6845_v17 = vadd.f32 %v6813_v50, %v6677_v25  ;;  %v6846_v15 = vadd.f32 %v5352_v22, %v3327_v41  ;;  %v5483_v44 = vsel %vm5431_vm1, %v5425_v6, 0.0  ;;  %v5586_v58 = vsel %vm5431_vm1, %v5529_v37, 0.0 }
 0x291   : > { %v3330_v2 = vpop.f32.mrb[31].mxu1  ;;  %v6847_v7 = vadd.f32 %v6814_v21, %v6678_v4  ;;  %v5584_v28 = vsel %vm5431_vm1, %v5528_v49, 0.0  ;;  %5759 = vst.msk [vmem:[%s8985_s23 + $0x64] sm:$0xf] %vm5733_vm0, %v6349_v43  ;;  %v5484_v5 = vadd.f32 %v5483_v44, %v5482_v10  ;;  %v5485_v9 = vsel %vm5431_vm1, %v5426_v11, 0.0 }
 0x292   : > { %v6848_v3 = vadd.f32 %v5355_v27, %v3330_v2  ;;  %v5585_v63 = vadd.f32 %v5584_v28, %v5583_v29  ;;  %v5429_v34 = vmax.f32 %v6845_v17, 0.0  ;;  %v5427_v26 = vmax.f32 %v6846_v15, 0.0 }
 0x293   : > { %v5430_v45 = vmax.f32 %v6847_v7, 0.0  ;;  %v5588_v55 = vsel %vm5431_vm1, %v5530_v35, 0.0  ;;  %v5486_v38 = vadd.f32 %v5485_v9, %v5484_v5 }
 0x294   : > { %v5428_v8 = vmax.f32 %v6848_v3, 0.0  ;;  %v5587_v59 = vadd.f32 %v5586_v58, %v5585_v63  ;;  %v6354_v0 = vpack.c.bf16 %v5429_v34, %v5429_v34  ;;  %v5487_v16 = vsel %vm5431_vm1, %v5427_v26, 0.0 }
 0x295   : > { %v5531_v1 = vmul.f32 %v5427_v26, %v5427_v26  ;;  %v6352_v40 = vpack.c.bf16 %v5427_v26, %v5427_v26  ;;  %v5488_v62 = vadd.f32 %v5487_v16, %v5486_v38  ;;  %v6355_v60 = vpack.c.bf16 %v5430_v45, %v5430_v45 }
 0x296   : > { %5764 = vst.msk [vmem:[%s8985_s23 + $0x78] sm:$0xf] %vm5733_vm0, %v6354_v0  ;;  %v5589_v57 = vadd.f32 %v5588_v55, %v5587_v59  ;;  %v5489_v46 = vsel %vm5431_vm1, %v5428_v8, 0.0  ;;  %v5533_v24 = vmul.f32 %v5429_v34, %v5429_v34  ;;  %v5532_v51 = vmul.f32 %v5428_v8, %v5428_v8 }
 0x297   : > { %v5590_v54 = vsel %vm5431_vm1, %v5531_v1, 0.0  ;;  %5762 = vst.msk [vmem:[%s8985_s23 + $0x70] sm:$0xf] %vm5733_vm0, %v6352_v40  ;;  %v6353_v20 = vpack.c.bf16 %v5428_v8, %v5428_v8  ;;  %5765 = vst.msk [vmem:[%s8985_s23 + $0x7c] sm:$0xf] %vm5733_vm0, %v6355_v60  ;;  %v5490_v50 = vadd.f32 %v5489_v46, %v5488_v62  ;;  %v5491_v12 = vsel %vm5431_vm1, %v5429_v34, 0.0 }
 0x298   : > { %v5591_v13 = vadd.f32 %v5590_v54, %v5589_v57  ;;  %v5534_v19 = vmul.f32 %v5430_v45, %v5430_v45  ;;  %v5592_v6 = vsel %vm5431_vm1, %v5532_v51, 0.0  ;;  %v5594_v42 = vsel %vm5431_vm1, %v5533_v24, 0.0 }
 0x299   : > { %5763 = vst.msk [vmem:[%s8985_s23 + $0x74] sm:$0xf] %vm5733_vm0, %v6353_v20  ;;  %v5492_v22 = vadd.f32 %v5491_v12, %v5490_v50  ;;  %v5493_v11 = vsel %vm5431_vm1, %v5430_v45, 0.0 }
 0x29a   : > { %v5593_v53 = vadd.f32 %v5592_v6, %v5591_v13  ;;  %v5596_v47 = vsel %vm5431_vm1, %v5534_v19, 0.0 }
 0x29b   : > { %v5494_v14 = vadd.f32 %v5493_v11, %v5492_v22 }
 0x29c   : > { %v5595_v21 = vadd.f32 %v5594_v42, %v5593_v53 }
 0x29d   : > { %v5495_v36 = vrot.slane %v5494_v14, 4 }
 0x29e   : > { %v5597_v52 = vadd.f32 %v5596_v47, %v5595_v21 }
 0x29f   : > { %v5496_v23 = vadd.f32 %v5495_v36, %v5494_v14 }
 0x2a0   : > { %v5598_v27 = vrot.slane %v5597_v52, 4 }
 0x2a1   : > { %v5497_v61 = vrot.slane %v5496_v23, 2 }
 0x2a2   : > { %v5599_v30 = vadd.f32 %v5598_v27, %v5597_v52 }
 0x2a3   : > { %v5498_v39 = vadd.f32 %v5497_v61, %v5496_v23 }
 0x2a4   : > { %v5600_v48 = vrot.slane %v5599_v30, 2 }
 0x2a5   : > { %v5499_v25 = vrot.slane %v5498_v39, 1 }
 0x2a6   : > { %v5601_v37 = vadd.f32 %v5600_v48, %v5599_v30 }
 0x2a7   : > { %v5500_v33 = vadd.f32 %v5499_v25, %v5498_v39 }
 0x2a8   : > { %v5602_v41 = vrot.slane %v5601_v37, 1 }
 0x2a9   : > { %5502 = vst.msk [vmem:[%s211_s26] sm:$0x1] %vm5501_vm2, %v5500_v33 }
 0x2aa   : > { %v5603_v32 = vadd.f32 %v5602_v41, %v5601_v37 }
 0x2ac   : > { %5604 = vst.msk [vmem:[%s214_s29] sm:$0x1] %vm5501_vm2, %v5603_v32 }
 0x2ad PF: > { %s15_s15 = sadd.s32 1, %s7188_s15  }
 0x2ae   : > { %p12_p4 = scmp.ge.s32.totalorder %s15_s15, 4  }
 0x2b0   :  { %14 = sbr.rel (!%p12_p4) target bundleno = 1 (0x1), region = 92 }

</bundles_post_ra>
